<compile_context>
chip_gen: v7x
topology: tpu7x:2x2x1
jax: 0.10.0
libtpu: 0.0.40
codegen_flags: <defaults>
</compile_context>

<pallas_src>
import math

import jax
import jax.numpy as jnp
from jax.experimental import pallas as pl
from jax.experimental.pallas import tpu as pltpu


# ---------------------------------------------------------------------------
# hardware / tiling helpers
# ---------------------------------------------------------------------------
def _vmem_info():
    """Return (physical VMEM bytes estimate, scoped-VMEM budget to request)."""
    phys = None
    try:
        info = pltpu.get_tpu_info()
        for attr in ("vmem_capacity_bytes", "vmem_bytes", "vmem_size_bytes"):
            v = getattr(info, attr, None)
            if v:
                phys = int(v)
                break
    except Exception:
        phys = None
    if phys is None:
        # conservative fallback: safe on every generation (incl. v7x's 64 MiB physical)
        return 64 * 1024 * 1024, 64 * 1024 * 1024
    return phys, min(int(0.80 * phys), 112 * 1024 * 1024)


def _choose_bt(B, Hn):
    """How many (n, c) images to fold into one grid step (sublane dimension)."""
    divs = [d for d in range(1, B + 1)
            if B % d == 0 and ((d * Hn) % 8 == 0 or d == B)]
    if not divs:
        return B
    fits = [d for d in divs if d * Hn <= 512]        # keep block rows in a sane range
    pref = [d for d in fits if B // d >= 2]          # keep >=2 grid groups (megacore)
    if pref:
        return max(pref)
    if fits:
        return max(fits)
    return min(divs)


def _choose_tw(W2, vmem_phys):
    """W2 frequency-tile width; lane multiple of 128, 256-aligned when possible."""
    if W2 <= 512:
        return W2
    small_vmem = vmem_phys <= 80 * 1024 * 1024        # v7x-class (64 MiB physical)
    prefs = (256, 512, 128, 384) if small_vmem else (512, 256, 128, 384)
    for t in prefs:
        if W2 % t == 0:
            return t
    for t in range(1024, 127, -128):                  # any 128-multiple divisor
        if W2 % t == 0:
            return t
    # TODO(synk): odd W2 -- pad the frequency axis to a 128 multiple instead of untiled.
    return W2


# ---------------------------------------------------------------------------
# Pallas kernel: one (batch-group g, W2-frequency-tile j) grid cell
# ---------------------------------------------------------------------------
def _make_prop_kernel(Bt, Hn, Wn, H2, tw, compute_dtype):
    cd = compute_dtype

    def dot(a, b):
        return jnp.dot(a, b, preferred_element_type=jnp.float32)

    # 3-multiplication (Karatsuba) complex matmuls.  The operator side arrives
    # pre-expanded as (real, real+imag, imag-real) planes built on the host.
    def cmul3_right(xr, xi, br, bs, bd):          # (xr + i*xi) @ B
        m1 = dot(xr + xi, br)
        m2 = dot(xi, bs)
        m3 = dot(xr, bd)
        return m1 - m2, m1 + m3                   # (real, imag), f32 accumulation

    def cmul3_left(ar, as_, ad, xr, xi):          # A @ (xr + i*xi)
        m1 = dot(ar, xr + xi)
        m2 = dot(as_, xi)
        m3 = dot(ad, xr)
        return m1 - m2, m1 + m3

    def kernel(ph_ref,                            # (Bt*Hn, Wn) f32 phase
               ayr_ref, ays_ref, ayd_ref,         # (H2, Hn)  fwd row-DFT (pad folded)
               axr_ref, axs_ref, axd_ref,         # (Wn, tw)  fwd col-DFT tile
               hr_ref, hi_ref,                    # (H2, tw)  transfer-function tile (cd)
               byr_ref, bys_ref, byd_ref,         # (Hn, H2)  inv row-DFT (crop folded)
               bxr_ref, bxs_ref, bxd_ref,         # (tw, Wn)  inv col-DFT tile
               outr_ref, outi_ref,                # (Bt*Hn, Wn) accumulated over j
               ur_sc, ui_sc):                     # (Bt*Hn, Wn) cd scratch (field)
        j = pl.program_id(1)

        # u = exp(1j*phase): EUP cos/sin + casts computed once per batch group
        # (j == 0) and reused for every W2 frequency tile.
        @pl.when(j == 0)
        def _field():
            ph = ph_ref[...]
            ur_sc[...] = jnp.cos(ph).astype(cd)
            ui_sc[...] = jnp.sin(ph).astype(cd)

        ur = ur_sc[...]
        ui = ui_sc[...]

        # forward column DFT (zero-pad folded):  P = u @ AxT[:, tile]
        pr, pi = cmul3_right(ur, ui, axr_ref[...], axs_ref[...], axd_ref[...])
        pr = pr.astype(cd)                        # (Bt*Hn, tw)
        pi = pi.astype(cd)

        ayr, ays, ayd = ayr_ref[...], ays_ref[...], ayd_ref[...]
        byr, bys, byd = byr_ref[...], bys_ref[...], byd_ref[...]
        hr, hi = hr_ref[...], hi_ref[...]

        # Per-image row-DFT pipeline: the DFT matrices stay the stationary MXU
        # operands across the (small, statically unrolled) batch loop; no
        # broadcast-materialized operator copies, and the live f32 intermediates
        # are only (H2, tw) at a time.
        vr_parts, vi_parts = [], []
        for b in range(Bt):
            sl = slice(b * Hn, (b + 1) * Hn)
            # forward row DFT:  U1 = AyC @ P[b]
            u1r, u1i = cmul3_left(ayr, ays, ayd, pr[sl, :], pi[sl, :])   # (H2, tw) f32
            # ASM / fresnel transfer function (elementwise, f32 precision)
            u2r = (u1r * hr - u1i * hi).astype(cd)
            u2i = (u1r * hi + u1i * hr).astype(cd)
            # inverse row DFT (center-crop folded):  V = ByC @ U2
            vvr, vvi = cmul3_left(byr, bys, byd, u2r, u2i)               # (Hn, tw) f32
            vr_parts.append(vvr.astype(cd))
            vi_parts.append(vvi.astype(cd))

        vr = vr_parts[0] if Bt == 1 else jnp.concatenate(vr_parts, axis=0)
        vi = vi_parts[0] if Bt == 1 else jnp.concatenate(vi_parts, axis=0)

        # inverse column DFT tile (crop folded):  partial = V @ BxT[tile, :]
        por, poi = cmul3_right(vr, vi, bxr_ref[...], bxs_ref[...], bxd_ref[...])

        # accumulate the W2-tile contributions into the resident output block
        @pl.when(j == 0)
        def _init():
            outr_ref[...] = por
            outi_ref[...] = poi

        @pl.when(j != 0)
        def _accum():
            outr_ref[...] += por
            outi_ref[...] += poi

    return kernel


class Propagation:
    """JAX/Pallas port of the ideal convolution-based ASM propagation (forward)."""

    def __init__(self, prop_dist, wavelength, feature_size, prop_type='ASM',
                 F_aperture=1.0, dim=1, linear_conv=True,
                 learned_amp=None, learned_phase=None,
                 compute_dtype=jnp.bfloat16):
        if not isinstance(prop_dist, list):
            prop_dist = [prop_dist]
        if not isinstance(wavelength, list):
            wavelength = [wavelength]
        assert len(prop_dist) == 1 and len(wavelength) == 1, \
            "single-plane / single-wavelength forward implemented"
        assert learned_amp is None and learned_phase is None, \
            "learned Fourier-plane amp/phase not implemented"
        self.prop_dist = prop_dist
        self.wvl = wavelength
        self.feature_size = feature_size
        self.prop_type = prop_type
        self.F_aperture = F_aperture
        self.dim = dim
        self.linear_conv = linear_conv
        self.bl_asm = min(prop_dist) > 0.3
        self.compute_dtype = compute_dtype
        self._cache = {}          # (N, C, H, W) -> (jitted fn, constant operand arrays)
        self._H = None

    # ----- precompute (plain JAX, built once per input shape & cached) -----
    def _compute_H(self, ny, nx):
        dy, dx = self.feature_size
        wvl = self.wvl[0]
        z = self.prop_dist[0]
        fy = jnp.linspace(-1.0 / (2 * dy), 1.0 / (2 * dy), ny)
        fx = jnp.linspace(-1.0 / (2 * dx), 1.0 / (2 * dx), nx)
        FY, FX = jnp.meshgrid(fy, fx, indexing='ij')       # (ny, nx)
        if self.prop_type.lower() == 'asm':
            G = 2 * math.pi * jnp.sqrt(1.0 / wvl ** 2 - (FX ** 2 + FY ** 2))
        else:  # fresnel
            G = math.pi * wvl * (FX ** 2 + FY ** 2)
        sq = jnp.abs(FX ** 2 + FY ** 2)
        if self.bl_asm:
            fy_max = 1.0 / math.sqrt((2 * z * (1.0 / (dy * float(ny)))) ** 2 + 1) / wvl
            fx_max = 1.0 / math.sqrt((2 * z * (1.0 / (dx * float(nx)))) ** 2 + 1) / wvl
            Hf = ((sq <= self.F_aperture ** 2 * sq.max())
                  & (jnp.abs(FX) < fx_max) & (jnp.abs(FY) < fy_max)).astype(jnp.float32)
        else:
            Hf = (sq <= self.F_aperture ** 2 * sq.max()).astype(jnp.float32)
        if z == 0.0:
            return jnp.ones((ny, nx), jnp.complex64)
        return (Hf * jnp.exp(1j * G.astype(jnp.complex64) * z)).astype(jnp.complex64)

    @staticmethod
    def _dft_mats(n):
        eye = jnp.eye(n, dtype=jnp.complex64)
        # A @ v == fftshift(fft(v, 'ortho'));  B @ v == ifft(ifftshift(v), 'ortho')
        A = jnp.fft.fftshift(jnp.fft.fft(eye, axis=0, norm='ortho'), axes=0)
        B = jnp.fft.ifft(jnp.fft.ifftshift(eye, axes=0), axis=0, norm='ortho')
        return A.astype(jnp.complex64), B.astype(jnp.complex64)

    def _kplanes(self, M):
        """Karatsuba operator planes (real, real+imag, imag-real) in compute_dtype."""
        cd = self.compute_dtype
        r, i = M.real, M.imag
        return (r.astype(cd), (r + i).astype(cd), (i - r).astype(cd))

    def _make_constants(self, Hn, Wn):
        rm = 2 if self.linear_conv else 1
        H2, W2 = rm * Hn, rm * Wn
        py, px = (H2 - Hn) // 2, (W2 - Wn) // 2     # (py=px=0 when linear_conv=False)
        Hc = self._compute_H(H2, W2)                # (H2, W2) complex64
        Ay, By = self._dft_mats(H2)
        Ax, Bx = self._dft_mats(W2)
        AyC = Ay[:, py:py + Hn]                     # (H2, Hn)  zero-pad folded
        AxT = Ax[:, px:px + Wn].T                   # (Wn, W2)
        ByC = By[py:py + Hn, :]                     # (Hn, H2)  center-crop folded
        BxT = Bx[px:px + Wn, :].T                   # (W2, Wn)
        cd = self.compute_dtype
        consts = (*self._kplanes(AyC),
                  *self._kplanes(AxT),
                  Hc.real.astype(cd), Hc.imag.astype(cd),
                  *self._kplanes(ByC),
                  *self._kplanes(BxT))
        self._H = Hc                                # cached for reference checking
        return consts

    # ----- pallas_call builder --------------------------------------------
    def _build_pallas_fn(self, N, C, Hn, Wn, single_buffer):
        B = N * C
        rm = 2 if self.linear_conv else 1
        H2, W2 = rm * Hn, rm * Wn
        Bt = _choose_bt(B, Hn)
        G = B // Bt
        vmem_phys, vmem_budget = _vmem_info()
        tw = _choose_tw(W2, vmem_phys)
        if W2 % tw != 0:
            tw = W2
        J = W2 // tw

        kernel = _make_prop_kernel(Bt, Hn, Wn, H2, tw, self.compute_dtype)

        def const_spec(shape):
            # grid-invariant operator plane: single-buffer it to halve its VMEM
            if single_buffer:
                return pl.BlockSpec(shape, lambda g, j: (0, 0),
                                    pipeline_mode=pl.Buffered(1))
            return pl.BlockSpec(shape, lambda g, j: (0, 0))

        img_spec = pl.BlockSpec((Bt * Hn, Wn), lambda g, j: (g, 0))
        colA_spec = pl.BlockSpec((Wn, tw), lambda g, j: (0, j))
        h_spec = pl.BlockSpec((H2, tw), lambda g, j: (0, j))
        colB_spec = pl.BlockSpec((tw, Wn), lambda g, j: (j, 0))
        in_specs = ([img_spec]
                    + [const_spec((H2, Hn))] * 3
                    + [colA_spec] * 3
                    + [h_spec] * 2
                    + [const_spec((Hn, H2))] * 3
                    + [colB_spec] * 3)
        out_spec = pl.BlockSpec((Bt * Hn, Wn), lambda g, j: (g, 0))

        prop_call = pl.pallas_call(
            kernel,
            out_shape=(jax.ShapeDtypeStruct((B * Hn, Wn), jnp.float32),
                       jax.ShapeDtypeStruct((B * Hn, Wn), jnp.float32)),
            grid_spec=pltpu.PrefetchScalarGridSpec(
                num_scalar_prefetch=0,
                grid=(G, J),
                in_specs=in_specs,
                out_specs=[out_spec, out_spec],
                scratch_shapes=[pltpu.VMEM((Bt * Hn, Wn), self.compute_dtype),
                                pltpu.VMEM((Bt * Hn, Wn), self.compute_dtype)]),
            compiler_params=pltpu.CompilerParams(
                dimension_semantics=("parallel", "arbitrary"),
                vmem_limit_bytes=vmem_budget),
        )

        @jax.jit
        def fn(phase, *consts):
            ph2d = phase.reshape(B * Hn, Wn)            # rows = (n, c, h), lanes = w
            outr, outi = prop_call(ph2d, *consts)
            return jax.lax.complex(outr, outi).reshape(N, C, Hn, Wn)

        return fn

    # ----- forward ----------------------------------------------------------
    def __call__(self, u_in):
        nd = u_in.ndim
        if nd == 2:
            u_in = u_in[None, None]
        elif nd == 3:
            u_in = u_in[None]
        assert u_in.ndim == 4 and u_in.dtype == jnp.float32, \
            "float32 phase input expected (field = exp(1j * phase))"
        N, C, Hn, Wn = u_in.shape

        key = (N, C, Hn, Wn)
        entry = self._cache.get(key)
        if entry is None:
            consts = self._make_constants(Hn, Wn)
            out = None
            for single in (True, False):
                try:
                    fn = self._build_pallas_fn(N, C, Hn, Wn, single_buffer=single)
                    out = jax.block_until_ready(fn(u_in, *consts))
                    self._cache[key] = (fn, consts)
                    break
                except Exception as e:                      # noqa: BLE001
                    if not single:
                        raise
                    # not silent: log why the single-buffer hint was rejected
                    print("[Propagation] single-buffer operator spec rejected "
                          f"({type(e).__name__}): {e}; retrying with default buffering")
        else:
            fn, consts = entry
            out = fn(u_in, *consts)

        if nd == 2:
            out = out[0, 0]
        elif nd == 3:
            out = out[0]
        return out


# ----- pure-JAX reference (for correctness check) ----------------------------
def _reference_prop(phase, Hc):
    N, C, Hn, Wn = phase.shape
    py, px = Hn // 2, Wn // 2
    u = jnp.exp(1j * phase.astype(jnp.complex64))
    u_pad = jnp.pad(u, ((0, 0), (0, 0), (py, Hn - py), (px, Wn - px)))
    U1 = jnp.fft.fftshift(jnp.fft.fft2(u_pad, norm='ortho'), axes=(-2, -1))
    U2 = U1 * Hc[None, None]
    uo = jnp.fft.ifft2(jnp.fft.ifftshift(U2, axes=(-2, -1)), norm='ortho')
    return uo[..., py:py + Hn, px:px + Wn]


if __name__ == "__main__":
    key = jax.random.PRNGKey(0)
    N, C, Hn, Wn = 2, 4, 16, 16
    phase = jax.random.uniform(key, (N, C, Hn, Wn), jnp.float32,
                               minval=-math.pi, maxval=math.pi)

    kwargs = dict(prop_dist=0.1, wavelength=520e-9, feature_size=(6.4e-6, 6.4e-6),
                  prop_type='ASM', F_aperture=1.0, linear_conv=True)

    # default bf16-MXU fast path (bf16 operands, f32 accumulation).  Loose tolerance:
    # bf16 + Karatsuba is a smoke check here; the f32 path below is the tight check.
    prop = Propagation(**kwargs)
    u_out = jax.block_until_ready(prop(phase))
    assert u_out.shape == (N, C, Hn, Wn) and u_out.dtype == jnp.complex64
    ref = _reference_prop(phase, prop._H)
    diff = u_out - ref
    err_max = float(jnp.max(jnp.abs(diff)))
    err_rel = float(jnp.linalg.norm(diff.ravel()) / jnp.linalg.norm(ref.ravel()))
    assert err_max < 2e-1 and err_rel < 1e-1, (err_max, err_rel)

    # float32 path through the same kernel structure (tight check)
    prop32 = Propagation(compute_dtype=jnp.float32, **kwargs)
    u32 = jax.block_until_ready(prop32(phase))
    err32 = float(jnp.max(jnp.abs(u32 - _reference_prop(phase, prop32._H))))
    assert err32 < 2e-2, err32

    print("KERNEL_OK")
</pallas_src>

<mosaic_0001>
module attributes {stable_mosaic.version = 11 : i64} {
  func.func @kernel(%arg0: i32, %arg1: i32, %arg2: memref<64x16xf32, #tpu.memory_space<vmem>>, %arg3: memref<32x16xbf16, #tpu.memory_space<vmem>>, %arg4: memref<32x16xbf16, #tpu.memory_space<vmem>>, %arg5: memref<32x16xbf16, #tpu.memory_space<vmem>>, %arg6: memref<16x32xbf16, #tpu.memory_space<vmem>>, %arg7: memref<16x32xbf16, #tpu.memory_space<vmem>>, %arg8: memref<16x32xbf16, #tpu.memory_space<vmem>>, %arg9: memref<32x32xbf16, #tpu.memory_space<vmem>>, %arg10: memref<32x32xbf16, #tpu.memory_space<vmem>>, %arg11: memref<16x32xbf16, #tpu.memory_space<vmem>>, %arg12: memref<16x32xbf16, #tpu.memory_space<vmem>>, %arg13: memref<16x32xbf16, #tpu.memory_space<vmem>>, %arg14: memref<32x16xbf16, #tpu.memory_space<vmem>>, %arg15: memref<32x16xbf16, #tpu.memory_space<vmem>>, %arg16: memref<32x16xbf16, #tpu.memory_space<vmem>>, %arg17: memref<64x16xf32, #tpu.memory_space<vmem>>, %arg18: memref<64x16xf32, #tpu.memory_space<vmem>>, %arg19: memref<64x16xbf16, #tpu.memory_space<vmem>>, %arg20: memref<64x16xbf16, #tpu.memory_space<vmem>>) attributes {dimension_semantics = [#tpu.dimension_semantics<parallel>, #tpu.dimension_semantics<arbitrary>], iteration_bounds = array<i64: 2, 1>, scalar_prefetch = 0 : i64, scratch_operands = 2 : i64, tpu.core_type = #tpu.core_type<tc>, window_params = [{transform_indices = @transform_0, window_bounds = array<i64: 64, 16>}, {pipeline_mode = #tpu.pipeline_mode<synchronous>, transform_indices = @transform_1, window_bounds = array<i64: 32, 16>}, {pipeline_mode = #tpu.pipeline_mode<synchronous>, transform_indices = @transform_2, window_bounds = array<i64: 32, 16>}, {pipeline_mode = #tpu.pipeline_mode<synchronous>, transform_indices = @transform_3, window_bounds = array<i64: 32, 16>}, {transform_indices = @transform_4, window_bounds = array<i64: 16, 32>}, {transform_indices = @transform_5, window_bounds = array<i64: 16, 32>}, {transform_indices = @transform_6, window_bounds = array<i64: 16, 32>}, {transform_indices = @transform_7, window_bounds = array<i64: 32, 32>}, {transform_indices = @transform_8, window_bounds = array<i64: 32, 32>}, {pipeline_mode = #tpu.pipeline_mode<synchronous>, transform_indices = @transform_9, window_bounds = array<i64: 16, 32>}, {pipeline_mode = #tpu.pipeline_mode<synchronous>, transform_indices = @transform_10, window_bounds = array<i64: 16, 32>}, {pipeline_mode = #tpu.pipeline_mode<synchronous>, transform_indices = @transform_11, window_bounds = array<i64: 16, 32>}, {transform_indices = @transform_12, window_bounds = array<i64: 32, 16>}, {transform_indices = @transform_13, window_bounds = array<i64: 32, 16>}, {transform_indices = @transform_14, window_bounds = array<i64: 32, 16>}, {transform_indices = @transform_15, window_bounds = array<i64: 64, 16>}, {transform_indices = @transform_16, window_bounds = array<i64: 64, 16>}]} {
    %c0_i32 = arith.constant 0 : i32
    %0 = arith.cmpi eq, %arg1, %c0_i32 : i32
    %1 = arith.extui %0 : i1 to i32
    %c0_i32_0 = arith.constant 0 : i32
    %2 = arith.cmpi ne, %1, %c0_i32_0 : i32
    scf.if %2 {
      %c0_65 = arith.constant 0 : index
      %c0_66 = arith.constant 0 : index
      %153 = vector.load %arg2[%c0_65, %c0_66] : memref<64x16xf32, #tpu.memory_space<vmem>>, vector<64x16xf32>
      %154 = math.cos %153 : vector<64x16xf32>
      %155 = arith.truncf %154 : vector<64x16xf32> to vector<64x16xbf16>
      %c0_67 = arith.constant 0 : index
      %c0_68 = arith.constant 0 : index
      %156 = vector.load %arg19[%c0_67, %c0_68] : memref<64x16xbf16, #tpu.memory_space<vmem>>, vector<64x16xbf16>
      tpu.vector_store %arg19[%c0_67, %c0_68], %155 {strides = array<i32>} : memref<64x16xbf16, #tpu.memory_space<vmem>>, vector<64x16xbf16>,
      %157 = math.sin %153 : vector<64x16xf32>
      %158 = arith.truncf %157 : vector<64x16xf32> to vector<64x16xbf16>
      %c0_69 = arith.constant 0 : index
      %c0_70 = arith.constant 0 : index
      %159 = vector.load %arg20[%c0_69, %c0_70] : memref<64x16xbf16, #tpu.memory_space<vmem>>, vector<64x16xbf16>
      tpu.vector_store %arg20[%c0_69, %c0_70], %158 {strides = array<i32>} : memref<64x16xbf16, #tpu.memory_space<vmem>>, vector<64x16xbf16>,
    } else {
    }
    %c0 = arith.constant 0 : index
    %c0_1 = arith.constant 0 : index
    %3 = vector.load %arg19[%c0, %c0_1] : memref<64x16xbf16, #tpu.memory_space<vmem>>, vector<64x16xbf16>
    %c0_2 = arith.constant 0 : index
    %c0_3 = arith.constant 0 : index
    %4 = vector.load %arg20[%c0_2, %c0_3] : memref<64x16xbf16, #tpu.memory_space<vmem>>, vector<64x16xbf16>
    %c0_4 = arith.constant 0 : index
    %c0_5 = arith.constant 0 : index
    %5 = vector.load %arg6[%c0_4, %c0_5] : memref<16x32xbf16, #tpu.memory_space<vmem>>, vector<16x32xbf16>
    %c0_6 = arith.constant 0 : index
    %c0_7 = arith.constant 0 : index
    %6 = vector.load %arg7[%c0_6, %c0_7] : memref<16x32xbf16, #tpu.memory_space<vmem>>, vector<16x32xbf16>
    %c0_8 = arith.constant 0 : index
    %c0_9 = arith.constant 0 : index
    %7 = vector.load %arg8[%c0_8, %c0_9] : memref<16x32xbf16, #tpu.memory_space<vmem>>, vector<16x32xbf16>
    %8 = arith.addf %3, %4 : vector<64x16xbf16>
    %cst = arith.constant dense<0.000000e+00> : vector<64x32xf32>
    %9 = tpu.matmul %8, %5, %cst {dimension_numbers = #tpu.dot_dimension_numbers<[1], [0], [0], [1], [0, 0, 1, 1], [], []>} : vector<64x16xbf16>, vector<16x32xbf16>, vector<64x32xf32> -> vector<64x32xf32>
    %cst_10 = arith.constant dense<0.000000e+00> : vector<64x32xf32>
    %10 = tpu.matmul %4, %6, %cst_10 {dimension_numbers = #tpu.dot_dimension_numbers<[1], [0], [0], [1], [0, 0, 1, 1], [], []>} : vector<64x16xbf16>, vector<16x32xbf16>, vector<64x32xf32> -> vector<64x32xf32>
    %cst_11 = arith.constant dense<0.000000e+00> : vector<64x32xf32>
    %11 = tpu.matmul %3, %7, %cst_11 {dimension_numbers = #tpu.dot_dimension_numbers<[1], [0], [0], [1], [0, 0, 1, 1], [], []>} : vector<64x16xbf16>, vector<16x32xbf16>, vector<64x32xf32> -> vector<64x32xf32>
    %12 = arith.subf %9, %10 : vector<64x32xf32>
    %13 = arith.addf %9, %11 : vector<64x32xf32>
    %14 = arith.truncf %12 : vector<64x32xf32> to vector<64x32xbf16>
    %15 = arith.truncf %13 : vector<64x32xf32> to vector<64x32xbf16>
    %c0_12 = arith.constant 0 : index
    %c0_13 = arith.constant 0 : index
    %16 = vector.load %arg3[%c0_12, %c0_13] : memref<32x16xbf16, #tpu.memory_space<vmem>>, vector<32x16xbf16>
    %c0_14 = arith.constant 0 : index
    %c0_15 = arith.constant 0 : index
    %17 = vector.load %arg4[%c0_14, %c0_15] : memref<32x16xbf16, #tpu.memory_space<vmem>>, vector<32x16xbf16>
    %c0_16 = arith.constant 0 : index
    %c0_17 = arith.constant 0 : index
    %18 = vector.load %arg5[%c0_16, %c0_17] : memref<32x16xbf16, #tpu.memory_space<vmem>>, vector<32x16xbf16>
    %c0_18 = arith.constant 0 : index
    %c0_19 = arith.constant 0 : index
    %19 = vector.load %arg11[%c0_18, %c0_19] : memref<16x32xbf16, #tpu.memory_space<vmem>>, vector<16x32xbf16>
    %c0_20 = arith.constant 0 : index
    %c0_21 = arith.constant 0 : index
    %20 = vector.load %arg12[%c0_20, %c0_21] : memref<16x32xbf16, #tpu.memory_space<vmem>>, vector<16x32xbf16>
    %c0_22 = arith.constant 0 : index
    %c0_23 = arith.constant 0 : index
    %21 = vector.load %arg13[%c0_22, %c0_23] : memref<16x32xbf16, #tpu.memory_space<vmem>>, vector<16x32xbf16>
    %c0_24 = arith.constant 0 : index
    %c0_25 = arith.constant 0 : index
    %22 = vector.load %arg9[%c0_24, %c0_25] : memref<32x32xbf16, #tpu.memory_space<vmem>>, vector<32x32xbf16>
    %c0_26 = arith.constant 0 : index
    %c0_27 = arith.constant 0 : index
    %23 = vector.load %arg10[%c0_26, %c0_27] : memref<32x32xbf16, #tpu.memory_space<vmem>>, vector<32x32xbf16>
    %24 = vector.extract_strided_slice %14 {offsets = [0, 0], sizes = [16, 32], strides = [1, 1]} : vector<64x32xbf16> to vector<16x32xbf16>
    %25 = vector.extract_strided_slice %15 {offsets = [0, 0], sizes = [16, 32], strides = [1, 1]} : vector<64x32xbf16> to vector<16x32xbf16>
    %26 = arith.addf %24, %25 : vector<16x32xbf16>
    %cst_28 = arith.constant dense<0.000000e+00> : vector<32x32xf32>
    %27 = tpu.matmul %16, %26, %cst_28 {dimension_numbers = #tpu.dot_dimension_numbers<[1], [0], [0], [1], [0, 0, 1, 1], [], []>} : vector<32x16xbf16>, vector<16x32xbf16>, vector<32x32xf32> -> vector<32x32xf32>
    %cst_29 = arith.constant dense<0.000000e+00> : vector<32x32xf32>
    %28 = tpu.matmul %17, %25, %cst_29 {dimension_numbers = #tpu.dot_dimension_numbers<[1], [0], [0], [1], [0, 0, 1, 1], [], []>} : vector<32x16xbf16>, vector<16x32xbf16>, vector<32x32xf32> -> vector<32x32xf32>
    %cst_30 = arith.constant dense<0.000000e+00> : vector<32x32xf32>
    %29 = tpu.matmul %18, %24, %cst_30 {dimension_numbers = #tpu.dot_dimension_numbers<[1], [0], [0], [1], [0, 0, 1, 1], [], []>} : vector<32x16xbf16>, vector<16x32xbf16>, vector<32x32xf32> -> vector<32x32xf32>
    %30 = arith.subf %27, %28 : vector<32x32xf32>
    %31 = arith.addf %27, %29 : vector<32x32xf32>
    %32 = arith.extf %22 : vector<32x32xbf16> to vector<32x32xf32>
    %33 = arith.mulf %30, %32 : vector<32x32xf32>
    %34 = arith.extf %23 : vector<32x32xbf16> to vector<32x32xf32>
    %35 = arith.mulf %31, %34 : vector<32x32xf32>
    %36 = arith.subf %33, %35 : vector<32x32xf32>
    %37 = arith.truncf %36 : vector<32x32xf32> to vector<32x32xbf16>
    %38 = arith.extf %23 : vector<32x32xbf16> to vector<32x32xf32>
    %39 = arith.mulf %30, %38 : vector<32x32xf32>
    %40 = arith.extf %22 : vector<32x32xbf16> to vector<32x32xf32>
    %41 = arith.mulf %31, %40 : vector<32x32xf32>
    %42 = arith.addf %39, %41 : vector<32x32xf32>
    %43 = arith.truncf %42 : vector<32x32xf32> to vector<32x32xbf16>
    %44 = arith.addf %37, %43 : vector<32x32xbf16>
    %cst_31 = arith.constant dense<0.000000e+00> : vector<16x32xf32>
    %45 = tpu.matmul %19, %44, %cst_31 {dimension_numbers = #tpu.dot_dimension_numbers<[1], [0], [0], [1], [0, 0, 1, 1], [], []>} : vector<16x32xbf16>, vector<32x32xbf16>, vector<16x32xf32> -> vector<16x32xf32>
    %cst_32 = arith.constant dense<0.000000e+00> : vector<16x32xf32>
    %46 = tpu.matmul %20, %43, %cst_32 {dimension_numbers = #tpu.dot_dimension_numbers<[1], [0], [0], [1], [0, 0, 1, 1], [], []>} : vector<16x32xbf16>, vector<32x32xbf16>, vector<16x32xf32> -> vector<16x32xf32>
    %cst_33 = arith.constant dense<0.000000e+00> : vector<16x32xf32>
    %47 = tpu.matmul %21, %37, %cst_33 {dimension_numbers = #tpu.dot_dimension_numbers<[1], [0], [0], [1], [0, 0, 1, 1], [], []>} : vector<16x32xbf16>, vector<32x32xbf16>, vector<16x32xf32> -> vector<16x32xf32>
    %48 = arith.subf %45, %46 : vector<16x32xf32>
    %49 = arith.addf %45, %47 : vector<16x32xf32>
    %50 = arith.truncf %48 : vector<16x32xf32> to vector<16x32xbf16>
    %51 = arith.truncf %49 : vector<16x32xf32> to vector<16x32xbf16>
    %52 = vector.extract_strided_slice %14 {offsets = [16, 0], sizes = [16, 32], strides = [1, 1]} : vector<64x32xbf16> to vector<16x32xbf16>
    %53 = vector.extract_strided_slice %15 {offsets = [16, 0], sizes = [16, 32], strides = [1, 1]} : vector<64x32xbf16> to vector<16x32xbf16>
    %54 = arith.addf %52, %53 : vector<16x32xbf16>
    %cst_34 = arith.constant dense<0.000000e+00> : vector<32x32xf32>
    %55 = tpu.matmul %16, %54, %cst_34 {dimension_numbers = #tpu.dot_dimension_numbers<[1], [0], [0], [1], [0, 0, 1, 1], [], []>} : vector<32x16xbf16>, vector<16x32xbf16>, vector<32x32xf32> -> vector<32x32xf32>
    %cst_35 = arith.constant dense<0.000000e+00> : vector<32x32xf32>
    %56 = tpu.matmul %17, %53, %cst_35 {dimension_numbers = #tpu.dot_dimension_numbers<[1], [0], [0], [1], [0, 0, 1, 1], [], []>} : vector<32x16xbf16>, vector<16x32xbf16>, vector<32x32xf32> -> vector<32x32xf32>
    %cst_36 = arith.constant dense<0.000000e+00> : vector<32x32xf32>
    %57 = tpu.matmul %18, %52, %cst_36 {dimension_numbers = #tpu.dot_dimension_numbers<[1], [0], [0], [1], [0, 0, 1, 1], [], []>} : vector<32x16xbf16>, vector<16x32xbf16>, vector<32x32xf32> -> vector<32x32xf32>
    %58 = arith.subf %55, %56 : vector<32x32xf32>
    %59 = arith.addf %55, %57 : vector<32x32xf32>
    %60 = arith.extf %22 : vector<32x32xbf16> to vector<32x32xf32>
    %61 = arith.mulf %58, %60 : vector<32x32xf32>
    %62 = arith.extf %23 : vector<32x32xbf16> to vector<32x32xf32>
    %63 = arith.mulf %59, %62 : vector<32x32xf32>
    %64 = arith.subf %61, %63 : vector<32x32xf32>
    %65 = arith.truncf %64 : vector<32x32xf32> to vector<32x32xbf16>
    %66 = arith.extf %23 : vector<32x32xbf16> to vector<32x32xf32>
    %67 = arith.mulf %58, %66 : vector<32x32xf32>
    %68 = arith.extf %22 : vector<32x32xbf16> to vector<32x32xf32>
    %69 = arith.mulf %59, %68 : vector<32x32xf32>
    %70 = arith.addf %67, %69 : vector<32x32xf32>
    %71 = arith.truncf %70 : vector<32x32xf32> to vector<32x32xbf16>
    %72 = arith.addf %65, %71 : vector<32x32xbf16>
    %cst_37 = arith.constant dense<0.000000e+00> : vector<16x32xf32>
    %73 = tpu.matmul %19, %72, %cst_37 {dimension_numbers = #tpu.dot_dimension_numbers<[1], [0], [0], [1], [0, 0, 1, 1], [], []>} : vector<16x32xbf16>, vector<32x32xbf16>, vector<16x32xf32> -> vector<16x32xf32>
    %cst_38 = arith.constant dense<0.000000e+00> : vector<16x32xf32>
    %74 = tpu.matmul %20, %71, %cst_38 {dimension_numbers = #tpu.dot_dimension_numbers<[1], [0], [0], [1], [0, 0, 1, 1], [], []>} : vector<16x32xbf16>, vector<32x32xbf16>, vector<16x32xf32> -> vector<16x32xf32>
    %cst_39 = arith.constant dense<0.000000e+00> : vector<16x32xf32>
    %75 = tpu.matmul %21, %65, %cst_39 {dimension_numbers = #tpu.dot_dimension_numbers<[1], [0], [0], [1], [0, 0, 1, 1], [], []>} : vector<16x32xbf16>, vector<32x32xbf16>, vector<16x32xf32> -> vector<16x32xf32>
    %76 = arith.subf %73, %74 : vector<16x32xf32>
    %77 = arith.addf %73, %75 : vector<16x32xf32>
    %78 = arith.truncf %76 : vector<16x32xf32> to vector<16x32xbf16>
    %79 = arith.truncf %77 : vector<16x32xf32> to vector<16x32xbf16>
    %80 = vector.extract_strided_slice %14 {offsets = [32, 0], sizes = [16, 32], strides = [1, 1]} : vector<64x32xbf16> to vector<16x32xbf16>
    %81 = vector.extract_strided_slice %15 {offsets = [32, 0], sizes = [16, 32], strides = [1, 1]} : vector<64x32xbf16> to vector<16x32xbf16>
    %82 = arith.addf %80, %81 : vector<16x32xbf16>
    %cst_40 = arith.constant dense<0.000000e+00> : vector<32x32xf32>
    %83 = tpu.matmul %16, %82, %cst_40 {dimension_numbers = #tpu.dot_dimension_numbers<[1], [0], [0], [1], [0, 0, 1, 1], [], []>} : vector<32x16xbf16>, vector<16x32xbf16>, vector<32x32xf32> -> vector<32x32xf32>
    %cst_41 = arith.constant dense<0.000000e+00> : vector<32x32xf32>
    %84 = tpu.matmul %17, %81, %cst_41 {dimension_numbers = #tpu.dot_dimension_numbers<[1], [0], [0], [1], [0, 0, 1, 1], [], []>} : vector<32x16xbf16>, vector<16x32xbf16>, vector<32x32xf32> -> vector<32x32xf32>
    %cst_42 = arith.constant dense<0.000000e+00> : vector<32x32xf32>
    %85 = tpu.matmul %18, %80, %cst_42 {dimension_numbers = #tpu.dot_dimension_numbers<[1], [0], [0], [1], [0, 0, 1, 1], [], []>} : vector<32x16xbf16>, vector<16x32xbf16>, vector<32x32xf32> -> vector<32x32xf32>
    %86 = arith.subf %83, %84 : vector<32x32xf32>
    %87 = arith.addf %83, %85 : vector<32x32xf32>
    %88 = arith.extf %22 : vector<32x32xbf16> to vector<32x32xf32>
    %89 = arith.mulf %86, %88 : vector<32x32xf32>
    %90 = arith.extf %23 : vector<32x32xbf16> to vector<32x32xf32>
    %91 = arith.mulf %87, %90 : vector<32x32xf32>
    %92 = arith.subf %89, %91 : vector<32x32xf32>
    %93 = arith.truncf %92 : vector<32x32xf32> to vector<32x32xbf16>
    %94 = arith.extf %23 : vector<32x32xbf16> to vector<32x32xf32>
    %95 = arith.mulf %86, %94 : vector<32x32xf32>
    %96 = arith.extf %22 : vector<32x32xbf16> to vector<32x32xf32>
    %97 = arith.mulf %87, %96 : vector<32x32xf32>
    %98 = arith.addf %95, %97 : vector<32x32xf32>
    %99 = arith.truncf %98 : vector<32x32xf32> to vector<32x32xbf16>
    %100 = arith.addf %93, %99 : vector<32x32xbf16>
    %cst_43 = arith.constant dense<0.000000e+00> : vector<16x32xf32>
    %101 = tpu.matmul %19, %100, %cst_43 {dimension_numbers = #tpu.dot_dimension_numbers<[1], [0], [0], [1], [0, 0, 1, 1], [], []>} : vector<16x32xbf16>, vector<32x32xbf16>, vector<16x32xf32> -> vector<16x32xf32>
    %cst_44 = arith.constant dense<0.000000e+00> : vector<16x32xf32>
    %102 = tpu.matmul %20, %99, %cst_44 {dimension_numbers = #tpu.dot_dimension_numbers<[1], [0], [0], [1], [0, 0, 1, 1], [], []>} : vector<16x32xbf16>, vector<32x32xbf16>, vector<16x32xf32> -> vector<16x32xf32>
    %cst_45 = arith.constant dense<0.000000e+00> : vector<16x32xf32>
    %103 = tpu.matmul %21, %93, %cst_45 {dimension_numbers = #tpu.dot_dimension_numbers<[1], [0], [0], [1], [0, 0, 1, 1], [], []>} : vector<16x32xbf16>, vector<32x32xbf16>, vector<16x32xf32> -> vector<16x32xf32>
    %104 = arith.subf %101, %102 : vector<16x32xf32>
    %105 = arith.addf %101, %103 : vector<16x32xf32>
    %106 = arith.truncf %104 : vector<16x32xf32> to vector<16x32xbf16>
    %107 = arith.truncf %105 : vector<16x32xf32> to vector<16x32xbf16>
    %108 = vector.extract_strided_slice %14 {offsets = [48, 0], sizes = [16, 32], strides = [1, 1]} : vector<64x32xbf16> to vector<16x32xbf16>
    %109 = vector.extract_strided_slice %15 {offsets = [48, 0], sizes = [16, 32], strides = [1, 1]} : vector<64x32xbf16> to vector<16x32xbf16>
    %110 = arith.addf %108, %109 : vector<16x32xbf16>
    %cst_46 = arith.constant dense<0.000000e+00> : vector<32x32xf32>
    %111 = tpu.matmul %16, %110, %cst_46 {dimension_numbers = #tpu.dot_dimension_numbers<[1], [0], [0], [1], [0, 0, 1, 1], [], []>} : vector<32x16xbf16>, vector<16x32xbf16>, vector<32x32xf32> -> vector<32x32xf32>
    %cst_47 = arith.constant dense<0.000000e+00> : vector<32x32xf32>
    %112 = tpu.matmul %17, %109, %cst_47 {dimension_numbers = #tpu.dot_dimension_numbers<[1], [0], [0], [1], [0, 0, 1, 1], [], []>} : vector<32x16xbf16>, vector<16x32xbf16>, vector<32x32xf32> -> vector<32x32xf32>
    %cst_48 = arith.constant dense<0.000000e+00> : vector<32x32xf32>
    %113 = tpu.matmul %18, %108, %cst_48 {dimension_numbers = #tpu.dot_dimension_numbers<[1], [0], [0], [1], [0, 0, 1, 1], [], []>} : vector<32x16xbf16>, vector<16x32xbf16>, vector<32x32xf32> -> vector<32x32xf32>
    %114 = arith.subf %111, %112 : vector<32x32xf32>
    %115 = arith.addf %111, %113 : vector<32x32xf32>
    %116 = arith.extf %22 : vector<32x32xbf16> to vector<32x32xf32>
    %117 = arith.mulf %114, %116 : vector<32x32xf32>
    %118 = arith.extf %23 : vector<32x32xbf16> to vector<32x32xf32>
    %119 = arith.mulf %115, %118 : vector<32x32xf32>
    %120 = arith.subf %117, %119 : vector<32x32xf32>
    %121 = arith.truncf %120 : vector<32x32xf32> to vector<32x32xbf16>
    %122 = arith.extf %23 : vector<32x32xbf16> to vector<32x32xf32>
    %123 = arith.mulf %114, %122 : vector<32x32xf32>
    %124 = arith.extf %22 : vector<32x32xbf16> to vector<32x32xf32>
    %125 = arith.mulf %115, %124 : vector<32x32xf32>
    %126 = arith.addf %123, %125 : vector<32x32xf32>
    %127 = arith.truncf %126 : vector<32x32xf32> to vector<32x32xbf16>
    %128 = arith.addf %121, %127 : vector<32x32xbf16>
    %cst_49 = arith.constant dense<0.000000e+00> : vector<16x32xf32>
    %129 = tpu.matmul %19, %128, %cst_49 {dimension_numbers = #tpu.dot_dimension_numbers<[1], [0], [0], [1], [0, 0, 1, 1], [], []>} : vector<16x32xbf16>, vector<32x32xbf16>, vector<16x32xf32> -> vector<16x32xf32>
    %cst_50 = arith.constant dense<0.000000e+00> : vector<16x32xf32>
    %130 = tpu.matmul %20, %127, %cst_50 {dimension_numbers = #tpu.dot_dimension_numbers<[1], [0], [0], [1], [0, 0, 1, 1], [], []>} : vector<16x32xbf16>, vector<32x32xbf16>, vector<16x32xf32> -> vector<16x32xf32>
    %cst_51 = arith.constant dense<0.000000e+00> : vector<16x32xf32>
    %131 = tpu.matmul %21, %121, %cst_51 {dimension_numbers = #tpu.dot_dimension_numbers<[1], [0], [0], [1], [0, 0, 1, 1], [], []>} : vector<16x32xbf16>, vector<32x32xbf16>, vector<16x32xf32> -> vector<16x32xf32>
    %132 = arith.subf %129, %130 : vector<16x32xf32>
    %133 = arith.addf %129, %131 : vector<16x32xf32>
    %134 = arith.truncf %132 : vector<16x32xf32> to vector<16x32xbf16>
    %135 = arith.truncf %133 : vector<16x32xf32> to vector<16x32xbf16>
    %136 = tpu.concatenate %50, %78, %106, %134 in 0 : vector<16x32xbf16>, vector<16x32xbf16>, vector<16x32xbf16>, vector<16x32xbf16> -> vector<64x32xbf16>
    %137 = tpu.concatenate %51, %79, %107, %135 in 0 : vector<16x32xbf16>, vector<16x32xbf16>, vector<16x32xbf16>, vector<16x32xbf16> -> vector<64x32xbf16>
    %c0_52 = arith.constant 0 : index
    %c0_53 = arith.constant 0 : index
    %138 = vector.load %arg14[%c0_52, %c0_53] : memref<32x16xbf16, #tpu.memory_space<vmem>>, vector<32x16xbf16>
    %c0_54 = arith.constant 0 : index
    %c0_55 = arith.constant 0 : index
    %139 = vector.load %arg15[%c0_54, %c0_55] : memref<32x16xbf16, #tpu.memory_space<vmem>>, vector<32x16xbf16>
    %c0_56 = arith.constant 0 : index
    %c0_57 = arith.constant 0 : index
    %140 = vector.load %arg16[%c0_56, %c0_57] : memref<32x16xbf16, #tpu.memory_space<vmem>>, vector<32x16xbf16>
    %141 = arith.addf %136, %137 : vector<64x32xbf16>
    %cst_58 = arith.constant dense<0.000000e+00> : vector<64x16xf32>
    %142 = tpu.matmul %141, %138, %cst_58 {dimension_numbers = #tpu.dot_dimension_numbers<[1], [0], [0], [1], [0, 0, 1, 1], [], []>} : vector<64x32xbf16>, vector<32x16xbf16>, vector<64x16xf32> -> vector<64x16xf32>
    %cst_59 = arith.constant dense<0.000000e+00> : vector<64x16xf32>
    %143 = tpu.matmul %137, %139, %cst_59 {dimension_numbers = #tpu.dot_dimension_numbers<[1], [0], [0], [1], [0, 0, 1, 1], [], []>} : vector<64x32xbf16>, vector<32x16xbf16>, vector<64x16xf32> -> vector<64x16xf32>
    %cst_60 = arith.constant dense<0.000000e+00> : vector<64x16xf32>
    %144 = tpu.matmul %136, %140, %cst_60 {dimension_numbers = #tpu.dot_dimension_numbers<[1], [0], [0], [1], [0, 0, 1, 1], [], []>} : vector<64x32xbf16>, vector<32x16xbf16>, vector<64x16xf32> -> vector<64x16xf32>
    %145 = arith.subf %142, %143 : vector<64x16xf32>
    %146 = arith.addf %142, %144 : vector<64x16xf32>
    %c0_i32_61 = arith.constant 0 : i32
    %147 = arith.cmpi eq, %arg1, %c0_i32_61 : i32
    %148 = arith.extui %147 : i1 to i32
    %c0_i32_62 = arith.constant 0 : i32
    %149 = arith.cmpi ne, %148, %c0_i32_62 : i32
    scf.if %149 {
      %c0_65 = arith.constant 0 : index
      %c0_66 = arith.constant 0 : index
      %153 = vector.load %arg17[%c0_65, %c0_66] : memref<64x16xf32, #tpu.memory_space<vmem>>, vector<64x16xf32>
      tpu.vector_store %arg17[%c0_65, %c0_66], %145 {strides = array<i32>} : memref<64x16xf32, #tpu.memory_space<vmem>>, vector<64x16xf32>,
      %c0_67 = arith.constant 0 : index
      %c0_68 = arith.constant 0 : index
      %154 = vector.load %arg18[%c0_67, %c0_68] : memref<64x16xf32, #tpu.memory_space<vmem>>, vector<64x16xf32>
      tpu.vector_store %arg18[%c0_67, %c0_68], %146 {strides = array<i32>} : memref<64x16xf32, #tpu.memory_space<vmem>>, vector<64x16xf32>,
    } else {
    }
    %c0_i32_63 = arith.constant 0 : i32
    %150 = arith.cmpi ne, %arg1, %c0_i32_63 : i32
    %151 = arith.extui %150 : i1 to i32
    %c0_i32_64 = arith.constant 0 : i32
    %152 = arith.cmpi ne, %151, %c0_i32_64 : i32
    scf.if %152 {
      %c0_65 = arith.constant 0 : index
      %c0_66 = arith.constant 0 : index
      %153 = vector.load %arg17[%c0_65, %c0_66] : memref<64x16xf32, #tpu.memory_space<vmem>>, vector<64x16xf32>
      %154 = arith.addf %153, %145 : vector<64x16xf32>
      %c0_67 = arith.constant 0 : index
      %c0_68 = arith.constant 0 : index
      %155 = vector.load %arg17[%c0_67, %c0_68] : memref<64x16xf32, #tpu.memory_space<vmem>>, vector<64x16xf32>
      tpu.vector_store %arg17[%c0_67, %c0_68], %154 {strides = array<i32>} : memref<64x16xf32, #tpu.memory_space<vmem>>, vector<64x16xf32>,
      %c0_69 = arith.constant 0 : index
      %c0_70 = arith.constant 0 : index
      %156 = vector.load %arg18[%c0_69, %c0_70] : memref<64x16xf32, #tpu.memory_space<vmem>>, vector<64x16xf32>
      %157 = arith.addf %156, %146 : vector<64x16xf32>
      %c0_71 = arith.constant 0 : index
      %c0_72 = arith.constant 0 : index
      %158 = vector.load %arg18[%c0_71, %c0_72] : memref<64x16xf32, #tpu.memory_space<vmem>>, vector<64x16xf32>
      tpu.vector_store %arg18[%c0_71, %c0_72], %157 {strides = array<i32>} : memref<64x16xf32, #tpu.memory_space<vmem>>, vector<64x16xf32>,
    } else {
    }
    return
  }
  func.func @transform_0(%arg0: i32, %arg1: i32) -> (i32, i32) {
    %c0_i32 = arith.constant 0 : i32
    %c0_i32_0 = arith.constant 0 : i32
    return %arg0, %c0_i32 : i32, i32
  }
  func.func @transform_1(%arg0: i32, %arg1: i32) -> (i32, i32) {
    %c0_i32 = arith.constant 0 : i32
    %c0_i32_0 = arith.constant 0 : i32
    %c0_i32_1 = arith.constant 0 : i32
    return %c0_i32, %c0_i32_0 : i32, i32
  }
  func.func @transform_2(%arg0: i32, %arg1: i32) -> (i32, i32) {
    %c0_i32 = arith.constant 0 : i32
    %c0_i32_0 = arith.constant 0 : i32
    %c0_i32_1 = arith.constant 0 : i32
    return %c0_i32, %c0_i32_0 : i32, i32
  }
  func.func @transform_3(%arg0: i32, %arg1: i32) -> (i32, i32) {
    %c0_i32 = arith.constant 0 : i32
    %c0_i32_0 = arith.constant 0 : i32
    %c0_i32_1 = arith.constant 0 : i32
    return %c0_i32, %c0_i32_0 : i32, i32
  }
  func.func @transform_4(%arg0: i32, %arg1: i32) -> (i32, i32) {
    %c0_i32 = arith.constant 0 : i32
    %c0_i32_0 = arith.constant 0 : i32
    return %c0_i32, %arg1 : i32, i32
  }
  func.func @transform_5(%arg0: i32, %arg1: i32) -> (i32, i32) {
    %c0_i32 = arith.constant 0 : i32
    %c0_i32_0 = arith.constant 0 : i32
    return %c0_i32, %arg1 : i32, i32
  }
  func.func @transform_6(%arg0: i32, %arg1: i32) -> (i32, i32) {
    %c0_i32 = arith.constant 0 : i32
    %c0_i32_0 = arith.constant 0 : i32
    return %c0_i32, %arg1 : i32, i32
  }
  func.func @transform_7(%arg0: i32, %arg1: i32) -> (i32, i32) {
    %c0_i32 = arith.constant 0 : i32
    %c0_i32_0 = arith.constant 0 : i32
    return %c0_i32, %arg1 : i32, i32
  }
  func.func @transform_8(%arg0: i32, %arg1: i32) -> (i32, i32) {
    %c0_i32 = arith.constant 0 : i32
    %c0_i32_0 = arith.constant 0 : i32
    return %c0_i32, %arg1 : i32, i32
  }
  func.func @transform_9(%arg0: i32, %arg1: i32) -> (i32, i32) {
    %c0_i32 = arith.constant 0 : i32
    %c0_i32_0 = arith.constant 0 : i32
    %c0_i32_1 = arith.constant 0 : i32
    return %c0_i32, %c0_i32_0 : i32, i32
  }
  func.func @transform_10(%arg0: i32, %arg1: i32) -> (i32, i32) {
    %c0_i32 = arith.constant 0 : i32
    %c0_i32_0 = arith.constant 0 : i32
    %c0_i32_1 = arith.constant 0 : i32
    return %c0_i32, %c0_i32_0 : i32, i32
  }
  func.func @transform_11(%arg0: i32, %arg1: i32) -> (i32, i32) {
    %c0_i32 = arith.constant 0 : i32
    %c0_i32_0 = arith.constant 0 : i32
    %c0_i32_1 = arith.constant 0 : i32
    return %c0_i32, %c0_i32_0 : i32, i32
  }
  func.func @transform_12(%arg0: i32, %arg1: i32) -> (i32, i32) {
    %c0_i32 = arith.constant 0 : i32
    %c0_i32_0 = arith.constant 0 : i32
    return %arg1, %c0_i32 : i32, i32
  }
  func.func @transform_13(%arg0: i32, %arg1: i32) -> (i32, i32) {
    %c0_i32 = arith.constant 0 : i32
    %c0_i32_0 = arith.constant 0 : i32
    return %arg1, %c0_i32 : i32, i32
  }
  func.func @transform_14(%arg0: i32, %arg1: i32) -> (i32, i32) {
    %c0_i32 = arith.constant 0 : i32
    %c0_i32_0 = arith.constant 0 : i32
    return %arg1, %c0_i32 : i32, i32
  }
  func.func @transform_15(%arg0: i32, %arg1: i32) -> (i32, i32) {
    %c0_i32 = arith.constant 0 : i32
    %c0_i32_0 = arith.constant 0 : i32
    return %arg0, %c0_i32 : i32, i32
  }
  func.func @transform_16(%arg0: i32, %arg1: i32) -> (i32, i32) {
    %c0_i32 = arith.constant 0 : i32
    %c0_i32_0 = arith.constant 0 : i32
    return %arg0, %c0_i32 : i32, i32
  }
}

module attributes {stable_mosaic.version = 11 : i64} {
  func.func @kernel(%arg0: i32, %arg1: i32, %arg2: memref<64x16xf32, #tpu.memory_space<vmem>>, %arg3: memref<32x16xbf16, #tpu.memory_space<vmem>>, %arg4: memref<32x16xbf16, #tpu.memory_space<vmem>>, %arg5: memref<32x16xbf16, #tpu.memory_space<vmem>>, %arg6: memref<16x32xbf16, #tpu.memory_space<vmem>>, %arg7: memref<16x32xbf16, #tpu.memory_space<vmem>>, %arg8: memref<16x32xbf16, #tpu.memory_space<vmem>>, %arg9: memref<32x32xbf16, #tpu.memory_space<vmem>>, %arg10: memref<32x32xbf16, #tpu.memory_space<vmem>>, %arg11: memref<16x32xbf16, #tpu.memory_space<vmem>>, %arg12: memref<16x32xbf16, #tpu.memory_space<vmem>>, %arg13: memref<16x32xbf16, #tpu.memory_space<vmem>>, %arg14: memref<32x16xbf16, #tpu.memory_space<vmem>>, %arg15: memref<32x16xbf16, #tpu.memory_space<vmem>>, %arg16: memref<32x16xbf16, #tpu.memory_space<vmem>>, %arg17: memref<64x16xf32, #tpu.memory_space<vmem>>, %arg18: memref<64x16xf32, #tpu.memory_space<vmem>>, %arg19: memref<64x16xbf16, #tpu.memory_space<vmem>>, %arg20: memref<64x16xbf16, #tpu.memory_space<vmem>>) attributes {dimension_semantics = [#tpu.dimension_semantics<parallel>, #tpu.dimension_semantics<arbitrary>], iteration_bounds = array<i64: 2, 1>, scalar_prefetch = 0 : i64, scratch_operands = 2 : i64, tpu.core_type = #tpu.core_type<tc>, window_params = [{transform_indices = @transform_0, window_bounds = array<i64: 64, 16>}, {pipeline_mode = #tpu.pipeline_mode<synchronous>, transform_indices = @transform_1, window_bounds = array<i64: 32, 16>}, {pipeline_mode = #tpu.pipeline_mode<synchronous>, transform_indices = @transform_2, window_bounds = array<i64: 32, 16>}, {pipeline_mode = #tpu.pipeline_mode<synchronous>, transform_indices = @transform_3, window_bounds = array<i64: 32, 16>}, {transform_indices = @transform_4, window_bounds = array<i64: 16, 32>}, {transform_indices = @transform_5, window_bounds = array<i64: 16, 32>}, {transform_indices = @transform_6, window_bounds = array<i64: 16, 32>}, {transform_indices = @transform_7, window_bounds = array<i64: 32, 32>}, {transform_indices = @transform_8, window_bounds = array<i64: 32, 32>}, {pipeline_mode = #tpu.pipeline_mode<synchronous>, transform_indices = @transform_9, window_bounds = array<i64: 16, 32>}, {pipeline_mode = #tpu.pipeline_mode<synchronous>, transform_indices = @transform_10, window_bounds = array<i64: 16, 32>}, {pipeline_mode = #tpu.pipeline_mode<synchronous>, transform_indices = @transform_11, window_bounds = array<i64: 16, 32>}, {transform_indices = @transform_12, window_bounds = array<i64: 32, 16>}, {transform_indices = @transform_13, window_bounds = array<i64: 32, 16>}, {transform_indices = @transform_14, window_bounds = array<i64: 32, 16>}, {transform_indices = @transform_15, window_bounds = array<i64: 64, 16>}, {transform_indices = @transform_16, window_bounds = array<i64: 64, 16>}]} {
    %c0_i32 = arith.constant 0 : i32
    %0 = arith.cmpi eq, %arg1, %c0_i32 : i32
    %1 = arith.extui %0 : i1 to i32
    %c0_i32_0 = arith.constant 0 : i32
    %2 = arith.cmpi ne, %1, %c0_i32_0 : i32
    scf.if %2 {
      %c0_65 = arith.constant 0 : index
      %c0_66 = arith.constant 0 : index
      %153 = vector.load %arg2[%c0_65, %c0_66] : memref<64x16xf32, #tpu.memory_space<vmem>>, vector<64x16xf32>
      %154 = math.cos %153 : vector<64x16xf32>
      %155 = arith.truncf %154 : vector<64x16xf32> to vector<64x16xbf16>
      %c0_67 = arith.constant 0 : index
      %c0_68 = arith.constant 0 : index
      %156 = vector.load %arg19[%c0_67, %c0_68] : memref<64x16xbf16, #tpu.memory_space<vmem>>, vector<64x16xbf16>
      tpu.vector_store %arg19[%c0_67, %c0_68], %155 {strides = array<i32>} : memref<64x16xbf16, #tpu.memory_space<vmem>>, vector<64x16xbf16>,
      %157 = math.sin %153 : vector<64x16xf32>
      %158 = arith.truncf %157 : vector<64x16xf32> to vector<64x16xbf16>
      %c0_69 = arith.constant 0 : index
      %c0_70 = arith.constant 0 : index
      %159 = vector.load %arg20[%c0_69, %c0_70] : memref<64x16xbf16, #tpu.memory_space<vmem>>, vector<64x16xbf16>
      tpu.vector_store %arg20[%c0_69, %c0_70], %158 {strides = array<i32>} : memref<64x16xbf16, #tpu.memory_space<vmem>>, vector<64x16xbf16>,
    } else {
    }
    %c0 = arith.constant 0 : index
    %c0_1 = arith.constant 0 : index
    %3 = vector.load %arg19[%c0, %c0_1] : memref<64x16xbf16, #tpu.memory_space<vmem>>, vector<64x16xbf16>
    %c0_2 = arith.constant 0 : index
    %c0_3 = arith.constant 0 : index
    %4 = vector.load %arg20[%c0_2, %c0_3] : memref<64x16xbf16, #tpu.memory_space<vmem>>, vector<64x16xbf16>
    %c0_4 = arith.constant 0 : index
    %c0_5 = arith.constant 0 : index
    %5 = vector.load %arg6[%c0_4, %c0_5] : memref<16x32xbf16, #tpu.memory_space<vmem>>, vector<16x32xbf16>
    %c0_6 = arith.constant 0 : index
    %c0_7 = arith.constant 0 : index
    %6 = vector.load %arg7[%c0_6, %c0_7] : memref<16x32xbf16, #tpu.memory_space<vmem>>, vector<16x32xbf16>
    %c0_8 = arith.constant 0 : index
    %c0_9 = arith.constant 0 : index
    %7 = vector.load %arg8[%c0_8, %c0_9] : memref<16x32xbf16, #tpu.memory_space<vmem>>, vector<16x32xbf16>
    %8 = arith.addf %3, %4 : vector<64x16xbf16>
    %cst = arith.constant dense<0.000000e+00> : vector<64x32xf32>
    %9 = tpu.matmul %8, %5, %cst {dimension_numbers = #tpu.dot_dimension_numbers<[1], [0], [0], [1], [0, 0, 1, 1], [], []>} : vector<64x16xbf16>, vector<16x32xbf16>, vector<64x32xf32> -> vector<64x32xf32>
    %cst_10 = arith.constant dense<0.000000e+00> : vector<64x32xf32>
    %10 = tpu.matmul %4, %6, %cst_10 {dimension_numbers = #tpu.dot_dimension_numbers<[1], [0], [0], [1], [0, 0, 1, 1], [], []>} : vector<64x16xbf16>, vector<16x32xbf16>, vector<64x32xf32> -> vector<64x32xf32>
    %cst_11 = arith.constant dense<0.000000e+00> : vector<64x32xf32>
    %11 = tpu.matmul %3, %7, %cst_11 {dimension_numbers = #tpu.dot_dimension_numbers<[1], [0], [0], [1], [0, 0, 1, 1], [], []>} : vector<64x16xbf16>, vector<16x32xbf16>, vector<64x32xf32> -> vector<64x32xf32>
    %12 = arith.subf %9, %10 : vector<64x32xf32>
    %13 = arith.addf %9, %11 : vector<64x32xf32>
    %14 = arith.truncf %12 : vector<64x32xf32> to vector<64x32xbf16>
    %15 = arith.truncf %13 : vector<64x32xf32> to vector<64x32xbf16>
    %c0_12 = arith.constant 0 : index
    %c0_13 = arith.constant 0 : index
    %16 = vector.load %arg3[%c0_12, %c0_13] : memref<32x16xbf16, #tpu.memory_space<vmem>>, vector<32x16xbf16>
    %c0_14 = arith.constant 0 : index
    %c0_15 = arith.constant 0 : index
    %17 = vector.load %arg4[%c0_14, %c0_15] : memref<32x16xbf16, #tpu.memory_space<vmem>>, vector<32x16xbf16>
    %c0_16 = arith.constant 0 : index
    %c0_17 = arith.constant 0 : index
    %18 = vector.load %arg5[%c0_16, %c0_17] : memref<32x16xbf16, #tpu.memory_space<vmem>>, vector<32x16xbf16>
    %c0_18 = arith.constant 0 : index
    %c0_19 = arith.constant 0 : index
    %19 = vector.load %arg11[%c0_18, %c0_19] : memref<16x32xbf16, #tpu.memory_space<vmem>>, vector<16x32xbf16>
    %c0_20 = arith.constant 0 : index
    %c0_21 = arith.constant 0 : index
    %20 = vector.load %arg12[%c0_20, %c0_21] : memref<16x32xbf16, #tpu.memory_space<vmem>>, vector<16x32xbf16>
    %c0_22 = arith.constant 0 : index
    %c0_23 = arith.constant 0 : index
    %21 = vector.load %arg13[%c0_22, %c0_23] : memref<16x32xbf16, #tpu.memory_space<vmem>>, vector<16x32xbf16>
    %c0_24 = arith.constant 0 : index
    %c0_25 = arith.constant 0 : index
    %22 = vector.load %arg9[%c0_24, %c0_25] : memref<32x32xbf16, #tpu.memory_space<vmem>>, vector<32x32xbf16>
    %c0_26 = arith.constant 0 : index
    %c0_27 = arith.constant 0 : index
    %23 = vector.load %arg10[%c0_26, %c0_27] : memref<32x32xbf16, #tpu.memory_space<vmem>>, vector<32x32xbf16>
    %24 = vector.extract_strided_slice %14 {offsets = [0, 0], sizes = [16, 32], strides = [1, 1]} : vector<64x32xbf16> to vector<16x32xbf16>
    %25 = vector.extract_strided_slice %15 {offsets = [0, 0], sizes = [16, 32], strides = [1, 1]} : vector<64x32xbf16> to vector<16x32xbf16>
    %26 = arith.addf %24, %25 : vector<16x32xbf16>
    %cst_28 = arith.constant dense<0.000000e+00> : vector<32x32xf32>
    %27 = tpu.matmul %16, %26, %cst_28 {dimension_numbers = #tpu.dot_dimension_numbers<[1], [0], [0], [1], [0, 0, 1, 1], [], []>} : vector<32x16xbf16>, vector<16x32xbf16>, vector<32x32xf32> -> vector<32x32xf32>
    %cst_29 = arith.constant dense<0.000000e+00> : vector<32x32xf32>
    %28 = tpu.matmul %17, %25, %cst_29 {dimension_numbers = #tpu.dot_dimension_numbers<[1], [0], [0], [1], [0, 0, 1, 1], [], []>} : vector<32x16xbf16>, vector<16x32xbf16>, vector<32x32xf32> -> vector<32x32xf32>
    %cst_30 = arith.constant dense<0.000000e+00> : vector<32x32xf32>
    %29 = tpu.matmul %18, %24, %cst_30 {dimension_numbers = #tpu.dot_dimension_numbers<[1], [0], [0], [1], [0, 0, 1, 1], [], []>} : vector<32x16xbf16>, vector<16x32xbf16>, vector<32x32xf32> -> vector<32x32xf32>
    %30 = arith.subf %27, %28 : vector<32x32xf32>
    %31 = arith.addf %27, %29 : vector<32x32xf32>
    %32 = arith.extf %22 : vector<32x32xbf16> to vector<32x32xf32>
    %33 = arith.mulf %30, %32 : vector<32x32xf32>
    %34 = arith.extf %23 : vector<32x32xbf16> to vector<32x32xf32>
    %35 = arith.mulf %31, %34 : vector<32x32xf32>
    %36 = arith.subf %33, %35 : vector<32x32xf32>
    %37 = arith.truncf %36 : vector<32x32xf32> to vector<32x32xbf16>
    %38 = arith.extf %23 : vector<32x32xbf16> to vector<32x32xf32>
    %39 = arith.mulf %30, %38 : vector<32x32xf32>
    %40 = arith.extf %22 : vector<32x32xbf16> to vector<32x32xf32>
    %41 = arith.mulf %31, %40 : vector<32x32xf32>
    %42 = arith.addf %39, %41 : vector<32x32xf32>
    %43 = arith.truncf %42 : vector<32x32xf32> to vector<32x32xbf16>
    %44 = arith.addf %37, %43 : vector<32x32xbf16>
    %cst_31 = arith.constant dense<0.000000e+00> : vector<16x32xf32>
    %45 = tpu.matmul %19, %44, %cst_31 {dimension_numbers = #tpu.dot_dimension_numbers<[1], [0], [0], [1], [0, 0, 1, 1], [], []>} : vector<16x32xbf16>, vector<32x32xbf16>, vector<16x32xf32> -> vector<16x32xf32>
    %cst_32 = arith.constant dense<0.000000e+00> : vector<16x32xf32>
    %46 = tpu.matmul %20, %43, %cst_32 {dimension_numbers = #tpu.dot_dimension_numbers<[1], [0], [0], [1], [0, 0, 1, 1], [], []>} : vector<16x32xbf16>, vector<32x32xbf16>, vector<16x32xf32> -> vector<16x32xf32>
    %cst_33 = arith.constant dense<0.000000e+00> : vector<16x32xf32>
    %47 = tpu.matmul %21, %37, %cst_33 {dimension_numbers = #tpu.dot_dimension_numbers<[1], [0], [0], [1], [0, 0, 1, 1], [], []>} : vector<16x32xbf16>, vector<32x32xbf16>, vector<16x32xf32> -> vector<16x32xf32>
    %48 = arith.subf %45, %46 : vector<16x32xf32>
    %49 = arith.addf %45, %47 : vector<16x32xf32>
    %50 = arith.truncf %48 : vector<16x32xf32> to vector<16x32xbf16>
    %51 = arith.truncf %49 : vector<16x32xf32> to vector<16x32xbf16>
    %52 = vector.extract_strided_slice %14 {offsets = [16, 0], sizes = [16, 32], strides = [1, 1]} : vector<64x32xbf16> to vector<16x32xbf16>
    %53 = vector.extract_strided_slice %15 {offsets = [16, 0], sizes = [16, 32], strides = [1, 1]} : vector<64x32xbf16> to vector<16x32xbf16>
    %54 = arith.addf %52, %53 : vector<16x32xbf16>
    %cst_34 = arith.constant dense<0.000000e+00> : vector<32x32xf32>
    %55 = tpu.matmul %16, %54, %cst_34 {dimension_numbers = #tpu.dot_dimension_numbers<[1], [0], [0], [1], [0, 0, 1, 1], [], []>} : vector<32x16xbf16>, vector<16x32xbf16>, vector<32x32xf32> -> vector<32x32xf32>
    %cst_35 = arith.constant dense<0.000000e+00> : vector<32x32xf32>
    %56 = tpu.matmul %17, %53, %cst_35 {dimension_numbers = #tpu.dot_dimension_numbers<[1], [0], [0], [1], [0, 0, 1, 1], [], []>} : vector<32x16xbf16>, vector<16x32xbf16>, vector<32x32xf32> -> vector<32x32xf32>
    %cst_36 = arith.constant dense<0.000000e+00> : vector<32x32xf32>
    %57 = tpu.matmul %18, %52, %cst_36 {dimension_numbers = #tpu.dot_dimension_numbers<[1], [0], [0], [1], [0, 0, 1, 1], [], []>} : vector<32x16xbf16>, vector<16x32xbf16>, vector<32x32xf32> -> vector<32x32xf32>
    %58 = arith.subf %55, %56 : vector<32x32xf32>
    %59 = arith.addf %55, %57 : vector<32x32xf32>
    %60 = arith.extf %22 : vector<32x32xbf16> to vector<32x32xf32>
    %61 = arith.mulf %58, %60 : vector<32x32xf32>
    %62 = arith.extf %23 : vector<32x32xbf16> to vector<32x32xf32>
    %63 = arith.mulf %59, %62 : vector<32x32xf32>
    %64 = arith.subf %61, %63 : vector<32x32xf32>
    %65 = arith.truncf %64 : vector<32x32xf32> to vector<32x32xbf16>
    %66 = arith.extf %23 : vector<32x32xbf16> to vector<32x32xf32>
    %67 = arith.mulf %58, %66 : vector<32x32xf32>
    %68 = arith.extf %22 : vector<32x32xbf16> to vector<32x32xf32>
    %69 = arith.mulf %59, %68 : vector<32x32xf32>
    %70 = arith.addf %67, %69 : vector<32x32xf32>
    %71 = arith.truncf %70 : vector<32x32xf32> to vector<32x32xbf16>
    %72 = arith.addf %65, %71 : vector<32x32xbf16>
    %cst_37 = arith.constant dense<0.000000e+00> : vector<16x32xf32>
    %73 = tpu.matmul %19, %72, %cst_37 {dimension_numbers = #tpu.dot_dimension_numbers<[1], [0], [0], [1], [0, 0, 1, 1], [], []>} : vector<16x32xbf16>, vector<32x32xbf16>, vector<16x32xf32> -> vector<16x32xf32>
    %cst_38 = arith.constant dense<0.000000e+00> : vector<16x32xf32>
    %74 = tpu.matmul %20, %71, %cst_38 {dimension_numbers = #tpu.dot_dimension_numbers<[1], [0], [0], [1], [0, 0, 1, 1], [], []>} : vector<16x32xbf16>, vector<32x32xbf16>, vector<16x32xf32> -> vector<16x32xf32>
    %cst_39 = arith.constant dense<0.000000e+00> : vector<16x32xf32>
    %75 = tpu.matmul %21, %65, %cst_39 {dimension_numbers = #tpu.dot_dimension_numbers<[1], [0], [0], [1], [0, 0, 1, 1], [], []>} : vector<16x32xbf16>, vector<32x32xbf16>, vector<16x32xf32> -> vector<16x32xf32>
    %76 = arith.subf %73, %74 : vector<16x32xf32>
    %77 = arith.addf %73, %75 : vector<16x32xf32>
    %78 = arith.truncf %76 : vector<16x32xf32> to vector<16x32xbf16>
    %79 = arith.truncf %77 : vector<16x32xf32> to vector<16x32xbf16>
    %80 = vector.extract_strided_slice %14 {offsets = [32, 0], sizes = [16, 32], strides = [1, 1]} : vector<64x32xbf16> to vector<16x32xbf16>
    %81 = vector.extract_strided_slice %15 {offsets = [32, 0], sizes = [16, 32], strides = [1, 1]} : vector<64x32xbf16> to vector<16x32xbf16>
    %82 = arith.addf %80, %81 : vector<16x32xbf16>
    %cst_40 = arith.constant dense<0.000000e+00> : vector<32x32xf32>
    %83 = tpu.matmul %16, %82, %cst_40 {dimension_numbers = #tpu.dot_dimension_numbers<[1], [0], [0], [1], [0, 0, 1, 1], [], []>} : vector<32x16xbf16>, vector<16x32xbf16>, vector<32x32xf32> -> vector<32x32xf32>
    %cst_41 = arith.constant dense<0.000000e+00> : vector<32x32xf32>
    %84 = tpu.matmul %17, %81, %cst_41 {dimension_numbers = #tpu.dot_dimension_numbers<[1], [0], [0], [1], [0, 0, 1, 1], [], []>} : vector<32x16xbf16>, vector<16x32xbf16>, vector<32x32xf32> -> vector<32x32xf32>
    %cst_42 = arith.constant dense<0.000000e+00> : vector<32x32xf32>
    %85 = tpu.matmul %18, %80, %cst_42 {dimension_numbers = #tpu.dot_dimension_numbers<[1], [0], [0], [1], [0, 0, 1, 1], [], []>} : vector<32x16xbf16>, vector<16x32xbf16>, vector<32x32xf32> -> vector<32x32xf32>
    %86 = arith.subf %83, %84 : vector<32x32xf32>
    %87 = arith.addf %83, %85 : vector<32x32xf32>
    %88 = arith.extf %22 : vector<32x32xbf16> to vector<32x32xf32>
    %89 = arith.mulf %86, %88 : vector<32x32xf32>
    %90 = arith.extf %23 : vector<32x32xbf16> to vector<32x32xf32>
    %91 = arith.mulf %87, %90 : vector<32x32xf32>
    %92 = arith.subf %89, %91 : vector<32x32xf32>
    %93 = arith.truncf %92 : vector<32x32xf32> to vector<32x32xbf16>
    %94 = arith.extf %23 : vector<32x32xbf16> to vector<32x32xf32>
    %95 = arith.mulf %86, %94 : vector<32x32xf32>
    %96 = arith.extf %22 : vector<32x32xbf16> to vector<32x32xf32>
    %97 = arith.mulf %87, %96 : vector<32x32xf32>
    %98 = arith.addf %95, %97 : vector<32x32xf32>
    %99 = arith.truncf %98 : vector<32x32xf32> to vector<32x32xbf16>
    %100 = arith.addf %93, %99 : vector<32x32xbf16>
    %cst_43 = arith.constant dense<0.000000e+00> : vector<16x32xf32>
    %101 = tpu.matmul %19, %100, %cst_43 {dimension_numbers = #tpu.dot_dimension_numbers<[1], [0], [0], [1], [0, 0, 1, 1], [], []>} : vector<16x32xbf16>, vector<32x32xbf16>, vector<16x32xf32> -> vector<16x32xf32>
    %cst_44 = arith.constant dense<0.000000e+00> : vector<16x32xf32>
    %102 = tpu.matmul %20, %99, %cst_44 {dimension_numbers = #tpu.dot_dimension_numbers<[1], [0], [0], [1], [0, 0, 1, 1], [], []>} : vector<16x32xbf16>, vector<32x32xbf16>, vector<16x32xf32> -> vector<16x32xf32>
    %cst_45 = arith.constant dense<0.000000e+00> : vector<16x32xf32>
    %103 = tpu.matmul %21, %93, %cst_45 {dimension_numbers = #tpu.dot_dimension_numbers<[1], [0], [0], [1], [0, 0, 1, 1], [], []>} : vector<16x32xbf16>, vector<32x32xbf16>, vector<16x32xf32> -> vector<16x32xf32>
    %104 = arith.subf %101, %102 : vector<16x32xf32>
    %105 = arith.addf %101, %103 : vector<16x32xf32>
    %106 = arith.truncf %104 : vector<16x32xf32> to vector<16x32xbf16>
    %107 = arith.truncf %105 : vector<16x32xf32> to vector<16x32xbf16>
    %108 = vector.extract_strided_slice %14 {offsets = [48, 0], sizes = [16, 32], strides = [1, 1]} : vector<64x32xbf16> to vector<16x32xbf16>
    %109 = vector.extract_strided_slice %15 {offsets = [48, 0], sizes = [16, 32], strides = [1, 1]} : vector<64x32xbf16> to vector<16x32xbf16>
    %110 = arith.addf %108, %109 : vector<16x32xbf16>
    %cst_46 = arith.constant dense<0.000000e+00> : vector<32x32xf32>
    %111 = tpu.matmul %16, %110, %cst_46 {dimension_numbers = #tpu.dot_dimension_numbers<[1], [0], [0], [1], [0, 0, 1, 1], [], []>} : vector<32x16xbf16>, vector<16x32xbf16>, vector<32x32xf32> -> vector<32x32xf32>
    %cst_47 = arith.constant dense<0.000000e+00> : vector<32x32xf32>
    %112 = tpu.matmul %17, %109, %cst_47 {dimension_numbers = #tpu.dot_dimension_numbers<[1], [0], [0], [1], [0, 0, 1, 1], [], []>} : vector<32x16xbf16>, vector<16x32xbf16>, vector<32x32xf32> -> vector<32x32xf32>
    %cst_48 = arith.constant dense<0.000000e+00> : vector<32x32xf32>
    %113 = tpu.matmul %18, %108, %cst_48 {dimension_numbers = #tpu.dot_dimension_numbers<[1], [0], [0], [1], [0, 0, 1, 1], [], []>} : vector<32x16xbf16>, vector<16x32xbf16>, vector<32x32xf32> -> vector<32x32xf32>
    %114 = arith.subf %111, %112 : vector<32x32xf32>
    %115 = arith.addf %111, %113 : vector<32x32xf32>
    %116 = arith.extf %22 : vector<32x32xbf16> to vector<32x32xf32>
    %117 = arith.mulf %114, %116 : vector<32x32xf32>
    %118 = arith.extf %23 : vector<32x32xbf16> to vector<32x32xf32>
    %119 = arith.mulf %115, %118 : vector<32x32xf32>
    %120 = arith.subf %117, %119 : vector<32x32xf32>
    %121 = arith.truncf %120 : vector<32x32xf32> to vector<32x32xbf16>
    %122 = arith.extf %23 : vector<32x32xbf16> to vector<32x32xf32>
    %123 = arith.mulf %114, %122 : vector<32x32xf32>
    %124 = arith.extf %22 : vector<32x32xbf16> to vector<32x32xf32>
    %125 = arith.mulf %115, %124 : vector<32x32xf32>
    %126 = arith.addf %123, %125 : vector<32x32xf32>
    %127 = arith.truncf %126 : vector<32x32xf32> to vector<32x32xbf16>
    %128 = arith.addf %121, %127 : vector<32x32xbf16>
    %cst_49 = arith.constant dense<0.000000e+00> : vector<16x32xf32>
    %129 = tpu.matmul %19, %128, %cst_49 {dimension_numbers = #tpu.dot_dimension_numbers<[1], [0], [0], [1], [0, 0, 1, 1], [], []>} : vector<16x32xbf16>, vector<32x32xbf16>, vector<16x32xf32> -> vector<16x32xf32>
    %cst_50 = arith.constant dense<0.000000e+00> : vector<16x32xf32>
    %130 = tpu.matmul %20, %127, %cst_50 {dimension_numbers = #tpu.dot_dimension_numbers<[1], [0], [0], [1], [0, 0, 1, 1], [], []>} : vector<16x32xbf16>, vector<32x32xbf16>, vector<16x32xf32> -> vector<16x32xf32>
    %cst_51 = arith.constant dense<0.000000e+00> : vector<16x32xf32>
    %131 = tpu.matmul %21, %121, %cst_51 {dimension_numbers = #tpu.dot_dimension_numbers<[1], [0], [0], [1], [0, 0, 1, 1], [], []>} : vector<16x32xbf16>, vector<32x32xbf16>, vector<16x32xf32> -> vector<16x32xf32>
    %132 = arith.subf %129, %130 : vector<16x32xf32>
    %133 = arith.addf %129, %131 : vector<16x32xf32>
    %134 = arith.truncf %132 : vector<16x32xf32> to vector<16x32xbf16>
    %135 = arith.truncf %133 : vector<16x32xf32> to vector<16x32xbf16>
    %136 = tpu.concatenate %50, %78, %106, %134 in 0 : vector<16x32xbf16>, vector<16x32xbf16>, vector<16x32xbf16>, vector<16x32xbf16> -> vector<64x32xbf16>
    %137 = tpu.concatenate %51, %79, %107, %135 in 0 : vector<16x32xbf16>, vector<16x32xbf16>, vector<16x32xbf16>, vector<16x32xbf16> -> vector<64x32xbf16>
    %c0_52 = arith.constant 0 : index
    %c0_53 = arith.constant 0 : index
    %138 = vector.load %arg14[%c0_52, %c0_53] : memref<32x16xbf16, #tpu.memory_space<vmem>>, vector<32x16xbf16>
    %c0_54 = arith.constant 0 : index
    %c0_55 = arith.constant 0 : index
    %139 = vector.load %arg15[%c0_54, %c0_55] : memref<32x16xbf16, #tpu.memory_space<vmem>>, vector<32x16xbf16>
    %c0_56 = arith.constant 0 : index
    %c0_57 = arith.constant 0 : index
    %140 = vector.load %arg16[%c0_56, %c0_57] : memref<32x16xbf16, #tpu.memory_space<vmem>>, vector<32x16xbf16>
    %141 = arith.addf %136, %137 : vector<64x32xbf16>
    %cst_58 = arith.constant dense<0.000000e+00> : vector<64x16xf32>
    %142 = tpu.matmul %141, %138, %cst_58 {dimension_numbers = #tpu.dot_dimension_numbers<[1], [0], [0], [1], [0, 0, 1, 1], [], []>} : vector<64x32xbf16>, vector<32x16xbf16>, vector<64x16xf32> -> vector<64x16xf32>
    %cst_59 = arith.constant dense<0.000000e+00> : vector<64x16xf32>
    %143 = tpu.matmul %137, %139, %cst_59 {dimension_numbers = #tpu.dot_dimension_numbers<[1], [0], [0], [1], [0, 0, 1, 1], [], []>} : vector<64x32xbf16>, vector<32x16xbf16>, vector<64x16xf32> -> vector<64x16xf32>
    %cst_60 = arith.constant dense<0.000000e+00> : vector<64x16xf32>
    %144 = tpu.matmul %136, %140, %cst_60 {dimension_numbers = #tpu.dot_dimension_numbers<[1], [0], [0], [1], [0, 0, 1, 1], [], []>} : vector<64x32xbf16>, vector<32x16xbf16>, vector<64x16xf32> -> vector<64x16xf32>
    %145 = arith.subf %142, %143 : vector<64x16xf32>
    %146 = arith.addf %142, %144 : vector<64x16xf32>
    %c0_i32_61 = arith.constant 0 : i32
    %147 = arith.cmpi eq, %arg1, %c0_i32_61 : i32
    %148 = arith.extui %147 : i1 to i32
    %c0_i32_62 = arith.constant 0 : i32
    %149 = arith.cmpi ne, %148, %c0_i32_62 : i32
    scf.if %149 {
      %c0_65 = arith.constant 0 : index
      %c0_66 = arith.constant 0 : index
      %153 = vector.load %arg17[%c0_65, %c0_66] : memref<64x16xf32, #tpu.memory_space<vmem>>, vector<64x16xf32>
      tpu.vector_store %arg17[%c0_65, %c0_66], %145 {strides = array<i32>} : memref<64x16xf32, #tpu.memory_space<vmem>>, vector<64x16xf32>,
      %c0_67 = arith.constant 0 : index
      %c0_68 = arith.constant 0 : index
      %154 = vector.load %arg18[%c0_67, %c0_68] : memref<64x16xf32, #tpu.memory_space<vmem>>, vector<64x16xf32>
      tpu.vector_store %arg18[%c0_67, %c0_68], %146 {strides = array<i32>} : memref<64x16xf32, #tpu.memory_space<vmem>>, vector<64x16xf32>,
    } else {
    }
    %c0_i32_63 = arith.constant 0 : i32
    %150 = arith.cmpi ne, %arg1, %c0_i32_63 : i32
    %151 = arith.extui %150 : i1 to i32
    %c0_i32_64 = arith.constant 0 : i32
    %152 = arith.cmpi ne, %151, %c0_i32_64 : i32
    scf.if %152 {
      %c0_65 = arith.constant 0 : index
      %c0_66 = arith.constant 0 : index
      %153 = vector.load %arg17[%c0_65, %c0_66] : memref<64x16xf32, #tpu.memory_space<vmem>>, vector<64x16xf32>
      %154 = arith.addf %153, %145 : vector<64x16xf32>
      %c0_67 = arith.constant 0 : index
      %c0_68 = arith.constant 0 : index
      %155 = vector.load %arg17[%c0_67, %c0_68] : memref<64x16xf32, #tpu.memory_space<vmem>>, vector<64x16xf32>
      tpu.vector_store %arg17[%c0_67, %c0_68], %154 {strides = array<i32>} : memref<64x16xf32, #tpu.memory_space<vmem>>, vector<64x16xf32>,
      %c0_69 = arith.constant 0 : index
      %c0_70 = arith.constant 0 : index
      %156 = vector.load %arg18[%c0_69, %c0_70] : memref<64x16xf32, #tpu.memory_space<vmem>>, vector<64x16xf32>
      %157 = arith.addf %156, %146 : vector<64x16xf32>
      %c0_71 = arith.constant 0 : index
      %c0_72 = arith.constant 0 : index
      %158 = vector.load %arg18[%c0_71, %c0_72] : memref<64x16xf32, #tpu.memory_space<vmem>>, vector<64x16xf32>
      tpu.vector_store %arg18[%c0_71, %c0_72], %157 {strides = array<i32>} : memref<64x16xf32, #tpu.memory_space<vmem>>, vector<64x16xf32>,
    } else {
    }
    return
  }
  func.func @transform_0(%arg0: i32, %arg1: i32) -> (i32, i32) {
    %c0_i32 = arith.constant 0 : i32
    %c0_i32_0 = arith.constant 0 : i32
    return %arg0, %c0_i32 : i32, i32
  }
  func.func @transform_1(%arg0: i32, %arg1: i32) -> (i32, i32) {
    %c0_i32 = arith.constant 0 : i32
    %c0_i32_0 = arith.constant 0 : i32
    %c0_i32_1 = arith.constant 0 : i32
    return %c0_i32, %c0_i32_0 : i32, i32
  }
  func.func @transform_2(%arg0: i32, %arg1: i32) -> (i32, i32) {
    %c0_i32 = arith.constant 0 : i32
    %c0_i32_0 = arith.constant 0 : i32
    %c0_i32_1 = arith.constant 0 : i32
    return %c0_i32, %c0_i32_0 : i32, i32
  }
  func.func @transform_3(%arg0: i32, %arg1: i32) -> (i32, i32) {
    %c0_i32 = arith.constant 0 : i32
    %c0_i32_0 = arith.constant 0 : i32
    %c0_i32_1 = arith.constant 0 : i32
    return %c0_i32, %c0_i32_0 : i32, i32
  }
  func.func @transform_4(%arg0: i32, %arg1: i32) -> (i32, i32) {
    %c0_i32 = arith.constant 0 : i32
    %c0_i32_0 = arith.constant 0 : i32
    return %c0_i32, %arg1 : i32, i32
  }
  func.func @transform_5(%arg0: i32, %arg1: i32) -> (i32, i32) {
    %c0_i32 = arith.constant 0 : i32
    %c0_i32_0 = arith.constant 0 : i32
    return %c0_i32, %arg1 : i32, i32
  }
  func.func @transform_6(%arg0: i32, %arg1: i32) -> (i32, i32) {
    %c0_i32 = arith.constant 0 : i32
    %c0_i32_0 = arith.constant 0 : i32
    return %c0_i32, %arg1 : i32, i32
  }
  func.func @transform_7(%arg0: i32, %arg1: i32) -> (i32, i32) {
    %c0_i32 = arith.constant 0 : i32
    %c0_i32_0 = arith.constant 0 : i32
    return %c0_i32, %arg1 : i32, i32
  }
  func.func @transform_8(%arg0: i32, %arg1: i32) -> (i32, i32) {
    %c0_i32 = arith.constant 0 : i32
    %c0_i32_0 = arith.constant 0 : i32
    return %c0_i32, %arg1 : i32, i32
  }
  func.func @transform_9(%arg0: i32, %arg1: i32) -> (i32, i32) {
    %c0_i32 = arith.constant 0 : i32
    %c0_i32_0 = arith.constant 0 : i32
    %c0_i32_1 = arith.constant 0 : i32
    return %c0_i32, %c0_i32_0 : i32, i32
  }
  func.func @transform_10(%arg0: i32, %arg1: i32) -> (i32, i32) {
    %c0_i32 = arith.constant 0 : i32
    %c0_i32_0 = arith.constant 0 : i32
    %c0_i32_1 = arith.constant 0 : i32
    return %c0_i32, %c0_i32_0 : i32, i32
  }
  func.func @transform_11(%arg0: i32, %arg1: i32) -> (i32, i32) {
    %c0_i32 = arith.constant 0 : i32
    %c0_i32_0 = arith.constant 0 : i32
    %c0_i32_1 = arith.constant 0 : i32
    return %c0_i32, %c0_i32_0 : i32, i32
  }
  func.func @transform_12(%arg0: i32, %arg1: i32) -> (i32, i32) {
    %c0_i32 = arith.constant 0 : i32
    %c0_i32_0 = arith.constant 0 : i32
    return %arg1, %c0_i32 : i32, i32
  }
  func.func @transform_13(%arg0: i32, %arg1: i32) -> (i32, i32) {
    %c0_i32 = arith.constant 0 : i32
    %c0_i32_0 = arith.constant 0 : i32
    return %arg1, %c0_i32 : i32, i32
  }
  func.func @transform_14(%arg0: i32, %arg1: i32) -> (i32, i32) {
    %c0_i32 = arith.constant 0 : i32
    %c0_i32_0 = arith.constant 0 : i32
    return %arg1, %c0_i32 : i32, i32
  }
  func.func @transform_15(%arg0: i32, %arg1: i32) -> (i32, i32) {
    %c0_i32 = arith.constant 0 : i32
    %c0_i32_0 = arith.constant 0 : i32
    return %arg0, %c0_i32 : i32, i32
  }
  func.func @transform_16(%arg0: i32, %arg1: i32) -> (i32, i32) {
    %c0_i32 = arith.constant 0 : i32
    %c0_i32_0 = arith.constant 0 : i32
    return %arg0, %c0_i32 : i32, i32
  }
}

</mosaic_0001>

<bundles_post_ra>
// kernel: custom-call
= control target key start
LH: loop header
LB: loop body
LE: loop exit
PB: predicated region body
PF: predicated region fallthrough
CT: control target
= control target key end

     0   :  { %s346_s0 = inlined_call_operand.hbm [shape: f32[2,4,16,16], index: 0, kind: input, shape index: {}]   ;;  %s347_s1 = inlined_call_operand.hbm [shape: f32[2,4,16,16], index: 1, kind: input, shape index: {}]   ;;  %s348_s2 = inlined_call_operand.hbm [shape: c64[2,4,16,16], index: 2, kind: output, shape index: {}]  }
   0x1   :  { %s281_s11 = scalar_lea.hbm %s348_s2, 2048 }
   0x2   :  { %4 = vsyncpa [#allocation2], 0 }
   0x3   :  { %5 = vsyncpa [#allocation1], 0  ;;  %s259_s12 = smov [#allocation3]   ;;  %s160_s16 = scalar_lea.hbm %s346_s0, 2048 }
   0x4   :  { %s6_s13 = sshll.u32 %s259_s12, 4  ;;  %p161_p0 = scmp.ne.s32.totalorder %s346_s0, %s160_s16  ;;  %s7_s13 = int_to_ptr.vmem [resolvable:$true] %s6_s13 }
   0x5   :  { %p164_p1 = scmp.lt.u32.totalorder %s160_s16, %s346_s0 }
   0x7   :  { %p166_p2 = pnand %p164_p1, %p161_p0 }
   0x9   :  { %169 = shalt.err (!%p166_p2)  }
   0xa   :  { %s170_s21 = scalar_lea.vmem %s7_s13, 2048  ;;  %p175_p4 = scmp.lt.s32.totalorder %s7_s13, %s7_s13 }
   0xb   :  { %p171_p3 = scmp.ne.s32.totalorder %s7_s13, %s170_s21  ;;  %p176_p5 = scmp.lt.s32.totalorder %s170_s21, %s170_s21 }
   0xd   :  { %p177_p6 = por %p176_p5, %p175_p4 }
   0xf   :  { %p178_p7 = pnand %p177_p6, %p171_p3 }
  0x11   :  { %181 = shalt.err (!%p178_p7)  }
  0x12   :  { %9 = dma.hbm_to_vmem [thread:$0]  %s346_s0, 2048, %s7_s13, [#allocation1] }
  0x13   :  { %251 = dma.done.wait [#allocation1], 2048  }
  0x14   :  { %252 = vsyncadd [#allocation1], 4294965248  ;;  %v11_v0 = vld [vmem:[#allocation3] sm:$0xff]  ;;  %v15_v1 = vld [vmem:[#allocation3 + $0x8] sm:$0xff]  ;;  %s260_s24 = smov [#allocation0]  }
  0x15   :  { %v19_v2 = vld [vmem:[#allocation3 + $0x10] sm:$0xff]  ;;  %12 = vst [vmem:[#allocation0] sm:$0xff] %v11_v0  ;;  %16 = vst [vmem:[#allocation0 + $0x8] sm:$0xff] %v15_v1  ;;  %v23_v3 = vld [vmem:[#allocation3 + $0x18] sm:$0xff]  ;;  %s73_s25 = sshll.u32 %s260_s24, 4  ;;  %s74_s25 = int_to_ptr.vmem [resolvable:$true] %s73_s25 }
  0x16   :  { %20 = vst [vmem:[#allocation0 + $0x10] sm:$0xff] %v19_v2  ;;  %v27_v4 = vld [vmem:[#allocation3 + $0x20] sm:$0xff]  ;;  %v31_v5 = vld [vmem:[#allocation3 + $0x28] sm:$0xff]  ;;  %24 = vst [vmem:[#allocation0 + $0x18] sm:$0xff] %v23_v3  ;;  %s182_s0 = scalar_lea.vmem %s74_s25, 2048  ;;  %p187_p9 = scmp.lt.s32.totalorder %s74_s25, %s74_s25 }
  0x17   :  { %28 = vst [vmem:[#allocation0 + $0x20] sm:$0xff] %v27_v4  ;;  %32 = vst [vmem:[#allocation0 + $0x28] sm:$0xff] %v31_v5  ;;  %v35_v6 = vld [vmem:[#allocation3 + $0x30] sm:$0xff]  ;;  %v39_v7 = vld [vmem:[#allocation3 + $0x38] sm:$0xff]  ;;  %p183_p8 = scmp.ne.s32.totalorder %s74_s25, %s182_s0  ;;  %p188_p10 = scmp.lt.s32.totalorder %s182_s0, %s182_s0 }
  0x18   :  { %v43_v8 = vld [vmem:[#allocation3 + $0x40] sm:$0xff]  ;;  %36 = vst [vmem:[#allocation0 + $0x30] sm:$0xff] %v35_v6  ;;  %40 = vst [vmem:[#allocation0 + $0x38] sm:$0xff] %v39_v7  ;;  %v47_v9 = vld [vmem:[#allocation3 + $0x48] sm:$0xff] }
  0x19   :  { %44 = vst [vmem:[#allocation0 + $0x40] sm:$0xff] %v43_v8  ;;  %v51_v10 = vld [vmem:[#allocation3 + $0x50] sm:$0xff]  ;;  %v55_v11 = vld [vmem:[#allocation3 + $0x58] sm:$0xff]  ;;  %48 = vst [vmem:[#allocation0 + $0x48] sm:$0xff] %v47_v9  ;;  %p189_p11 = por %p188_p10, %p187_p9 }
  0x1a   :  { %52 = vst [vmem:[#allocation0 + $0x50] sm:$0xff] %v51_v10  ;;  %56 = vst [vmem:[#allocation0 + $0x58] sm:$0xff] %v55_v11  ;;  %v59_v12 = vld [vmem:[#allocation3 + $0x60] sm:$0xff]  ;;  %v63_v13 = vld [vmem:[#allocation3 + $0x68] sm:$0xff] }
  0x1b   :  { %v67_v14 = vld [vmem:[#allocation3 + $0x70] sm:$0xff]  ;;  %60 = vst [vmem:[#allocation0 + $0x60] sm:$0xff] %v59_v12  ;;  %64 = vst [vmem:[#allocation0 + $0x68] sm:$0xff] %v63_v13  ;;  %v71_v15 = vld [vmem:[#allocation3 + $0x78] sm:$0xff]  ;;  %p190_p12 = pnand %p189_p11, %p183_p8 }
  0x1c   :  { %68 = vst [vmem:[#allocation0 + $0x70] sm:$0xff] %v67_v14  ;;  %72 = vst [vmem:[#allocation0 + $0x78] sm:$0xff] %v71_v15 }
  0x1d   :  { %193 = shalt.err (!%p190_p12)  }
  0x1e   :  { %p195_p13 = scmp.ne.s32.totalorder %s348_s2, %s281_s11  ;;  %s302_s30 = scalar_lea.hbm %s348_s2, 4096 }
  0x1f   :  { %p197_p0 = scmp.lt.u32.totalorder %s302_s30, %s281_s11  ;;  %p198_p1 = scmp.lt.u32.totalorder %s281_s11, %s348_s2 }
  0x21   :  { %p199_p2 = por %p198_p1, %p197_p0 }
  0x23   :  { %p200_p3 = pnand %p199_p2, %p195_p13 }
  0x25   :  { %203 = shalt.err (!%p200_p3)  }
  0x26   :  { %76 = dma.vmem_to_hbm [thread:$0]  %s74_s25, 2048, %s348_s2, [#allocation2] }
  0x27   :  { %253 = dma.done.wait [#allocation2], 2048  }
  0x28   :  { %254 = vsyncadd [#allocation2], 4294965248 }
  0x29   :  { %78 = vsyncpa [#allocation1], 1 }
  0x2a   :  { %79 = vsyncpa [#allocation2], 1 }
  0x2b   :  { %80 = vsyncpa [#allocation6], 0 }
  0x2c   :  { %81 = vsyncpa [#allocation5], 0  ;;  %s261_s9 = smov [#allocation7]   ;;  %s204_s14 = scalar_lea.hbm %s347_s1, 2048 }
  0x2d   :  { %s82_s10 = sshll.u32 %s261_s9, 4  ;;  %p205_p4 = scmp.ne.s32.totalorder %s347_s1, %s204_s14  ;;  %s83_s10 = int_to_ptr.vmem [resolvable:$true] %s82_s10 }
  0x2e   :  { %p208_p5 = scmp.lt.u32.totalorder %s204_s14, %s347_s1 }
  0x30   :  { %p210_p6 = pnand %p208_p5, %p205_p4 }
  0x32   :  { %213 = shalt.err (!%p210_p6)  }
  0x33   :  { %s214_s19 = scalar_lea.vmem %s83_s10, 2048  ;;  %p219_p8 = scmp.lt.s32.totalorder %s83_s10, %s83_s10 }
  0x34   :  { %p215_p7 = scmp.ne.s32.totalorder %s83_s10, %s214_s19  ;;  %p220_p9 = scmp.lt.s32.totalorder %s214_s19, %s214_s19 }
  0x36   :  { %p221_p10 = por %p220_p9, %p219_p8 }
  0x38   :  { %p222_p11 = pnand %p221_p10, %p215_p7 }
  0x3a   :  { %225 = shalt.err (!%p222_p11)  }
  0x3b   :  { %85 = dma.hbm_to_vmem [thread:$0]  %s347_s1, 2048, %s83_s10, [#allocation5] }
  0x3c   :  { %255 = dma.done.wait [#allocation5], 2048  }
  0x3d   :  { %256 = vsyncadd [#allocation5], 4294965248  ;;  %v87_v16 = vld [vmem:[#allocation7] sm:$0xff]  ;;  %v91_v17 = vld [vmem:[#allocation7 + $0x8] sm:$0xff]  ;;  %s262_s22 = smov [#allocation4]  }
  0x3e   :  { %v95_v18 = vld [vmem:[#allocation7 + $0x10] sm:$0xff]  ;;  %88 = vst [vmem:[#allocation4] sm:$0xff] %v87_v16  ;;  %92 = vst [vmem:[#allocation4 + $0x8] sm:$0xff] %v91_v17  ;;  %v99_v19 = vld [vmem:[#allocation7 + $0x18] sm:$0xff]  ;;  %s149_s23 = sshll.u32 %s262_s22, 4  ;;  %s150_s23 = int_to_ptr.vmem [resolvable:$true] %s149_s23 }
  0x3f   :  { %96 = vst [vmem:[#allocation4 + $0x10] sm:$0xff] %v95_v18  ;;  %v103_v20 = vld [vmem:[#allocation7 + $0x20] sm:$0xff]  ;;  %v107_v21 = vld [vmem:[#allocation7 + $0x28] sm:$0xff]  ;;  %100 = vst [vmem:[#allocation4 + $0x18] sm:$0xff] %v99_v19  ;;  %s226_s1 = scalar_lea.vmem %s150_s23, 2048  ;;  %p231_p13 = scmp.lt.s32.totalorder %s150_s23, %s150_s23 }
  0x40   :  { %104 = vst [vmem:[#allocation4 + $0x20] sm:$0xff] %v103_v20  ;;  %108 = vst [vmem:[#allocation4 + $0x28] sm:$0xff] %v107_v21  ;;  %v111_v22 = vld [vmem:[#allocation7 + $0x30] sm:$0xff]  ;;  %v115_v23 = vld [vmem:[#allocation7 + $0x38] sm:$0xff]  ;;  %p227_p12 = scmp.ne.s32.totalorder %s150_s23, %s226_s1  ;;  %p232_p2 = scmp.lt.s32.totalorder %s226_s1, %s226_s1 }
  0x41   :  { %v119_v24 = vld [vmem:[#allocation7 + $0x40] sm:$0xff]  ;;  %112 = vst [vmem:[#allocation4 + $0x30] sm:$0xff] %v111_v22  ;;  %116 = vst [vmem:[#allocation4 + $0x38] sm:$0xff] %v115_v23  ;;  %v123_v25 = vld [vmem:[#allocation7 + $0x48] sm:$0xff] }
  0x42   :  { %120 = vst [vmem:[#allocation4 + $0x40] sm:$0xff] %v119_v24  ;;  %v127_v26 = vld [vmem:[#allocation7 + $0x50] sm:$0xff]  ;;  %v131_v27 = vld [vmem:[#allocation7 + $0x58] sm:$0xff]  ;;  %124 = vst [vmem:[#allocation4 + $0x48] sm:$0xff] %v123_v25  ;;  %p233_p3 = por %p232_p2, %p231_p13 }
  0x43   :  { %128 = vst [vmem:[#allocation4 + $0x50] sm:$0xff] %v127_v26  ;;  %132 = vst [vmem:[#allocation4 + $0x58] sm:$0xff] %v131_v27  ;;  %v135_v28 = vld [vmem:[#allocation7 + $0x60] sm:$0xff]  ;;  %v139_v29 = vld [vmem:[#allocation7 + $0x68] sm:$0xff] }
  0x44   :  { %v143_v30 = vld [vmem:[#allocation7 + $0x70] sm:$0xff]  ;;  %136 = vst [vmem:[#allocation4 + $0x60] sm:$0xff] %v135_v28  ;;  %140 = vst [vmem:[#allocation4 + $0x68] sm:$0xff] %v139_v29  ;;  %v147_v31 = vld [vmem:[#allocation7 + $0x78] sm:$0xff]  ;;  %p234_p4 = pnand %p233_p3, %p227_p12 }
  0x45   :  { %144 = vst [vmem:[#allocation4 + $0x70] sm:$0xff] %v143_v30  ;;  %148 = vst [vmem:[#allocation4 + $0x78] sm:$0xff] %v147_v31 }
  0x46   :  { %237 = shalt.err (!%p234_p4)  }
  0x47   :  { %p239_p5 = scmp.ne.s32.totalorder %s281_s11, %s302_s30  ;;  %p242_p6 = scmp.lt.u32.totalorder %s302_s30, %s302_s30 }
  0x49   :  { %p243_p7 = por %p242_p6, %p198_p1 }
  0x4b   :  { %p245_p8 = por %p243_p7, %p197_p0 }
  0x4d   :  { %p246_p9 = pnand %p245_p8, %p239_p5 }
  0x4f   :  { %249 = shalt.err (!%p246_p9)  }
  0x50   :  { %152 = dma.vmem_to_hbm [thread:$0]  %s150_s23, 2048, %s281_s11, [#allocation6] }
  0x51   :  { %257 = dma.done.wait [#allocation6], 2048  }
  0x52   :  { %258 = vsyncadd [#allocation6], 4294965248 }
  0x53   :  { %154 = vsyncpa [#allocation5], 1 }
  0x54   :  { %155 = vsyncpa [#allocation6], 1 }

// kernel: fn.1
= control target key start
LH: loop header
LB: loop body
LE: loop exit
PB: predicated region body
PF: predicated region fallthrough
CT: control target
= control target key end

     0   :  { %s8099_s0 = inlined_call_operand.hbm [shape: f32[128,16], index: 0, kind: input, shape index: {}]   ;;  %s8100_s1 = inlined_call_operand.hbm [shape: bf16[32,16], index: 1, kind: input, shape index: {}]   ;;  %s8101_s2 = inlined_call_operand.hbm [shape: bf16[32,16], index: 2, kind: input, shape index: {}]   ;;  %s8102_s3 = inlined_call_operand.hbm [shape: bf16[32,16], index: 3, kind: input, shape index: {}]   ;;  %s8103_s4 = inlined_call_operand.hbm [shape: bf16[16,32], index: 4, kind: input, shape index: {}]   ;;  %s8104_s5 = inlined_call_operand.hbm [shape: bf16[16,32], index: 5, kind: input, shape index: {}]   ;;  %s8105_s6 = inlined_call_operand.hbm [shape: bf16[16,32], index: 6, kind: input, shape index: {}]   ;;  %s8106_s7 = inlined_call_operand.hbm [shape: bf16[32,32], index: 7, kind: input, shape index: {}]   ;;  %s8107_s8 = inlined_call_operand.hbm [shape: bf16[32,32], index: 8, kind: input, shape index: {}]   ;;  %s8108_s9 = inlined_call_operand.hbm [shape: bf16[16,32], index: 9, kind: input, shape index: {}]   ;;  %s8109_s10 = inlined_call_operand.hbm [shape: bf16[16,32], index: 10, kind: input, shape index: {}]   ;;  %s8110_s11 = inlined_call_operand.hbm [shape: bf16[16,32], index: 11, kind: input, shape index: {}]   ;;  %s8111_s12 = inlined_call_operand.hbm [shape: bf16[32,16], index: 12, kind: input, shape index: {}]   ;;  %s8112_s13 = inlined_call_operand.hbm [shape: bf16[32,16], index: 13, kind: input, shape index: {}]   ;;  %s8113_s14 = inlined_call_operand.hbm [shape: bf16[32,16], index: 14, kind: input, shape index: {}]   ;;  %s8114_s15 = inlined_call_operand.hbm [shape: f32[128,16], index: 15, kind: output, shape index: {0}]   ;;  %s8115_s16 = inlined_call_operand.hbm [shape: f32[128,16], index: 16, kind: output, shape index: {1}]  }
   0x1   :  { %8134 = sst [smem:[#allocation48_spill]] %s8099_s0 }
   0x2   :  { %8135 = sst [smem:[#allocation49_spill]] %s8100_s1 }
   0x3   :  { %8136 = sst [smem:[#allocation50_spill]] %s8101_s2 }
   0x4   :  { %8137 = sst [smem:[#allocation51_spill]] %s8102_s3 }
   0x5   :  { %8138 = sst [smem:[#allocation52_spill]] %s8114_s15 }
   0x6   :  { %8139 = sst [smem:[#allocation53_spill]] %s8115_s16 }
   0x7   :  { %22 = vsyncpa [#allocation5], 0 }
   0x8   :  { %24 = vsyncpa [#allocation5 + $0x1], 0 }
   0x9   :  { %25 = vsyncpa [#allocation8], 0 }
   0xa   :  { %26 = vsyncpa [#allocation11], 0 }
   0xb   :  { %27 = vsyncpa [#allocation14], 0 }
   0xc   :  { %28 = vsyncpa [#allocation17], 0 }
   0xd   :  { %29 = vsyncpa [#allocation20], 0 }
   0xe   :  { %30 = vsyncpa [#allocation23], 0 }
   0xf   :  { %31 = vsyncpa [#allocation26], 0 }
  0x10   :  { %32 = vsyncpa [#allocation6], 0 }
  0x11   :  { %34 = vsyncpa [#allocation6 + $0x1], 0 }
  0x12   :  { %35 = vsyncpa [#allocation30], 0 }
  0x13   :  { %37 = vsyncpa [#allocation30 + $0x1], 0  ;;  %s6382_s21 = smov 0   ;;  %s6384_s22 = smov 0  }
  0x14   :  { %s6386_s23 = smov 0   ;;  %s6388_s24 = smov 0  }
  0x15   :  { %s6390_s25 = smov 0   ;;  %s6392_s26 = smov 0  }
  0x16 LB: > { %8140 = sst [smem:[#allocation41_spill]] %s6244_s21  ;;  %s8117_s27 = sadd.s32 4294967295, %s6264_s26   ;;  %s6264_s26 = sphi %s6392_s26, %s43_s26   ;;  %s6260_s25 = sphi %s6390_s25, %s8204_s25   ;;  %s6256_s24 = sphi %s6388_s24, %s8202_s24   ;;  %s6252_s23 = sphi %s6386_s23, %s8203_s23   ;;  %s6248_s22 = sphi %s6384_s22, %s8201_s22   ;;  %s6244_s21 = sphi %s6382_s21, %s8200_s21  }
  0x17   : > { %8141 = sst [smem:[#allocation42_spill]] %s6248_s22  ;;  %p4845_p0 = scmp.ge.s32.totalorder %s6264_s26, 1 }
  0x18   : > { %8142 = sst [smem:[#allocation43_spill]] %s6252_s23  ;;  %p6416_p1 = scmp.eq.s32.totalorder %s8117_s27, 0 }
  0x19   : > { %8143 = sst [smem:[#allocation44_spill]] %s6256_s24  ;;  %p472_p2 = scmp.lt.s32.totalorder %s6264_s26, 3 }
  0x1a   : > { %8144 = sst [smem:[#allocation45_spill]] %s6260_s25  ;;  %s6266_s30 = smov [#allocation7]  }
  0x1b   : > { %s8145_s28 = scalar_select %p6416_p1, 1, 0 }
  0x1c   : > { %p6421_p3 = pnand %p4845_p0, %p472_p2  ;;  %s484_s0 = sshll.u32 %s6266_s30, 4  ;;  %s6425_s0 = int_to_ptr.vmem [resolvable:$true] %s484_s0 }
  0x1d   : > { %8146 = sst [smem:[#allocation46_spill]] %s8145_s28  ;;  %s6267_s18 = smov [#allocation10]  }
  0x1e   : > { %s8147_s29 = scalar_select %p6421_p3, 1, 0 }
  0x1f   : > { %p5488_p4 = pneg %p6421_p3  ;;  %s510_s19 = sshll.u32 %s6267_s18, 4  ;;  %s6436_s19 = int_to_ptr.vmem [resolvable:$true] %s510_s19 }
  0x20   : > { %8148 = sst [smem:[#allocation47_spill]] %s8147_s29  ;;  %s6268_s20 = smov [#allocation13]  }
  0x21   : > { %p6432_p6 = pnand %p5488_p4, %p6416_p1  ;;  %s6438_s27 = sshll.u32 %s6268_s20, 4  ;;  %s541_s27 = int_to_ptr.vmem [resolvable:$true] %s6438_s27 }
  0x22   : > { %s8150_s1 = sld [smem:[#allocation49_spill]] }
  0x23   : > { %p6448_p8 = pneg %p6432_p6 }
  0x28   : > { %s5700_s15 = scalar_lea.hbm %s8150_s1, 256 }
  0x29   : > { %p5701_p7 = scmp.ne.s32.totalorder %s8150_s1, %s5700_s15  ;;  %p5707_p11 = scmp.lt.u32.totalorder %s5700_s15, %s8150_s1 }
  0x2b   : > { %p5703_p9 = pnand %p6448_p8, %p5701_p7 }
  0x2d   : > { %p5704_p10 = pneg %p5703_p9 }
  0x2f   : > { %p5709_p12 = pnand %p5707_p11, %p5704_p10 }
  0x31   : > { %5712 = shalt.err (!%p5709_p12)
}
  0x32   : > { %s5713_s16 = scalar_lea.vmem %s6425_s0, 256  ;;  %p5721_p4 = scmp.lt.s32.totalorder %s6425_s0, %s6425_s0 }
  0x33   : > { %p5714_p13 = scmp.ne.s32.totalorder %s6425_s0, %s5713_s16  ;;  %p5722_p5 = scmp.lt.s32.totalorder %s5713_s16, %s5713_s16 }
  0x35   : > { %p5716_p0 = pnand %p5714_p13, %p6448_p8  ;;  %p5723_p7 = por %p5722_p5, %p5721_p4 }
  0x37   : > { %p5717_p2 = pneg %p5716_p0 }
  0x39   : > { %p5724_p9 = pnand %p5723_p7, %p5717_p2 }
  0x3b   : > { %5727 = shalt.err (!%p5724_p9)
}
  0x3c   : > { %s6269_s24 = smov 64   ;;  %s6270_s15 = smov 4  }
  0x3d   : > { %5491 = dma.hbm_to_vmem [thread:$0]  (!%p6432_p6), %s8150_s1, 256, %s6425_s0, [#allocation8], %s6269_s24, %s6269_s24, %s6270_s15  }
  0x3e   : > { %s8152_s3 = sld [smem:[#allocation51_spill]] }
  0x44   : > { %s5728_s16 = scalar_lea.hbm %s8152_s3, 256 }
  0x45   : > { %p5729_p5 = scmp.ne.s32.totalorder %s8152_s3, %s5728_s16  ;;  %p5735_p12 = scmp.lt.u32.totalorder %s5728_s16, %s8152_s3 }
  0x47   : > { %p5731_p10 = pnand %p5729_p5, %p6448_p8 }
  0x49   : > { %p5732_p11 = pneg %p5731_p10 }
  0x4b   : > { %p5737_p13 = pnand %p5735_p12, %p5732_p11 }
  0x4d   : > { %5740 = shalt.err (!%p5737_p13)
}
  0x4e   : > { %s5741_s0 = scalar_lea.vmem %s6436_s19, 256  ;;  %p5749_p7 = scmp.lt.s32.totalorder %s6436_s19, %s6436_s19 }
  0x4f   : > { %p5742_p0 = scmp.ne.s32.totalorder %s6436_s19, %s5741_s0  ;;  %p5750_p9 = scmp.lt.s32.totalorder %s5741_s0, %s5741_s0 }
  0x51   : > { %p5744_p2 = pnand %p5742_p0, %p6448_p8  ;;  %p5751_p5 = por %p5750_p9, %p5749_p7 }
  0x53   : > { %p5745_p4 = pneg %p5744_p2 }
  0x55   : > { %p5752_p10 = pnand %p5751_p5, %p5745_p4 }
  0x57   : > { %5755 = shalt.err (!%p5752_p10)
}
  0x58   : > { %5497 = dma.hbm_to_vmem [thread:$0]  (!%p6432_p6), %s8152_s3, 256, %s6436_s19, [#allocation11], %s6269_s24, %s6269_s24, %s6270_s15  }
  0x59   : > { %s5756_s29 = scalar_lea.hbm %s8104_s5, 128 }
  0x5a   : > { %p5757_p11 = scmp.ne.s32.totalorder %s8104_s5, %s5756_s29  ;;  %p5763_p0 = scmp.lt.u32.totalorder %s5756_s29, %s8104_s5 }
  0x5c   : > { %p5759_p12 = pnand %p5757_p11, %p6448_p8 }
  0x5e   : > { %p5760_p13 = pneg %p5759_p12 }
  0x60   : > { %p5765_p2 = pnand %p5763_p0, %p5760_p13 }
  0x62   : > { %5768 = shalt.err (!%p5765_p2)
}
  0x63   : > { %s5769_s0 = scalar_lea.vmem %s541_s27, 128  ;;  %p5777_p5 = scmp.lt.s32.totalorder %s541_s27, %s541_s27 }
  0x64   : > { %p5770_p4 = scmp.ne.s32.totalorder %s541_s27, %s5769_s0  ;;  %p5778_p10 = scmp.lt.s32.totalorder %s5769_s0, %s5769_s0 }
  0x66   : > { %p5772_p7 = pnand %p5770_p4, %p6448_p8  ;;  %p5779_p3 = por %p5778_p10, %p5777_p5 }
  0x68   : > { %p5773_p9 = pneg %p5772_p7 }
  0x6a   : > { %p5780_p1 = pnand %p5779_p3, %p5773_p9 }
  0x6c   : > { %5783 = shalt.err (!%p5780_p1)
}
  0x6d   : > { %5503 = dma.hbm_to_vmem [thread:$0]  (!%p6432_p6), %s8104_s5, 128, %s541_s27, [#allocation14], %s6269_s24, %s6269_s24, %s6270_s15  }
  0x6e   : > { %s6271_s22 = smov [#allocation16]   ;;  %s6272_s25 = smov [#allocation19]  }
  0x6f   : > { %s570_s23 = sshll.u32 %s6271_s22, 4  ;;  %s598_s29 = sshll.u32 %s6272_s25, 4  ;;  %s571_s23 = int_to_ptr.vmem [resolvable:$true] %s570_s23  ;;  %s599_s29 = int_to_ptr.vmem [resolvable:$true] %s598_s29 }
  0x70   : > { %s5784_s20 = scalar_lea.hbm %s8106_s7, 256 }
  0x71   : > { %p5785_p1 = scmp.ne.s32.totalorder %s8106_s7, %s5784_s20  ;;  %p5791_p12 = scmp.lt.u32.totalorder %s5784_s20, %s8106_s7 }
  0x73   : > { %p5787_p3 = pnand %p5785_p1, %p6448_p8 }
  0x75   : > { %p5788_p11 = pneg %p5787_p3 }
  0x77   : > { %p5793_p13 = pnand %p5791_p12, %p5788_p11 }
  0x79   : > { %5796 = shalt.err (!%p5793_p13)
}
  0x7a   : > { %s5797_s27 = scalar_lea.vmem %s571_s23, 256  ;;  %p5805_p7 = scmp.lt.s32.totalorder %s571_s23, %s571_s23 }
  0x7b   : > { %p5798_p0 = scmp.ne.s32.totalorder %s571_s23, %s5797_s27  ;;  %p5806_p9 = scmp.lt.s32.totalorder %s5797_s27, %s5797_s27 }
  0x7d   : > { %p5800_p2 = pnand %p5798_p0, %p6448_p8  ;;  %p5807_p5 = por %p5806_p9, %p5805_p7 }
  0x7f   : > { %p5801_p4 = pneg %p5800_p2 }
  0x81   : > { %p5808_p10 = pnand %p5807_p5, %p5801_p4 }
  0x83   : > { %5811 = shalt.err (!%p5808_p10)
}
  0x84   : > { %5509 = dma.hbm_to_vmem [thread:$0]  (!%p6432_p6), %s8106_s7, 256, %s571_s23, [#allocation17], %s6269_s24, %s6269_s24, %s6270_s15  }
  0x85   : > { %s5812_s30 = scalar_lea.hbm %s8108_s9, 128 }
  0x86   : > { %p5813_p1 = scmp.ne.s32.totalorder %s8108_s9, %s5812_s30  ;;  %p5819_p12 = scmp.lt.u32.totalorder %s5812_s30, %s8108_s9 }
  0x88   : > { %p5815_p3 = pnand %p5813_p1, %p6448_p8 }
  0x8a   : > { %p5816_p11 = pneg %p5815_p3 }
  0x8c   : > { %p5821_p13 = pnand %p5819_p12, %p5816_p11 }
  0x8e   : > { %5824 = shalt.err (!%p5821_p13)
}
  0x8f   : > { %s5825_s19 = scalar_lea.vmem %s599_s29, 128  ;;  %p5833_p7 = scmp.lt.s32.totalorder %s599_s29, %s599_s29 }
  0x90   : > { %p5826_p0 = scmp.ne.s32.totalorder %s599_s29, %s5825_s19  ;;  %p5834_p9 = scmp.lt.s32.totalorder %s5825_s19, %s5825_s19 }
  0x92   : > { %p5828_p2 = pnand %p5826_p0, %p6448_p8  ;;  %p5835_p5 = por %p5834_p9, %p5833_p7 }
  0x94   : > { %p5829_p4 = pneg %p5828_p2 }
  0x96   : > { %p5836_p10 = pnand %p5835_p5, %p5829_p4 }
  0x98   : > { %5839 = shalt.err (!%p5836_p10)
}
  0x99   : > { %5515 = dma.hbm_to_vmem [thread:$0]  (!%p6432_p6), %s8108_s9, 128, %s599_s29, [#allocation20], %s6269_s24, %s6269_s24, %s6270_s15  }
  0x9a   : > { %s6273_s1 = smov [#allocation22]   ;;  %s6274_s22 = smov [#allocation25]  }
  0x9b   : > { %s624_s21 = sshll.u32 %s6273_s1, 4  ;;  %s656_s25 = sshll.u32 %s6274_s22, 4  ;;  %s625_s21 = int_to_ptr.vmem [resolvable:$true] %s624_s21  ;;  %s657_s25 = int_to_ptr.vmem [resolvable:$true] %s656_s25 }
  0x9c   : > { %s5840_s20 = scalar_lea.hbm %s8110_s11, 128 }
  0x9d   : > { %p5841_p1 = scmp.ne.s32.totalorder %s8110_s11, %s5840_s20  ;;  %p5847_p12 = scmp.lt.u32.totalorder %s5840_s20, %s8110_s11 }
  0x9f   : > { %p5843_p3 = pnand %p5841_p1, %p6448_p8 }
  0xa1   : > { %p5844_p11 = pneg %p5843_p3 }
  0xa3   : > { %p5849_p13 = pnand %p5847_p12, %p5844_p11 }
  0xa5   : > { %5852 = shalt.err (!%p5849_p13)
}
  0xa6   : > { %s5853_s29 = scalar_lea.vmem %s625_s21, 128  ;;  %p5861_p7 = scmp.lt.s32.totalorder %s625_s21, %s625_s21 }
  0xa7   : > { %p5854_p0 = scmp.ne.s32.totalorder %s625_s21, %s5853_s29  ;;  %p5862_p9 = scmp.lt.s32.totalorder %s5853_s29, %s5853_s29 }
  0xa9   : > { %p5856_p2 = pnand %p5854_p0, %p6448_p8  ;;  %p5863_p5 = por %p5862_p9, %p5861_p7 }
  0xab   : > { %p5857_p4 = pneg %p5856_p2 }
  0xad   : > { %p5864_p10 = pnand %p5863_p5, %p5857_p4 }
  0xaf   : > { %5867 = shalt.err (!%p5864_p10)
}
  0xb0   : > { %5521 = dma.hbm_to_vmem [thread:$0]  (!%p6432_p6), %s8110_s11, 128, %s625_s21, [#allocation23], %s6269_s24, %s6269_s24, %s6270_s15  }
  0xb1   : > { %s5868_s18 = scalar_lea.hbm %s8112_s13, 256 }
  0xb2   : > { %p5869_p1 = scmp.ne.s32.totalorder %s8112_s13, %s5868_s18  ;;  %p5875_p12 = scmp.lt.u32.totalorder %s5868_s18, %s8112_s13 }
  0xb4   : > { %p5871_p3 = pnand %p5869_p1, %p6448_p8 }
  0xb6   : > { %p5872_p11 = pneg %p5871_p3 }
  0xb8   : > { %p5877_p13 = pnand %p5875_p12, %p5872_p11 }
  0xba   : > { %5880 = shalt.err (!%p5877_p13)
}
  0xbb   : > { %s5881_s23 = scalar_lea.vmem %s657_s25, 256  ;;  %p5889_p7 = scmp.lt.s32.totalorder %s657_s25, %s657_s25 }
  0xbc   : > { %p5882_p0 = scmp.ne.s32.totalorder %s657_s25, %s5881_s23  ;;  %p5890_p9 = scmp.lt.s32.totalorder %s5881_s23, %s5881_s23 }
  0xbe   : > { %p5884_p2 = pnand %p5882_p0, %p6448_p8  ;;  %p5891_p5 = por %p5890_p9, %p5889_p7 }
  0xc0   : > { %p5885_p4 = pneg %p5884_p2 }
  0xc2   : > { %p5892_p10 = pnand %p5891_p5, %p5885_p4 }
  0xc4   : > { %5895 = shalt.err (!%p5892_p10)
}
  0xc5   : > { %5527 = dma.hbm_to_vmem [thread:$0]  (!%p6432_p6), %s8112_s13, 256, %s657_s25, [#allocation26], %s6269_s24, %s6269_s24, %s6270_s15  }
  0xc6   : > { %s6275_s27 = smov [#allocation9]   ;;  %s6276_s22 = smov [#allocation12]  }
  0xc7   : > { %s497_s1 = sshll.u32 %s6275_s27, 4  ;;  %s525_s30 = sshll.u32 %s6276_s22, 4  ;;  %s498_s1 = int_to_ptr.vmem [resolvable:$true] %s497_s1  ;;  %s526_s30 = int_to_ptr.vmem [resolvable:$true] %s525_s30 }
  0xc8   : > { %s8153_s2 = sld [smem:[#allocation50_spill]] }
  0xce   : > { %s5896_s16 = scalar_lea.hbm %s8153_s2, 256 }
  0xcf   : > { %p5897_p1 = scmp.ne.s32.totalorder %s8153_s2, %s5896_s16  ;;  %p5903_p12 = scmp.lt.u32.totalorder %s5896_s16, %s8153_s2 }
  0xd1   : > { %p5899_p3 = pnand %p5897_p1, %p6448_p8 }
  0xd3   : > { %p5900_p11 = pneg %p5899_p3 }
  0xd5   : > { %p5905_p13 = pnand %p5903_p12, %p5900_p11 }
  0xd7   : > { %5908 = shalt.err (!%p5905_p13)
}
  0xd8   : > { %s5909_s25 = scalar_lea.vmem %s498_s1, 256  ;;  %p5917_p7 = scmp.lt.s32.totalorder %s498_s1, %s498_s1 }
  0xd9   : > { %p5910_p0 = scmp.ne.s32.totalorder %s498_s1, %s5909_s25  ;;  %p5918_p9 = scmp.lt.s32.totalorder %s5909_s25, %s5909_s25 }
  0xdb   : > { %p5912_p2 = pnand %p5910_p0, %p6448_p8  ;;  %p5919_p5 = por %p5918_p9, %p5917_p7 }
  0xdd   : > { %p5913_p4 = pneg %p5912_p2 }
  0xdf   : > { %p5920_p10 = pnand %p5919_p5, %p5913_p4 }
  0xe1   : > { %5923 = shalt.err (!%p5920_p10)
}
  0xe2   : > { %5494 = dma.hbm_to_vmem [thread:$0]  (!%p6432_p6), %s8153_s2, 256, %s498_s1, [#allocation8], %s6269_s24, %s6269_s24, %s6270_s15  }
  0xe3   : > { %s5924_s20 = scalar_lea.hbm %s8103_s4, 128 }
  0xe4   : > { %p5925_p1 = scmp.ne.s32.totalorder %s8103_s4, %s5924_s20  ;;  %p5931_p12 = scmp.lt.u32.totalorder %s5924_s20, %s8103_s4 }
  0xe6   : > { %p5927_p3 = pnand %p5925_p1, %p6448_p8 }
  0xe8   : > { %p5928_p11 = pneg %p5927_p3 }
  0xea   : > { %p5933_p13 = pnand %p5931_p12, %p5928_p11 }
  0xec   : > { %5936 = shalt.err (!%p5933_p13)
}
  0xed   : > { %s5937_s21 = scalar_lea.vmem %s526_s30, 128  ;;  %p5945_p7 = scmp.lt.s32.totalorder %s526_s30, %s526_s30 }
  0xee   : > { %p5938_p0 = scmp.ne.s32.totalorder %s526_s30, %s5937_s21  ;;  %p5946_p9 = scmp.lt.s32.totalorder %s5937_s21, %s5937_s21 }
  0xf0   : > { %p5940_p2 = pnand %p5938_p0, %p6448_p8  ;;  %p5947_p5 = por %p5946_p9, %p5945_p7 }
  0xf2   : > { %p5941_p4 = pneg %p5940_p2 }
  0xf4   : > { %p5948_p10 = pnand %p5947_p5, %p5941_p4 }
  0xf6   : > { %5951 = shalt.err (!%p5948_p10)
}
  0xf7   : > { %5500 = dma.hbm_to_vmem [thread:$0]  (!%p6432_p6), %s8103_s4, 128, %s526_s30, [#allocation11], %s6269_s24, %s6269_s24, %s6270_s15  }
  0xf8   : > { %s6277_s29 = smov [#allocation15]   ;;  %s6278_s22 = smov [#allocation18]  }
  0xf9   : > { %s555_s27 = sshll.u32 %s6277_s29, 4  ;;  %s585_s18 = sshll.u32 %s6278_s22, 4  ;;  %s556_s27 = int_to_ptr.vmem [resolvable:$true] %s555_s27  ;;  %s586_s18 = int_to_ptr.vmem [resolvable:$true] %s585_s18 }
  0xfa   : > { %s5952_s0 = scalar_lea.hbm %s8105_s6, 128 }
  0xfb   : > { %p5953_p1 = scmp.ne.s32.totalorder %s8105_s6, %s5952_s0  ;;  %p5959_p12 = scmp.lt.u32.totalorder %s5952_s0, %s8105_s6 }
  0xfd   : > { %p5955_p3 = pnand %p5953_p1, %p6448_p8 }
  0xff   : > { %p5956_p11 = pneg %p5955_p3 }
 0x101   : > { %p5961_p13 = pnand %p5959_p12, %p5956_p11 }
 0x103   : > { %5964 = shalt.err (!%p5961_p13)
}
 0x104   : > { %s5965_s30 = scalar_lea.vmem %s556_s27, 128  ;;  %p5973_p7 = scmp.lt.s32.totalorder %s556_s27, %s556_s27 }
 0x105   : > { %p5966_p0 = scmp.ne.s32.totalorder %s556_s27, %s5965_s30  ;;  %p5974_p9 = scmp.lt.s32.totalorder %s5965_s30, %s5965_s30 }
 0x107   : > { %p5968_p2 = pnand %p5966_p0, %p6448_p8  ;;  %p5975_p5 = por %p5974_p9, %p5973_p7 }
 0x109   : > { %p5969_p4 = pneg %p5968_p2 }
 0x10b   : > { %p5976_p10 = pnand %p5975_p5, %p5969_p4 }
 0x10d   : > { %5979 = shalt.err (!%p5976_p10)
}
 0x10e   : > { %5506 = dma.hbm_to_vmem [thread:$0]  (!%p6432_p6), %s8105_s6, 128, %s556_s27, [#allocation14], %s6269_s24, %s6269_s24, %s6270_s15  }
 0x10f   : > { %s5980_s16 = scalar_lea.hbm %s8107_s8, 256 }
 0x110   : > { %p5981_p1 = scmp.ne.s32.totalorder %s8107_s8, %s5980_s16  ;;  %p5987_p12 = scmp.lt.u32.totalorder %s5980_s16, %s8107_s8 }
 0x112   : > { %p5983_p3 = pnand %p5981_p1, %p6448_p8 }
 0x114   : > { %p5984_p11 = pneg %p5983_p3 }
 0x116   : > { %p5989_p13 = pnand %p5987_p12, %p5984_p11 }
 0x118   : > { %5992 = shalt.err (!%p5989_p13)
}
 0x119   : > { %s5993_s1 = scalar_lea.vmem %s586_s18, 256  ;;  %p6001_p7 = scmp.lt.s32.totalorder %s586_s18, %s586_s18 }
 0x11a   : > { %p5994_p0 = scmp.ne.s32.totalorder %s586_s18, %s5993_s1  ;;  %p6002_p9 = scmp.lt.s32.totalorder %s5993_s1, %s5993_s1 }
 0x11c   : > { %p5996_p2 = pnand %p5994_p0, %p6448_p8  ;;  %p6003_p5 = por %p6002_p9, %p6001_p7 }
 0x11e   : > { %p5997_p4 = pneg %p5996_p2 }
 0x120   : > { %p6004_p10 = pnand %p6003_p5, %p5997_p4 }
 0x122   : > { %6007 = shalt.err (!%p6004_p10)
}
 0x123   : > { %5512 = dma.hbm_to_vmem [thread:$0]  (!%p6432_p6), %s8107_s8, 256, %s586_s18, [#allocation17], %s6269_s24, %s6269_s24, %s6270_s15  }
 0x124   : > { %s6279_s25 = smov [#allocation21]   ;;  %s6280_s22 = smov [#allocation24]  }
 0x125   : > { %s611_s29 = sshll.u32 %s6279_s25, 4  ;;  %s640_s20 = sshll.u32 %s6280_s22, 4  ;;  %s612_s29 = int_to_ptr.vmem [resolvable:$true] %s611_s29  ;;  %s641_s20 = int_to_ptr.vmem [resolvable:$true] %s640_s20 }
 0x126   : > { %s6008_s19 = scalar_lea.hbm %s8109_s10, 128 }
 0x127   : > { %p6009_p1 = scmp.ne.s32.totalorder %s8109_s10, %s6008_s19  ;;  %p6015_p12 = scmp.lt.u32.totalorder %s6008_s19, %s8109_s10 }
 0x129   : > { %p6011_p3 = pnand %p6009_p1, %p6448_p8 }
 0x12b   : > { %p6012_p11 = pneg %p6011_p3 }
 0x12d   : > { %p6017_p13 = pnand %p6015_p12, %p6012_p11 }
 0x12f   : > { %6020 = shalt.err (!%p6017_p13)
}
 0x130   : > { %s6021_s18 = scalar_lea.vmem %s612_s29, 128  ;;  %p6029_p7 = scmp.lt.s32.totalorder %s612_s29, %s612_s29 }
 0x131   : > { %p6022_p0 = scmp.ne.s32.totalorder %s612_s29, %s6021_s18  ;;  %p6030_p9 = scmp.lt.s32.totalorder %s6021_s18, %s6021_s18 }
 0x133   : > { %p6024_p2 = pnand %p6022_p0, %p6448_p8  ;;  %p6031_p5 = por %p6030_p9, %p6029_p7 }
 0x135   : > { %p6025_p4 = pneg %p6024_p2 }
 0x137   : > { %p6032_p10 = pnand %p6031_p5, %p6025_p4 }
 0x139   : > { %6035 = shalt.err (!%p6032_p10)
}
 0x13a   : > { %5518 = dma.hbm_to_vmem [thread:$0]  (!%p6432_p6), %s8109_s10, 128, %s612_s29, [#allocation20], %s6269_s24, %s6269_s24, %s6270_s15  }
 0x13b   : > { %s6036_s0 = scalar_lea.hbm %s8111_s12, 256 }
 0x13c   : > { %p6037_p1 = scmp.ne.s32.totalorder %s8111_s12, %s6036_s0  ;;  %p6043_p12 = scmp.lt.u32.totalorder %s6036_s0, %s8111_s12 }
 0x13e   : > { %p6039_p3 = pnand %p6037_p1, %p6448_p8 }
 0x140   : > { %p6040_p11 = pneg %p6039_p3 }
 0x142   : > { %p6045_p13 = pnand %p6043_p12, %p6040_p11 }
 0x144   : > { %6048 = shalt.err (!%p6045_p13)
}
 0x145   : > { %s6049_s27 = scalar_lea.vmem %s641_s20, 256  ;;  %p6057_p7 = scmp.lt.s32.totalorder %s641_s20, %s641_s20 }
 0x146   : > { %p6050_p0 = scmp.ne.s32.totalorder %s641_s20, %s6049_s27  ;;  %p6058_p9 = scmp.lt.s32.totalorder %s6049_s27, %s6049_s27 }
 0x148   : > { %p6052_p2 = pnand %p6050_p0, %p6448_p8  ;;  %p6059_p5 = por %p6058_p9, %p6057_p7 }
 0x14a   : > { %p6053_p4 = pneg %p6052_p2 }
 0x14c   : > { %p6060_p10 = pnand %p6059_p5, %p6053_p4 }
 0x14e   : > { %6063 = shalt.err (!%p6060_p10)
}
 0x14f   : > { %5524 = dma.hbm_to_vmem [thread:$0]  (!%p6432_p6), %s8111_s12, 256, %s641_s20, [#allocation23], %s6269_s24, %s6269_s24, %s6270_s15  }
 0x150   : > { %s6281_s30 = smov [#allocation27]   ;;  %s6064_s0 = scalar_lea.hbm %s8113_s14, 256 }
 0x151   : > { %s672_s25 = sshll.u32 %s6281_s30, 4  ;;  %p6065_p1 = scmp.ne.s32.totalorder %s8113_s14, %s6064_s0  ;;  %s673_s25 = int_to_ptr.vmem [resolvable:$true] %s672_s25 }
 0x152   : > { %p6071_p12 = scmp.lt.u32.totalorder %s6064_s0, %s8113_s14 }
 0x153   : > { %p6067_p3 = pnand %p6065_p1, %p6448_p8 }
 0x155   : > { %p6068_p11 = pneg %p6067_p3 }
 0x157   : > { %p6073_p13 = pnand %p6071_p12, %p6068_p11 }
 0x159   : > { %6076 = shalt.err (!%p6073_p13)
}
 0x15a   : > { %s6077_s20 = scalar_lea.vmem %s673_s25, 256  ;;  %p6085_p7 = scmp.lt.s32.totalorder %s673_s25, %s673_s25 }
 0x15b   : > { %p6078_p0 = scmp.ne.s32.totalorder %s673_s25, %s6077_s20  ;;  %p6086_p9 = scmp.lt.s32.totalorder %s6077_s20, %s6077_s20 }
 0x15d   : > { %p6080_p2 = pnand %p6078_p0, %p6448_p8  ;;  %p6087_p5 = por %p6086_p9, %p6085_p7 }
 0x15f   : > { %p6081_p4 = pneg %p6080_p2 }
 0x161   : > { %p6088_p10 = pnand %p6087_p5, %p6081_p4 }
 0x163   : > { %6091 = shalt.err (!%p6088_p10)
}
 0x164   : > { %s8154_s18 = sld [smem:[#allocation45_spill]]  ;;  %s8155_s30 = sld [smem:[#allocation43_spill]] }
 0x165   : > { %s8156_s22 = sld [smem:[#allocation42_spill]]  ;;  %s8157_s28 = sld [smem:[#allocation41_spill]] }
 0x166   : > { %s8158_s16 = sld [smem:[#allocation46_spill]]  ;;  %s4844_s17 = sadd.s32 4294967294, %s6264_s26  }
 0x167   : > { %5530 = dma.hbm_to_vmem [thread:$0]  (!%p6432_p6), %s8113_s14, 256, %s673_s25, [#allocation26], %s6269_s24, %s6269_s24, %s6270_s15  }
 0x168   : > { %p70_p3 = scmp.eq.s32.totalorder %s6264_s26, 0  ;;  %s8160_s15 = sadd.s32 4294967295, %s6264_s26  }
 0x169   : > { %p433_p6 = scmp.eq.s32.totalorder %s8160_s15, 1  ;;  %p439_p7 = scmp.eq.s32.totalorder %s4844_s17, 1 }
 0x16a   : > { %s55_s0 = sadd.s32 1, %s8154_s18  ;;  %s62_s19 = sadd.s32 1, %s8155_s30 }
 0x16b   : > { %p57_p8 = scmp.ge.s32.totalorder %s55_s0, 2  ;;  %p69_p1 = scmp.ne.s32.totalorder %s8155_s30, %s8156_s22 }
 0x16c   : > { %p75_p12 = scmp.ne.s32.totalorder %s8156_s22, %s8157_s28  ;;  %p8161_p0 = scmp.ne.s32.totalorder %s8158_s16, 0 }
 0x16d   : > { %s8206_s0 = smov (%p57_p8, %s55_s0), 0  ;;  %p6759_p11 = por %p70_p3, %p69_p1 }
 0x16e   : > { %s59_s24 = ssub.s32 %s8154_s18, %s8206_s0  ;;  %p6771_p2 = por %p8161_p0, %p75_p12 }
 0x16f   : > { %p60_p13 = scmp.eq.s32.totalorder %s59_s24, 0  ;;  %p6775_p4 = por %p433_p6, %p69_p1 }
 0x170   : > { %p6782_p9 = por %p439_p7, %p75_p12  ;;  %p5556_p5 = scmp.lt.s32.totalorder %s6264_s26, 2 }
 0x171   : > { %s8163_s21 = scalar_select %p6775_p4, 1, 0 }
 0x172   : > { %s6780_s1 = scalar_select %p60_p13, %s8155_s30, %s62_s19  }
 0x173   : > { %s8164_s20 = scalar_select %p6782_p9, 1, 0 }
 0x174   : > { %s686_s27 = sand.u32 1, %s8155_s30   ;;  %s5032_s29 = sshll.u32 %s8154_s18, 10 }
 0x175   : > { %s4861_s22 = sshll.u32 %s686_s27, 6  ;;  %s8165_s24 = sld [smem:[#allocation48_spill]] }
 0x176   : > { %s690_s17 = scalar_lea.vmem [#allocation4], %s4861_s22  ;;  %p6796_p10 = pnand %p5556_p5, %p6759_p11 }
 0x177   : > { %s697_s19 = sshll.u32 %s690_s17, 4  ;;  %s6802_s18 = scalar_lea.sflag [#allocation5], %s686_s27  ;;  %s6800_s19 = int_to_ptr.vmem [resolvable:$true] %s697_s19 }
 0x178   : > { %p6094_p1 = pneg %p6796_p10 }
 0x17b   : > { %s8166_s15 = smov %s8165_s24  ;;  %s6792_s2 = scalar_lea.hbm %s8165_s24, %s5032_s29 }
 0x17c   : > { %s6092_s30 = scalar_lea.hbm %s6792_s2, 1024  ;;  %s6097_s22 = scalar_lea.hbm %s8166_s15, 2048 }
 0x17d   : > { %p6093_p8 = scmp.ne.s32.totalorder %s6792_s2, %s6092_s30  ;;  %p6098_p11 = scmp.lt.u32.totalorder %s6792_s2, %s8166_s15 }
 0x17e   : > { %p6099_p6 = scmp.lt.u32.totalorder %s6097_s22, %s6092_s30  ;;  %p6101_p0 = scmp.lt.u32.totalorder %s6092_s30, %s6792_s2 }
 0x17f   : > { %p6095_p3 = pnand %p6094_p1, %p6093_p8 }
 0x180   : > { %p6100_p13 = por %p6099_p6, %p6098_p11 }
 0x181   : > { %p6096_p12 = pneg %p6095_p3 }
 0x182   : > { %p6102_p7 = por %p6101_p0, %p6100_p13 }
 0x184   : > { %p6103_p5 = pnand %p6102_p7, %p6096_p12 }
 0x186   : > { %6106 = shalt.err (!%p6103_p5)
}
 0x187   : > { %s6107_s27 = scalar_lea.vmem %s6800_s19, 1024  ;;  %s6282_s24 = smov [#allocation4]  }
 0x188   : > { %p6108_p8 = scmp.ne.s32.totalorder %s6800_s19, %s6107_s27  ;;  %s6112_s17 = sshll.u32 %s6282_s24, 4  ;;  %s6113_s17 = int_to_ptr.vmem [resolvable:$false] %s6112_s17 }
 0x189   : > { %s6114_s29 = scalar_lea.vmem %s6113_s17, 2048  ;;  %p6115_p4 = scmp.lt.s32.totalorder %s6800_s19, %s6113_s17 }
 0x18a   : > { %p6110_p3 = pnand %p6108_p8, %p6094_p1  ;;  %p6116_p11 = scmp.lt.s32.totalorder %s6114_s29, %s6107_s27 }
 0x18c   : > { %p6111_p9 = pneg %p6110_p3  ;;  %p6117_p6 = por %p6116_p11, %p6115_p4 }
 0x18e   : > { %p6118_p13 = pnand %p6117_p6, %p6111_p9 }
 0x190   : > { %6121 = shalt.err (!%p6118_p13)
}
 0x191   : > { %s6283_s30 = smov 128   ;;  %s6284_s23 = smov 8  }
 0x192   : > { %5534 = dma.hbm_to_vmem [thread:$0]  (!%p6796_p10), %s6792_s2, 1024, %s6800_s19, %s6802_s18, %s6283_s30, %s6283_s30, %s6284_s23  }
 0x193   : > { %s8168_s22 = sld [smem:[#allocation47_spill]] }
 0x199   : > { %p8169_p1 = scmp.ne.s32.totalorder %s8168_s22, 0 }
 0x19a   : > { %s8170_s28 = sld [smem:[#allocation42_spill]] (!%p8169_p1) }
 0x19b   : > { %709 = sbr.rel (%p8169_p1) target bundleno = 2415 (0x96f), region = 80 }
 0x1a0   : > { %s6833_s16 = sand.u32 (!%p8169_p1), 1, %s8170_s28  }
 0x1a1   : > { %s6836_s27 = sshll.u32 (!%p8169_p1), %s6833_s16, 6  ;;  %s712_s24 = scalar_lea.sflag (!%p8169_p1), [#allocation5], %s6833_s16 }
 0x1a2   : > { %s6840_s17 = scalar_lea.vmem [#allocation4], %s6836_s27 }
 0x1a3   : > { %6203 = dma.done.wait (%p6771_p2), %s712_s24, 1024  }
 0x1a4   : > { %6205 = vsyncadd (%p6771_p2), %s712_s24, 4294966272  ;;  %s8171_s2 = sld [smem:[#allocation46_spill]] }
 0x1aa   : > { %p8172_p4 = scmp.ne.s32.totalorder %s8171_s2, 0 }
 0x1ac   : > { %6207 = dma.done.wait (%p8172_p4), [#allocation8], 512  }
 0x1ad   : > { %6209 = vsyncadd (%p8172_p4), [#allocation8], 4294966784 }
 0x1ae   : > { %6211 = dma.done.wait (%p8172_p4), [#allocation11], 384  }
 0x1af   : > { %6213 = vsyncadd (%p8172_p4), [#allocation11], 4294966912 }
 0x1b0   : > { %6215 = dma.done.wait (%p8172_p4), [#allocation14], 256  }
 0x1b1   : > { %6217 = vsyncadd (%p8172_p4), [#allocation14], 4294967040 }
 0x1b2   : > { %6219 = dma.done.wait (%p8172_p4), [#allocation17], 512  }
 0x1b3   : > { %6221 = vsyncadd (%p8172_p4), [#allocation17], 4294966784 }
 0x1b4   : > { %6223 = dma.done.wait (%p8172_p4), [#allocation20], 256  }
 0x1b5   : > { %6225 = vsyncadd (%p8172_p4), [#allocation20], 4294967040 }
 0x1b6   : > { %6227 = dma.done.wait (%p8172_p4), [#allocation23], 384  }
 0x1b7   : > { %6229 = vsyncadd (%p8172_p4), [#allocation23], 4294966912 }
 0x1b8   : > { %6231 = dma.done.wait (%p8172_p4), [#allocation26], 512  }
 0x1b9   : > { %6233 = vsyncadd (%p8172_p4), [#allocation26], 4294966784  ;;  %v5648_v0 = vld [vmem:[#allocation12] sm:$0xff]   ;;  %v6875_v1 = vld [vmem:[%s6840_s17] sm:$0xff]  ;;  %v6285_v32 = vmov 683565275  }
 0x1ba   : > { %v6878_v2 = vld [vmem:[%s6840_s17 + $0x8] sm:$0xff]  ;;  %5158 = vmatprep.subr.bf16.mxu0 %v5648_v0  ;;  %5392 = vmatprep.subr.bf16.mxu1 %v5648_v0  ;;  %v844_v3 = vand.u32 2147483647, %v6875_v1  ;;  %v847_v4 = vand.u32 2139095040, %v6875_v1  ;;  %v6883_v5 = vld [vmem:[%s6840_s17 + $0x20] sm:$0xff]  ;;  %vm846_vm13 = vcmp.lt.s32.totalorder %v6875_v1, 0 }
 0x1bb   : > { %5159 = vmatpush3.bf16.msra.mxu0 %v5648_v0  ;;  %5393 = vmatpush3.bf16.msra.mxu1 %v5648_v0  ;;  %v947_v6 = vand.u32 2147483647, %v6878_v2  ;;  %v950_v7 = vand.u32 2139095040, %v6878_v2  ;;  %v1259_v12 = vand.u32 2139095040, %v6883_v5  ;;  %v1256_v22 = vand.u32 2147483647, %v6883_v5 }
 0x1bc   : > { %v848_v8 = vshrl.u32 %v847_v4, 23  ;;  %v851_v9 = vand.u32 8388607, %v844_v3  ;;  %v6286_v34 = vmov 2475754826   ;;  %s8187_s3 = sld [smem:[#allocation44_spill]] }
 0x1bd   : > { %v951_v10 = vshrl.u32 %v950_v7, 23  ;;  %v954_v11 = vand.u32 8388607, %v947_v6  ;;  %v1260_v15 = vshrl.u32 %v1259_v12, 23  ;;  %v6287_v36 = vmov 2131351028  }
 0x1be   : > { %v4882_v13 = vadd.s32 4294967169, %v848_v8  ;;  %v852_v16 = vor.u32 8388608, %v851_v9  ;;  %v6288_v38 = vmov 2102212464   ;;  %v6289_v40 = vmov 920167782  }
 0x1bf   : > { %v4886_v14 = vadd.s32 4294967169, %v951_v10  ;;  %v955_v18 = vor.u32 8388608, %v954_v11  ;;  %v4898_v20 = vadd.s32 4294967169, %v1260_v15  ;;  %v6290_v47 = vmov 1326507024   ;;  %s817_s25 = scalar_lea.vmem [#allocation28], %s6836_s27 }
 0x1c0   : > { %v854_v17 = vadd.s32 1, %v4882_v13  ;;  %v6893_v25 = vshll.u32 %v852_v16, 8  ;;  %vm7001_vm14 = vcmp.le.f32.partialorder %v844_v3, 0.7853982  ;;  %s4565_s18 = sshll.u32 %s817_s25, 4  ;;  %s8188_s23 = sld [smem:[#allocation52_spill]]  ;;  %s7995_s18 = int_to_ptr.vmem [resolvable:$true] %s4565_s18 }
 0x1c1   : > { %v957_v19 = vadd.s32 1, %v4886_v14  ;;  %v6897_v29 = vshll.u32 %v955_v18, 8  ;;  %v6899_v30 = vadd.s32 1, %v4898_v20  ;;  %p8190_p9 = scmp.ne.s32.totalorder %s8163_s21, 0  ;;  %s6293_s2 = smov [#allocation28]  }
 0x1c2   : > { %vm855_vm0 = vcmp.gt.s32.totalorder %v854_v17, 0  ;;  %s8131_s19 = sshll.u32 %s8187_s3, 10  ;;  %s6126_s29 = sshll.u32 %s6293_s2, 4  ;;  %s6127_s29 = int_to_ptr.vmem [resolvable:$false] %s6126_s29 }
 0x1c3   : > { %v856_v21 = vsel %vm855_vm0, %v854_v17, 0  ;;  %vm958_vm1 = vcmp.gt.s32.totalorder %v957_v19, 0  ;;  %vm1267_vm6 = vcmp.gt.s32.totalorder %v6899_v30, 0  ;;  %s6128_s30 = scalar_lea.vmem %s6127_s29, 2048  ;;  %p6129_p0 = scmp.lt.s32.totalorder %s7995_s18, %s6127_s29 }
 0x1c4   : > { %v857_v23 = vshrl.u32 %v856_v21, 5  ;;  %v858_v24 = vand.u32 31, %v856_v21  ;;  %v959_v26 = vsel %vm958_vm1, %v957_v19, 0 }
 0x1c5   : > { %v6895_v27 = vshrl.u32 %v959_v26, 5  ;;  %v961_v28 = vand.u32 31, %v959_v26 }
 0x1c6   : > { %v859_v31 = vsub.s32 32, %v858_v24  ;;  %v861_v33 = vshll.u32 %v6285_v32, %v858_v24  ;;  %v864_v35 = vshll.u32 %v6286_v34, %v858_v24  ;;  %v867_v37 = vshll.u32 %v6287_v36, %v858_v24  ;;  %s8189_s28 = smov %s8188_s23  ;;  %s7993_s22 = scalar_lea.hbm %s8188_s23, %s8131_s19 }
 0x1c7   : > { %v870_v39 = vshll.u32 %v6288_v38, %v858_v24  ;;  %v873_v41 = vshll.u32 %v6289_v40, %v858_v24  ;;  %vm876_vm2 = vcmp.lt.s32.totalorder %v857_v23, 1  ;;  %vm877_vm3 = vcmp.lt.s32.totalorder %v857_v23, 2 }
 0x1c8   : > { %v860_v42 = vshrl.u32 %v6285_v32, %v859_v31  ;;  %v862_v43 = vshrl.u32 %v6286_v34, %v859_v31  ;;  %v865_v44 = vshrl.u32 %v6287_v36, %v859_v31  ;;  %v868_v45 = vshrl.u32 %v6288_v38, %v859_v31 }
 0x1c9   : > { %v871_v46 = vshrl.u32 %v6289_v40, %v859_v31  ;;  %v874_v48 = vshrl.u32 %v6290_v47, %v859_v31  ;;  %vm878_vm4 = vcmp.lt.s32.totalorder %v857_v23, 3  ;;  %vm879_vm5 = vcmp.lt.s32.totalorder %v857_v23, 4 }
 0x1ca   : > { %v863_v49 = vor.u32 %v862_v43, %v861_v33  ;;  %v866_v50 = vor.u32 %v865_v44, %v864_v35  ;;  %v869_v51 = vor.u32 %v868_v45, %v867_v37  ;;  %v962_v52 = vsub.s32 32, %v961_v28 }
 0x1cb   : > { %v872_v53 = vor.u32 %v871_v46, %v870_v39  ;;  %v875_v54 = vor.u32 %v874_v48, %v873_v41  ;;  %v964_v55 = vshll.u32 %v6285_v32, %v961_v28  ;;  %v967_v63 = vshll.u32 %v6286_v34, %v961_v28 }
 0x1cc   : > { %v880_v56 = vsel %vm876_vm2, %v860_v42, %v863_v49  ;;  %v881_v57 = vsel %vm879_vm5, %v869_v51, 2102212464  ;;  %v884_v58 = vsel %vm876_vm2, %v863_v49, %v866_v50  ;;  %v888_v59 = vsel %vm876_vm2, %v866_v50, %v869_v51 }
 0x1cd   : > { %v882_v60 = vsel %vm878_vm4, %v866_v50, %v881_v57  ;;  %v885_v61 = vsel %vm879_vm5, %v872_v53, 920167782  ;;  %v889_v62 = vsel %vm879_vm5, %v875_v54, 1326507024  ;;  %v963_v7 = vshrl.u32 %v6285_v32, %v962_v52 }
 0x1ce   : > { %v886_v0 = vsel %vm878_vm4, %v869_v51, %v885_v61  ;;  %v890_v4 = vsel %vm878_vm4, %v872_v53, %v889_v62  ;;  %v965_v8 = vshrl.u32 %v6286_v34, %v962_v52  ;;  %v883_v9 = vsel %vm877_vm3, %v880_v56, %v882_v60  ;;  %v6970_v62 = vld [vmem:[%s6840_s17 + $0x28] sm:$0xff] }
 0x1cf   : > { %v887_v10 = vsel %vm877_vm3, %v884_v58, %v886_v0  ;;  %v891_v11 = vsel %vm877_vm3, %v888_v59, %v890_v4  ;;  %v968_v12 = vshrl.u32 %v6287_v36, %v962_v52  ;;  %v970_v19 = vshll.u32 %v6287_v36, %v961_v28 }
 0x1d0   : > { %v6928_v13 = vmul.u32.u64.low %v6893_v25, %v891_v11  ;;  %v6929_v14 = vmul.u32.u64.high %v6893_v25, %v891_v11, %v6928_v13  ;;  %v6932_v15 = vmul.u32.u64.low %v6893_v25, %v887_v10  ;;  %v6933_v16 = vmul.u32.u64.high %v6893_v25, %v887_v10, %v6932_v15 }
 0x1d1   : > { %v966_v17 = vor.u32 %v965_v8, %v964_v55  ;;  %v969_v18 = vor.u32 %v968_v12, %v967_v63  ;;  %v971_v20 = vshrl.u32 %v6288_v38, %v962_v52  ;;  %v973_v21 = vshll.u32 %v6288_v38, %v961_v28 }
 0x1d2   : > { %v974_v23 = vshrl.u32 %v6289_v40, %v962_v52  ;;  %v976_v24 = vshll.u32 %v6289_v40, %v961_v28  ;;  %v977_v26 = vshrl.u32 %v6290_v47, %v962_v52  ;;  %v899_v31 = vmul.u32 %v6893_v25, %v883_v9 }
 0x1d3   : > { %v972_v33 = vor.u32 %v971_v20, %v970_v19  ;;  %vm979_vm7 = vcmp.lt.s32.totalorder %v6895_v27, 1  ;;  %vm980_vm8 = vcmp.lt.s32.totalorder %v6895_v27, 2  ;;  %vm901_vm9 = vc.u32 %v6929_v14, %v6932_v15 }
 0x1d4   : > { %v902_v35 = vadd.s32 1, %v6933_v16  ;;  %v975_v37 = vor.u32 %v974_v23, %v973_v21  ;;  %vm981_vm10 = vcmp.lt.s32.totalorder %v6895_v27, 3  ;;  %v978_v39 = vor.u32 %v977_v26, %v976_v24 }
 0x1d5   : > { %vm982_vm11 = vcmp.lt.s32.totalorder %v6895_v27, 4  ;;  %v983_v28 = vsel %vm979_vm7, %v963_v7, %v966_v17  ;;  %v987_v41 = vsel %vm979_vm7, %v966_v17, %v969_v18  ;;  %v991_v44 = vsel %vm979_vm7, %v969_v18, %v972_v33 }
 0x1d6   : > { %v903_v42 = vsel %vm901_vm9, %v902_v35, %v6933_v16  ;;  %v984_v25 = vsel %vm982_vm11, %v972_v33, 2102212464  ;;  %v988_v43 = vsel %vm982_vm11, %v975_v37, 920167782  ;;  %v992_v49 = vsel %vm982_vm11, %v978_v39, 1326507024 }
 0x1d7   : > { %v904_v45 = vadd.s32 %v903_v42, %v899_v31  ;;  %v985_v46 = vsel %vm981_vm10, %v969_v18, %v984_v25  ;;  %v989_v48 = vsel %vm981_vm10, %v972_v33, %v988_v43  ;;  %v993_v52 = vsel %vm981_vm10, %v975_v37, %v992_v49 }
 0x1d8   : > { %v986_v50 = vsel %vm980_vm8, %v983_v28, %v985_v46  ;;  %v990_v51 = vsel %vm980_vm8, %v987_v41, %v989_v48  ;;  %v1268_v53 = vsel %vm1267_vm6, %v6899_v30, 0  ;;  %v994_v55 = vsel %vm980_vm8, %v991_v44, %v993_v52 }
 0x1d9   : > { %v905_v54 = vadd.s32 536870912, %v904_v45  ;;  %v6959_v56 = vmul.u32.u64.low %v6897_v29, %v990_v51  ;;  %v6960_v57 = vmul.u32.u64.high %v6897_v29, %v990_v51, %v6959_v56  ;;  %v1263_v60 = vand.u32 8388607, %v1256_v22 }
 0x1da   : > { %v6964_v58 = vmul.u32.u64.low %v6897_v29, %v994_v55  ;;  %v6965_v59 = vmul.u32.u64.high %v6897_v29, %v994_v55, %v6964_v58  ;;  %v1270_v30 = vand.u32 31, %v1268_v53  ;;  %v1002_v63 = vmul.u32 %v6897_v29, %v986_v50 }
 0x1db   : > { %v906_v61 = vshrl.u32 %v905_v54, 30  ;;  %v1005_v0 = vadd.s32 1, %v6960_v57  ;;  %v1359_v4 = vand.u32 2147483647, %v6970_v62  ;;  %v1264_v7 = vor.u32 8388608, %v1263_v60 }
 0x1dc   : > { %vm1004_vm12 = vc.u32 %v6965_v59, %v6959_v56  ;;  %v1362_v8 = vand.u32 2139095040, %v6970_v62  ;;  %v1271_v11 = vsub.s32 32, %v1270_v30  ;;  %v900_v16 = vadd.s32 %v6932_v15, %v6929_v14 }
 0x1dd   : > { %v907_v27 = vshll.u32 %v906_v61, 30  ;;  %v1006_v10 = vsel %vm1004_vm12, %v1005_v0, %v6960_v57  ;;  %v6981_v29 = vand.u32 8388607, %v1359_v4  ;;  %v6984_v18 = vshll.u32 %v1264_v7, 8 }
 0x1de   : > { %v1007_v12 = vadd.s32 %v1006_v10, %v1002_v63  ;;  %v1363_v19 = vshrl.u32 %v1362_v8, 23  ;;  %v6987_v21 = vshrl.u32 %v1268_v53, 5  ;;  %v1279_v23 = vshll.u32 %v6287_v36, %v1270_v30 }
 0x1df   : > { %v908_v9 = vsub.s32 %v904_v45, %v907_v27  ;;  %v1280_v24 = vshrl.u32 %v6288_v38, %v1271_v11  ;;  %v1273_v31 = vshll.u32 %v6285_v32, %v1270_v30  ;;  %v1274_v33 = vshrl.u32 %v6286_v34, %v1271_v11 }
 0x1e0   : > { %v1008_v17 = vadd.s32 536870912, %v1007_v12  ;;  %v1276_v14 = vshll.u32 %v6286_v34, %v1270_v30  ;;  %v1277_v35 = vshrl.u32 %v6287_v36, %v1271_v11  ;;  %v1282_v37 = vshll.u32 %v6288_v38, %v1270_v30 }
 0x1e1   : > { %v910_v13 = vsub.s32 0, %v908_v9  ;;  %v1283_v39 = vshrl.u32 %v6289_v40, %v1271_v11  ;;  %v1285_v42 = vshll.u32 %v6289_v40, %v1270_v30  ;;  %v1286_v25 = vshrl.u32 %v6290_v47, %v1271_v11 }
 0x1e2   : > { %v6991_v26 = vshrl.u32 %v1008_v17, 30  ;;  %v4902_v43 = vadd.s32 4294967169, %v1363_v19  ;;  %v1281_v45 = vor.u32 %v1280_v24, %v1279_v23  ;;  %vm1288_vm15 = vcmp.lt.s32.totalorder %v6987_v21, 1 }
 0x1e3   : > { %v4883_v20 = vmin.u32 %v910_v13, %v908_v9  ;;  %vm1291_vm0 = vcmp.lt.s32.totalorder %v6987_v21, 4  ;;  %v930_v46 = vsub.s32 4, %v906_v61  ;;  %v1272_v3 = vshrl.u32 %v6285_v32, %v1271_v11 }
 0x1e4   : > { %v1010_v41 = vshll.u32 %v6991_v26, 30  ;;  %v1275_v49 = vor.u32 %v1274_v33, %v1273_v31  ;;  %v1278_v50 = vor.u32 %v1277_v35, %v1276_v14  ;;  %v1284_v51 = vor.u32 %v1283_v39, %v1282_v37 }
 0x1e5   : > { %v912_v15 = vclz %v4883_v20  ;;  %v1293_v52 = vsel %vm1291_vm0, %v1281_v45, 2102212464  ;;  %v1287_v55 = vor.u32 %v1286_v25, %v1285_v42  ;;  %vm1289_vm2 = vcmp.lt.s32.totalorder %v6987_v21, 2 }
 0x1e6   : > { %v7010_v48 = vsub.s32 %v1007_v12, %v1010_v41  ;;  %vm1290_vm3 = vcmp.lt.s32.totalorder %v6987_v21, 3  ;;  %v931_v30 = vsel %vm846_vm13, %v930_v46, %v906_v61  ;;  %vm949_vm4 = vcmp.lt.s32.totalorder %v6878_v2, 0 }
 0x1e7   : > { %v4884_v44 = vadd.s32 4294967294, %v912_v15  ;;  %v1292_v27 = vsel %vm1288_vm15, %v1272_v3, %v1275_v49  ;;  %v1294_v0 = vsel %vm1290_vm3, %v1278_v50, %v1293_v52  ;;  %v1297_v10 = vsel %vm1291_vm0, %v1284_v51, 920167782 }
 0x1e8   : > { %v1013_v54 = vsub.s32 0, %v7010_v48  ;;  %v1298_v61 = vsel %vm1290_vm3, %v1281_v45, %v1297_v10  ;;  %v1300_v12 = vsel %vm1288_vm15, %v1278_v50, %v1281_v45  ;;  %v1301_v13 = vsel %vm1291_vm0, %v1287_v55, 1326507024 }
 0x1e9   : > { %vm4885_vm1 = vcmp.lt.s32.totalorder %v4884_v44, 0  ;;  %vm7040_vm5 = vcmp.le.f32.partialorder %v947_v6, 0.7853982  ;;  %v1003_v23 = vadd.s32 %v6959_v56, %v6965_v59  ;;  %v1033_v31 = vsub.s32 4, %v6991_v26 }
 0x1ea   : > { %v915_v53 = vsel %vm4885_vm1, 0, %v4884_v44  ;;  %v4887_v63 = vmin.u32 %v1013_v54, %v7010_v48  ;;  %v1302_v14 = vsel %vm1290_vm3, %v1284_v51, %v1301_v13  ;;  %v1295_v6 = vsel %vm1289_vm2, %v1292_v27, %v1294_v0 }
 0x1eb   : > { %v916_v57 = vsub.s32 32, %v915_v53  ;;  %v917_v58 = vshll.u32 %v908_v9, %v915_v53  ;;  %v920_v60 = vsub.s32 4294967266, %v915_v53  ;;  %v1296_v9 = vsel %vm1288_vm15, %v1275_v49, %v1278_v50 }
 0x1ec   : > { %v1015_v11 = vclz %v4887_v63  ;;  %v1299_v33 = vsel %vm1289_vm2, %v1296_v9, %v1298_v61  ;;  %v1303_v37 = vsel %vm1289_vm2, %v1300_v12, %v1302_v14  ;;  %v1369_v39 = vadd.s32 1, %v4902_v43 }
 0x1ed   : > { %v918_v7 = vshrl.u32 %v900_v16, %v916_v57  ;;  %v921_v8 = vadd.s32 127, %v920_v60  ;;  %v933_v16 = vsel %vm7001_vm14, 0, %v931_v30  ;;  %v1034_v49 = vsel %vm949_vm4, %v1033_v31, %v6991_v26 }
 0x1ee   : > { %v4888_v24 = vadd.s32 4294967294, %v1015_v11  ;;  %v7056_v56 = vmul.u32.u64.low %v6984_v18, %v1303_v37  ;;  %v7057_v59 = vmul.u32.u64.high %v6984_v18, %v1303_v37, %v7056_v56  ;;  %vm1370_vm7 = vcmp.gt.s32.totalorder %v1369_v39, 0 }
 0x1ef   : > { %v919_v17 = vor.u32 %v918_v7, %v917_v58  ;;  %v922_v19 = vshll.u32 %v921_v8, 23  ;;  %v7060_v25 = vmul.u32.u64.low %v6984_v18, %v1299_v33  ;;  %v7061_v44 = vmul.u32.u64.high %v6984_v18, %v1299_v33, %v7060_v25 }
 0x1f0   : > { %vm4889_vm6 = vcmp.lt.s32.totalorder %v4888_v24, 0  ;;  %v1770_v50 = vadd.s32 3, %v933_v16  ;;  %v1371_v51 = vsel %vm1370_vm7, %v1369_v39, 0  ;;  %v1311_v53 = vmul.u32 %v6984_v18, %v1295_v6 }
 0x1f1   : > { %v923_v15 = vor.u32 4788187, %v922_v19  ;;  %v926_v35 = vcvt.s32.f32 %v919_v17  ;;  %v1018_v42 = vsel %vm4889_vm6, 0, %v4888_v24  ;;  %vm1313_vm8 = vc.u32 %v7057_v59, %v7060_v25 }
 0x1f2   : > { %v1019_v45 = vsub.s32 32, %v1018_v42  ;;  %v1020_v46 = vshll.u32 %v7010_v48, %v1018_v42  ;;  %v1023_v3 = vsub.s32 4294967266, %v1018_v42  ;;  %v1314_v55 = vadd.s32 1, %v7061_v44 }
 0x1f3   : > { %v924_v41 = vand.u32 2147483647, %v923_v15  ;;  %v1367_v48 = vor.u32 8388608, %v6981_v29  ;;  %v1373_v57 = vand.u32 31, %v1371_v51  ;;  %v7073_v58 = vand.u32 3, %v933_v16 }
 0x1f4   : > { %v1021_v43 = vshrl.u32 %v1003_v23, %v1019_v45  ;;  %v1024_v52 = vadd.s32 127, %v1023_v3  ;;  %v1036_v26 = vsel %vm7040_vm5, 0, %v1034_v49  ;;  %v7079_v18 = vand.u32 3, %v1770_v50 }
 0x1f5   : > { %v927_v21 = vmul.f32 %v926_v35, %v924_v41  ;;  %v1315_v27 = vsel %vm1313_vm8, %v1314_v55, %v7061_v44  ;;  %v1374_v0 = vsub.s32 32, %v1373_v57  ;;  %v1874_v10 = vadd.s32 3, %v1036_v26 }
 0x1f6   : > { %v1022_v60 = vor.u32 %v1021_v43, %v1020_v46  ;;  %v1025_v30 = vshll.u32 %v1024_v52, 23  ;;  %v1316_v9 = vadd.s32 %v1315_v27, %v1311_v53  ;;  %v7085_v11 = vshrl.u32 %v1371_v51, 5 }
 0x1f7   : > { %v928_v54 = vxor.u32 2147483648, %v927_v21  ;;  %v1376_v61 = vshll.u32 %v6285_v32, %v1373_v57  ;;  %v1377_v17 = vshrl.u32 %v6286_v34, %v1374_v0  ;;  %v1379_v19 = vshll.u32 %v6286_v34, %v1373_v57 }
 0x1f8   : > { %v1026_v7 = vor.u32 4788187, %v1025_v30  ;;  %v1029_v8 = vcvt.s32.f32 %v1022_v60  ;;  %v1317_v13 = vadd.s32 536870912, %v1316_v9  ;;  %v1382_v16 = vshll.u32 %v6287_v36, %v1373_v57 }
 0x1f9   : > { %v929_v63 = vsel %vm846_vm13, %v928_v54, %v927_v21  ;;  %v1383_v28 = vshrl.u32 %v6288_v38, %v1374_v0  ;;  %v1385_v23 = vshll.u32 %v6288_v38, %v1373_v57  ;;  %v1380_v33 = vshrl.u32 %v6287_v36, %v1374_v0 }
 0x1fa   : > { %v932_v29 = vsel %vm7001_vm14, %v6875_v1, %v929_v63  ;;  %v1027_v12 = vand.u32 2147483647, %v1026_v7  ;;  %v7093_v31 = vshrl.u32 %v1317_v13, 30  ;;  %v1386_v14 = vshrl.u32 %v6289_v40, %v1374_v0 }
 0x1fb   : > { %5666 = vcosq.f32 %v932_v29  ;;  %vm939_vm9 = vcmp.eq.s32.totalorder %v7073_v58, 0  ;;  %vm942_vm10 = vcmp.eq.s32.totalorder %v7073_v58, 2  ;;  %v1388_v15 = vshll.u32 %v6289_v40, %v1373_v57 }
 0x1fc   : > { %5668 = vsinq.f32 %v932_v29  ;;  %v1030_v24 = vmul.f32 %v1029_v8, %v1027_v12  ;;  %v1389_v35 = vshrl.u32 %v6290_v47, %v1374_v0  ;;  %v7101_v37 = vand.u32 3, %v1036_v26 }
 0x1fd   : > { %vm1773_vm11 = vcmp.eq.s32.totalorder %v7079_v18, 0  ;;  %vm1776_vm12 = vcmp.eq.s32.totalorder %v7079_v18, 2  ;;  %v7105_v56 = vand.u32 3, %v1874_v10  ;;  %v1319_v39 = vshll.u32 %v7093_v31, 30 }
 0x1fe   : > { %v1031_v6 = vxor.u32 2147483648, %v1030_v24  ;;  %vm938_vm13 = vcmp.lt.s32.totalorder %v7073_v58, 2  ;;  %v1375_v41 = vshrl.u32 %v6285_v32, %v1374_v0  ;;  %v1378_v42 = vor.u32 %v1377_v17, %v1376_v61 }
 0x1ff   : > { %v1384_v44 = vor.u32 %v1383_v28, %v1382_v16  ;;  %v1387_v45 = vor.u32 %v1386_v14, %v1385_v23  ;;  %v7112_v3 = vsub.s32 %v1316_v9, %v1319_v39  ;;  %v1381_v21 = vor.u32 %v1380_v33, %v1379_v19  ;;  %v7165_v19 = vld [vmem:[%s6840_s17 + $0x10] sm:$0xff] }
 0x200   : > { %v1032_v46 = vsel %vm949_vm4, %v1031_v6, %v1030_v24  ;;  %vm1394_vm14 = vcmp.lt.s32.totalorder %v7085_v11, 4  ;;  %vm1772_vm15 = vcmp.lt.s32.totalorder %v7079_v18, 2  ;;  %v1390_v50 = vor.u32 %v1389_v35, %v1388_v15 }
 0x201   : > { %v1035_v49 = vsel %vm7040_vm5, %v6878_v2, %v1032_v46  ;;  %vm1391_vm0 = vcmp.lt.s32.totalorder %v7085_v11, 1  ;;  %v1396_v51 = vsel %vm1394_vm14, %v1384_v44, 2102212464  ;;  %vm936_vm1 = vweird.f32 %v6875_v1 }
 0x202   : > { %5670 = vcosq.f32 %v1035_v49  ;;  %v1322_v43 = vsub.s32 0, %v7112_v3  ;;  %vm1393_vm2 = vcmp.lt.s32.totalorder %v7085_v11, 3  ;;  %v7125_v52 = vshll.u32 %v1367_v48, 8 }
 0x203   : > { %5672 = vsinq.f32 %v1035_v49  ;;  %vm1392_vm3 = vcmp.lt.s32.totalorder %v7085_v11, 2  ;;  %v1395_v20 = vsel %vm1391_vm0, %v1375_v41, %v1378_v42  ;;  %v1400_v54 = vsel %vm1394_vm14, %v1387_v45, 920167782 }
 0x204   : > { %v4899_v60 = vmin.u32 %v1322_v43, %v7112_v3  ;;  %v1397_v30 = vsel %vm1393_vm2, %v1381_v21, %v1396_v51  ;;  %v1399_v48 = vsel %vm1391_vm0, %v1378_v42, %v1381_v21  ;;  %vm1042_vm4 = vcmp.eq.s32.totalorder %v7101_v37, 0 }
 0x205   : > { %v5667_v53 = vpop.eup %5666  ;;  %v1401_v63 = vsel %vm1393_vm2, %v1384_v44, %v1400_v54  ;;  %v1403_v27 = vsel %vm1391_vm0, %v1381_v21, %v1384_v44  ;;  %v1404_v0 = vsel %vm1394_vm14, %v1390_v50, 1326507024  ;;  %vm1041_vm5 = vcmp.lt.s32.totalorder %v7101_v37, 2 }
 0x206   : > { %v5669_v55 = vpop.eup %5668  ;;  %v943_v57 = vxor.u32 2147483648, %v5667_v53  ;;  %vm1045_vm6 = vcmp.eq.s32.totalorder %v7101_v37, 2  ;;  %vm1876_vm7 = vcmp.lt.s32.totalorder %v7105_v56, 2  ;;  %vm1877_vm8 = vcmp.eq.s32.totalorder %v7105_v56, 0 }
 0x207   : > { %v940_v26 = vxor.u32 2147483648, %v5669_v55  ;;  %v1324_v29 = vclz %v4899_v60  ;;  %vm1039_vm0 = vweird.f32 %v6878_v2  ;;  %v1402_v9 = vsel %vm1392_vm3, %v1399_v48, %v1401_v63 }
 0x208   : > { %v944_v8 = vsel %vm942_vm10, %v943_v57, %v5669_v55  ;;  %v1405_v10 = vsel %vm1393_vm2, %v1387_v45, %v1404_v0  ;;  %vm1258_vm14 = vcmp.lt.s32.totalorder %v6883_v5, 0  ;;  %v1312_v61 = vadd.s32 %v7060_v25, %v7057_v59 }
 0x209   : > { %v941_v7 = vsel %vm939_vm9, %v5667_v53, %v940_v26  ;;  %v4900_v12 = vadd.s32 4294967294, %v1324_v29  ;;  %v1398_v13 = vsel %vm1392_vm3, %v1395_v20, %v1397_v30  ;;  %v1406_v17 = vsel %vm1392_vm3, %v1403_v27, %v1405_v10 }
 0x20a   : > { %v1775_v16 = vsel %vm1773_vm11, %v5667_v53, %v940_v26  ;;  %v1778_v28 = vsel %vm1776_vm12, %v943_v57, %v5669_v55  ;;  %v7172_v23 = vmul.u32.u64.low %v7125_v52, %v1406_v17  ;;  %v7173_v24 = vmul.u32.u64.high %v7125_v52, %v1406_v17, %v7172_v23 }
 0x20b   : > { %v945_v59 = vsel %vm938_vm13, %v941_v7, %v944_v8  ;;  %vm1672_vm9 = vcmask 130048   ;;  %vm4901_vm10 = vcmp.lt.s32.totalorder %v4900_v12, 0  ;;  %vm1880_vm2 = vcmp.eq.s32.totalorder %v7105_v56, 2 }
 0x20c   : > { %v7178_v25 = vmul.u32.u64.low %v7125_v52, %v1402_v9  ;;  %v7179_v11 = vmul.u32.u64.high %v7125_v52, %v1402_v9, %v7178_v25  ;;  %v1327_v33 = vsel %vm4901_vm10, 0, %v4900_v12  ;;  %v1342_v14 = vsub.s32 4, %v7093_v31  ;;  %v5671_v35 = vpop.eup %5670 }
 0x20d   : > { %v1053_v15 = vand.u32 2139095040, %v7165_v19  ;;  %v1779_v6 = vsel %vm1772_vm15, %v1775_v16, %v1778_v28  ;;  %v1328_v58 = vsub.s32 32, %v1327_v33  ;;  %v1329_v39 = vshll.u32 %v7112_v3, %v1327_v33  ;;  %v5673_v42 = vpop.eup %5672 }
 0x20e   : > { %v1332_v41 = vsub.s32 4294967266, %v1327_v33  ;;  %v946_v44 = vsel %vm936_vm1, nan, %v945_v59  ;;  %v1046_v45 = vxor.u32 2147483648, %v5671_v35  ;;  %v1414_v46 = vmul.u32 %v7125_v52, %v1398_v13  ;;  %v7239_v33 = vld [vmem:[%s6840_s17 + $0x18] sm:$0xff] }
 0x20f   : > { %vm1416_vm11 = vc.u32 %v7173_v24, %v7178_v25  ;;  %v1043_v21 = vxor.u32 2147483648, %v5673_v42  ;;  %v1330_v49 = vshrl.u32 %v1312_v61, %v1328_v58  ;;  %v1417_v18 = vadd.s32 1, %v7179_v11 }
 0x210   : > { %v1333_v50 = vadd.s32 127, %v1332_v41  ;;  %v1047_v51 = vsel %vm1045_vm6, %v1046_v45, %v5673_v42  ;;  %v1780_v3 = vsel %vm936_vm1, nan, %v1779_v6  ;;  %v1882_v43 = vsel %vm1880_vm2, %v1046_v45, %v5673_v42 }
 0x211   : > { %v1054_v53 = vshrl.u32 %v1053_v15, 23  ;;  %v1044_v52 = vsel %vm1042_vm4, %v5671_v35, %v1043_v21  ;;  %v1879_v20 = vsel %vm1877_vm8, %v5671_v35, %v1043_v21  ;;  %v1331_v54 = vor.u32 %v1330_v49, %v1329_v39 }
 0x212   : > { %v1334_v55 = vshll.u32 %v1333_v50, 23  ;;  %v1048_v57 = vsel %vm1041_vm5, %v1044_v52, %v1047_v51  ;;  %v1883_v60 = vsel %vm1876_vm7, %v1879_v20, %v1882_v43  ;;  %v1343_v1 = vsel %vm1258_vm14, %v1342_v14, %v7093_v31 }
 0x213   : > { %v1418_v30 = vsel %vm1416_vm11, %v1417_v18, %v7179_v11  ;;  %v1049_v48 = vsel %vm1039_vm0, nan, %v1048_v57  ;;  %v1884_v26 = vsel %vm1039_vm0, nan, %v1883_v60  ;;  %v1338_v63 = vcvt.s32.f32 %v1331_v54 }
 0x214   : > { %v1335_v37 = vor.u32 4788187, %v1334_v55  ;;  %v1668_v27 = vpack.c.bf16 %v1049_v48, %v946_v44  ;;  %v2509_v56 = vpack.c.bf16 %v1884_v26, %v1780_v3  ;;  %v1419_v0 = vadd.s32 %v1418_v30, %v1414_v46 }
 0x215   : > { %v4890_v29 = vadd.s32 4294967169, %v1054_v53  ;;  %vm7223_vm12 = vcmp.le.f32.partialorder %v1256_v22, 0.7853982  ;;  %v1050_v61 = vand.u32 2147483647, %v7165_v19  ;;  %vm1361_vm15 = vcmp.lt.s32.totalorder %v6970_v62, 0 }
 0x216   : > { %v1336_v7 = vand.u32 2147483647, %v1335_v37  ;;  %1673 = vst.msk [vmem:[#allocation2] sm:$0xff] %vm1672_vm9, %v1668_v27  ;;  %2513 = vst.msk [vmem:[#allocation3] sm:$0xff] %vm1672_vm9, %v2509_v56  ;;  %v1420_v2 = vadd.s32 536870912, %v1419_v0  ;;  %v1345_v10 = vsel %vm7223_vm12, 0, %v1343_v1  ;;  %v1415_v41 = vadd.s32 %v7178_v25, %v7173_v24 }
 0x217   : > { %v1060_v8 = vadd.s32 1, %v4890_v29  ;;  %v2186_v28 = vadd.s32 3, %v1345_v10  ;;  %v7234_v59 = vand.u32 8388607, %v1050_v61  ;;  %v7246_v6 = vand.u32 3, %v1345_v10 }
 0x218   : > { %v1339_v9 = vmul.f32 %v1338_v63, %v1336_v7  ;;  %v1421_v12 = vshrl.u32 %v1420_v2, 30  ;;  %v1153_v21 = vand.u32 2147483647, %v7239_v33  ;;  %vm7261_vm1 = vcmp.le.f32.partialorder %v1359_v4, 0.7853982 }
 0x219   : > { %vm1061_vm13 = vcmp.gt.s32.totalorder %v1060_v8, 0  ;;  %v7253_v44 = vand.u32 3, %v2186_v28  ;;  %v1058_v46 = vor.u32 8388608, %v7234_v59  ;;  %vm1354_vm7 = vcmp.eq.s32.totalorder %v7246_v6, 2 }
 0x21a   : > { %v1340_v13 = vxor.u32 2147483648, %v1339_v9  ;;  %v1062_v17 = vsel %vm1061_vm13, %v1060_v8, 0  ;;  %v1422_v16 = vshll.u32 %v1421_v12, 30  ;;  %v1445_v45 = vsub.s32 4, %v1421_v12 }
 0x21b   : > { %v1064_v23 = vand.u32 31, %v1062_v17  ;;  %v1063_v25 = vshrl.u32 %v1062_v17, 5  ;;  %v1160_v60 = vand.u32 8388607, %v1153_v21  ;;  %vm2192_vm0 = vcmp.eq.s32.totalorder %v7253_v44, 2 }
 0x21c   : > { %v1341_v22 = vsel %vm1258_vm14, %v1340_v13, %v1339_v9  ;;  %v7236_v11 = vsub.s32 %v1419_v0, %v1422_v16  ;;  %v1446_v54 = vsel %vm1361_vm15, %v1445_v45, %v1421_v12  ;;  %vm1351_vm10 = vcmp.eq.s32.totalorder %v7246_v6, 0 }
 0x21d   : > { %v7241_v14 = vld [vmem:[#allocation2] sm:$0xff]  ;;  %v1344_v35 = vsel %vm7223_vm12, %v6883_v5, %v1341_v22  ;;  %v1065_v58 = vsub.s32 32, %v1064_v23  ;;  %v1156_v5 = vand.u32 2139095040, %v7239_v33  ;;  %v1067_v50 = vshll.u32 %v6285_v32, %v1064_v23 }
 0x21e   : > { %v2521_v15 = vld [vmem:[#allocation3] sm:$0xff]  ;;  %v1425_v42 = vsub.s32 0, %v7236_v11  ;;  %5674 = vcosq.f32 %v1344_v35  ;;  %v1070_v51 = vshll.u32 %v6286_v34, %v1064_v23  ;;  %v1073_v43 = vshll.u32 %v6287_v36, %v1064_v23 }
 0x21f   : > { %v2531_v39 = vadd.bf16 %v2521_v15, %v7241_v14  ;;  %v1068_v18 = vshrl.u32 %v6286_v34, %v1065_v58  ;;  %v1071_v3 = vshrl.u32 %v6287_v36, %v1065_v58  ;;  %v1074_v52 = vshrl.u32 %v6288_v38, %v1065_v58 }
 0x220   : > { %v4903_v24 = vmin.u32 %v1425_v42, %v7236_v11  ;;  %v1076_v4 = vshll.u32 %v6288_v38, %v1064_v23  ;;  %v1077_v20 = vshrl.u32 %v6289_v40, %v1065_v58  ;;  %v1079_v55 = vshll.u32 %v6289_v40, %v1064_v23 }
 0x221   : > { %5160 = vmatprep.mubr.msk.bf16.mxu0 %vm1672_vm9, %v2531_v39  ;;  %v1157_v57 = vshrl.u32 %v1156_v5, 23  ;;  %5676 = vsinq.f32 %v1344_v35  ;;  %v1080_v48 = vshrl.u32 %v6290_v47, %v1065_v58  ;;  %v1069_v26 = vor.u32 %v1068_v18, %v1067_v50 }
 0x222   : > { %v1427_v53 = vclz %v4903_v24  ;;  %v1078_v30 = vor.u32 %v1077_v20, %v1076_v4  ;;  %v1072_v37 = vor.u32 %v1071_v3, %v1070_v51  ;;  %v1075_v63 = vor.u32 %v1074_v52, %v1073_v43  ;;  %v7311_v20 = vld [vmem:[%s6840_s17 + $0x30] sm:$0xff] }
 0x223   : > { %vm1085_vm3 = vcmp.lt.s32.totalorder %v1063_v25, 4  ;;  %v1066_v27 = vshrl.u32 %v6285_v32, %v1065_v58  ;;  %vm1082_vm5 = vcmp.lt.s32.totalorder %v1063_v25, 1  ;;  %vm1084_vm6 = vcmp.lt.s32.totalorder %v1063_v25, 3 }
 0x224   : > { %v4904_v1 = vadd.s32 4294967294, %v1427_v53  ;;  %v1081_v0 = vor.u32 %v1080_v48, %v1079_v55  ;;  %v1087_v29 = vsel %vm1085_vm3, %v1075_v63, 2102212464  ;;  %v1091_v7 = vsel %vm1085_vm3, %v1078_v30, 920167782 }
 0x225   : > { %v4894_v9 = vadd.s32 4294967169, %v1157_v57  ;;  %v1448_v10 = vsel %vm7261_vm1, 0, %v1446_v54  ;;  %vm1083_vm8 = vcmp.lt.s32.totalorder %v1063_v25, 2  ;;  %v1090_v12 = vsel %vm1082_vm5, %v1069_v26, %v1072_v37 }
 0x226   : > { %vm4905_vm4 = vcmp.lt.s32.totalorder %v4904_v1, 0  ;;  %v1092_v13 = vsel %vm1084_vm6, %v1075_v63, %v1091_v7  ;;  %v1086_v23 = vsel %vm1082_vm5, %v1066_v27, %v1069_v26  ;;  %v1088_v22 = vsel %vm1084_vm6, %v1072_v37, %v1087_v29 }
 0x227   : > { %v1430_v56 = vsel %vm4905_vm4, 0, %v4904_v1  ;;  %v1094_v59 = vsel %vm1082_vm5, %v1072_v37, %v1075_v63  ;;  %v1098_v15 = vshll.u32 %v1058_v46, 8  ;;  %v1093_v39 = vsel %vm1083_vm8, %v1090_v12, %v1092_v13 }
 0x228   : > { %v1431_v31 = vsub.s32 32, %v1430_v56  ;;  %v1432_v2 = vshll.u32 %v7236_v11, %v1430_v56  ;;  %v1435_v8 = vsub.s32 4294967266, %v1430_v56  ;;  %v7289_v17 = vpop.eup %5674  ;;  %v1095_v11 = vsel %vm1085_vm3, %v1081_v0, 1326507024 }
 0x229   : > { %v1161_v42 = vor.u32 8388608, %v1160_v60  ;;  %v2290_v45 = vadd.s32 3, %v1448_v10  ;;  %v1089_v5 = vsel %vm1083_vm8, %v1086_v23, %v1088_v22  ;;  %v1096_v24 = vsel %vm1084_vm6, %v1078_v30, %v1095_v11 }
 0x22a   : > { %v1433_v16 = vshrl.u32 %v1415_v41, %v1431_v31  ;;  %v1436_v28 = vadd.s32 127, %v1435_v8  ;;  %v1355_v41 = vxor.u32 2147483648, %v7289_v17  ;;  %v1097_v3 = vsel %vm1083_vm8, %v1094_v59, %v1096_v24 }
 0x22b   : > { %v7300_v50 = vpop.eup %5676  ;;  %v1163_v46 = vadd.s32 1, %v4894_v9  ;;  %v7303_v43 = vmul.u32.u64.low %v1098_v15, %v1097_v3  ;;  %v7304_v53 = vmul.u32.u64.high %v1098_v15, %v1097_v3, %v7303_v43  ;;  %v7313_v55 = vshll.u32 %v1161_v42, 8  ;;  %v5698_v42 = vld [vmem:[%s6840_s17 + $0x20] sm:$0xff] }
 0x22c   : > { %v1434_v35 = vor.u32 %v1433_v16, %v1432_v2  ;;  %v1437_v58 = vshll.u32 %v1436_v28, 23  ;;  %v7306_v52 = vmul.u32.u64.low %v1098_v15, %v1093_v39  ;;  %v7307_v4 = vmul.u32.u64.high %v1098_v15, %v1093_v39, %v7306_v52 }
 0x22d   : > { %vm1164_vm14 = vcmp.gt.s32.totalorder %v1163_v46, 0  ;;  %v1462_v57 = vand.u32 2147483647, %v7311_v20  ;;  %v1352_v60 = vxor.u32 2147483648, %v7300_v50  ;;  %v7317_v25 = vand.u32 3, %v1448_v10 }
 0x22e   : > { %v1438_v18 = vor.u32 4788187, %v1437_v58  ;;  %v1441_v51 = vcvt.s32.f32 %v1434_v35  ;;  %v7319_v1 = vand.u32 3, %v2290_v45  ;;  %v1165_v30 = vsel %vm1164_vm14, %v1163_v46, 0 }
 0x22f   : > { %v7324_v48 = vsel %vm1354_vm7, %v1355_v41, %v7300_v50  ;;  %v1105_v37 = vmul.u32 %v1098_v15, %v1089_v5  ;;  %v1167_v63 = vand.u32 31, %v1165_v30  ;;  %vm2189_vm2 = vcmp.eq.s32.totalorder %v7253_v44, 0 }
 0x230   : > { %v1439_v54 = vand.u32 2147483647, %v1438_v18  ;;  %v7331_v27 = vsel %vm2192_vm0, %v1355_v41, %v7300_v50  ;;  %vm1107_vm11 = vc.u32 %v7304_v53, %v7306_v52  ;;  %v1108_v56 = vadd.s32 1, %v7307_v4 }
 0x231   : > { %v1166_v0 = vshrl.u32 %v1165_v30, 5  ;;  %v1168_v7 = vsub.s32 32, %v1167_v63  ;;  %v1170_v31 = vshll.u32 %v6285_v32, %v1167_v63  ;;  %v1173_v2 = vshll.u32 %v6286_v34, %v1167_v63 }
 0x232   : > { %v1442_v26 = vmul.f32 %v1441_v51, %v1439_v54  ;;  %v1109_v8 = vsel %vm1107_vm11, %v1108_v56, %v7307_v4  ;;  %v1176_v9 = vshll.u32 %v6287_v36, %v1167_v63  ;;  %v1179_v10 = vshll.u32 %v6288_v38, %v1167_v63 }
 0x233   : > { %v1182_v12 = vshll.u32 %v6289_v40, %v1167_v63  ;;  %vm1350_vm12 = vcmp.lt.s32.totalorder %v7246_v6, 2  ;;  %vm2188_vm13 = vcmp.lt.s32.totalorder %v7253_v44, 2  ;;  %v1110_v16 = vadd.s32 %v1109_v8, %v1105_v37 }
 0x234   : > { %v1443_v29 = vxor.u32 2147483648, %v1442_v26  ;;  %v1169_v28 = vshrl.u32 %v6285_v32, %v1168_v7  ;;  %v1171_v23 = vshrl.u32 %v6286_v34, %v1168_v7  ;;  %v1174_v59 = vshrl.u32 %v6287_v36, %v1168_v7 }
 0x235   : > { %v1177_v11 = vshrl.u32 %v6288_v38, %v1168_v7  ;;  %v1180_v15 = vshrl.u32 %v6289_v40, %v1168_v7  ;;  %v1111_v35 = vadd.s32 536870912, %v1110_v16  ;;  %v1183_v39 = vshrl.u32 %v6290_v47, %v1168_v7 }
 0x236   : > { %v1444_v13 = vsel %vm1361_vm15, %v1443_v29, %v1442_v26  ;;  %v1172_v58 = vor.u32 %v1171_v23, %v1170_v31  ;;  %vm1348_vm15 = vweird.f32 %v5698_v42  ;;  %v1175_v41 = vor.u32 %v1174_v59, %v1173_v2  ;;  %v7400_v23 = vld [vmem:[#allocation15] sm:$0xff]  }
 0x237   : > { %v1447_v22 = vsel %vm7261_vm1, %v6970_v62, %v1444_v13  ;;  %v1178_v45 = vor.u32 %v1177_v11, %v1176_v9  ;;  %v1181_v5 = vor.u32 %v1180_v15, %v1179_v10  ;;  %v7356_v24 = vshrl.u32 %v1111_v35, 30  ;;  %5178 = vmatprep.subr.bf16.mxu0 %v7400_v23 }
 0x238   : > { %5678 = vcosq.f32 %v1447_v22  ;;  %v1184_v49 = vor.u32 %v1183_v39, %v1182_v12  ;;  %vm1185_vm1 = vcmp.lt.s32.totalorder %v1166_v0, 1  ;;  %v1465_v18 = vand.u32 2139095040, %v7311_v20 }
 0x239   : > { %5680 = vsinq.f32 %v1447_v22  ;;  %vm1454_vm3 = vcmp.eq.s32.totalorder %v7317_v25, 0  ;;  %vm1186_vm4 = vcmp.lt.s32.totalorder %v1166_v0, 2  ;;  %vm1187_vm5 = vcmp.lt.s32.totalorder %v1166_v0, 3 }
 0x23a   : > { %vm1188_vm6 = vcmp.lt.s32.totalorder %v1166_v0, 4  ;;  %v1193_v51 = vsel %vm1185_vm1, %v1172_v58, %v1175_v41  ;;  %vm1453_vm7 = vcmp.lt.s32.totalorder %v7317_v25, 2  ;;  %v1113_v3 = vshll.u32 %v7356_v24, 30 }
 0x23b   : > { %v1189_v46 = vsel %vm1185_vm1, %v1169_v28, %v1172_v58  ;;  %v1190_v43 = vsel %vm1188_vm6, %v1178_v45, 2102212464  ;;  %v1194_v4 = vsel %vm1188_vm6, %v1181_v5, 920167782  ;;  %vm1451_vm8 = vweird.f32 %v6970_v62  ;;  %v7398_v28 = vld [vmem:[#allocation13] sm:$0xff]  }
 0x23c   : > { %v1191_v54 = vsel %vm1187_vm5, %v1175_v41, %v1190_v43  ;;  %v1195_v30 = vsel %vm1187_vm5, %v1178_v45, %v1194_v4  ;;  %v1197_v26 = vsel %vm1185_vm1, %v1175_v41, %v1178_v45  ;;  %v1198_v37 = vsel %vm1188_vm6, %v1184_v49, 1326507024  ;;  %5168 = vmatprep.subr.bf16.mxu1 %v7398_v28 }
 0x23d   : > { %v1353_v63 = vsel %vm1351_vm10, %v7289_v17, %v1352_v60  ;;  %v2191_v56 = vsel %vm2189_vm2, %v7289_v17, %v1352_v60  ;;  %v7375_v29 = vsub.s32 %v1110_v16, %v1113_v3  ;;  %v1196_v7 = vsel %vm1186_vm4, %v1193_v51, %v1195_v30 }
 0x23e   : > { %v1199_v31 = vsel %vm1187_vm5, %v1181_v5, %v1198_v37  ;;  %v7380_v2 = vmul.u32.u64.low %v7313_v55, %v1196_v7  ;;  %v7381_v8 = vmul.u32.u64.high %v7313_v55, %v1196_v7, %v7380_v2  ;;  %v1466_v9 = vshrl.u32 %v1465_v18, 23 }
 0x23f   : > { %vm1457_vm0 = vcmp.eq.s32.totalorder %v7317_v25, 2  ;;  %v1116_v50 = vsub.s32 0, %v7375_v29  ;;  %v1192_v10 = vsel %vm1186_vm4, %v1189_v46, %v1191_v54  ;;  %v1200_v17 = vsel %vm1186_vm4, %v1197_v26, %v1199_v31 }
 0x240   : > { %v1357_v60 = vsel %vm1350_vm12, %v1353_v63, %v7324_v48  ;;  %v2195_v12 = vsel %vm2188_vm13, %v2191_v56, %v7331_v27  ;;  %v7395_v13 = vmul.u32.u64.low %v7313_v55, %v1200_v17  ;;  %v7396_v16 = vmul.u32.u64.high %v7313_v55, %v1200_v17, %v7395_v13 }
 0x241   : > { %vm2292_vm14 = vcmp.lt.s32.totalorder %v7319_v1, 2  ;;  %vm2293_vm10 = vcmp.eq.s32.totalorder %v7319_v1, 0  ;;  %vm2296_vm2 = vcmp.eq.s32.totalorder %v7319_v1, 2  ;;  %v4891_v6 = vmin.u32 %v1116_v50, %v7375_v29 }
 0x242   : > { %v5679_v22 = vpop.eup %5678  ;;  %v1208_v27 = vmul.u32 %v7313_v55, %v1192_v10  ;;  %v1211_v0 = vadd.s32 1, %v7381_v8  ;;  %v4906_v59 = vadd.s32 4294967169, %v1466_v9  ;;  %v1358_v11 = vsel %vm1348_vm15, nan, %v1357_v60  ;;  %v7453_v60 = vld [vmem:[%s6840_s17 + $0x38] sm:$0xff]  ;;  %s6122_s17 = scalar_lea.vmem %s7995_s18, 1024 }
 0x243   : > { %v5681_v48 = vpop.eup %5680  ;;  %v1458_v44 = vxor.u32 2147483648, %v5679_v22  ;;  %v2196_v35 = vsel %vm1348_vm15, nan, %v2195_v12  ;;  %v1118_v58 = vclz %v4891_v6  ;;  %v1136_v45 = vsub.s32 4, %v7356_v24  ;;  %p6123_p2 = scmp.ne.s32.totalorder %s7995_s18, %s6122_s17  ;;  %p6130_p7 = scmp.lt.s32.totalorder %s6128_s30, %s6122_s17 }
 0x244   : > { %v1455_v15 = vxor.u32 2147483648, %v5681_v48  ;;  %vm1210_vm11 = vc.u32 %v7396_v16, %v7380_v2  ;;  %v1472_v46 = vadd.s32 1, %v4906_v59  ;;  %v1106_v54 = vadd.s32 %v7306_v52, %v7304_v53 }
 0x245   : > { %v1459_v39 = vsel %vm1457_vm0, %v1458_v44, %v5681_v48  ;;  %v2298_v41 = vsel %vm2296_vm2, %v1458_v44, %v5681_v48  ;;  %v4892_v49 = vadd.s32 4294967294, %v1118_v58  ;;  %v1212_v42 = vsel %vm1210_vm11, %v1211_v0, %v7381_v8  ;;  %p6124_p10 = pnand %p6123_p2, %p8190_p9  ;;  %p6131_p5 = por %p6130_p7, %p6129_p0 }
 0x246   : > { %v1456_v55 = vsel %vm1454_vm3, %v5679_v22, %v1455_v15  ;;  %v2295_v5 = vsel %vm2293_vm10, %v5679_v22, %v1455_v15  ;;  %v1213_v3 = vadd.s32 %v1212_v42, %v1208_v27  ;;  %vm1052_vm13 = vcmp.lt.s32.totalorder %v7165_v19, 0 }
 0x247   : > { %v1460_v18 = vsel %vm1453_vm7, %v1456_v55, %v1459_v39  ;;  %v2299_v51 = vsel %vm2292_vm14, %v2295_v5, %v2298_v41  ;;  %vm4893_vm12 = vcmp.lt.s32.totalorder %v4892_v49, 0  ;;  %v1137_v62 = vsel %vm1052_vm13, %v1136_v45, %v7356_v24  ;;  %p6125_p12 = pneg %p6124_p10 }
 0x248   : > { %v1461_v43 = vsel %vm1451_vm8, nan, %v1460_v18  ;;  %v2300_v4 = vsel %vm1451_vm8, nan, %v2299_v51  ;;  %v1121_v37 = vsel %vm4893_vm12, 0, %v4892_v49  ;;  %v1214_v25 = vadd.s32 536870912, %v1213_v3 }
 0x249   : > { %v1670_v30 = vpack.c.bf16 %v1461_v43, %v1358_v11  ;;  %v2511_v26 = vpack.c.bf16 %v2300_v4, %v2196_v35  ;;  %v1122_v1 = vsub.s32 32, %v1121_v37  ;;  %v1123_v63 = vshll.u32 %v7375_v29, %v1121_v37  ;;  %p6132_p8 = pnand %p6131_p5, %p6125_p12 }
 0x24a   : > { %v1126_v56 = vsub.s32 4294967266, %v1121_v37  ;;  %v7439_v53 = vshrl.u32 %v1214_v25, 30  ;;  %v1469_v52 = vand.u32 8388607, %v1462_v57  ;;  %vm1473_vm15 = vcmp.gt.s32.totalorder %v1472_v46, 0 }
 0x24b   : > { %1675 = vst.msk [vmem:[#allocation2 + $0x10] sm:$0xff] %vm1672_vm9, %v1670_v30  ;;  %2515 = vst.msk [vmem:[#allocation3 + $0x10] sm:$0xff] %vm1672_vm9, %v2511_v26  ;;  %v1124_v7 = vshrl.u32 %v1106_v54, %v1122_v1  ;;  %v1474_v8 = vsel %vm1473_vm15, %v1472_v46, 0  ;;  %vm7445_vm1 = vcmp.le.f32.partialorder %v1050_v61, 0.7853982  ;;  %v1568_v11 = vand.u32 2139095040, %v7453_v60 }
 0x24c   : > { %v1127_v31 = vadd.s32 127, %v1126_v56  ;;  %v1216_v9 = vshll.u32 %v7439_v53, 30  ;;  %v1476_v50 = vand.u32 31, %v1474_v8  ;;  %v1139_v17 = vsel %vm7445_vm1, 0, %v1137_v62 }
 0x24d   : > { %v1125_v10 = vor.u32 %v1124_v7, %v1123_v63  ;;  %v1470_v13 = vor.u32 8388608, %v1469_v52  ;;  %v7457_v61 = vand.u32 3, %v1139_v17  ;;  %v1565_v44 = vand.u32 2147483647, %v7453_v60 }
 0x24e   : > { %v1128_v24 = vshll.u32 %v1127_v31, 23  ;;  %v7455_v12 = vsub.s32 %v1213_v3, %v1216_v9  ;;  %v1477_v22 = vsub.s32 32, %v1476_v50  ;;  %v7461_v0 = vadd.s32 3, %v1139_v17 }
 0x24f   : > { %v1132_v48 = vcvt.s32.f32 %v1125_v10  ;;  %v1479_v59 = vshll.u32 %v6285_v32, %v1476_v50  ;;  %v1482_v41 = vshll.u32 %v6286_v34, %v1476_v50  ;;  %v1485_v49 = vshll.u32 %v6287_v36, %v1476_v50 }
 0x250   : > { %v1129_v6 = vor.u32 4788187, %v1128_v24  ;;  %v1219_v27 = vsub.s32 0, %v7455_v12  ;;  %v1480_v39 = vshrl.u32 %v6286_v34, %v1477_v22  ;;  %v1483_v45 = vshrl.u32 %v6287_v36, %v1477_v22 }
 0x251   : > { %v7476_v42 = vshll.u32 %v1470_v13, 8  ;;  %v1209_v51 = vadd.s32 %v7380_v2, %v7396_v16  ;;  %v1239_v3 = vsub.s32 4, %v7439_v53  ;;  %v1475_v46 = vshrl.u32 %v1474_v8, 5 }
 0x252   : > { %v7465_v15 = vld [vmem:[#allocation2 + $0x10] sm:$0xff]  ;;  %v1130_v58 = vand.u32 2147483647, %v1129_v6  ;;  %v4895_v5 = vmin.u32 %v1219_v27, %v7455_v12  ;;  %vm1155_vm3 = vcmp.lt.s32.totalorder %v7239_v33, 0  ;;  %v1486_v4 = vshrl.u32 %v6288_v38, %v1477_v22 }
 0x253   : > { %v7467_v35 = vld [vmem:[#allocation3 + $0x10] sm:$0xff]  ;;  %v1488_v54 = vshll.u32 %v6288_v38, %v1476_v50  ;;  %v1569_v30 = vshrl.u32 %v1568_v11, 23  ;;  %v1478_v37 = vshrl.u32 %v6285_v32, %v1477_v22  ;;  %v1481_v25 = vor.u32 %v1480_v39, %v1479_v59 }
 0x254   : > { %v2533_v55 = vadd.bf16 %v7467_v35, %v7465_v15  ;;  %v1133_v18 = vmul.f32 %v1132_v48, %v1130_v58  ;;  %v1221_v43 = vclz %v4895_v5  ;;  %v1484_v1 = vor.u32 %v1483_v45, %v1482_v41 }
 0x255   : > { %v1487_v2 = vor.u32 %v1486_v4, %v1485_v49  ;;  %v1489_v16 = vshrl.u32 %v6289_v40, %v1477_v22  ;;  %v1491_v56 = vshll.u32 %v6289_v40, %v1476_v50  ;;  %v1492_v52 = vshrl.u32 %v6290_v47, %v1477_v22 }
 0x256   : > { %5164 = vmatprep.mubr.msk.bf16.mxu1 %vm1672_vm9, %v2533_v55  ;;  %v1134_v26 = vxor.u32 2147483648, %v1133_v18  ;;  %v4896_v63 = vadd.s32 4294967294, %v1221_v43  ;;  %vm1494_vm4 = vcmp.lt.s32.totalorder %v1475_v46, 1  ;;  %vm1495_vm5 = vcmp.lt.s32.totalorder %v1475_v46, 2 }
 0x257   : > { %vm7496_vm6 = vcmp.le.f32.partialorder %v1153_v21, 0.7853982  ;;  %v1490_v8 = vor.u32 %v1489_v16, %v1488_v54  ;;  %vm1496_vm8 = vcmp.lt.s32.totalorder %v1475_v46, 3  ;;  %v1493_v50 = vor.u32 %v1492_v52, %v1491_v56 }
 0x258   : > { %v1135_v62 = vsel %vm1052_vm13, %v1134_v26, %v1133_v18  ;;  %vm4897_vm7 = vcmp.lt.s32.totalorder %v4896_v63, 0  ;;  %vm1497_vm0 = vcmp.lt.s32.totalorder %v1475_v46, 4  ;;  %v1498_v29 = vsel %vm1494_vm4, %v1478_v37, %v1481_v25 }
 0x259   : > { %v1138_v7 = vsel %vm7445_vm1, %v7165_v19, %v1135_v62  ;;  %v1224_v9 = vsel %vm4897_vm7, 0, %v4896_v63  ;;  %v1499_v13 = vsel %vm1497_vm0, %v1487_v2, 2102212464  ;;  %v1502_v21 = vsel %vm1494_vm4, %v1481_v25, %v1484_v1 }
 0x25a   : > { %5682 = vcosq.f32 %v1138_v7  ;;  %v1225_v10 = vsub.s32 32, %v1224_v9  ;;  %v1226_v24 = vshll.u32 %v7455_v12, %v1224_v9  ;;  %v1229_v17 = vsub.s32 4294967266, %v1224_v9 }
 0x25b   : > { %5684 = vsinq.f32 %v1138_v7  ;;  %v1503_v22 = vsel %vm1497_vm0, %v1490_v8, 920167782  ;;  %v1500_v27 = vsel %vm1496_vm8, %v1484_v1, %v1499_v13  ;;  %v1240_v11 = vsel %vm1155_vm3, %v1239_v3, %v7439_v53 }
 0x25c   : > { %v1227_v6 = vshrl.u32 %v1209_v51, %v1225_v10  ;;  %v1230_v48 = vadd.s32 127, %v1229_v17  ;;  %v1504_v59 = vsel %vm1496_vm8, %v1487_v2, %v1503_v22  ;;  %v1506_v58 = vsel %vm1494_vm4, %v1484_v1, %v1487_v2 }
 0x25d   : > { %v1505_v12 = vsel %vm1495_vm5, %v1502_v21, %v1504_v59  ;;  %v1507_v39 = vsel %vm1497_vm0, %v1493_v50, 1326507024  ;;  %v1501_v55 = vsel %vm1495_vm5, %v1498_v29, %v1500_v27  ;;  %v4910_v53 = vadd.s32 4294967169, %v1569_v30 }
 0x25e   : > { %v1228_v41 = vor.u32 %v1227_v6, %v1226_v24  ;;  %v1231_v45 = vshll.u32 %v1230_v48, 23  ;;  %v1508_v5 = vsel %vm1496_vm8, %v1490_v8, %v1507_v39  ;;  %v1242_v26 = vsel %vm7496_vm6, 0, %v1240_v11 }
 0x25f   : > { %v1509_v49 = vsel %vm1495_vm5, %v1506_v58, %v1508_v5  ;;  %v7517_v18 = vmul.u32.u64.low %v7476_v42, %v1505_v12  ;;  %v7518_v51 = vmul.u32.u64.high %v7476_v42, %v1505_v12, %v7517_v18  ;;  %v1575_v37 = vadd.s32 1, %v4910_v53 }
 0x260   : > { %v1232_v3 = vor.u32 4788187, %v1231_v45  ;;  %v1235_v43 = vcvt.s32.f32 %v1228_v41  ;;  %v7522_v4 = vmul.u32.u64.low %v7476_v42, %v1509_v49  ;;  %v7523_v54 = vmul.u32.u64.high %v7476_v42, %v1509_v49, %v7522_v4 }
 0x261   : > { %vm1144_vm14 = vcmp.lt.s32.totalorder %v7457_v61, 2  ;;  %v7529_v25 = vand.u32 3, %v7461_v0  ;;  %v1517_v1 = vmul.u32 %v7476_v42, %v1501_v55  ;;  %vm1145_vm10 = vcmp.eq.s32.totalorder %v7457_v61, 0 }
 0x262   : > { %v1233_v46 = vand.u32 2147483647, %v1232_v3  ;;  %v1520_v30 = vadd.s32 1, %v7518_v51  ;;  %v1572_v2 = vand.u32 8388607, %v1565_v44  ;;  %vm1576_vm2 = vcmp.gt.s32.totalorder %v1575_v37, 0 }
 0x263   : > { %v2082_v52 = vadd.s32 3, %v1242_v26  ;;  %vm1519_vm11 = vc.u32 %v7523_v54, %v7517_v18  ;;  %vm1148_vm12 = vcmp.eq.s32.totalorder %v7457_v61, 2  ;;  %v1577_v7 = vsel %vm1576_vm2, %v1575_v37, 0 }
 0x264   : > { %v5683_v63 = vpop.eup %5682  ;;  %v1236_v62 = vmul.f32 %v1235_v43, %v1233_v46  ;;  %v1521_v42 = vsel %vm1519_vm11, %v1520_v30, %v7518_v51  ;;  %vm1142_vm13 = vweird.f32 %v7165_v19  ;;  %vm1980_vm15 = vcmp.lt.s32.totalorder %v7529_v25, 2 }
 0x265   : > { %v5685_v16 = vpop.eup %5684  ;;  %v1149_v56 = vxor.u32 2147483648, %v5683_v63  ;;  %vm1984_vm1 = vcmp.eq.s32.totalorder %v7529_v25, 2  ;;  %v1522_v9 = vadd.s32 %v1521_v42, %v1517_v1  ;;  %v7543_v50 = vand.u32 3, %v1242_v26 }
 0x266   : > { %v1146_v0 = vxor.u32 2147483648, %v5685_v16  ;;  %v1237_v8 = vxor.u32 2147483648, %v1236_v62  ;;  %vm1981_vm4 = vcmp.eq.s32.totalorder %v7529_v25, 0  ;;  %v1573_v10 = vor.u32 8388608, %v1572_v2 }
 0x267   : > { %v1579_v24 = vand.u32 31, %v1577_v7  ;;  %v1150_v17 = vsel %vm1148_vm12, %v1149_v56, %v5685_v16  ;;  %v7548_v13 = vand.u32 3, %v2082_v52  ;;  %v1523_v21 = vadd.s32 536870912, %v1522_v9 }
 0x268   : > { %v1238_v29 = vsel %vm1155_vm3, %v1237_v8, %v1236_v62  ;;  %v1147_v22 = vsel %vm1145_vm10, %v5683_v63, %v1146_v0  ;;  %v1986_v48 = vsel %vm1984_vm1, %v1149_v56, %v5685_v16  ;;  %v1578_v58 = vshrl.u32 %v1577_v7, 5 }
 0x269   : > { %v1241_v6 = vsel %vm7496_vm6, %v7239_v33, %v1238_v29  ;;  %v1580_v27 = vsub.s32 32, %v1579_v24  ;;  %v7555_v59 = vshrl.u32 %v1523_v21, 30  ;;  %v1582_v11 = vshll.u32 %v6285_v32, %v1579_v24 }
 0x26a   : > { %5686 = vcosq.f32 %v1241_v6  ;;  %v1585_v12 = vshll.u32 %v6286_v34, %v1579_v24  ;;  %vm1251_vm3 = vcmp.eq.s32.totalorder %v7543_v50, 2  ;;  %v1983_v31 = vsel %vm1981_vm4, %v5683_v63, %v1146_v0 }
 0x26b   : > { %5688 = vsinq.f32 %v1241_v6  ;;  %v1583_v39 = vshrl.u32 %v6286_v34, %v1580_v27  ;;  %v1586_v41 = vshrl.u32 %v6287_v36, %v1580_v27  ;;  %v1525_v45 = vshll.u32 %v7555_v59, 30 }
 0x26c   : > { %v1588_v55 = vshll.u32 %v6287_v36, %v1579_v24  ;;  %v1589_v5 = vshrl.u32 %v6288_v38, %v1580_v27  ;;  %v1151_v49 = vsel %vm1144_vm14, %v1147_v22, %v1150_v17  ;;  %vm1248_vm5 = vcmp.eq.s32.totalorder %v7543_v50, 0 }
 0x26d   : > { %vm2085_vm6 = vcmp.eq.s32.totalorder %v7548_v13, 0  ;;  %v1581_v34 = vshrl.u32 %v6285_v32, %v1580_v27  ;;  %v1591_v51 = vshll.u32 %v6288_v38, %v1579_v24  ;;  %v1592_v53 = vshrl.u32 %v6289_v40, %v1580_v27 }
 0x26e   : > { %vm1247_vm7 = vcmp.lt.s32.totalorder %v7543_v50, 2  ;;  %vm2084_vm8 = vcmp.lt.s32.totalorder %v7548_v13, 2  ;;  %v7576_v36 = vsub.s32 %v1522_v9, %v1525_v45  ;;  %v1584_v3 = vor.u32 %v1583_v39, %v1582_v11 }
 0x26f   : > { %v1587_v43 = vor.u32 %v1586_v41, %v1585_v12  ;;  %v1594_v61 = vshll.u32 %v6289_v40, %v1579_v24  ;;  %vm1245_vm0 = vweird.f32 %v7239_v33  ;;  %v1590_v4 = vor.u32 %v1589_v5, %v1588_v55 }
 0x270   : > { %v1593_v26 = vor.u32 %v1592_v53, %v1591_v51  ;;  %v1595_v32 = vshrl.u32 %v6290_v47, %v1580_v27  ;;  %vm1597_vm14 = vcmp.lt.s32.totalorder %v1578_v58, 1  ;;  %v1987_v38 = vsel %vm1980_vm15, %v1983_v31, %v1986_v48 }
 0x271   : > { %vm2088_vm10 = vcmp.eq.s32.totalorder %v7548_v13, 2  ;;  %v1528_v37 = vsub.s32 0, %v7576_v36  ;;  %v1613_v46 = vshll.u32 %v1573_v10, 8  ;;  %v1152_v1 = vsel %vm1142_vm13, nan, %v1151_v49 }
 0x272   : > { %v1596_v63 = vor.u32 %v1595_v32, %v1594_v61  ;;  %vm1599_vm2 = vcmp.lt.s32.totalorder %v1578_v58, 3  ;;  %vm1600_vm11 = vcmp.lt.s32.totalorder %v1578_v58, 4  ;;  %vm1598_vm12 = vcmp.lt.s32.totalorder %v1578_v58, 2 }
 0x273   : > { %v4907_v40 = vmin.u32 %v1528_v37, %v7576_v36  ;;  %v1601_v30 = vsel %vm1597_vm14, %v1581_v34, %v1584_v3  ;;  %v1605_v47 = vsel %vm1597_vm14, %v1584_v3, %v1587_v43  ;;  %v1602_v2 = vsel %vm1600_vm11, %v1590_v4, 2102212464 }
 0x274   : > { %v1606_v16 = vsel %vm1600_vm11, %v1593_v26, 920167782  ;;  %v1609_v25 = vsel %vm1597_vm14, %v1587_v43, %v1590_v4  ;;  %v1610_v56 = vsel %vm1600_vm11, %v1596_v63, 1326507024  ;;  %v5687_v62 = vpop.eup %5686  ;;  %v1603_v0 = vsel %vm1599_vm2, %v1587_v43, %v1602_v2 }
 0x275   : > { %v1530_v52 = vclz %v4907_v40  ;;  %v1607_v42 = vsel %vm1599_vm2, %v1590_v4, %v1606_v16  ;;  %v1611_v7 = vsel %vm1599_vm2, %v1593_v26, %v1610_v56  ;;  %v5689_v8 = vpop.eup %5688  ;;  %v1252_v9 = vxor.u32 2147483648, %v5687_v62 }
 0x276   : > { %v1604_v10 = vsel %vm1598_vm12, %v1601_v30, %v1603_v0  ;;  %v1608_v24 = vsel %vm1598_vm12, %v1605_v47, %v1607_v42  ;;  %v1612_v17 = vsel %vm1598_vm12, %v1609_v25, %v1611_v7  ;;  %v1249_v29 = vxor.u32 2147483648, %v5689_v8 }
 0x277   : > { %v4908_v21 = vadd.s32 4294967294, %v1530_v52  ;;  %v7591_v22 = vmul.u32.u64.low %v1613_v46, %v1612_v17  ;;  %v7592_v6 = vmul.u32.u64.high %v1613_v46, %v1612_v17, %v7591_v22  ;;  %v1253_v48 = vsel %vm1251_vm3, %v1252_v9, %v5689_v8 }
 0x278   : > { %v2090_v27 = vsel %vm2088_vm10, %v1252_v9, %v5689_v8  ;;  %v7598_v11 = vmul.u32.u64.low %v1613_v46, %v1608_v24  ;;  %v7599_v12 = vmul.u32.u64.high %v1613_v46, %v1608_v24, %v7598_v11  ;;  %v1250_v39 = vsel %vm1248_vm5, %v5687_v62, %v1249_v29 }
 0x279   : > { %v1988_v58 = vsel %vm1142_vm13, nan, %v1987_v38  ;;  %v2087_v41 = vsel %vm2085_vm6, %v5687_v62, %v1249_v29  ;;  %vm4909_vm15 = vcmp.lt.s32.totalorder %v4908_v21, 0  ;;  %v1254_v31 = vsel %vm1247_vm7, %v1250_v39, %v1253_v48 }
 0x27a   : > { %v2091_v45 = vsel %vm2084_vm8, %v2087_v41, %v2090_v27  ;;  %v1533_v55 = vsel %vm4909_vm15, 0, %v4908_v21  ;;  %v1255_v5 = vsel %vm1245_vm0, nan, %v1254_v31  ;;  %v1518_v19 = vadd.s32 %v7517_v18, %v7523_v54 }
 0x27b   : > { %v2092_v49 = vsel %vm1245_vm0, nan, %v2091_v45  ;;  %v1620_v34 = vmul.u32 %v1613_v46, %v1604_v10  ;;  %v1669_v51 = vpack.c.bf16 %v1255_v5, %v1152_v1  ;;  %v1534_v3 = vsub.s32 32, %v1533_v55 }
 0x27c   : > { %v2510_v53 = vpack.c.bf16 %v2092_v49, %v1988_v58  ;;  %v1538_v43 = vsub.s32 4294967266, %v1533_v55  ;;  %vm1622_vm13 = vc.u32 %v7592_v6, %v7598_v11  ;;  %v1623_v50 = vadd.s32 1, %v7599_v12 }
 0x27d   : > { %1674 = vst.msk [vmem:[#allocation2 + $0x8] sm:$0xff] %vm1672_vm9, %v1669_v51  ;;  %v1535_v61 = vshll.u32 %v7576_v36, %v1533_v55  ;;  %v1536_v4 = vshrl.u32 %v1518_v19, %v1534_v3  ;;  %vm1464_vm1 = vcmp.lt.s32.totalorder %v7311_v20, 0  ;;  %v1621_v0 = vadd.s32 %v7598_v11, %v7592_v6 }
 0x27e   : > { %2514 = vst.msk [vmem:[#allocation3 + $0x8] sm:$0xff] %vm1672_vm9, %v2510_v53  ;;  %v1539_v13 = vadd.s32 127, %v1538_v43  ;;  %v1624_v33 = vsel %vm1622_vm13, %v1623_v50, %v7599_v12  ;;  %vm7637_vm3 = vcmp.le.f32.partialorder %v1462_v57, 0.7853982  ;;  %vm1567_vm5 = vcmp.lt.s32.totalorder %v7453_v60, 0 }
 0x27f   : > { %v1625_v54 = vadd.s32 %v1624_v33, %v1620_v34  ;;  %v1537_v32 = vor.u32 %v1536_v4, %v1535_v61  ;;  %vm1566_vm6 = vcmp.le.f32.partialorder %v1565_v44, 0.7853982  ;;  %vm1554_vm11 = vweird.f32 %v7311_v20 }
 0x280   : > { %v1540_v18 = vshll.u32 %v1539_v13, 23 }
 0x281   : > { %v1626_v26 = vadd.s32 536870912, %v1625_v54  ;;  %v1544_v47 = vcvt.s32.f32 %v1537_v32 }
 0x282   : > { %v1541_v38 = vor.u32 4788187, %v1540_v18 }
 0x283   : > { %v1627_v37 = vshrl.u32 %v1626_v26, 30 }
 0x284   : > { %v2518_v46 = vld [vmem:[#allocation2 + $0x8] sm:$0xff]  ;;  %v1542_v30 = vand.u32 2147483647, %v1541_v38 }
 0x285   : > { %v7623_v1 = vld [vmem:[#allocation3 + $0x8] sm:$0xff]  ;;  %v1628_v40 = vshll.u32 %v1627_v37, 30  ;;  %v1651_v27 = vsub.s32 4, %v1627_v37 }
 0x286   : > { %v2532_v63 = vadd.bf16 %v7623_v1, %v2518_v46  ;;  %v1545_v16 = vmul.f32 %v1544_v47, %v1542_v30 }
 0x287   : > { %v1629_v2 = vsub.s32 %v1625_v54, %v1628_v40  ;;  %v1652_v58 = vsel %vm1567_vm5, %v1651_v27, %v1627_v37 }
 0x288   : > { %5161 = vmatmul.mubr.msk.bf16.vlgmr.msra.gmra.mrb[0].mxu0 %vm1672_vm9, %v2532_v63  ;;  %v1546_v62 = vxor.u32 2147483648, %v1545_v16  ;;  %v1654_v55 = vsel %vm1566_vm6, 0, %v1652_v58 }
 0x289   : > { %5179 = vmatpush3.bf16.msra.mxu0 %v7400_v23  ;;  %5180 = vmatprep.mubr.msk.bf16.mxu0 %vm1672_vm9, %v7241_v14  ;;  %v1631_v36 = vsub.s32 0, %v1629_v2  ;;  %v2498_v34 = vadd.s32 3, %v1654_v55  ;;  %v1658_v44 = vand.u32 3, %v1654_v55  ;;  %v7675_v14 = vld [vmem:[#allocation10] sm:$0xff]  }
 0x28a   : > { %v1547_v42 = vsel %vm1464_vm1, %v1546_v62, %v1545_v16 }
 0x28b   : > { %v4911_v25 = vmin.u32 %v1631_v36, %v1629_v2  ;;  %v1550_v17 = vsel %vm7637_vm3, %v7311_v20, %v1547_v42  ;;  %v2499_v3 = vand.u32 3, %v2498_v34  ;;  %vm1660_vm12 = vcmp.eq.s32.totalorder %v1658_v44, 0  ;;  %v5699_v20 = vld [vmem:[#allocation3] sm:$0xff] }
 0x28c   : > { %5690 = vcosq.f32 %v1550_v17  ;;  %vm1663_vm15 = vcmp.eq.s32.totalorder %v1658_v44, 2 }
 0x28d   : > { %v1633_v56 = vclz %v4911_v25  ;;  %5692 = vsinq.f32 %v1550_v17  ;;  %vm2504_vm13 = vcmp.eq.s32.totalorder %v2499_v3, 2 }
 0x28f   : > { %v4912_v52 = vadd.s32 4294967294, %v1633_v56 }
 0x290   : > { %5181 = vmatmul.mubr.msk.bf16.vlgmr.msra.gmra.mrb[4].mxu0 %vm1672_vm9, %v2518_v46 }
 0x291   : > { %5184 = vmatprep.mubr.msk.bf16.mxu0 %vm1672_vm9, %v7465_v15  ;;  %vm4913_vm4 = vcmp.lt.s32.totalorder %v4912_v52, 0  ;;  %v1548_v15 = vsub.s32 4, %v7555_v59 }
 0x292   : > { %v1636_v23 = vsel %vm4913_vm4, 0, %v4912_v52  ;;  %vm1659_vm4 = vcmp.lt.s32.totalorder %v1658_v44, 2 }
 0x293   : > { %v1637_v7 = vsub.s32 32, %v1636_v23  ;;  %v1638_v8 = vshll.u32 %v1629_v2, %v1636_v23  ;;  %v1641_v9 = vsub.s32 4294967266, %v1636_v23  ;;  %v1549_v6 = vsel %vm1464_vm1, %v1548_v15, %v7555_v59 }
 0x294   : > { %v1551_v11 = vsel %vm7637_vm3, 0, %v1549_v6  ;;  %vm2501_vm1 = vcmp.eq.s32.totalorder %v2499_v3, 0  ;;  %vm2500_vm3 = vcmp.lt.s32.totalorder %v2499_v3, 2 }
 0x295   : > { %v1639_v10 = vshrl.u32 %v1621_v0, %v1637_v7  ;;  %v1642_v24 = vadd.s32 127, %v1641_v9  ;;  %v2394_v41 = vadd.s32 3, %v1551_v11  ;;  %v1555_v49 = vand.u32 3, %v1551_v11  ;;  %v7673_v0 = vld [vmem:[#allocation7] sm:$0xff]  }
 0x296   : > { %v5691_v59 = vpop.eup %5690 }
 0x297   : > { %v1640_v29 = vor.u32 %v1639_v10, %v1638_v8  ;;  %v1643_v57 = vshll.u32 %v1642_v24, 23  ;;  %v5693_v5 = vpop.eup %5692  ;;  %v2395_v19 = vand.u32 3, %v2394_v41  ;;  %v1561_v53 = vxor.u32 2147483648, %v5691_v59 }
 0x298   : > { %v1558_v51 = vxor.u32 2147483648, %v5693_v5  ;;  %vm1557_vm7 = vcmp.eq.s32.totalorder %v1555_v49, 0  ;;  %vm1560_vm8 = vcmp.eq.s32.totalorder %v1555_v49, 2  ;;  %vm1556_vm10 = vcmp.lt.s32.totalorder %v1555_v49, 2 }
 0x299   : > { %v1644_v21 = vor.u32 4788187, %v1643_v57  ;;  %v1647_v22 = vcvt.s32.f32 %v1640_v29  ;;  %vm2397_vm0 = vcmp.eq.s32.totalorder %v2395_v19, 0  ;;  %vm2400_vm14 = vcmp.eq.s32.totalorder %v2395_v19, 2 }
 0x29a   : > { %vm2396_vm2 = vcmp.lt.s32.totalorder %v2395_v19, 2  ;;  %v1559_v43 = vsel %vm1557_vm7, %v5691_v59, %v1558_v51  ;;  %v1562_v50 = vsel %vm1560_vm8, %v1561_v53, %v5693_v5  ;;  %v2399_v13 = vsel %vm2397_vm0, %v5691_v59, %v1558_v51 }
 0x29b   : > { %v1645_v48 = vand.u32 2147483647, %v1644_v21  ;;  %v2402_v33 = vsel %vm2400_vm14, %v1561_v53, %v5693_v5  ;;  %v1563_v18 = vsel %vm1556_vm10, %v1559_v43, %v1562_v50  ;;  %vm3082_vm7 = vcmask 261120  }
 0x29c   : > { %v2403_v26 = vsel %vm2396_vm2, %v2399_v13, %v2402_v33  ;;  %v1564_v46 = vsel %vm1554_vm11, nan, %v1563_v18 }
 0x29d   : > { %v1648_v12 = vmul.f32 %v1647_v22, %v1645_v48  ;;  %v2404_v40 = vsel %vm1554_vm11, nan, %v2403_v26 }
 0x29f   : > { %v1649_v39 = vxor.u32 2147483648, %v1648_v12 }
 0x2a1   : > { %v1650_v31 = vsel %vm1567_vm5, %v1649_v39, %v1648_v12  ;;  %vm1657_vm5 = vweird.f32 %v7453_v60 }
 0x2a2   : > { %v1653_v45 = vsel %vm1566_vm6, %v7453_v60, %v1650_v31  ;;  %vm6292_vm6 = vmmov 0  }
 0x2a3   : > { %5694 = vcosq.f32 %v1653_v45 }
 0x2a4   : > { %5696 = vsinq.f32 %v1653_v45 }
 0x2ad   : > { %v5695_v61 = vpop.eup %5694 }
 0x2ae   : > { %v5697_v4 = vpop.eup %5696  ;;  %v1664_v54 = vxor.u32 2147483648, %v5695_v61 }
 0x2af   : > { %v1661_v32 = vxor.u32 2147483648, %v5697_v4 }
 0x2b0   : > { %v1665_v38 = vsel %vm1663_vm15, %v1664_v54, %v5697_v4  ;;  %v2506_v37 = vsel %vm2504_vm13, %v1664_v54, %v5697_v4  ;;  %v7693_v4 = vld [vmem:[#allocation10 + $0x8] sm:$0xff]  }
 0x2b1   : > { %v1662_v63 = vsel %vm1660_vm12, %v5695_v61, %v1661_v32  ;;  %v2503_v30 = vsel %vm2501_vm1, %v5695_v61, %v1661_v32 }
 0x2b2   : > { %v1666_v47 = vsel %vm1659_vm4, %v1662_v63, %v1665_v38  ;;  %v2507_v2 = vsel %vm2500_vm3, %v2503_v30, %v2506_v37  ;;  %v7695_v38 = vld [vmem:[#allocation7 + $0x8] sm:$0xff]   ;;  %v7697_v63 = vld [vmem:[#allocation9] sm:$0xff]  }
 0x2b3   : > { %v1667_v36 = vsel %vm1657_vm5, nan, %v1666_v47  ;;  %v2508_v16 = vsel %vm1657_vm5, nan, %v2507_v2 }
 0x2b4   : > { %v1671_v25 = vpack.c.bf16 %v1667_v36, %v1564_v46  ;;  %v2512_v56 = vpack.c.bf16 %v2508_v16, %v2404_v40  ;;  %v7717_v16 = vld [vmem:[#allocation9 + $0x8] sm:$0xff]  }
 0x2b6   : > { %1676 = vst.msk [vmem:[#allocation2 + $0x18] sm:$0xff] %vm1672_vm9, %v1671_v25  ;;  %2516 = vst.msk [vmem:[#allocation3 + $0x18] sm:$0xff] %vm1672_vm9, %v2512_v56  ;;  %v6291_v25 = vmov 0.0  }
 0x2bd   : > { %v2520_v60 = vld [vmem:[#allocation2 + $0x18] sm:$0xff] }
 0x2be   : > { %v2524_v62 = vld [vmem:[#allocation3 + $0x18] sm:$0xff]  ;;  %5185 = vmatmul.mubr.msk.bf16.gmra.mrb[8].mxu0 %vm1672_vm9, %v2520_v60 }
 0x2bf   : > { %v2534_v52 = vadd.bf16 %v2524_v62, %v2520_v60  ;;  %5202 = vmatprep.mubr.msk.bf16.mxu0 %vm1672_vm9, %v7675_v14 }
 0x2c1   : > { %5165 = vmatmul.mubr.msk.bf16.vlgmr.msra.gmra.mrb[0].mxu1 %vm1672_vm9, %v2534_v52 }
 0x2c2   : > { %5169 = vmatpush3.bf16.msra.mxu1 %v7398_v28  ;;  %5170 = vmatprep.mubr.msk.bf16.mxu1 %vm1672_vm9, %v5699_v20 }
 0x2c9   : > { %5171 = vmatmul.mubr.msk.bf16.vlgmr.msra.gmra.mrb[4].mxu1 %vm1672_vm9, %v7623_v1 }
 0x2ca   : > { %5174 = vmatprep.mubr.msk.bf16.mxu1 %vm1672_vm9, %v7467_v35 }
 0x2d1   : > { %5175 = vmatmul.mubr.msk.bf16.gmra.mrb[8].mxu1 %vm1672_vm9, %v2524_v62 }
 0x2d2   : > { %5190 = vmatprep.mubr.msk.bf16.mxu1 %vm1672_vm9, %v7673_v0 }
 0x35b   : > { %v5162_v28 = vpop.f32.mrb[0].mxu0 }
 0x35c   : > { %v2588_v23 = vpop.f32.mrb[1].mxu0 }
 0x35d   : > { %v5163_v42 = vpop.f32.mrb[2].mxu0 }
 0x35e   : > { %v2591_v7 = vpop.f32.mrb[3].mxu0 }
 0x363   : > { %v5182_v1 = vpop.f32.mrb[4].mxu0 }
 0x364   : > { %v2795_v8 = vadd.f32 %v5182_v1, %v5162_v28  ;;  %v2754_v9 = vpop.f32.mrb[5].mxu0  ;;  %v5052_v1 = vld [vmem:[#allocation18 + $0x8] sm:$0xff]  }
 0x365   : > { %v2793_v35 = vadd.f32 %v2754_v9, %v2588_v23  ;;  %v5183_v10 = vpop.f32.mrb[6].mxu0 }
 0x366   : > { %v2796_v24 = vadd.f32 %v5183_v10, %v5163_v42  ;;  %v2757_v15 = vpop.f32.mrb[7].mxu0  ;;  %v5036_v10 = vld [vmem:[#allocation16] sm:$0xff]  }
 0x367   : > { %v2794_v17 = vadd.f32 %v2757_v15, %v2591_v7 }
 0x368   : > { %v7681_v29 = vpack.c.bf16 %v2796_v24, %v2795_v8  ;;  %v5044_v8 = vld [vmem:[#allocation18] sm:$0xff]  }
 0x369   : > { %v2805_v57 = vpack.c.bf16 %v2794_v17, %v2793_v35 }
 0x391   : > { %v5186_v21 = vpop.f32.mrb[8].mxu0 }
 0x392   : > { %v2770_v22 = vpop.f32.mrb[9].mxu0 }
 0x393   : > { %v5187_v48 = vpop.f32.mrb[10].mxu0 }
 0x394   : > { %v5166_v6 = vpop.f32.mrb[0].mxu1  ;;  %v2773_v12 = vpop.f32.mrb[11].mxu0 }
 0x395   : > { %v2604_v27 = vpop.f32.mrb[1].mxu1  ;;  %v2799_v11 = vadd.f32 %v5186_v21, %v5166_v6  ;;  %v7731_v21 = vunpack.c.l.bf16 %v5044_v8 }
 0x396   : > { %v5167_v39 = vpop.f32.mrb[2].mxu1  ;;  %v2797_v58 = vadd.f32 %v2770_v22, %v2604_v27  ;;  %v7733_v22 = vunpack.c.l.bf16 %v5036_v10 }
 0x397   : > { %v2607_v41 = vpop.f32.mrb[3].mxu1  ;;  %v2800_v31 = vadd.f32 %v5187_v48, %v5167_v39  ;;  %v7737_v48 = vunpack.c.h.bf16 %v5052_v1 }
 0x398   : > { %v2798_v45 = vadd.f32 %v2773_v12, %v2607_v41  ;;  %v7741_v12 = vunpack.c.h.bf16 %v5036_v10 }
 0x399   : > { %v7683_v55 = vpack.c.bf16 %v2800_v31, %v2799_v11 }
 0x39a   : > { %v7685_v59 = vpack.c.bf16 %v2798_v45, %v2797_v58 }
 0x39c   : > { %v5172_v5 = vpop.f32.mrb[4].mxu1 }
 0x39d   : > { %v2787_v49 = vsub.f32 %v5162_v28, %v5172_v5  ;;  %v2671_v19 = vpop.f32.mrb[5].mxu1 }
 0x39e   : > { %v2785_v34 = vsub.f32 %v2588_v23, %v2671_v19  ;;  %v5173_v51 = vpop.f32.mrb[6].mxu1 }
 0x39f   : > { %v2788_v53 = vsub.f32 %v5163_v42, %v5173_v51  ;;  %v2674_v44 = vpop.f32.mrb[7].mxu1 }
 0x3a0   : > { %v2786_v3 = vsub.f32 %v2591_v7, %v2674_v44  ;;  %v5051_v7 = vld [vmem:[#allocation16 + $0x8] sm:$0xff]  }
 0x3a1   : > { %v7687_v43 = vpack.c.bf16 %v2788_v53, %v2787_v49  ;;  %v7727_v17 = vunpack.c.l.bf16 %v5051_v7 }
 0x3a2   : > { %v2801_v50 = vpack.c.bf16 %v2786_v3, %v2785_v34 }
 0x3a3   : > { %v7691_v13 = vadd.bf16 %v7681_v29, %v7687_v43 }
 0x3a4   : > { %v5176_v33 = vpop.f32.mrb[8].mxu1  ;;  %5200 = vmatprep.subr.bf16.mxu0 %v2801_v50  ;;  %v2835_v61 = vadd.bf16 %v2805_v57, %v2801_v50 }
 0x3a5   : > { %v2791_v18 = vsub.f32 %v5166_v6, %v5176_v33  ;;  %v2687_v54 = vpop.f32.mrb[9].mxu1  ;;  %5201 = vmatpush3.bf16.msra.mxu0 %v2801_v50  ;;  %v7735_v6 = vunpack.c.h.bf16 %v5051_v7 }
 0x3a6   : > { %v2789_v26 = vsub.f32 %v2604_v27, %v2687_v54  ;;  %v5177_v32 = vpop.f32.mrb[10].mxu1  ;;  %5188 = vmatprep.subr.bf16.mxu1 %v2835_v61  ;;  %5214 = vmatprep.subr.bf16.mxu0 %v6291_v25  ;;  %v7739_v27 = vunpack.c.h.bf16 %v5044_v8 }
 0x3a7   : > { %v2792_v37 = vsub.f32 %v5167_v39, %v5177_v32  ;;  %v2690_v46 = vpop.f32.mrb[11].mxu1  ;;  %5189 = vmatpush3.bf16.msra.mxu1 %v2835_v61 }
 0x3a8   : > { %v2790_v40 = vsub.f32 %v2607_v41, %v2690_v46  ;;  %5194 = vmatprep.subr.bf16.mxu1 %v2805_v57  ;;  %5203 = vmatmul.mubr.msk.bf16.vlgmr.msra.gmra.mrb[12].mxu0 %vm1672_vm9, %v7693_v4 }
 0x3a9   : > { %v7701_v30 = vpack.c.bf16 %v2792_v37, %v2791_v18  ;;  %5218 = vmatprep.mubr.msk.bf16.mxu0 %vm6292_vm6, %v6291_v25 }
 0x3aa   : > { %v7703_v47 = vpack.c.bf16 %v2790_v40, %v2789_v26  ;;  %5191 = vmatmul.mubr.msk.bf16.vlgmr.msra.gmra.mrb[12].mxu1 %vm1672_vm9, %v7695_v38 }
 0x3ab   : > { %5195 = vmatpush3.bf16.msra.mxu1 %v2805_v57  ;;  %5196 = vmatprep.mubr.msk.bf16.mxu1 %vm1672_vm9, %v7697_v63  ;;  %v7711_v2 = vadd.bf16 %v7683_v55, %v7701_v30  ;;  %v7729_v57 = vunpack.c.l.bf16 %v5052_v1 }
 0x3ac   : > { %v7715_v36 = vadd.bf16 %v7685_v59, %v7703_v47  ;;  %5206 = vmatprep.subr.bf16.mxu1 %v6291_v25 }
 0x3b2   : > { %5197 = vmatmul.mubr.msk.bf16.vlgmr.msra.gmra.mrb[16].mxu1 %vm1672_vm9, %v7717_v16 }
 0x3b3   : > { %5210 = vmatprep.mubr.msk.bf16.mxu1 %vm6292_vm6, %v6291_v25 }
 0x47b   : > { %v5204_v56 = vpop.f32.mrb[12].mxu0 }
 0x47c   : > { %v3016_v60 = vpop.f32.mrb[13].mxu0 }
 0x47d   : > { %v5192_v62 = vpop.f32.mrb[12].mxu1  ;;  %v5205_v52 = vpop.f32.mrb[14].mxu0 }
 0x47e   : > { %v2886_v20 = vpop.f32.mrb[13].mxu1  ;;  %v3037_v28 = vadd.f32 %v5204_v56, %v5192_v62  ;;  %v3019_v23 = vpop.f32.mrb[15].mxu0 }
 0x47f   : > { %v5193_v42 = vpop.f32.mrb[14].mxu1  ;;  %v3035_v9 = vadd.f32 %v3016_v60, %v2886_v20 }
 0x480   : > { %v2889_v35 = vpop.f32.mrb[15].mxu1  ;;  %v3038_v24 = vadd.f32 %v5205_v52, %v5193_v42  ;;  %v3053_v58 = vmul.f32 %v7729_v57, %v3037_v28  ;;  %v3067_v41 = vmul.f32 %v7727_v17, %v3037_v28 }
 0x481   : > { %v3036_v15 = vadd.f32 %v3019_v23, %v2889_v35  ;;  %v3051_v45 = vmul.f32 %v7731_v21, %v3035_v9  ;;  %v3065_v49 = vmul.f32 %v7733_v22, %v3035_v9 }
 0x482   : > { %v3054_v34 = vmul.f32 %v7737_v48, %v3038_v24  ;;  %v3068_v51 = vmul.f32 %v7735_v6, %v3038_v24  ;;  %v7761_v24 = vld [vmem:[#allocation21] sm:$0xff]  }
 0x483   : > { %v3052_v33 = vmul.f32 %v7739_v27, %v3036_v15  ;;  %v3066_v26 = vmul.f32 %v7741_v12, %v3036_v15  ;;  %v7764_v15 = vld [vmem:[#allocation19] sm:$0xff]  }
 0x485   : > { %v5198_v11 = vpop.f32.mrb[16].mxu1 }
 0x486   : > { %v3033_v39 = vsub.f32 %v5192_v62, %v5198_v11  ;;  %v2951_v31 = vpop.f32.mrb[17].mxu1  ;;  %v7778_v11 = vld [vmem:[#allocation22] sm:$0xff]  }
 0x487   : > { %v3031_v5 = vsub.f32 %v2886_v20, %v2951_v31  ;;  %v5199_v19 = vpop.f32.mrb[18].mxu1 }
 0x488   : > { %v3045_v53 = vmul.f32 %v7727_v17, %v3033_v39  ;;  %v3063_v44 = vmul.f32 %v7729_v57, %v3033_v39  ;;  %v3034_v3 = vsub.f32 %v5193_v42, %v5199_v19  ;;  %v2954_v50 = vpop.f32.mrb[19].mxu1 }
 0x489   : > { %v3043_v61 = vmul.f32 %v7733_v22, %v3031_v5  ;;  %v3061_v18 = vmul.f32 %v7731_v21, %v3031_v5  ;;  %v3032_v54 = vsub.f32 %v2889_v35, %v2954_v50 }
 0x48a   : > { %v3057_v32 = vsub.f32 %v3045_v53, %v3053_v58  ;;  %v3071_v37 = vadd.f32 %v3067_v41, %v3063_v44  ;;  %v3046_v46 = vmul.f32 %v7735_v6, %v3034_v3  ;;  %v3064_v40 = vmul.f32 %v7737_v48, %v3034_v3 }
 0x48b   : > { %v3055_v56 = vsub.f32 %v3043_v61, %v3051_v45  ;;  %v3069_v60 = vadd.f32 %v3065_v49, %v3061_v18  ;;  %v3044_v62 = vmul.f32 %v7741_v12, %v3032_v54  ;;  %v3062_v52 = vmul.f32 %v7739_v27, %v3032_v54 }
 0x48c   : > { %v3058_v20 = vsub.f32 %v3046_v46, %v3054_v34  ;;  %v3072_v28 = vadd.f32 %v3068_v51, %v3064_v40 }
 0x48d   : > { %v3056_v23 = vsub.f32 %v3044_v62, %v3052_v33  ;;  %v3070_v42 = vadd.f32 %v3066_v26, %v3062_v52 }
 0x48e   : > { %v3060_v7 = vpack.c.bf16 %v3058_v20, %v3057_v32  ;;  %v3074_v1 = vpack.c.bf16 %v3072_v28, %v3071_v37 }
 0x48f   : > { %v3059_v8 = vpack.c.bf16 %v3056_v23, %v3055_v56  ;;  %v3073_v9 = vpack.c.bf16 %v3070_v42, %v3069_v60 }
 0x490   : > { %v3076_v35 = vadd.bf16 %v3074_v1, %v3060_v7 }
 0x491   : > { %5215 = vmatpush3.bf16.msra.mxu0 %v3073_v9  ;;  %v3075_v10 = vadd.bf16 %v3073_v9, %v3059_v8 }
 0x492   : > { %5216 = vmatprep.subr.bf16.mxu0 %v6291_v25 }
 0x493   : > { %5207 = vmatpush3.bf16.msra.mxu1 %v3075_v10 }
 0x494   : > { %5208 = vmatprep.subr.bf16.mxu1 %v6291_v25 }
 0x495   : > { %5217 = vmatpush3.bf16.msra.mxu0 %v3074_v1 }
 0x496   : > { %5230 = vmatprep.subr.bf16.mxu0 %v7691_v13 }
 0x497   : > { %5209 = vmatpush3.bf16.msra.mxu1 %v3076_v35 }
 0x498   : > { %5219 = vmatmul.mubr.msk.bf16.vlgmr.msra.gmra.mrb[16].mxu0 %vm3082_vm7, %v7761_v24  ;;  %5222 = vmatprep.subr.bf16.mxu1 %v6291_v25 }
 0x499   : > { %5231 = vmatpush3.bf16.msra.mxu0 %v7691_v13  ;;  %5232 = vmatprep.mubr.msk.bf16.mxu0 %vm1672_vm9, %v7673_v0 }
 0x49a   : > { %5211 = vmatmul.mubr.msk.bf16.vlgmr.msra.gmra.mrb[20].mxu1 %vm3082_vm7, %v7764_v15  ;;  %5242 = vmatprep.subr.bf16.mxu0 %v7687_v43 }
 0x49b   : > { %5223 = vmatpush3.bf16.msra.mxu1 %v3059_v8  ;;  %5226 = vmatprep.mubr.msk.bf16.mxu1 %vm6292_vm6, %v6291_v25 }
 0x49c   : > { %5224 = vmatprep.subr.bf16.mxu1 %v6291_v25 }
 0x49f   : > { %5225 = vmatpush3.bf16.msra.mxu1 %v3060_v7 }
 0x4a0   : > { %5233 = vmatmul.mubr.msk.bf16.vlgmr.msra.gmra.mrb[20].mxu0 %vm1672_vm9, %v7695_v38  ;;  %5236 = vmatprep.subr.bf16.mxu1 %v7681_v29 }
 0x4a1   : > { %5243 = vmatpush3.bf16.msra.mxu0 %v7687_v43  ;;  %5244 = vmatprep.mubr.msk.bf16.mxu0 %vm1672_vm9, %v7675_v14 }
 0x4a2   : > { %5227 = vmatmul.mubr.msk.bf16.vlgmr.msra.gmra.mrb[24].mxu1 %vm3082_vm7, %v7778_v11  ;;  %5256 = vmatprep.subr.bf16.mxu0 %v6291_v25 }
 0x4a3   : > { %5237 = vmatpush3.bf16.msra.mxu1 %v7681_v29  ;;  %5238 = vmatprep.mubr.msk.bf16.mxu1 %vm1672_vm9, %v7697_v63 }
 0x4a4   : > { %5248 = vmatprep.subr.bf16.mxu1 %v6291_v25 }
 0x4a8   : > { %5245 = vmatmul.mubr.msk.bf16.vlgmr.msra.gmra.mrb[24].mxu0 %vm1672_vm9, %v7693_v4 }
 0x4a9   : > { %5260 = vmatprep.mubr.msk.bf16.mxu0 %vm6292_vm6, %v6291_v25 }
 0x4aa   : > { %5239 = vmatmul.mubr.msk.bf16.vlgmr.msra.gmra.mrb[28].mxu1 %vm1672_vm9, %v7717_v16 }
 0x4ab   : > { %5252 = vmatprep.mubr.msk.bf16.mxu1 %vm6292_vm6, %v6291_v25 }
 0x56b   : > { %v3169_v43 = vpop.f32.mrb[16].mxu0 }
 0x56c   : > { %v5220_v13 = vpop.f32.mrb[17].mxu0 }
 0x56d   : > { %v3120_v29 = vpop.f32.mrb[20].mxu1  ;;  %v3172_v39 = vpop.f32.mrb[18].mxu0 }
 0x56e   : > { %v5212_v58 = vpop.f32.mrb[21].mxu1  ;;  %v3225_v41 = vsub.f32 %v3120_v29, %v3169_v43  ;;  %v5221_v31 = vpop.f32.mrb[19].mxu0 }
 0x56f   : > { %v3123_v45 = vpop.f32.mrb[22].mxu1 }
 0x570   : > { %v5213_v5 = vpop.f32.mrb[23].mxu1  ;;  %v3226_v49 = vsub.f32 %v3123_v45, %v3172_v39 }
 0x572   : > { %v7801_v19 = vpack.c.bf16 %v3226_v49, %v3225_v41 }
 0x573   : > { %v5234_v34 = vpop.f32.mrb[20].mxu0 }
 0x574   : > { %v3266_v51 = vpop.f32.mrb[21].mxu0 }
 0x575   : > { %v3218_v53 = vpop.f32.mrb[24].mxu1  ;;  %v5235_v44 = vpop.f32.mrb[22].mxu0 }
 0x576   : > { %v3227_v3 = vadd.f32 %v3218_v53, %v3120_v29  ;;  %v5228_v50 = vpop.f32.mrb[25].mxu1  ;;  %v3269_v33 = vpop.f32.mrb[23].mxu0 }
 0x577   : > { %v3221_v61 = vpop.f32.mrb[26].mxu1 }
 0x578   : > { %v3228_v18 = vadd.f32 %v3221_v61, %v3123_v45  ;;  %v5229_v54 = vpop.f32.mrb[27].mxu1 }
 0x57a   : > { %v7803_v26 = vpack.c.bf16 %v3228_v18, %v3227_v3 }
 0x57b   : > { %v5246_v32 = vpop.f32.mrb[24].mxu0 }
 0x57c   : > { %v3385_v37 = vadd.f32 %v5246_v32, %v5234_v34  ;;  %v3364_v46 = vpop.f32.mrb[25].mxu0 }
 0x57d   : > { %v5240_v40 = vpop.f32.mrb[28].mxu1  ;;  %v3383_v56 = vadd.f32 %v3364_v46, %v3266_v51  ;;  %v5247_v60 = vpop.f32.mrb[26].mxu0 }
 0x57e   : > { %v3381_v62 = vsub.f32 %v5234_v34, %v5240_v40  ;;  %v3393_v52 = vmul.f32 %v7729_v57, %v3385_v37  ;;  %v3407_v20 = vmul.f32 %v7727_v17, %v3385_v37  ;;  %v3315_v28 = vpop.f32.mrb[29].mxu1  ;;  %v3386_v23 = vadd.f32 %v5247_v60, %v5235_v44  ;;  %v3367_v42 = vpop.f32.mrb[27].mxu0 }
 0x57f   : > { %v3379_v7 = vsub.f32 %v3266_v51, %v3315_v28  ;;  %v3391_v1 = vmul.f32 %v7731_v21, %v3383_v56  ;;  %v3405_v8 = vmul.f32 %v7733_v22, %v3383_v56  ;;  %v5241_v9 = vpop.f32.mrb[30].mxu1  ;;  %v3384_v35 = vadd.f32 %v3367_v42, %v3269_v33 }
 0x580   : > { %v3389_v10 = vmul.f32 %v7727_v17, %v3381_v62  ;;  %v3403_v43 = vmul.f32 %v7729_v57, %v3381_v62  ;;  %v3382_v13 = vsub.f32 %v5235_v44, %v5241_v9  ;;  %v3394_v29 = vmul.f32 %v7737_v48, %v3386_v23  ;;  %v3318_v39 = vpop.f32.mrb[31].mxu1 }
 0x581   : > { %v3387_v58 = vmul.f32 %v7733_v22, %v3379_v7  ;;  %v3401_v41 = vmul.f32 %v7731_v21, %v3379_v7  ;;  %v3408_v31 = vmul.f32 %v7735_v6, %v3386_v23  ;;  %v3380_v45 = vsub.f32 %v3269_v33, %v3318_v39 }
 0x582   : > { %v3397_v5 = vsub.f32 %v3389_v10, %v3393_v52  ;;  %v3411_v49 = vadd.f32 %v3407_v20, %v3403_v43  ;;  %v3390_v34 = vmul.f32 %v7735_v6, %v3382_v13  ;;  %v3404_v51 = vmul.f32 %v7737_v48, %v3382_v13 }
 0x583   : > { %v3395_v53 = vsub.f32 %v3387_v58, %v3391_v1  ;;  %v3409_v3 = vadd.f32 %v3405_v8, %v3401_v41  ;;  %v3388_v44 = vmul.f32 %v7741_v12, %v3380_v45  ;;  %v3402_v50 = vmul.f32 %v7739_v27, %v3380_v45 }
 0x584   : > { %v3398_v61 = vsub.f32 %v3390_v34, %v3394_v29  ;;  %v3412_v18 = vadd.f32 %v3408_v31, %v3404_v51  ;;  %v3392_v54 = vmul.f32 %v7739_v27, %v3384_v35  ;;  %v3406_v32 = vmul.f32 %v7741_v12, %v3384_v35 }
 0x586   : > { %v3400_v37 = vpack.c.bf16 %v3398_v61, %v3397_v5  ;;  %v3414_v33 = vpack.c.bf16 %v3412_v18, %v3411_v49  ;;  %v3396_v46 = vsub.f32 %v3388_v44, %v3392_v54  ;;  %v3410_v40 = vadd.f32 %v3406_v32, %v3402_v50 }
 0x588   : > { %v3399_v56 = vpack.c.bf16 %v3396_v46, %v3395_v53  ;;  %v3413_v60 = vpack.c.bf16 %v3410_v40, %v3409_v3  ;;  %v3416_v62 = vadd.bf16 %v3414_v33, %v3400_v37 }
 0x58a   : > { %5257 = vmatpush3.bf16.msra.mxu0 %v3413_v60  ;;  %v3415_v52 = vadd.bf16 %v3413_v60, %v3399_v56 }
 0x58b   : > { %5258 = vmatprep.subr.bf16.mxu0 %v6291_v25 }
 0x58c   : > { %5249 = vmatpush3.bf16.msra.mxu1 %v3415_v52 }
 0x58d   : > { %5250 = vmatprep.subr.bf16.mxu1 %v6291_v25 }
 0x58e   : > { %5259 = vmatpush3.bf16.msra.mxu0 %v3414_v33 }
 0x58f   : > { %5272 = vmatprep.subr.bf16.mxu0 %v7715_v36 }
 0x590   : > { %5251 = vmatpush3.bf16.msra.mxu1 %v3416_v62 }
 0x591   : > { %5261 = vmatmul.mubr.msk.bf16.vlgmr.msra.gmra.mrb[28].mxu0 %vm3082_vm7, %v7761_v24  ;;  %5264 = vmatprep.subr.bf16.mxu1 %v6291_v25 }
 0x592   : > { %5273 = vmatpush3.bf16.msra.mxu0 %v7715_v36  ;;  %5274 = vmatprep.mubr.msk.bf16.mxu0 %vm1672_vm9, %v7673_v0 }
 0x593   : > { %5253 = vmatmul.mubr.msk.bf16.vlgmr.msra.gmra.mrb[32].mxu1 %vm3082_vm7, %v7764_v15  ;;  %5284 = vmatprep.subr.bf16.mxu0 %v7703_v47 }
 0x594   : > { %5265 = vmatpush3.bf16.msra.mxu1 %v3399_v56  ;;  %5268 = vmatprep.mubr.msk.bf16.mxu1 %vm6292_vm6, %v6291_v25 }
 0x595   : > { %5266 = vmatprep.subr.bf16.mxu1 %v6291_v25 }
 0x598   : > { %5267 = vmatpush3.bf16.msra.mxu1 %v3400_v37 }
 0x599   : > { %5275 = vmatmul.mubr.msk.bf16.vlgmr.msra.gmra.mrb[32].mxu0 %vm1672_vm9, %v7695_v38  ;;  %5278 = vmatprep.subr.bf16.mxu1 %v7685_v59 }
 0x59a   : > { %5285 = vmatpush3.bf16.msra.mxu0 %v7703_v47  ;;  %5286 = vmatprep.mubr.msk.bf16.mxu0 %vm1672_vm9, %v7675_v14 }
 0x59b   : > { %5269 = vmatmul.mubr.msk.bf16.vlgmr.msra.gmra.mrb[36].mxu1 %vm3082_vm7, %v7778_v11  ;;  %5298 = vmatprep.subr.bf16.mxu0 %v6291_v25 }
 0x59c   : > { %5279 = vmatpush3.bf16.msra.mxu1 %v7685_v59  ;;  %5280 = vmatprep.mubr.msk.bf16.mxu1 %vm1672_vm9, %v7697_v63 }
 0x59d   : > { %5290 = vmatprep.subr.bf16.mxu1 %v6291_v25 }
 0x5a1   : > { %5287 = vmatmul.mubr.msk.bf16.vlgmr.msra.gmra.mrb[36].mxu0 %vm1672_vm9, %v7693_v4 }
 0x5a2   : > { %5302 = vmatprep.mubr.msk.bf16.mxu0 %vm6292_vm6, %v6291_v25 }
 0x5a3   : > { %5281 = vmatmul.mubr.msk.bf16.vlgmr.msra.gmra.mrb[40].mxu1 %vm1672_vm9, %v7717_v16 }
 0x5a4   : > { %5294 = vmatprep.mubr.msk.bf16.mxu1 %vm6292_vm6, %v6291_v25 }
 0x664   : > { %v3492_v47 = vpop.f32.mrb[28].mxu0 }
 0x665   : > { %v5262_v36 = vpop.f32.mrb[29].mxu0 }
 0x666   : > { %v3451_v59 = vpop.f32.mrb[32].mxu1  ;;  %v3495_v20 = vpop.f32.mrb[30].mxu0 }
 0x667   : > { %v5254_v28 = vpop.f32.mrb[33].mxu1  ;;  %v3540_v23 = vsub.f32 %v3451_v59, %v3492_v47  ;;  %v5263_v42 = vpop.f32.mrb[31].mxu0 }
 0x668   : > { %v3454_v7 = vpop.f32.mrb[34].mxu1 }
 0x669   : > { %v5255_v1 = vpop.f32.mrb[35].mxu1  ;;  %v3541_v8 = vsub.f32 %v3454_v7, %v3495_v20 }
 0x66b   : > { %v7857_v9 = vpack.c.bf16 %v3541_v8, %v3540_v23 }
 0x66c   : > { %v5276_v35 = vpop.f32.mrb[32].mxu0 }
 0x66d   : > { %v3581_v10 = vpop.f32.mrb[33].mxu0 }
 0x66e   : > { %v3533_v43 = vpop.f32.mrb[36].mxu1  ;;  %v5277_v13 = vpop.f32.mrb[34].mxu0 }
 0x66f   : > { %v3542_v29 = vadd.f32 %v3533_v43, %v3451_v59  ;;  %v5270_v39 = vpop.f32.mrb[37].mxu1  ;;  %v3584_v58 = vpop.f32.mrb[35].mxu0 }
 0x670   : > { %v3536_v41 = vpop.f32.mrb[38].mxu1 }
 0x671   : > { %v3543_v31 = vadd.f32 %v3536_v41, %v3454_v7  ;;  %v5271_v45 = vpop.f32.mrb[39].mxu1 }
 0x673   : > { %v7859_v5 = vpack.c.bf16 %v3543_v31, %v3542_v29 }
 0x674   : > { %v5288_v49 = vpop.f32.mrb[36].mxu0 }
 0x675   : > { %v3700_v34 = vadd.f32 %v5288_v49, %v5276_v35  ;;  %v3679_v51 = vpop.f32.mrb[37].mxu0 }
 0x676   : > { %v5282_v53 = vpop.f32.mrb[40].mxu1  ;;  %v3698_v3 = vadd.f32 %v3679_v51, %v3581_v10  ;;  %v5289_v44 = vpop.f32.mrb[38].mxu0 }
 0x677   : > { %v3696_v50 = vsub.f32 %v5276_v35, %v5282_v53  ;;  %v3708_v61 = vmul.f32 %v7729_v57, %v3700_v34  ;;  %v3722_v18 = vmul.f32 %v7727_v17, %v3700_v34  ;;  %v3630_v54 = vpop.f32.mrb[41].mxu1  ;;  %v3701_v32 = vadd.f32 %v5289_v44, %v5277_v13  ;;  %v3682_v37 = vpop.f32.mrb[39].mxu0 }
 0x678   : > { %v3694_v33 = vsub.f32 %v3581_v10, %v3630_v54  ;;  %v3706_v46 = vmul.f32 %v7731_v21, %v3698_v3  ;;  %v3720_v40 = vmul.f32 %v7733_v22, %v3698_v3  ;;  %v5283_v56 = vpop.f32.mrb[42].mxu1  ;;  %v3699_v60 = vadd.f32 %v3682_v37, %v3584_v58 }
 0x679   : > { %v3704_v62 = vmul.f32 %v7727_v17, %v3696_v50  ;;  %v3718_v52 = vmul.f32 %v7729_v57, %v3696_v50  ;;  %v3697_v47 = vsub.f32 %v5277_v13, %v5283_v56  ;;  %v3709_v36 = vmul.f32 %v7737_v48, %v3701_v32  ;;  %v3633_v59 = vpop.f32.mrb[43].mxu1 }
 0x67a   : > { %v3702_v20 = vmul.f32 %v7733_v22, %v3694_v33  ;;  %v3716_v28 = vmul.f32 %v7731_v21, %v3694_v33  ;;  %v3723_v23 = vmul.f32 %v7735_v6, %v3701_v32  ;;  %v3695_v42 = vsub.f32 %v3584_v58, %v3633_v59 }
 0x67b   : > { %v3712_v7 = vsub.f32 %v3704_v62, %v3708_v61  ;;  %v3726_v1 = vadd.f32 %v3722_v18, %v3718_v52  ;;  %v3705_v8 = vmul.f32 %v7735_v6, %v3697_v47  ;;  %v3719_v35 = vmul.f32 %v7737_v48, %v3697_v47 }
 0x67c   : > { %v3710_v10 = vsub.f32 %v3702_v20, %v3706_v46  ;;  %v3724_v43 = vadd.f32 %v3720_v40, %v3716_v28  ;;  %v3703_v13 = vmul.f32 %v7741_v12, %v3695_v42  ;;  %v3717_v29 = vmul.f32 %v7739_v27, %v3695_v42 }
 0x67d   : > { %v3713_v39 = vsub.f32 %v3705_v8, %v3709_v36  ;;  %v3727_v41 = vadd.f32 %v3723_v23, %v3719_v35  ;;  %v3707_v31 = vmul.f32 %v7739_v27, %v3699_v60  ;;  %v3721_v45 = vmul.f32 %v7741_v12, %v3699_v60 }
 0x67f   : > { %v3715_v49 = vpack.c.bf16 %v3713_v39, %v3712_v7  ;;  %v3729_v58 = vpack.c.bf16 %v3727_v41, %v3726_v1  ;;  %v3711_v34 = vsub.f32 %v3703_v13, %v3707_v31  ;;  %v3725_v51 = vadd.f32 %v3721_v45, %v3717_v29 }
 0x681   : > { %v3714_v53 = vpack.c.bf16 %v3711_v34, %v3710_v10  ;;  %v3728_v3 = vpack.c.bf16 %v3725_v51, %v3724_v43  ;;  %v3731_v44 = vadd.bf16 %v3729_v58, %v3715_v49 }
 0x683   : > { %5299 = vmatpush3.bf16.msra.mxu0 %v3728_v3  ;;  %v3730_v50 = vadd.bf16 %v3728_v3, %v3714_v53 }
 0x684   : > { %5300 = vmatprep.subr.bf16.mxu0 %v6291_v25 }
 0x685   : > { %5291 = vmatpush3.bf16.msra.mxu1 %v3730_v50 }
 0x686   : > { %5292 = vmatprep.subr.bf16.mxu1 %v6291_v25 }
 0x687   : > { %5301 = vmatpush3.bf16.msra.mxu0 %v3729_v58 }
 0x688   : > { %5314 = vmatprep.subr.bf16.mxu0 %v7711_v2 }
 0x689   : > { %5293 = vmatpush3.bf16.msra.mxu1 %v3731_v44 }
 0x68a   : > { %5303 = vmatmul.mubr.msk.bf16.vlgmr.msra.gmra.mrb[40].mxu0 %vm3082_vm7, %v7761_v24  ;;  %5306 = vmatprep.subr.bf16.mxu1 %v6291_v25 }
 0x68b   : > { %5315 = vmatpush3.bf16.msra.mxu0 %v7711_v2  ;;  %5316 = vmatprep.mubr.msk.bf16.mxu0 %vm1672_vm9, %v7673_v0 }
 0x68c   : > { %5295 = vmatmul.mubr.msk.bf16.vlgmr.msra.gmra.mrb[44].mxu1 %vm3082_vm7, %v7764_v15  ;;  %5326 = vmatprep.subr.bf16.mxu0 %v7701_v30 }
 0x68d   : > { %5307 = vmatpush3.bf16.msra.mxu1 %v3714_v53  ;;  %5310 = vmatprep.mubr.msk.bf16.mxu1 %vm6292_vm6, %v6291_v25 }
 0x68e   : > { %5308 = vmatprep.subr.bf16.mxu1 %v6291_v25 }
 0x691   : > { %5309 = vmatpush3.bf16.msra.mxu1 %v3715_v49 }
 0x692   : > { %5317 = vmatmul.mubr.msk.bf16.vlgmr.msra.gmra.mrb[44].mxu0 %vm1672_vm9, %v7695_v38  ;;  %5320 = vmatprep.subr.bf16.mxu1 %v7683_v55 }
 0x693   : > { %5327 = vmatpush3.bf16.msra.mxu0 %v7701_v30  ;;  %5328 = vmatprep.mubr.msk.bf16.mxu0 %vm1672_vm9, %v7675_v14 }
 0x694   : > { %5311 = vmatmul.mubr.msk.bf16.vlgmr.msra.gmra.mrb[48].mxu1 %vm3082_vm7, %v7778_v11  ;;  %5340 = vmatprep.subr.bf16.mxu0 %v6291_v25 }
 0x695   : > { %5321 = vmatpush3.bf16.msra.mxu1 %v7683_v55  ;;  %5322 = vmatprep.mubr.msk.bf16.mxu1 %vm1672_vm9, %v7697_v63 }
 0x696   : > { %5332 = vmatprep.subr.bf16.mxu1 %v6291_v25 }
 0x69a   : > { %5329 = vmatmul.mubr.msk.bf16.vlgmr.msra.gmra.mrb[48].mxu0 %vm1672_vm9, %v7693_v4 }
 0x69b   : > { %5344 = vmatprep.mubr.msk.bf16.mxu0 %vm6292_vm6, %v6291_v25 }
 0x69c   : > { %5323 = vmatmul.mubr.msk.bf16.vlgmr.msra.gmra.mrb[52].mxu1 %vm1672_vm9, %v7717_v16 }
 0x69d   : > { %5336 = vmatprep.mubr.msk.bf16.mxu1 %vm6292_vm6, %v6291_v25 }
 0x75d   : > { %v3807_v0 = vpop.f32.mrb[40].mxu0 }
 0x75e   : > { %v5304_v14 = vpop.f32.mrb[41].mxu0 }
 0x75f   : > { %v3766_v55 = vpop.f32.mrb[44].mxu1  ;;  %v3810_v38 = vpop.f32.mrb[42].mxu0 }
 0x760   : > { %v5296_v30 = vpop.f32.mrb[45].mxu1  ;;  %v3855_v63 = vsub.f32 %v3766_v55, %v3807_v0  ;;  %v5305_v2 = vpop.f32.mrb[43].mxu0 }
 0x761   : > { %v3769_v61 = vpop.f32.mrb[46].mxu1 }
 0x762   : > { %v5297_v18 = vpop.f32.mrb[47].mxu1  ;;  %v3856_v54 = vsub.f32 %v3769_v61, %v3810_v38 }
 0x764   : > { %v7913_v4 = vpack.c.bf16 %v3856_v54, %v3855_v63 }
 0x765   : > { %v5318_v32 = vpop.f32.mrb[44].mxu0 }
 0x766   : > { %v3896_v37 = vpop.f32.mrb[45].mxu0 }
 0x767   : > { %v3848_v33 = vpop.f32.mrb[48].mxu1  ;;  %v5319_v46 = vpop.f32.mrb[46].mxu0 }
 0x768   : > { %v3857_v16 = vadd.f32 %v3848_v33, %v3766_v55  ;;  %v5312_v40 = vpop.f32.mrb[49].mxu1  ;;  %v3899_v56 = vpop.f32.mrb[47].mxu0 }
 0x769   : > { %v3851_v60 = vpop.f32.mrb[50].mxu1  ;;  %v5662_v40 = vld [vmem:[#allocation25] sm:$0xff]  }
 0x76a   : > { %v3858_v62 = vadd.f32 %v3851_v60, %v3769_v61  ;;  %v5313_v52 = vpop.f32.mrb[51].mxu1  ;;  %v5665_v60 = vld [vmem:[#allocation27 + $0x8] sm:$0xff]  }
 0x76c   : > { %v7915_v47 = vpack.c.bf16 %v3858_v62, %v3857_v16  ;;  %v5660_v16 = vld [vmem:[#allocation24] sm:$0xff]  }
 0x76d   : > { %v5330_v36 = vpop.f32.mrb[48].mxu0 }
 0x76e   : > { %v4015_v59 = vadd.f32 %v5330_v36, %v5318_v32  ;;  %v3994_v20 = vpop.f32.mrb[49].mxu0 }
 0x76f   : > { %v5324_v28 = vpop.f32.mrb[52].mxu1  ;;  %v4013_v23 = vadd.f32 %v3994_v20, %v3896_v37  ;;  %v5331_v42 = vpop.f32.mrb[50].mxu0 }
 0x770   : > { %v4011_v7 = vsub.f32 %v5318_v32, %v5324_v28  ;;  %v4023_v1 = vmul.f32 %v7729_v57, %v4015_v59  ;;  %v4037_v8 = vmul.f32 %v7727_v17, %v4015_v59  ;;  %v3945_v35 = vpop.f32.mrb[53].mxu1  ;;  %v4016_v10 = vadd.f32 %v5331_v42, %v5319_v46  ;;  %v3997_v43 = vpop.f32.mrb[51].mxu0 }
 0x771   : > { %v4009_v13 = vsub.f32 %v3896_v37, %v3945_v35  ;;  %v4021_v29 = vmul.f32 %v7731_v21, %v4013_v23  ;;  %v4035_v39 = vmul.f32 %v7733_v22, %v4013_v23  ;;  %v5325_v41 = vpop.f32.mrb[54].mxu1  ;;  %v4014_v31 = vadd.f32 %v3997_v43, %v3899_v56 }
 0x772   : > { %v4019_v45 = vmul.f32 %v7727_v17, %v4011_v7  ;;  %v4033_v49 = vmul.f32 %v7729_v57, %v4011_v7  ;;  %v4012_v58 = vsub.f32 %v5319_v46, %v5325_v41  ;;  %v4024_v34 = vmul.f32 %v7737_v48, %v4016_v10  ;;  %v3948_v51 = vpop.f32.mrb[55].mxu1 }
 0x773   : > { %v4017_v53 = vmul.f32 %v7733_v22, %v4009_v13  ;;  %v4031_v3 = vmul.f32 %v7731_v21, %v4009_v13  ;;  %v4038_v44 = vmul.f32 %v7735_v6, %v4016_v10  ;;  %v4010_v50 = vsub.f32 %v3899_v56, %v3948_v51 }
 0x774   : > { %v4027_v0 = vsub.f32 %v4019_v45, %v4023_v1  ;;  %v4041_v14 = vadd.f32 %v4037_v8, %v4033_v49  ;;  %v4020_v55 = vmul.f32 %v7735_v6, %v4012_v58  ;;  %v4034_v38 = vmul.f32 %v7737_v48, %v4012_v58 }
 0x775   : > { %v4025_v17 = vsub.f32 %v4017_v53, %v4021_v29  ;;  %v4039_v30 = vadd.f32 %v4035_v39, %v4031_v3  ;;  %v4018_v57 = vmul.f32 %v7741_v12, %v4010_v50  ;;  %v4032_v63 = vmul.f32 %v7739_v27, %v4010_v50 }
 0x776   : > { %v4028_v2 = vsub.f32 %v4020_v55, %v4024_v34  ;;  %v4042_v61 = vadd.f32 %v4038_v44, %v4034_v38  ;;  %v4022_v22 = vmul.f32 %v7739_v27, %v4014_v31  ;;  %v4036_v21 = vmul.f32 %v7741_v12, %v4014_v31  ;;  %v5661_v27 = vld [vmem:[#allocation24 + $0x8] sm:$0xff]  }
 0x777   : > { %v4188_v12 = vadd.bf16 %v7803_v26, %v7801_v19  ;;  %v4190_v56 = vadd.bf16 %v7915_v47, %v7913_v4 }
 0x778   : > { %v4030_v18 = vpack.c.bf16 %v4028_v2, %v4027_v0  ;;  %v4044_v54 = vpack.c.bf16 %v4042_v61, %v4041_v14  ;;  %v4026_v32 = vsub.f32 %v4018_v57, %v4022_v22  ;;  %v4040_v37 = vadd.f32 %v4036_v21, %v4032_v63 }
 0x77a   : > { %v4029_v33 = vpack.c.bf16 %v4026_v32, %v4025_v17  ;;  %v4043_v6 = vpack.c.bf16 %v4040_v37, %v4039_v30  ;;  %v4046_v46 = vadd.bf16 %v4044_v54, %v4030_v18 }
 0x77c   : > { %5341 = vmatpush3.bf16.msra.mxu0 %v4043_v6  ;;  %v4045_v48 = vadd.bf16 %v4043_v6, %v4029_v33 }
 0x77d   : > { %5342 = vmatprep.subr.bf16.mxu0 %v6291_v25 }
 0x77e   : > { %5333 = vmatpush3.bf16.msra.mxu1 %v4045_v48 }
 0x77f   : > { %5334 = vmatprep.subr.bf16.mxu1 %v6291_v25 }
 0x780   : > { %5343 = vmatpush3.bf16.msra.mxu0 %v4044_v54 }
 0x781   : > { %5356 = vmatprep.subr.bf16.mxu0 %v5660_v16 }
 0x782   : > { %5335 = vmatpush3.bf16.msra.mxu1 %v4046_v46 }
 0x783   : > { %5345 = vmatmul.mubr.msk.bf16.vlgmr.msra.gmra.mrb[52].mxu0 %vm3082_vm7, %v7761_v24  ;;  %5348 = vmatprep.subr.bf16.mxu1 %v6291_v25  ;;  %v4189_v24 = vadd.bf16 %v7859_v5, %v7857_v9 }
 0x784   : > { %5357 = vmatpush3.bf16.msra.mxu0 %v5660_v16  ;;  %5360 = vmatprep.mubr.msk.bf16.mxu0 %vm3082_vm7, %v4188_v12 }
 0x785   : > { %5337 = vmatmul.mubr.msk.bf16.vlgmr.msra.gmra.mrb[56].mxu1 %vm3082_vm7, %v7764_v15  ;;  %5358 = vmatprep.subr.bf16.mxu0 %v5661_v27  ;;  %v5663_v15 = vld [vmem:[#allocation25 + $0x8] sm:$0xff]  }
 0x786   : > { %5349 = vmatpush3.bf16.msra.mxu1 %v4029_v33  ;;  %5352 = vmatprep.mubr.msk.bf16.mxu1 %vm6292_vm6, %v6291_v25 }
 0x787   : > { %5350 = vmatprep.subr.bf16.mxu1 %v6291_v25  ;;  %v5664_v25 = vld [vmem:[#allocation27] sm:$0xff]  }
 0x788   : > { %5359 = vmatpush3.bf16.msra.mxu0 %v5661_v27 }
 0x789   : > { %5380 = vmatprep.subr.bf16.mxu0 %v5664_v25 }
 0x78a   : > { %5351 = vmatpush3.bf16.msra.mxu1 %v4030_v18 }
 0x78b   : > { %5361 = vmatmul.mubr.msk.bf16.vlgmr.msra.gmra.mrb[56].mxu0 %vm3082_vm7, %v4189_v24  ;;  %5368 = vmatprep.subr.bf16.mxu1 %v5662_v40 }
 0x78c   : > { %5364 = vmatprep.mubr.msk.bf16.mxu0 %vm3082_vm7, %v4190_v56  ;;  %5381 = vmatpush3.bf16.msra.mxu0 %v5664_v25 }
 0x78d   : > { %5353 = vmatmul.mubr.msk.bf16.vlgmr.msra.gmra.mrb[60].mxu1 %vm3082_vm7, %v7778_v11  ;;  %5382 = vmatprep.subr.bf16.mxu0 %v5665_v60 }
 0x78e   : > { %5369 = vmatpush3.bf16.msra.mxu1 %v5662_v40  ;;  %5372 = vmatprep.mubr.msk.bf16.mxu1 %vm3082_vm7, %v7803_v26 }
 0x78f   : > { %5370 = vmatprep.subr.bf16.mxu1 %v5663_v15 }
 0x790   : > { %5383 = vmatpush3.bf16.msra.mxu0 %v5665_v60 }
 0x792   : > { %5371 = vmatpush3.bf16.msra.mxu1 %v5663_v15 }
 0x795   : > { %5373 = vmatmul.mubr.msk.bf16.vlgmr.msra.gmra.mrb[64].mxu1 %vm3082_vm7, %v7859_v5 }
 0x796   : > { %5376 = vmatprep.mubr.msk.bf16.mxu1 %vm3082_vm7, %v7915_v47 }
 0x856   : > { %v4122_v62 = vpop.f32.mrb[52].mxu0 }
 0x857   : > { %v5346_v11 = vpop.f32.mrb[53].mxu0 }
 0x858   : > { %v4081_v52 = vpop.f32.mrb[56].mxu1  ;;  %v4125_v36 = vpop.f32.mrb[54].mxu0 }
 0x859   : > { %v4170_v59 = vsub.f32 %v4081_v52, %v4122_v62  ;;  %v5338_v26 = vpop.f32.mrb[57].mxu1  ;;  %v5347_v20 = vpop.f32.mrb[55].mxu0 }
 0x85a   : > { %v4084_v28 = vpop.f32.mrb[58].mxu1 }
 0x85b   : > { %v4171_v23 = vsub.f32 %v4084_v28, %v4125_v36  ;;  %v5339_v42 = vpop.f32.mrb[59].mxu1 }
 0x85d   : > { %v4174_v5 = vpack.c.bf16 %v4171_v23, %v4170_v59 }
 0x85e   : > { %v7960_v7 = vpop.f32.mrb[56].mxu0 }
 0x85f   : > { %v7962_v47 = vpop.f32.mrb[57].mxu0 }
 0x860   : > { %v4163_v1 = vpop.f32.mrb[60].mxu1  ;;  %v7964_v8 = vpop.f32.mrb[58].mxu0 }
 0x861   : > { %v4172_v35 = vadd.f32 %v4163_v1, %v4081_v52  ;;  %v5354_v10 = vpop.f32.mrb[61].mxu1  ;;  %v7966_v43 = vpop.f32.mrb[59].mxu0 }
 0x862   : > { %v4166_v13 = vpop.f32.mrb[62].mxu1 }
 0x863   : > { %v4173_v29 = vadd.f32 %v4166_v13, %v4084_v28  ;;  %v5355_v39 = vpop.f32.mrb[63].mxu1 }
 0x865   : > { %v4175_v41 = vpack.c.bf16 %v4173_v29, %v4172_v35 }
 0x867   : > { %v4191_v31 = vadd.bf16 %v4175_v41, %v4174_v5  ;;  %5377 = vmatmul.mubr.msk.bf16.gmra.mrb[68].mxu1 %vm3082_vm7, %v4175_v41 }
 0x868   : > { %v5374_v45 = vpop.f32.mrb[64].mxu1 }
 0x869   : > { %v4461_v49 = vsub.f32 %v7960_v7, %v5374_v45  ;;  %5365 = vmatmul.mubr.msk.bf16.gmra.mrb[60].mxu0 %vm3082_vm7, %v4191_v31  ;;  %v4339_v58 = vpop.f32.mrb[65].mxu1 }
 0x86a   : > { %v4459_v34 = vsub.f32 %v7962_v47, %v4339_v58  ;;  %v5375_v51 = vpop.f32.mrb[66].mxu1  ;;  %5384 = vmatprep.mubr.msk.bf16.mxu0 %vm3082_vm7, %v7801_v19 }
 0x86b   : > { %4480 = vst.msk [vmem:[%s817_s25 + $0x10] sm:$0xff] %vm1672_vm9, %v4461_v49  ;;  %v4462_v53 = vsub.f32 %v7964_v8, %v5375_v51  ;;  %v4342_v3 = vpop.f32.mrb[67].mxu1 }
 0x86c   : > { %4478 = vst.msk [vmem:[%s817_s25] sm:$0xff] %vm1672_vm9, %v4459_v34  ;;  %v4460_v44 = vsub.f32 %v7966_v43, %v4342_v3 }
 0x86d   : > { %4481 = vst.msk [vmem:[%s817_s25 + $0x18] sm:$0xff] %vm1672_vm9, %v4462_v53 }
 0x86e   : > { %4479 = vst.msk [vmem:[%s817_s25 + $0x8] sm:$0xff] %vm1672_vm9, %v4460_v44 }
 0x871   : > { %5385 = vmatmul.mubr.msk.bf16.vlgmr.msra.gmra.mrb[64].mxu0 %vm3082_vm7, %v7857_v9 }
 0x872   : > { %5388 = vmatprep.mubr.msk.bf16.mxu0 %vm3082_vm7, %v7913_v4 }
 0x879   : > { %5389 = vmatmul.mubr.msk.bf16.gmra.mrb[68].mxu0 %vm3082_vm7, %v4174_v5 }
 0x93a   : > { %v5378_v19 = vpop.f32.mrb[68].mxu1 }
 0x93b   : > { %v4355_v50 = vpop.f32.mrb[69].mxu1 }
 0x93c   : > { %v5366_v0 = vpop.f32.mrb[60].mxu0  ;;  %v5379_v14 = vpop.f32.mrb[70].mxu1 }
 0x93d   : > { %v4465_v55 = vsub.f32 %v5366_v0, %v5378_v19  ;;  %v4266_v38 = vpop.f32.mrb[61].mxu0  ;;  %v4358_v17 = vpop.f32.mrb[71].mxu1 }
 0x93e   : > { %v4463_v30 = vsub.f32 %v4266_v38, %v4355_v50  ;;  %v5367_v57 = vpop.f32.mrb[62].mxu0 }
 0x93f   : > { %4484 = vst.msk [vmem:[%s817_s25 + $0x30] sm:$0xff] %vm1672_vm9, %v4465_v55  ;;  %v4466_v9 = vsub.f32 %v5367_v57, %v5379_v14  ;;  %v4269_v4 = vpop.f32.mrb[63].mxu0 }
 0x940   : > { %4482 = vst.msk [vmem:[%s817_s25 + $0x20] sm:$0xff] %vm1672_vm9, %v4463_v30  ;;  %v4464_v63 = vsub.f32 %v4269_v4, %v4358_v17 }
 0x941   : > { %4485 = vst.msk [vmem:[%s817_s25 + $0x38] sm:$0xff] %vm1672_vm9, %v4466_v9 }
 0x942   : > { %4483 = vst.msk [vmem:[%s817_s25 + $0x28] sm:$0xff] %vm1672_vm9, %v4464_v63 }
 0x943   : > { %6135 = shalt.err (!%p6132_p8)
}
 0x944   : > { %s6136_s25 = scalar_lea.hbm %s7993_s22, 1024  ;;  %s6140_s2 = scalar_lea.hbm %s8189_s28, 2048 }
 0x945   : > { %p6137_p3 = scmp.ne.s32.totalorder %s7993_s22, %s6136_s25  ;;  %p6141_p13 = scmp.lt.u32.totalorder %s7993_s22, %s8189_s28 }
 0x946   : > { %p6142_p1 = scmp.lt.u32.totalorder %s6140_s2, %s6136_s25  ;;  %p6144_p2 = scmp.lt.u32.totalorder %s6136_s25, %s7993_s22 }
 0x947   : > { %p6138_p11 = pnand %p6137_p3, %p8190_p9 }
 0x948   : > { %p6143_p4 = por %p6142_p1, %p6141_p13 }
 0x949   : > { %p6139_p6 = pneg %p6138_p11 }
 0x94a   : > { %p6145_p10 = por %p6144_p2, %p6143_p4 }
 0x94c   : > { %p6146_p12 = pnand %p6145_p10, %p6139_p6 }
 0x94e   : > { %6149 = shalt.err (!%p6146_p12)
}
 0x94f   : > { %s8132_s17 = smov 128   ;;  %s8133_s30 = smov 8   ;;  %v5386_v2 = vpop.f32.mrb[64].mxu0 }
 0x950   : > { %s8191_s19 = scalar_lea.sflag [#allocation6], %s6833_s16  ;;  %v4469_v61 = vadd.f32 %v5386_v2, %v7960_v7  ;;  %v4428_v22 = vpop.f32.mrb[65].mxu0  ;;  %s824_s24 = scalar_lea.vmem [#allocation29], %s6836_s27 }
 0x951   : > { %5484 = dma.vmem_to_hbm [thread:$0]  (%p8190_p9), %s7995_s18, 1024, %s7993_s22, %s8191_s19, %s8132_s17, %s8132_s17, %s8133_s30   ;;  %v4467_v21 = vadd.f32 %v4428_v22, %v7962_v47  ;;  %v5387_v18 = vpop.f32.mrb[66].mxu0 }
 0x952   : > { %4488 = vst.msk [vmem:[%s824_s24 + $0x10] sm:$0xff] %vm1672_vm9, %v4469_v61  ;;  %v4470_v54 = vadd.f32 %v5387_v18, %v7964_v8  ;;  %v4431_v32 = vpop.f32.mrb[67].mxu0  ;;  %s4581_s27 = sshll.u32 %s824_s24, 4  ;;  %s8192_s18 = sshll.u32 %s8187_s3, 10  ;;  %s8045_s27 = int_to_ptr.vmem [resolvable:$true] %s4581_s27 }
 0x953   : > { %4486 = vst.msk [vmem:[%s824_s24] sm:$0xff] %vm1672_vm9, %v4467_v21  ;;  %v4468_v37 = vadd.f32 %v4431_v32, %v7966_v43  ;;  %v5390_v33 = vpop.f32.mrb[68].mxu0  ;;  %s8193_s23 = sld [smem:[#allocation53_spill]]  ;;  %s4552_s19 = scalar_lea.sflag [#allocation30], %s6833_s16 }
 0x954   : > { %4489 = vst.msk [vmem:[%s824_s24 + $0x18] sm:$0xff] %vm1672_vm9, %v4470_v54  ;;  %v4473_v6 = vadd.f32 %v5390_v33, %v5366_v0  ;;  %v4444_v46 = vpop.f32.mrb[69].mxu0  ;;  %s6150_s17 = scalar_lea.vmem %s8045_s27, 1024  ;;  %s6296_s3 = smov [#allocation29]  }
 0x955   : > { %4487 = vst.msk [vmem:[%s824_s24 + $0x8] sm:$0xff] %vm1672_vm9, %v4468_v37  ;;  %v4471_v48 = vadd.f32 %v4444_v46, %v4266_v38  ;;  %v5391_v16 = vpop.f32.mrb[70].mxu0  ;;  %p6151_p0 = scmp.ne.s32.totalorder %s8045_s27, %s6150_s17  ;;  %s6154_s30 = sshll.u32 %s6296_s3, 4  ;;  %s6155_s30 = int_to_ptr.vmem [resolvable:$false] %s6154_s30 }
 0x956   : > { %4492 = vst.msk [vmem:[%s824_s24 + $0x30] sm:$0xff] %vm1672_vm9, %v4473_v6  ;;  %v4474_v27 = vadd.f32 %v5391_v16, %v5367_v57  ;;  %v4447_v12 = vpop.f32.mrb[71].mxu0  ;;  %p6157_p8 = scmp.lt.s32.totalorder %s8045_s27, %s6155_s30 }
 0x957   : > { %4490 = vst.msk [vmem:[%s824_s24 + $0x20] sm:$0xff] %vm1672_vm9, %v4471_v48  ;;  %v4472_v40 = vadd.f32 %v4447_v12, %v4269_v4  ;;  %p6152_p7 = pnand %p6151_p0, %p8190_p9 }
 0x958   : > { %4493 = vst.msk [vmem:[%s824_s24 + $0x38] sm:$0xff] %vm1672_vm9, %v4474_v27 }
 0x959   : > { %s8194_s2 = smov %s8193_s23  ;;  %s8043_s29 = scalar_lea.hbm %s8193_s23, %s8192_s18  ;;  %4491 = vst.msk [vmem:[%s824_s24 + $0x28] sm:$0xff] %vm1672_vm9, %v4472_v40 }
 0x95a   : > { %p6153_p5 = pneg %p6152_p7  ;;  %s6156_s18 = scalar_lea.vmem %s6155_s30, 2048 }
 0x95b   : > { %p6158_p3 = scmp.lt.s32.totalorder %s6156_s18, %s6150_s17 }
 0x95d   : > { %p6159_p11 = por %p6158_p3, %p6157_p8 }
 0x95f   : > { %p6160_p6 = pnand %p6159_p11, %p6153_p5 }
 0x961   : > { %6163 = shalt.err (!%p6160_p6)
}
 0x962   : > { %s6164_s24 = scalar_lea.hbm %s8043_s29, 1024  ;;  %s6168_s23 = scalar_lea.hbm %s8194_s2, 2048 }
 0x963   : > { %p6165_p13 = scmp.ne.s32.totalorder %s8043_s29, %s6164_s24  ;;  %p6169_p2 = scmp.lt.u32.totalorder %s8043_s29, %s8194_s2 }
 0x964   : > { %p6170_p10 = scmp.lt.u32.totalorder %s6168_s23, %s6164_s24  ;;  %p6172_p0 = scmp.lt.u32.totalorder %s6164_s24, %s8043_s29 }
 0x965   : > { %p6166_p1 = pnand %p6165_p13, %p8190_p9 }
 0x966   : > { %p6171_p12 = por %p6170_p10, %p6169_p2 }
 0x967   : > { %p6167_p4 = pneg %p6166_p1 }
 0x968   : > { %p6173_p7 = por %p6172_p0, %p6171_p12 }
 0x96a   : > { %p6174_p5 = pnand %p6173_p7, %p6167_p4 }
 0x96c   : > { %6177 = shalt.err (!%p6174_p5)
}
 0x96d   : > { %s8195_s17 = smov 8   ;;  %s8196_s18 = smov 128  }
 0x96e   : > { %5485 = dma.vmem_to_hbm [thread:$0]  (%p8190_p9), %s8045_s27, 1024, %s8043_s29, %s4552_s19, %s8196_s18, %s8196_s18, %s8195_s17  }
 0x96f PF: > { %s8197_s22 = sld [smem:[#allocation41_spill]]  ;;  %p8198_p8 = scmp.ne.s32.totalorder %s8164_s20, 0 }
 0x970   : > { %p8199_p3 = scmp.ge.s32.totalorder %s6264_s26, 2 }
 0x972   : > { %p5536_p11 = pnand %p8199_p3, %p8198_p8 }
 0x975   : > { %s4596_s25 = sand.u32 1, %s8197_s22  }
 0x976   : > { %s4597_s24 = scalar_lea.sflag [#allocation6], %s4596_s25 }
 0x977   : > { %6235 = dma.done.wait (!%p5536_p11), %s4597_s24, 1024  }
 0x978   : > { %6237 = vsyncadd (!%p5536_p11), %s4597_s24, 4294966272  ;;  %s4606_s21 = scalar_lea.sflag [#allocation30], %s4596_s25 }
 0x979   : > { %6239 = dma.done.wait (!%p5536_p11), %s4606_s21, 1024  }
 0x97a   : > { %6241 = vsyncadd (!%p5536_p11), %s4606_s21, 4294966272  ;;  %s43_s26 = sadd.s32 1, %s6264_s26   ;;  %s8200_s21 = sld [smem:[#allocation42_spill]] }
 0x97b   : > { %p40_p6 = scmp.ge.s32.totalorder %s43_s26, 4   ;;  %s8201_s22 = sld [smem:[#allocation43_spill]] }
 0x97c   : > { %s8202_s24 = sld [smem:[#allocation45_spill]]  ;;  %s8203_s23 = smov %s6780_s1 }
 0x97d   : > { %s8204_s25 = smov %s8206_s0  ;;  %42 = sbr.rel (!%p40_p6) target bundleno = 22 (0x16), region = 218 }
 0x984   :  { %4611 = vsyncpa [#allocation5], 1 }
 0x985   :  { %4613 = vsyncpa [#allocation5 + $0x1], 1 }
 0x986   :  { %4614 = vsyncpa [#allocation8], 1 }
 0x987   :  { %4615 = vsyncpa [#allocation11], 1 }
 0x988   :  { %4616 = vsyncpa [#allocation14], 1 }
 0x989   :  { %4617 = vsyncpa [#allocation17], 1 }
 0x98a   :  { %4618 = vsyncpa [#allocation20], 1 }
 0x98b   :  { %4619 = vsyncpa [#allocation23], 1 }
 0x98c   :  { %4620 = vsyncpa [#allocation26], 1 }
 0x98d   :  { %4621 = vsyncpa [#allocation6], 1 }
 0x98e   :  { %4623 = vsyncpa [#allocation6 + $0x1], 1 }
 0x98f   :  { %4624 = vsyncpa [#allocation30], 1 }
 0x990   :  { %4626 = vsyncpa [#allocation30 + $0x1], 1 }

// kernel: custom-call
= control target key start
LH: loop header
LB: loop body
LE: loop exit
PB: predicated region body
PF: predicated region fallthrough
CT: control target
= control target key end

     0   :  { %s346_s0 = inlined_call_operand.hbm [shape: f32[2,4,16,16], index: 0, kind: input, shape index: {}]   ;;  %s347_s1 = inlined_call_operand.hbm [shape: f32[2,4,16,16], index: 1, kind: input, shape index: {}]   ;;  %s348_s2 = inlined_call_operand.hbm [shape: c64[2,4,16,16], index: 2, kind: output, shape index: {}]  }
   0x1   :  { %s281_s11 = scalar_lea.hbm %s348_s2, 2048 }
   0x2   :  { %4 = vsyncpa [#allocation2], 0 }
   0x3   :  { %5 = vsyncpa [#allocation1], 0  ;;  %s259_s12 = smov [#allocation3]   ;;  %s160_s16 = scalar_lea.hbm %s346_s0, 2048 }
   0x4   :  { %s6_s13 = sshll.u32 %s259_s12, 4  ;;  %p161_p0 = scmp.ne.s32.totalorder %s346_s0, %s160_s16  ;;  %s7_s13 = int_to_ptr.vmem [resolvable:$true] %s6_s13 }
   0x5   :  { %p164_p1 = scmp.lt.u32.totalorder %s160_s16, %s346_s0 }
   0x7   :  { %p166_p2 = pnand %p164_p1, %p161_p0 }
   0x9   :  { %169 = shalt.err (!%p166_p2)  }
   0xa   :  { %s170_s21 = scalar_lea.vmem %s7_s13, 2048  ;;  %p175_p4 = scmp.lt.s32.totalorder %s7_s13, %s7_s13 }
   0xb   :  { %p171_p3 = scmp.ne.s32.totalorder %s7_s13, %s170_s21  ;;  %p176_p5 = scmp.lt.s32.totalorder %s170_s21, %s170_s21 }
   0xd   :  { %p177_p6 = por %p176_p5, %p175_p4 }
   0xf   :  { %p178_p7 = pnand %p177_p6, %p171_p3 }
  0x11   :  { %181 = shalt.err (!%p178_p7)  }
  0x12   :  { %9 = dma.hbm_to_vmem [thread:$0]  %s346_s0, 2048, %s7_s13, [#allocation1] }
  0x13   :  { %251 = dma.done.wait [#allocation1], 2048  }
  0x14   :  { %252 = vsyncadd [#allocation1], 4294965248  ;;  %v11_v0 = vld [vmem:[#allocation3] sm:$0xff]  ;;  %v15_v1 = vld [vmem:[#allocation3 + $0x8] sm:$0xff]  ;;  %s260_s24 = smov [#allocation0]  }
  0x15   :  { %v19_v2 = vld [vmem:[#allocation3 + $0x10] sm:$0xff]  ;;  %12 = vst [vmem:[#allocation0] sm:$0xff] %v11_v0  ;;  %16 = vst [vmem:[#allocation0 + $0x8] sm:$0xff] %v15_v1  ;;  %v23_v3 = vld [vmem:[#allocation3 + $0x18] sm:$0xff]  ;;  %s73_s25 = sshll.u32 %s260_s24, 4  ;;  %s74_s25 = int_to_ptr.vmem [resolvable:$true] %s73_s25 }
  0x16   :  { %20 = vst [vmem:[#allocation0 + $0x10] sm:$0xff] %v19_v2  ;;  %v27_v4 = vld [vmem:[#allocation3 + $0x20] sm:$0xff]  ;;  %v31_v5 = vld [vmem:[#allocation3 + $0x28] sm:$0xff]  ;;  %24 = vst [vmem:[#allocation0 + $0x18] sm:$0xff] %v23_v3  ;;  %s182_s0 = scalar_lea.vmem %s74_s25, 2048  ;;  %p187_p9 = scmp.lt.s32.totalorder %s74_s25, %s74_s25 }
  0x17   :  { %28 = vst [vmem:[#allocation0 + $0x20] sm:$0xff] %v27_v4  ;;  %32 = vst [vmem:[#allocation0 + $0x28] sm:$0xff] %v31_v5  ;;  %v35_v6 = vld [vmem:[#allocation3 + $0x30] sm:$0xff]  ;;  %v39_v7 = vld [vmem:[#allocation3 + $0x38] sm:$0xff]  ;;  %p183_p8 = scmp.ne.s32.totalorder %s74_s25, %s182_s0  ;;  %p188_p10 = scmp.lt.s32.totalorder %s182_s0, %s182_s0 }
  0x18   :  { %v43_v8 = vld [vmem:[#allocation3 + $0x40] sm:$0xff]  ;;  %36 = vst [vmem:[#allocation0 + $0x30] sm:$0xff] %v35_v6  ;;  %40 = vst [vmem:[#allocation0 + $0x38] sm:$0xff] %v39_v7  ;;  %v47_v9 = vld [vmem:[#allocation3 + $0x48] sm:$0xff] }
  0x19   :  { %44 = vst [vmem:[#allocation0 + $0x40] sm:$0xff] %v43_v8  ;;  %v51_v10 = vld [vmem:[#allocation3 + $0x50] sm:$0xff]  ;;  %v55_v11 = vld [vmem:[#allocation3 + $0x58] sm:$0xff]  ;;  %48 = vst [vmem:[#allocation0 + $0x48] sm:$0xff] %v47_v9  ;;  %p189_p11 = por %p188_p10, %p187_p9 }
  0x1a   :  { %52 = vst [vmem:[#allocation0 + $0x50] sm:$0xff] %v51_v10  ;;  %56 = vst [vmem:[#allocation0 + $0x58] sm:$0xff] %v55_v11  ;;  %v59_v12 = vld [vmem:[#allocation3 + $0x60] sm:$0xff]  ;;  %v63_v13 = vld [vmem:[#allocation3 + $0x68] sm:$0xff] }
  0x1b   :  { %v67_v14 = vld [vmem:[#allocation3 + $0x70] sm:$0xff]  ;;  %60 = vst [vmem:[#allocation0 + $0x60] sm:$0xff] %v59_v12  ;;  %64 = vst [vmem:[#allocation0 + $0x68] sm:$0xff] %v63_v13  ;;  %v71_v15 = vld [vmem:[#allocation3 + $0x78] sm:$0xff]  ;;  %p190_p12 = pnand %p189_p11, %p183_p8 }
  0x1c   :  { %68 = vst [vmem:[#allocation0 + $0x70] sm:$0xff] %v67_v14  ;;  %72 = vst [vmem:[#allocation0 + $0x78] sm:$0xff] %v71_v15 }
  0x1d   :  { %193 = shalt.err (!%p190_p12)  }
  0x1e   :  { %p195_p13 = scmp.ne.s32.totalorder %s348_s2, %s281_s11  ;;  %s302_s30 = scalar_lea.hbm %s348_s2, 4096 }
  0x1f   :  { %p197_p0 = scmp.lt.u32.totalorder %s302_s30, %s281_s11  ;;  %p198_p1 = scmp.lt.u32.totalorder %s281_s11, %s348_s2 }
  0x21   :  { %p199_p2 = por %p198_p1, %p197_p0 }
  0x23   :  { %p200_p3 = pnand %p199_p2, %p195_p13 }
  0x25   :  { %203 = shalt.err (!%p200_p3)  }
  0x26   :  { %76 = dma.vmem_to_hbm [thread:$0]  %s74_s25, 2048, %s348_s2, [#allocation2] }
  0x27   :  { %253 = dma.done.wait [#allocation2], 2048  }
  0x28   :  { %254 = vsyncadd [#allocation2], 4294965248 }
  0x29   :  { %78 = vsyncpa [#allocation1], 1 }
  0x2a   :  { %79 = vsyncpa [#allocation2], 1 }
  0x2b   :  { %80 = vsyncpa [#allocation6], 0 }
  0x2c   :  { %81 = vsyncpa [#allocation5], 0  ;;  %s261_s9 = smov [#allocation7]   ;;  %s204_s14 = scalar_lea.hbm %s347_s1, 2048 }
  0x2d   :  { %s82_s10 = sshll.u32 %s261_s9, 4  ;;  %p205_p4 = scmp.ne.s32.totalorder %s347_s1, %s204_s14  ;;  %s83_s10 = int_to_ptr.vmem [resolvable:$true] %s82_s10 }
  0x2e   :  { %p208_p5 = scmp.lt.u32.totalorder %s204_s14, %s347_s1 }
  0x30   :  { %p210_p6 = pnand %p208_p5, %p205_p4 }
  0x32   :  { %213 = shalt.err (!%p210_p6)  }
  0x33   :  { %s214_s19 = scalar_lea.vmem %s83_s10, 2048  ;;  %p219_p8 = scmp.lt.s32.totalorder %s83_s10, %s83_s10 }
  0x34   :  { %p215_p7 = scmp.ne.s32.totalorder %s83_s10, %s214_s19  ;;  %p220_p9 = scmp.lt.s32.totalorder %s214_s19, %s214_s19 }
  0x36   :  { %p221_p10 = por %p220_p9, %p219_p8 }
  0x38   :  { %p222_p11 = pnand %p221_p10, %p215_p7 }
  0x3a   :  { %225 = shalt.err (!%p222_p11)  }
  0x3b   :  { %85 = dma.hbm_to_vmem [thread:$0]  %s347_s1, 2048, %s83_s10, [#allocation5] }
  0x3c   :  { %255 = dma.done.wait [#allocation5], 2048  }
  0x3d   :  { %256 = vsyncadd [#allocation5], 4294965248  ;;  %v87_v16 = vld [vmem:[#allocation7] sm:$0xff]  ;;  %v91_v17 = vld [vmem:[#allocation7 + $0x8] sm:$0xff]  ;;  %s262_s22 = smov [#allocation4]  }
  0x3e   :  { %v95_v18 = vld [vmem:[#allocation7 + $0x10] sm:$0xff]  ;;  %88 = vst [vmem:[#allocation4] sm:$0xff] %v87_v16  ;;  %92 = vst [vmem:[#allocation4 + $0x8] sm:$0xff] %v91_v17  ;;  %v99_v19 = vld [vmem:[#allocation7 + $0x18] sm:$0xff]  ;;  %s149_s23 = sshll.u32 %s262_s22, 4  ;;  %s150_s23 = int_to_ptr.vmem [resolvable:$true] %s149_s23 }
  0x3f   :  { %96 = vst [vmem:[#allocation4 + $0x10] sm:$0xff] %v95_v18  ;;  %v103_v20 = vld [vmem:[#allocation7 + $0x20] sm:$0xff]  ;;  %v107_v21 = vld [vmem:[#allocation7 + $0x28] sm:$0xff]  ;;  %100 = vst [vmem:[#allocation4 + $0x18] sm:$0xff] %v99_v19  ;;  %s226_s1 = scalar_lea.vmem %s150_s23, 2048  ;;  %p231_p13 = scmp.lt.s32.totalorder %s150_s23, %s150_s23 }
  0x40   :  { %104 = vst [vmem:[#allocation4 + $0x20] sm:$0xff] %v103_v20  ;;  %108 = vst [vmem:[#allocation4 + $0x28] sm:$0xff] %v107_v21  ;;  %v111_v22 = vld [vmem:[#allocation7 + $0x30] sm:$0xff]  ;;  %v115_v23 = vld [vmem:[#allocation7 + $0x38] sm:$0xff]  ;;  %p227_p12 = scmp.ne.s32.totalorder %s150_s23, %s226_s1  ;;  %p232_p2 = scmp.lt.s32.totalorder %s226_s1, %s226_s1 }
  0x41   :  { %v119_v24 = vld [vmem:[#allocation7 + $0x40] sm:$0xff]  ;;  %112 = vst [vmem:[#allocation4 + $0x30] sm:$0xff] %v111_v22  ;;  %116 = vst [vmem:[#allocation4 + $0x38] sm:$0xff] %v115_v23  ;;  %v123_v25 = vld [vmem:[#allocation7 + $0x48] sm:$0xff] }
  0x42   :  { %120 = vst [vmem:[#allocation4 + $0x40] sm:$0xff] %v119_v24  ;;  %v127_v26 = vld [vmem:[#allocation7 + $0x50] sm:$0xff]  ;;  %v131_v27 = vld [vmem:[#allocation7 + $0x58] sm:$0xff]  ;;  %124 = vst [vmem:[#allocation4 + $0x48] sm:$0xff] %v123_v25  ;;  %p233_p3 = por %p232_p2, %p231_p13 }
  0x43   :  { %128 = vst [vmem:[#allocation4 + $0x50] sm:$0xff] %v127_v26  ;;  %132 = vst [vmem:[#allocation4 + $0x58] sm:$0xff] %v131_v27  ;;  %v135_v28 = vld [vmem:[#allocation7 + $0x60] sm:$0xff]  ;;  %v139_v29 = vld [vmem:[#allocation7 + $0x68] sm:$0xff] }
  0x44   :  { %v143_v30 = vld [vmem:[#allocation7 + $0x70] sm:$0xff]  ;;  %136 = vst [vmem:[#allocation4 + $0x60] sm:$0xff] %v135_v28  ;;  %140 = vst [vmem:[#allocation4 + $0x68] sm:$0xff] %v139_v29  ;;  %v147_v31 = vld [vmem:[#allocation7 + $0x78] sm:$0xff]  ;;  %p234_p4 = pnand %p233_p3, %p227_p12 }
  0x45   :  { %144 = vst [vmem:[#allocation4 + $0x70] sm:$0xff] %v143_v30  ;;  %148 = vst [vmem:[#allocation4 + $0x78] sm:$0xff] %v147_v31 }
  0x46   :  { %237 = shalt.err (!%p234_p4)  }
  0x47   :  { %p239_p5 = scmp.ne.s32.totalorder %s281_s11, %s302_s30  ;;  %p242_p6 = scmp.lt.u32.totalorder %s302_s30, %s302_s30 }
  0x49   :  { %p243_p7 = por %p242_p6, %p198_p1 }
  0x4b   :  { %p245_p8 = por %p243_p7, %p197_p0 }
  0x4d   :  { %p246_p9 = pnand %p245_p8, %p239_p5 }
  0x4f   :  { %249 = shalt.err (!%p246_p9)  }
  0x50   :  { %152 = dma.vmem_to_hbm [thread:$0]  %s150_s23, 2048, %s281_s11, [#allocation6] }
  0x51   :  { %257 = dma.done.wait [#allocation6], 2048  }
  0x52   :  { %258 = vsyncadd [#allocation6], 4294965248 }
  0x53   :  { %154 = vsyncpa [#allocation5], 1 }
  0x54   :  { %155 = vsyncpa [#allocation6], 1 }

// kernel: fn.1
= control target key start
LH: loop header
LB: loop body
LE: loop exit
PB: predicated region body
PF: predicated region fallthrough
CT: control target
= control target key end

     0   :  { %s8099_s0 = inlined_call_operand.hbm [shape: f32[128,16], index: 0, kind: input, shape index: {}]   ;;  %s8100_s1 = inlined_call_operand.hbm [shape: bf16[32,16], index: 1, kind: input, shape index: {}]   ;;  %s8101_s2 = inlined_call_operand.hbm [shape: bf16[32,16], index: 2, kind: input, shape index: {}]   ;;  %s8102_s3 = inlined_call_operand.hbm [shape: bf16[32,16], index: 3, kind: input, shape index: {}]   ;;  %s8103_s4 = inlined_call_operand.hbm [shape: bf16[16,32], index: 4, kind: input, shape index: {}]   ;;  %s8104_s5 = inlined_call_operand.hbm [shape: bf16[16,32], index: 5, kind: input, shape index: {}]   ;;  %s8105_s6 = inlined_call_operand.hbm [shape: bf16[16,32], index: 6, kind: input, shape index: {}]   ;;  %s8106_s7 = inlined_call_operand.hbm [shape: bf16[32,32], index: 7, kind: input, shape index: {}]   ;;  %s8107_s8 = inlined_call_operand.hbm [shape: bf16[32,32], index: 8, kind: input, shape index: {}]   ;;  %s8108_s9 = inlined_call_operand.hbm [shape: bf16[16,32], index: 9, kind: input, shape index: {}]   ;;  %s8109_s10 = inlined_call_operand.hbm [shape: bf16[16,32], index: 10, kind: input, shape index: {}]   ;;  %s8110_s11 = inlined_call_operand.hbm [shape: bf16[16,32], index: 11, kind: input, shape index: {}]   ;;  %s8111_s12 = inlined_call_operand.hbm [shape: bf16[32,16], index: 12, kind: input, shape index: {}]   ;;  %s8112_s13 = inlined_call_operand.hbm [shape: bf16[32,16], index: 13, kind: input, shape index: {}]   ;;  %s8113_s14 = inlined_call_operand.hbm [shape: bf16[32,16], index: 14, kind: input, shape index: {}]   ;;  %s8114_s15 = inlined_call_operand.hbm [shape: f32[128,16], index: 15, kind: output, shape index: {0}]   ;;  %s8115_s16 = inlined_call_operand.hbm [shape: f32[128,16], index: 16, kind: output, shape index: {1}]  }
   0x1   :  { %8134 = sst [smem:[#allocation48_spill]] %s8099_s0 }
   0x2   :  { %8135 = sst [smem:[#allocation49_spill]] %s8100_s1 }
   0x3   :  { %8136 = sst [smem:[#allocation50_spill]] %s8101_s2 }
   0x4   :  { %8137 = sst [smem:[#allocation51_spill]] %s8102_s3 }
   0x5   :  { %8138 = sst [smem:[#allocation52_spill]] %s8114_s15 }
   0x6   :  { %8139 = sst [smem:[#allocation53_spill]] %s8115_s16 }
   0x7   :  { %22 = vsyncpa [#allocation5], 0 }
   0x8   :  { %24 = vsyncpa [#allocation5 + $0x1], 0 }
   0x9   :  { %25 = vsyncpa [#allocation8], 0 }
   0xa   :  { %26 = vsyncpa [#allocation11], 0 }
   0xb   :  { %27 = vsyncpa [#allocation14], 0 }
   0xc   :  { %28 = vsyncpa [#allocation17], 0 }
   0xd   :  { %29 = vsyncpa [#allocation20], 0 }
   0xe   :  { %30 = vsyncpa [#allocation23], 0 }
   0xf   :  { %31 = vsyncpa [#allocation26], 0 }
  0x10   :  { %32 = vsyncpa [#allocation6], 0 }
  0x11   :  { %34 = vsyncpa [#allocation6 + $0x1], 0 }
  0x12   :  { %35 = vsyncpa [#allocation30], 0 }
  0x13   :  { %37 = vsyncpa [#allocation30 + $0x1], 0  ;;  %s6382_s21 = smov 0   ;;  %s6384_s22 = smov 0  }
  0x14   :  { %s6386_s23 = smov 0   ;;  %s6388_s24 = smov 0  }
  0x15   :  { %s6390_s25 = smov 0   ;;  %s6392_s26 = smov 0  }
  0x16 LB: > { %8140 = sst [smem:[#allocation41_spill]] %s6244_s21  ;;  %s8117_s27 = sadd.s32 4294967295, %s6264_s26   ;;  %s6264_s26 = sphi %s6392_s26, %s43_s26   ;;  %s6260_s25 = sphi %s6390_s25, %s8204_s25   ;;  %s6256_s24 = sphi %s6388_s24, %s8202_s24   ;;  %s6252_s23 = sphi %s6386_s23, %s8203_s23   ;;  %s6248_s22 = sphi %s6384_s22, %s8201_s22   ;;  %s6244_s21 = sphi %s6382_s21, %s8200_s21  }
  0x17   : > { %8141 = sst [smem:[#allocation42_spill]] %s6248_s22  ;;  %p4845_p0 = scmp.ge.s32.totalorder %s6264_s26, 1 }
  0x18   : > { %8142 = sst [smem:[#allocation43_spill]] %s6252_s23  ;;  %p6416_p1 = scmp.eq.s32.totalorder %s8117_s27, 0 }
  0x19   : > { %8143 = sst [smem:[#allocation44_spill]] %s6256_s24  ;;  %p472_p2 = scmp.lt.s32.totalorder %s6264_s26, 3 }
  0x1a   : > { %8144 = sst [smem:[#allocation45_spill]] %s6260_s25  ;;  %s6266_s30 = smov [#allocation7]  }
  0x1b   : > { %s8145_s28 = scalar_select %p6416_p1, 1, 0 }
  0x1c   : > { %p6421_p3 = pnand %p4845_p0, %p472_p2  ;;  %s484_s0 = sshll.u32 %s6266_s30, 4  ;;  %s6425_s0 = int_to_ptr.vmem [resolvable:$true] %s484_s0 }
  0x1d   : > { %8146 = sst [smem:[#allocation46_spill]] %s8145_s28  ;;  %s6267_s18 = smov [#allocation10]  }
  0x1e   : > { %s8147_s29 = scalar_select %p6421_p3, 1, 0 }
  0x1f   : > { %p5488_p4 = pneg %p6421_p3  ;;  %s510_s19 = sshll.u32 %s6267_s18, 4  ;;  %s6436_s19 = int_to_ptr.vmem [resolvable:$true] %s510_s19 }
  0x20   : > { %8148 = sst [smem:[#allocation47_spill]] %s8147_s29  ;;  %s6268_s20 = smov [#allocation13]  }
  0x21   : > { %p6432_p6 = pnand %p5488_p4, %p6416_p1  ;;  %s6438_s27 = sshll.u32 %s6268_s20, 4  ;;  %s541_s27 = int_to_ptr.vmem [resolvable:$true] %s6438_s27 }
  0x22   : > { %s8150_s1 = sld [smem:[#allocation49_spill]] }
  0x23   : > { %p6448_p8 = pneg %p6432_p6 }
  0x28   : > { %s5700_s15 = scalar_lea.hbm %s8150_s1, 256 }
  0x29   : > { %p5701_p7 = scmp.ne.s32.totalorder %s8150_s1, %s5700_s15  ;;  %p5707_p11 = scmp.lt.u32.totalorder %s5700_s15, %s8150_s1 }
  0x2b   : > { %p5703_p9 = pnand %p6448_p8, %p5701_p7 }
  0x2d   : > { %p5704_p10 = pneg %p5703_p9 }
  0x2f   : > { %p5709_p12 = pnand %p5707_p11, %p5704_p10 }
  0x31   : > { %5712 = shalt.err (!%p5709_p12)
}
  0x32   : > { %s5713_s16 = scalar_lea.vmem %s6425_s0, 256  ;;  %p5721_p4 = scmp.lt.s32.totalorder %s6425_s0, %s6425_s0 }
  0x33   : > { %p5714_p13 = scmp.ne.s32.totalorder %s6425_s0, %s5713_s16  ;;  %p5722_p5 = scmp.lt.s32.totalorder %s5713_s16, %s5713_s16 }
  0x35   : > { %p5716_p0 = pnand %p5714_p13, %p6448_p8  ;;  %p5723_p7 = por %p5722_p5, %p5721_p4 }
  0x37   : > { %p5717_p2 = pneg %p5716_p0 }
  0x39   : > { %p5724_p9 = pnand %p5723_p7, %p5717_p2 }
  0x3b   : > { %5727 = shalt.err (!%p5724_p9)
}
  0x3c   : > { %s6269_s24 = smov 64   ;;  %s6270_s15 = smov 4  }
  0x3d   : > { %5491 = dma.hbm_to_vmem [thread:$0]  (!%p6432_p6), %s8150_s1, 256, %s6425_s0, [#allocation8], %s6269_s24, %s6269_s24, %s6270_s15  }
  0x3e   : > { %s8152_s3 = sld [smem:[#allocation51_spill]] }
  0x44   : > { %s5728_s16 = scalar_lea.hbm %s8152_s3, 256 }
  0x45   : > { %p5729_p5 = scmp.ne.s32.totalorder %s8152_s3, %s5728_s16  ;;  %p5735_p12 = scmp.lt.u32.totalorder %s5728_s16, %s8152_s3 }
  0x47   : > { %p5731_p10 = pnand %p5729_p5, %p6448_p8 }
  0x49   : > { %p5732_p11 = pneg %p5731_p10 }
  0x4b   : > { %p5737_p13 = pnand %p5735_p12, %p5732_p11 }
  0x4d   : > { %5740 = shalt.err (!%p5737_p13)
}
  0x4e   : > { %s5741_s0 = scalar_lea.vmem %s6436_s19, 256  ;;  %p5749_p7 = scmp.lt.s32.totalorder %s6436_s19, %s6436_s19 }
  0x4f   : > { %p5742_p0 = scmp.ne.s32.totalorder %s6436_s19, %s5741_s0  ;;  %p5750_p9 = scmp.lt.s32.totalorder %s5741_s0, %s5741_s0 }
  0x51   : > { %p5744_p2 = pnand %p5742_p0, %p6448_p8  ;;  %p5751_p5 = por %p5750_p9, %p5749_p7 }
  0x53   : > { %p5745_p4 = pneg %p5744_p2 }
  0x55   : > { %p5752_p10 = pnand %p5751_p5, %p5745_p4 }
  0x57   : > { %5755 = shalt.err (!%p5752_p10)
}
  0x58   : > { %5497 = dma.hbm_to_vmem [thread:$0]  (!%p6432_p6), %s8152_s3, 256, %s6436_s19, [#allocation11], %s6269_s24, %s6269_s24, %s6270_s15  }
  0x59   : > { %s5756_s29 = scalar_lea.hbm %s8104_s5, 128 }
  0x5a   : > { %p5757_p11 = scmp.ne.s32.totalorder %s8104_s5, %s5756_s29  ;;  %p5763_p0 = scmp.lt.u32.totalorder %s5756_s29, %s8104_s5 }
  0x5c   : > { %p5759_p12 = pnand %p5757_p11, %p6448_p8 }
  0x5e   : > { %p5760_p13 = pneg %p5759_p12 }
  0x60   : > { %p5765_p2 = pnand %p5763_p0, %p5760_p13 }
  0x62   : > { %5768 = shalt.err (!%p5765_p2)
}
  0x63   : > { %s5769_s0 = scalar_lea.vmem %s541_s27, 128  ;;  %p5777_p5 = scmp.lt.s32.totalorder %s541_s27, %s541_s27 }
  0x64   : > { %p5770_p4 = scmp.ne.s32.totalorder %s541_s27, %s5769_s0  ;;  %p5778_p10 = scmp.lt.s32.totalorder %s5769_s0, %s5769_s0 }
  0x66   : > { %p5772_p7 = pnand %p5770_p4, %p6448_p8  ;;  %p5779_p3 = por %p5778_p10, %p5777_p5 }
  0x68   : > { %p5773_p9 = pneg %p5772_p7 }
  0x6a   : > { %p5780_p1 = pnand %p5779_p3, %p5773_p9 }
  0x6c   : > { %5783 = shalt.err (!%p5780_p1)
}
  0x6d   : > { %5503 = dma.hbm_to_vmem [thread:$0]  (!%p6432_p6), %s8104_s5, 128, %s541_s27, [#allocation14], %s6269_s24, %s6269_s24, %s6270_s15  }
  0x6e   : > { %s6271_s22 = smov [#allocation16]   ;;  %s6272_s25 = smov [#allocation19]  }
  0x6f   : > { %s570_s23 = sshll.u32 %s6271_s22, 4  ;;  %s598_s29 = sshll.u32 %s6272_s25, 4  ;;  %s571_s23 = int_to_ptr.vmem [resolvable:$true] %s570_s23  ;;  %s599_s29 = int_to_ptr.vmem [resolvable:$true] %s598_s29 }
  0x70   : > { %s5784_s20 = scalar_lea.hbm %s8106_s7, 256 }
  0x71   : > { %p5785_p1 = scmp.ne.s32.totalorder %s8106_s7, %s5784_s20  ;;  %p5791_p12 = scmp.lt.u32.totalorder %s5784_s20, %s8106_s7 }
  0x73   : > { %p5787_p3 = pnand %p5785_p1, %p6448_p8 }
  0x75   : > { %p5788_p11 = pneg %p5787_p3 }
  0x77   : > { %p5793_p13 = pnand %p5791_p12, %p5788_p11 }
  0x79   : > { %5796 = shalt.err (!%p5793_p13)
}
  0x7a   : > { %s5797_s27 = scalar_lea.vmem %s571_s23, 256  ;;  %p5805_p7 = scmp.lt.s32.totalorder %s571_s23, %s571_s23 }
  0x7b   : > { %p5798_p0 = scmp.ne.s32.totalorder %s571_s23, %s5797_s27  ;;  %p5806_p9 = scmp.lt.s32.totalorder %s5797_s27, %s5797_s27 }
  0x7d   : > { %p5800_p2 = pnand %p5798_p0, %p6448_p8  ;;  %p5807_p5 = por %p5806_p9, %p5805_p7 }
  0x7f   : > { %p5801_p4 = pneg %p5800_p2 }
  0x81   : > { %p5808_p10 = pnand %p5807_p5, %p5801_p4 }
  0x83   : > { %5811 = shalt.err (!%p5808_p10)
}
  0x84   : > { %5509 = dma.hbm_to_vmem [thread:$0]  (!%p6432_p6), %s8106_s7, 256, %s571_s23, [#allocation17], %s6269_s24, %s6269_s24, %s6270_s15  }
  0x85   : > { %s5812_s30 = scalar_lea.hbm %s8108_s9, 128 }
  0x86   : > { %p5813_p1 = scmp.ne.s32.totalorder %s8108_s9, %s5812_s30  ;;  %p5819_p12 = scmp.lt.u32.totalorder %s5812_s30, %s8108_s9 }
  0x88   : > { %p5815_p3 = pnand %p5813_p1, %p6448_p8 }
  0x8a   : > { %p5816_p11 = pneg %p5815_p3 }
  0x8c   : > { %p5821_p13 = pnand %p5819_p12, %p5816_p11 }
  0x8e   : > { %5824 = shalt.err (!%p5821_p13)
}
  0x8f   : > { %s5825_s19 = scalar_lea.vmem %s599_s29, 128  ;;  %p5833_p7 = scmp.lt.s32.totalorder %s599_s29, %s599_s29 }
  0x90   : > { %p5826_p0 = scmp.ne.s32.totalorder %s599_s29, %s5825_s19  ;;  %p5834_p9 = scmp.lt.s32.totalorder %s5825_s19, %s5825_s19 }
  0x92   : > { %p5828_p2 = pnand %p5826_p0, %p6448_p8  ;;  %p5835_p5 = por %p5834_p9, %p5833_p7 }
  0x94   : > { %p5829_p4 = pneg %p5828_p2 }
  0x96   : > { %p5836_p10 = pnand %p5835_p5, %p5829_p4 }
  0x98   : > { %5839 = shalt.err (!%p5836_p10)
}
  0x99   : > { %5515 = dma.hbm_to_vmem [thread:$0]  (!%p6432_p6), %s8108_s9, 128, %s599_s29, [#allocation20], %s6269_s24, %s6269_s24, %s6270_s15  }
  0x9a   : > { %s6273_s1 = smov [#allocation22]   ;;  %s6274_s22 = smov [#allocation25]  }
  0x9b   : > { %s624_s21 = sshll.u32 %s6273_s1, 4  ;;  %s656_s25 = sshll.u32 %s6274_s22, 4  ;;  %s625_s21 = int_to_ptr.vmem [resolvable:$true] %s624_s21  ;;  %s657_s25 = int_to_ptr.vmem [resolvable:$true] %s656_s25 }
  0x9c   : > { %s5840_s20 = scalar_lea.hbm %s8110_s11, 128 }
  0x9d   : > { %p5841_p1 = scmp.ne.s32.totalorder %s8110_s11, %s5840_s20  ;;  %p5847_p12 = scmp.lt.u32.totalorder %s5840_s20, %s8110_s11 }
  0x9f   : > { %p5843_p3 = pnand %p5841_p1, %p6448_p8 }
  0xa1   : > { %p5844_p11 = pneg %p5843_p3 }
  0xa3   : > { %p5849_p13 = pnand %p5847_p12, %p5844_p11 }
  0xa5   : > { %5852 = shalt.err (!%p5849_p13)
}
  0xa6   : > { %s5853_s29 = scalar_lea.vmem %s625_s21, 128  ;;  %p5861_p7 = scmp.lt.s32.totalorder %s625_s21, %s625_s21 }
  0xa7   : > { %p5854_p0 = scmp.ne.s32.totalorder %s625_s21, %s5853_s29  ;;  %p5862_p9 = scmp.lt.s32.totalorder %s5853_s29, %s5853_s29 }
  0xa9   : > { %p5856_p2 = pnand %p5854_p0, %p6448_p8  ;;  %p5863_p5 = por %p5862_p9, %p5861_p7 }
  0xab   : > { %p5857_p4 = pneg %p5856_p2 }
  0xad   : > { %p5864_p10 = pnand %p5863_p5, %p5857_p4 }
  0xaf   : > { %5867 = shalt.err (!%p5864_p10)
}
  0xb0   : > { %5521 = dma.hbm_to_vmem [thread:$0]  (!%p6432_p6), %s8110_s11, 128, %s625_s21, [#allocation23], %s6269_s24, %s6269_s24, %s6270_s15  }
  0xb1   : > { %s5868_s18 = scalar_lea.hbm %s8112_s13, 256 }
  0xb2   : > { %p5869_p1 = scmp.ne.s32.totalorder %s8112_s13, %s5868_s18  ;;  %p5875_p12 = scmp.lt.u32.totalorder %s5868_s18, %s8112_s13 }
  0xb4   : > { %p5871_p3 = pnand %p5869_p1, %p6448_p8 }
  0xb6   : > { %p5872_p11 = pneg %p5871_p3 }
  0xb8   : > { %p5877_p13 = pnand %p5875_p12, %p5872_p11 }
  0xba   : > { %5880 = shalt.err (!%p5877_p13)
}
  0xbb   : > { %s5881_s23 = scalar_lea.vmem %s657_s25, 256  ;;  %p5889_p7 = scmp.lt.s32.totalorder %s657_s25, %s657_s25 }
  0xbc   : > { %p5882_p0 = scmp.ne.s32.totalorder %s657_s25, %s5881_s23  ;;  %p5890_p9 = scmp.lt.s32.totalorder %s5881_s23, %s5881_s23 }
  0xbe   : > { %p5884_p2 = pnand %p5882_p0, %p6448_p8  ;;  %p5891_p5 = por %p5890_p9, %p5889_p7 }
  0xc0   : > { %p5885_p4 = pneg %p5884_p2 }
  0xc2   : > { %p5892_p10 = pnand %p5891_p5, %p5885_p4 }
  0xc4   : > { %5895 = shalt.err (!%p5892_p10)
}
  0xc5   : > { %5527 = dma.hbm_to_vmem [thread:$0]  (!%p6432_p6), %s8112_s13, 256, %s657_s25, [#allocation26], %s6269_s24, %s6269_s24, %s6270_s15  }
  0xc6   : > { %s6275_s27 = smov [#allocation9]   ;;  %s6276_s22 = smov [#allocation12]  }
  0xc7   : > { %s497_s1 = sshll.u32 %s6275_s27, 4  ;;  %s525_s30 = sshll.u32 %s6276_s22, 4  ;;  %s498_s1 = int_to_ptr.vmem [resolvable:$true] %s497_s1  ;;  %s526_s30 = int_to_ptr.vmem [resolvable:$true] %s525_s30 }
  0xc8   : > { %s8153_s2 = sld [smem:[#allocation50_spill]] }
  0xce   : > { %s5896_s16 = scalar_lea.hbm %s8153_s2, 256 }
  0xcf   : > { %p5897_p1 = scmp.ne.s32.totalorder %s8153_s2, %s5896_s16  ;;  %p5903_p12 = scmp.lt.u32.totalorder %s5896_s16, %s8153_s2 }
  0xd1   : > { %p5899_p3 = pnand %p5897_p1, %p6448_p8 }
  0xd3   : > { %p5900_p11 = pneg %p5899_p3 }
  0xd5   : > { %p5905_p13 = pnand %p5903_p12, %p5900_p11 }
  0xd7   : > { %5908 = shalt.err (!%p5905_p13)
}
  0xd8   : > { %s5909_s25 = scalar_lea.vmem %s498_s1, 256  ;;  %p5917_p7 = scmp.lt.s32.totalorder %s498_s1, %s498_s1 }
  0xd9   : > { %p5910_p0 = scmp.ne.s32.totalorder %s498_s1, %s5909_s25  ;;  %p5918_p9 = scmp.lt.s32.totalorder %s5909_s25, %s5909_s25 }
  0xdb   : > { %p5912_p2 = pnand %p5910_p0, %p6448_p8  ;;  %p5919_p5 = por %p5918_p9, %p5917_p7 }
  0xdd   : > { %p5913_p4 = pneg %p5912_p2 }
  0xdf   : > { %p5920_p10 = pnand %p5919_p5, %p5913_p4 }
  0xe1   : > { %5923 = shalt.err (!%p5920_p10)
}
  0xe2   : > { %5494 = dma.hbm_to_vmem [thread:$0]  (!%p6432_p6), %s8153_s2, 256, %s498_s1, [#allocation8], %s6269_s24, %s6269_s24, %s6270_s15  }
  0xe3   : > { %s5924_s20 = scalar_lea.hbm %s8103_s4, 128 }
  0xe4   : > { %p5925_p1 = scmp.ne.s32.totalorder %s8103_s4, %s5924_s20  ;;  %p5931_p12 = scmp.lt.u32.totalorder %s5924_s20, %s8103_s4 }
  0xe6   : > { %p5927_p3 = pnand %p5925_p1, %p6448_p8 }
  0xe8   : > { %p5928_p11 = pneg %p5927_p3 }
  0xea   : > { %p5933_p13 = pnand %p5931_p12, %p5928_p11 }
  0xec   : > { %5936 = shalt.err (!%p5933_p13)
}
  0xed   : > { %s5937_s21 = scalar_lea.vmem %s526_s30, 128  ;;  %p5945_p7 = scmp.lt.s32.totalorder %s526_s30, %s526_s30 }
  0xee   : > { %p5938_p0 = scmp.ne.s32.totalorder %s526_s30, %s5937_s21  ;;  %p5946_p9 = scmp.lt.s32.totalorder %s5937_s21, %s5937_s21 }
  0xf0   : > { %p5940_p2 = pnand %p5938_p0, %p6448_p8  ;;  %p5947_p5 = por %p5946_p9, %p5945_p7 }
  0xf2   : > { %p5941_p4 = pneg %p5940_p2 }
  0xf4   : > { %p5948_p10 = pnand %p5947_p5, %p5941_p4 }
  0xf6   : > { %5951 = shalt.err (!%p5948_p10)
}
  0xf7   : > { %5500 = dma.hbm_to_vmem [thread:$0]  (!%p6432_p6), %s8103_s4, 128, %s526_s30, [#allocation11], %s6269_s24, %s6269_s24, %s6270_s15  }
  0xf8   : > { %s6277_s29 = smov [#allocation15]   ;;  %s6278_s22 = smov [#allocation18]  }
  0xf9   : > { %s555_s27 = sshll.u32 %s6277_s29, 4  ;;  %s585_s18 = sshll.u32 %s6278_s22, 4  ;;  %s556_s27 = int_to_ptr.vmem [resolvable:$true] %s555_s27  ;;  %s586_s18 = int_to_ptr.vmem [resolvable:$true] %s585_s18 }
  0xfa   : > { %s5952_s0 = scalar_lea.hbm %s8105_s6, 128 }
  0xfb   : > { %p5953_p1 = scmp.ne.s32.totalorder %s8105_s6, %s5952_s0  ;;  %p5959_p12 = scmp.lt.u32.totalorder %s5952_s0, %s8105_s6 }
  0xfd   : > { %p5955_p3 = pnand %p5953_p1, %p6448_p8 }
  0xff   : > { %p5956_p11 = pneg %p5955_p3 }
 0x101   : > { %p5961_p13 = pnand %p5959_p12, %p5956_p11 }
 0x103   : > { %5964 = shalt.err (!%p5961_p13)
}
 0x104   : > { %s5965_s30 = scalar_lea.vmem %s556_s27, 128  ;;  %p5973_p7 = scmp.lt.s32.totalorder %s556_s27, %s556_s27 }
 0x105   : > { %p5966_p0 = scmp.ne.s32.totalorder %s556_s27, %s5965_s30  ;;  %p5974_p9 = scmp.lt.s32.totalorder %s5965_s30, %s5965_s30 }
 0x107   : > { %p5968_p2 = pnand %p5966_p0, %p6448_p8  ;;  %p5975_p5 = por %p5974_p9, %p5973_p7 }
 0x109   : > { %p5969_p4 = pneg %p5968_p2 }
 0x10b   : > { %p5976_p10 = pnand %p5975_p5, %p5969_p4 }
 0x10d   : > { %5979 = shalt.err (!%p5976_p10)
}
 0x10e   : > { %5506 = dma.hbm_to_vmem [thread:$0]  (!%p6432_p6), %s8105_s6, 128, %s556_s27, [#allocation14], %s6269_s24, %s6269_s24, %s6270_s15  }
 0x10f   : > { %s5980_s16 = scalar_lea.hbm %s8107_s8, 256 }
 0x110   : > { %p5981_p1 = scmp.ne.s32.totalorder %s8107_s8, %s5980_s16  ;;  %p5987_p12 = scmp.lt.u32.totalorder %s5980_s16, %s8107_s8 }
 0x112   : > { %p5983_p3 = pnand %p5981_p1, %p6448_p8 }
 0x114   : > { %p5984_p11 = pneg %p5983_p3 }
 0x116   : > { %p5989_p13 = pnand %p5987_p12, %p5984_p11 }
 0x118   : > { %5992 = shalt.err (!%p5989_p13)
}
 0x119   : > { %s5993_s1 = scalar_lea.vmem %s586_s18, 256  ;;  %p6001_p7 = scmp.lt.s32.totalorder %s586_s18, %s586_s18 }
 0x11a   : > { %p5994_p0 = scmp.ne.s32.totalorder %s586_s18, %s5993_s1  ;;  %p6002_p9 = scmp.lt.s32.totalorder %s5993_s1, %s5993_s1 }
 0x11c   : > { %p5996_p2 = pnand %p5994_p0, %p6448_p8  ;;  %p6003_p5 = por %p6002_p9, %p6001_p7 }
 0x11e   : > { %p5997_p4 = pneg %p5996_p2 }
 0x120   : > { %p6004_p10 = pnand %p6003_p5, %p5997_p4 }
 0x122   : > { %6007 = shalt.err (!%p6004_p10)
}
 0x123   : > { %5512 = dma.hbm_to_vmem [thread:$0]  (!%p6432_p6), %s8107_s8, 256, %s586_s18, [#allocation17], %s6269_s24, %s6269_s24, %s6270_s15  }
 0x124   : > { %s6279_s25 = smov [#allocation21]   ;;  %s6280_s22 = smov [#allocation24]  }
 0x125   : > { %s611_s29 = sshll.u32 %s6279_s25, 4  ;;  %s640_s20 = sshll.u32 %s6280_s22, 4  ;;  %s612_s29 = int_to_ptr.vmem [resolvable:$true] %s611_s29  ;;  %s641_s20 = int_to_ptr.vmem [resolvable:$true] %s640_s20 }
 0x126   : > { %s6008_s19 = scalar_lea.hbm %s8109_s10, 128 }
 0x127   : > { %p6009_p1 = scmp.ne.s32.totalorder %s8109_s10, %s6008_s19  ;;  %p6015_p12 = scmp.lt.u32.totalorder %s6008_s19, %s8109_s10 }
 0x129   : > { %p6011_p3 = pnand %p6009_p1, %p6448_p8 }
 0x12b   : > { %p6012_p11 = pneg %p6011_p3 }
 0x12d   : > { %p6017_p13 = pnand %p6015_p12, %p6012_p11 }
 0x12f   : > { %6020 = shalt.err (!%p6017_p13)
}
 0x130   : > { %s6021_s18 = scalar_lea.vmem %s612_s29, 128  ;;  %p6029_p7 = scmp.lt.s32.totalorder %s612_s29, %s612_s29 }
 0x131   : > { %p6022_p0 = scmp.ne.s32.totalorder %s612_s29, %s6021_s18  ;;  %p6030_p9 = scmp.lt.s32.totalorder %s6021_s18, %s6021_s18 }
 0x133   : > { %p6024_p2 = pnand %p6022_p0, %p6448_p8  ;;  %p6031_p5 = por %p6030_p9, %p6029_p7 }
 0x135   : > { %p6025_p4 = pneg %p6024_p2 }
 0x137   : > { %p6032_p10 = pnand %p6031_p5, %p6025_p4 }
 0x139   : > { %6035 = shalt.err (!%p6032_p10)
}
 0x13a   : > { %5518 = dma.hbm_to_vmem [thread:$0]  (!%p6432_p6), %s8109_s10, 128, %s612_s29, [#allocation20], %s6269_s24, %s6269_s24, %s6270_s15  }
 0x13b   : > { %s6036_s0 = scalar_lea.hbm %s8111_s12, 256 }
 0x13c   : > { %p6037_p1 = scmp.ne.s32.totalorder %s8111_s12, %s6036_s0  ;;  %p6043_p12 = scmp.lt.u32.totalorder %s6036_s0, %s8111_s12 }
 0x13e   : > { %p6039_p3 = pnand %p6037_p1, %p6448_p8 }
 0x140   : > { %p6040_p11 = pneg %p6039_p3 }
 0x142   : > { %p6045_p13 = pnand %p6043_p12, %p6040_p11 }
 0x144   : > { %6048 = shalt.err (!%p6045_p13)
}
 0x145   : > { %s6049_s27 = scalar_lea.vmem %s641_s20, 256  ;;  %p6057_p7 = scmp.lt.s32.totalorder %s641_s20, %s641_s20 }
 0x146   : > { %p6050_p0 = scmp.ne.s32.totalorder %s641_s20, %s6049_s27  ;;  %p6058_p9 = scmp.lt.s32.totalorder %s6049_s27, %s6049_s27 }
 0x148   : > { %p6052_p2 = pnand %p6050_p0, %p6448_p8  ;;  %p6059_p5 = por %p6058_p9, %p6057_p7 }
 0x14a   : > { %p6053_p4 = pneg %p6052_p2 }
 0x14c   : > { %p6060_p10 = pnand %p6059_p5, %p6053_p4 }
 0x14e   : > { %6063 = shalt.err (!%p6060_p10)
}
 0x14f   : > { %5524 = dma.hbm_to_vmem [thread:$0]  (!%p6432_p6), %s8111_s12, 256, %s641_s20, [#allocation23], %s6269_s24, %s6269_s24, %s6270_s15  }
 0x150   : > { %s6281_s30 = smov [#allocation27]   ;;  %s6064_s0 = scalar_lea.hbm %s8113_s14, 256 }
 0x151   : > { %s672_s25 = sshll.u32 %s6281_s30, 4  ;;  %p6065_p1 = scmp.ne.s32.totalorder %s8113_s14, %s6064_s0  ;;  %s673_s25 = int_to_ptr.vmem [resolvable:$true] %s672_s25 }
 0x152   : > { %p6071_p12 = scmp.lt.u32.totalorder %s6064_s0, %s8113_s14 }
 0x153   : > { %p6067_p3 = pnand %p6065_p1, %p6448_p8 }
 0x155   : > { %p6068_p11 = pneg %p6067_p3 }
 0x157   : > { %p6073_p13 = pnand %p6071_p12, %p6068_p11 }
 0x159   : > { %6076 = shalt.err (!%p6073_p13)
}
 0x15a   : > { %s6077_s20 = scalar_lea.vmem %s673_s25, 256  ;;  %p6085_p7 = scmp.lt.s32.totalorder %s673_s25, %s673_s25 }
 0x15b   : > { %p6078_p0 = scmp.ne.s32.totalorder %s673_s25, %s6077_s20  ;;  %p6086_p9 = scmp.lt.s32.totalorder %s6077_s20, %s6077_s20 }
 0x15d   : > { %p6080_p2 = pnand %p6078_p0, %p6448_p8  ;;  %p6087_p5 = por %p6086_p9, %p6085_p7 }
 0x15f   : > { %p6081_p4 = pneg %p6080_p2 }
 0x161   : > { %p6088_p10 = pnand %p6087_p5, %p6081_p4 }
 0x163   : > { %6091 = shalt.err (!%p6088_p10)
}
 0x164   : > { %s8154_s18 = sld [smem:[#allocation45_spill]]  ;;  %s8155_s30 = sld [smem:[#allocation43_spill]] }
 0x165   : > { %s8156_s22 = sld [smem:[#allocation42_spill]]  ;;  %s8157_s28 = sld [smem:[#allocation41_spill]] }
 0x166   : > { %s8158_s16 = sld [smem:[#allocation46_spill]]  ;;  %s4844_s17 = sadd.s32 4294967294, %s6264_s26  }
 0x167   : > { %5530 = dma.hbm_to_vmem [thread:$0]  (!%p6432_p6), %s8113_s14, 256, %s673_s25, [#allocation26], %s6269_s24, %s6269_s24, %s6270_s15  }
 0x168   : > { %p70_p3 = scmp.eq.s32.totalorder %s6264_s26, 0  ;;  %s8160_s15 = sadd.s32 4294967295, %s6264_s26  }
 0x169   : > { %p433_p6 = scmp.eq.s32.totalorder %s8160_s15, 1  ;;  %p439_p7 = scmp.eq.s32.totalorder %s4844_s17, 1 }
 0x16a   : > { %s55_s0 = sadd.s32 1, %s8154_s18  ;;  %s62_s19 = sadd.s32 1, %s8155_s30 }
 0x16b   : > { %p57_p8 = scmp.ge.s32.totalorder %s55_s0, 2  ;;  %p69_p1 = scmp.ne.s32.totalorder %s8155_s30, %s8156_s22 }
 0x16c   : > { %p75_p12 = scmp.ne.s32.totalorder %s8156_s22, %s8157_s28  ;;  %p8161_p0 = scmp.ne.s32.totalorder %s8158_s16, 0 }
 0x16d   : > { %s8206_s0 = smov (%p57_p8, %s55_s0), 0  ;;  %p6759_p11 = por %p70_p3, %p69_p1 }
 0x16e   : > { %s59_s24 = ssub.s32 %s8154_s18, %s8206_s0  ;;  %p6771_p2 = por %p8161_p0, %p75_p12 }
 0x16f   : > { %p60_p13 = scmp.eq.s32.totalorder %s59_s24, 0  ;;  %p6775_p4 = por %p433_p6, %p69_p1 }
 0x170   : > { %p6782_p9 = por %p439_p7, %p75_p12  ;;  %p5556_p5 = scmp.lt.s32.totalorder %s6264_s26, 2 }
 0x171   : > { %s8163_s21 = scalar_select %p6775_p4, 1, 0 }
 0x172   : > { %s6780_s1 = scalar_select %p60_p13, %s8155_s30, %s62_s19  }
 0x173   : > { %s8164_s20 = scalar_select %p6782_p9, 1, 0 }
 0x174   : > { %s686_s27 = sand.u32 1, %s8155_s30   ;;  %s5032_s29 = sshll.u32 %s8154_s18, 10 }
 0x175   : > { %s4861_s22 = sshll.u32 %s686_s27, 6  ;;  %s8165_s24 = sld [smem:[#allocation48_spill]] }
 0x176   : > { %s690_s17 = scalar_lea.vmem [#allocation4], %s4861_s22  ;;  %p6796_p10 = pnand %p5556_p5, %p6759_p11 }
 0x177   : > { %s697_s19 = sshll.u32 %s690_s17, 4  ;;  %s6802_s18 = scalar_lea.sflag [#allocation5], %s686_s27  ;;  %s6800_s19 = int_to_ptr.vmem [resolvable:$true] %s697_s19 }
 0x178   : > { %p6094_p1 = pneg %p6796_p10 }
 0x17b   : > { %s8166_s15 = smov %s8165_s24  ;;  %s6792_s2 = scalar_lea.hbm %s8165_s24, %s5032_s29 }
 0x17c   : > { %s6092_s30 = scalar_lea.hbm %s6792_s2, 1024  ;;  %s6097_s22 = scalar_lea.hbm %s8166_s15, 2048 }
 0x17d   : > { %p6093_p8 = scmp.ne.s32.totalorder %s6792_s2, %s6092_s30  ;;  %p6098_p11 = scmp.lt.u32.totalorder %s6792_s2, %s8166_s15 }
 0x17e   : > { %p6099_p6 = scmp.lt.u32.totalorder %s6097_s22, %s6092_s30  ;;  %p6101_p0 = scmp.lt.u32.totalorder %s6092_s30, %s6792_s2 }
 0x17f   : > { %p6095_p3 = pnand %p6094_p1, %p6093_p8 }
 0x180   : > { %p6100_p13 = por %p6099_p6, %p6098_p11 }
 0x181   : > { %p6096_p12 = pneg %p6095_p3 }
 0x182   : > { %p6102_p7 = por %p6101_p0, %p6100_p13 }
 0x184   : > { %p6103_p5 = pnand %p6102_p7, %p6096_p12 }
 0x186   : > { %6106 = shalt.err (!%p6103_p5)
}
 0x187   : > { %s6107_s27 = scalar_lea.vmem %s6800_s19, 1024  ;;  %s6282_s24 = smov [#allocation4]  }
 0x188   : > { %p6108_p8 = scmp.ne.s32.totalorder %s6800_s19, %s6107_s27  ;;  %s6112_s17 = sshll.u32 %s6282_s24, 4  ;;  %s6113_s17 = int_to_ptr.vmem [resolvable:$false] %s6112_s17 }
 0x189   : > { %s6114_s29 = scalar_lea.vmem %s6113_s17, 2048  ;;  %p6115_p4 = scmp.lt.s32.totalorder %s6800_s19, %s6113_s17 }
 0x18a   : > { %p6110_p3 = pnand %p6108_p8, %p6094_p1  ;;  %p6116_p11 = scmp.lt.s32.totalorder %s6114_s29, %s6107_s27 }
 0x18c   : > { %p6111_p9 = pneg %p6110_p3  ;;  %p6117_p6 = por %p6116_p11, %p6115_p4 }
 0x18e   : > { %p6118_p13 = pnand %p6117_p6, %p6111_p9 }
 0x190   : > { %6121 = shalt.err (!%p6118_p13)
}
 0x191   : > { %s6283_s30 = smov 128   ;;  %s6284_s23 = smov 8  }
 0x192   : > { %5534 = dma.hbm_to_vmem [thread:$0]  (!%p6796_p10), %s6792_s2, 1024, %s6800_s19, %s6802_s18, %s6283_s30, %s6283_s30, %s6284_s23  }
 0x193   : > { %s8168_s22 = sld [smem:[#allocation47_spill]] }
 0x199   : > { %p8169_p1 = scmp.ne.s32.totalorder %s8168_s22, 0 }
 0x19a   : > { %s8170_s28 = sld [smem:[#allocation42_spill]] (!%p8169_p1) }
 0x19b   : > { %709 = sbr.rel (%p8169_p1) target bundleno = 2415 (0x96f), region = 80 }
 0x1a0   : > { %s6833_s16 = sand.u32 (!%p8169_p1), 1, %s8170_s28  }
 0x1a1   : > { %s6836_s27 = sshll.u32 (!%p8169_p1), %s6833_s16, 6  ;;  %s712_s24 = scalar_lea.sflag (!%p8169_p1), [#allocation5], %s6833_s16 }
 0x1a2   : > { %s6840_s17 = scalar_lea.vmem [#allocation4], %s6836_s27 }
 0x1a3   : > { %6203 = dma.done.wait (%p6771_p2), %s712_s24, 1024  }
 0x1a4   : > { %6205 = vsyncadd (%p6771_p2), %s712_s24, 4294966272  ;;  %s8171_s2 = sld [smem:[#allocation46_spill]] }
 0x1aa   : > { %p8172_p4 = scmp.ne.s32.totalorder %s8171_s2, 0 }
 0x1ac   : > { %6207 = dma.done.wait (%p8172_p4), [#allocation8], 512  }
 0x1ad   : > { %6209 = vsyncadd (%p8172_p4), [#allocation8], 4294966784 }
 0x1ae   : > { %6211 = dma.done.wait (%p8172_p4), [#allocation11], 384  }
 0x1af   : > { %6213 = vsyncadd (%p8172_p4), [#allocation11], 4294966912 }
 0x1b0   : > { %6215 = dma.done.wait (%p8172_p4), [#allocation14], 256  }
 0x1b1   : > { %6217 = vsyncadd (%p8172_p4), [#allocation14], 4294967040 }
 0x1b2   : > { %6219 = dma.done.wait (%p8172_p4), [#allocation17], 512  }
 0x1b3   : > { %6221 = vsyncadd (%p8172_p4), [#allocation17], 4294966784 }
 0x1b4   : > { %6223 = dma.done.wait (%p8172_p4), [#allocation20], 256  }
 0x1b5   : > { %6225 = vsyncadd (%p8172_p4), [#allocation20], 4294967040 }
 0x1b6   : > { %6227 = dma.done.wait (%p8172_p4), [#allocation23], 384  }
 0x1b7   : > { %6229 = vsyncadd (%p8172_p4), [#allocation23], 4294966912 }
 0x1b8   : > { %6231 = dma.done.wait (%p8172_p4), [#allocation26], 512  }
 0x1b9   : > { %6233 = vsyncadd (%p8172_p4), [#allocation26], 4294966784  ;;  %v5648_v0 = vld [vmem:[#allocation12] sm:$0xff]   ;;  %v6875_v1 = vld [vmem:[%s6840_s17] sm:$0xff]  ;;  %v6285_v32 = vmov 683565275  }
 0x1ba   : > { %v6878_v2 = vld [vmem:[%s6840_s17 + $0x8] sm:$0xff]  ;;  %5158 = vmatprep.subr.bf16.mxu0 %v5648_v0  ;;  %5392 = vmatprep.subr.bf16.mxu1 %v5648_v0  ;;  %v844_v3 = vand.u32 2147483647, %v6875_v1  ;;  %v847_v4 = vand.u32 2139095040, %v6875_v1  ;;  %v6883_v5 = vld [vmem:[%s6840_s17 + $0x20] sm:$0xff]  ;;  %vm846_vm13 = vcmp.lt.s32.totalorder %v6875_v1, 0 }
 0x1bb   : > { %5159 = vmatpush3.bf16.msra.mxu0 %v5648_v0  ;;  %5393 = vmatpush3.bf16.msra.mxu1 %v5648_v0  ;;  %v947_v6 = vand.u32 2147483647, %v6878_v2  ;;  %v950_v7 = vand.u32 2139095040, %v6878_v2  ;;  %v1259_v12 = vand.u32 2139095040, %v6883_v5  ;;  %v1256_v22 = vand.u32 2147483647, %v6883_v5 }
 0x1bc   : > { %v848_v8 = vshrl.u32 %v847_v4, 23  ;;  %v851_v9 = vand.u32 8388607, %v844_v3  ;;  %v6286_v34 = vmov 2475754826   ;;  %s8187_s3 = sld [smem:[#allocation44_spill]] }
 0x1bd   : > { %v951_v10 = vshrl.u32 %v950_v7, 23  ;;  %v954_v11 = vand.u32 8388607, %v947_v6  ;;  %v1260_v15 = vshrl.u32 %v1259_v12, 23  ;;  %v6287_v36 = vmov 2131351028  }
 0x1be   : > { %v4882_v13 = vadd.s32 4294967169, %v848_v8  ;;  %v852_v16 = vor.u32 8388608, %v851_v9  ;;  %v6288_v38 = vmov 2102212464   ;;  %v6289_v40 = vmov 920167782  }
 0x1bf   : > { %v4886_v14 = vadd.s32 4294967169, %v951_v10  ;;  %v955_v18 = vor.u32 8388608, %v954_v11  ;;  %v4898_v20 = vadd.s32 4294967169, %v1260_v15  ;;  %v6290_v47 = vmov 1326507024   ;;  %s817_s25 = scalar_lea.vmem [#allocation28], %s6836_s27 }
 0x1c0   : > { %v854_v17 = vadd.s32 1, %v4882_v13  ;;  %v6893_v25 = vshll.u32 %v852_v16, 8  ;;  %vm7001_vm14 = vcmp.le.f32.partialorder %v844_v3, 0.7853982  ;;  %s4565_s18 = sshll.u32 %s817_s25, 4  ;;  %s8188_s23 = sld [smem:[#allocation52_spill]]  ;;  %s7995_s18 = int_to_ptr.vmem [resolvable:$true] %s4565_s18 }
 0x1c1   : > { %v957_v19 = vadd.s32 1, %v4886_v14  ;;  %v6897_v29 = vshll.u32 %v955_v18, 8  ;;  %v6899_v30 = vadd.s32 1, %v4898_v20  ;;  %p8190_p9 = scmp.ne.s32.totalorder %s8163_s21, 0  ;;  %s6293_s2 = smov [#allocation28]  }
 0x1c2   : > { %vm855_vm0 = vcmp.gt.s32.totalorder %v854_v17, 0  ;;  %s8131_s19 = sshll.u32 %s8187_s3, 10  ;;  %s6126_s29 = sshll.u32 %s6293_s2, 4  ;;  %s6127_s29 = int_to_ptr.vmem [resolvable:$false] %s6126_s29 }
 0x1c3   : > { %v856_v21 = vsel %vm855_vm0, %v854_v17, 0  ;;  %vm958_vm1 = vcmp.gt.s32.totalorder %v957_v19, 0  ;;  %vm1267_vm6 = vcmp.gt.s32.totalorder %v6899_v30, 0  ;;  %s6128_s30 = scalar_lea.vmem %s6127_s29, 2048  ;;  %p6129_p0 = scmp.lt.s32.totalorder %s7995_s18, %s6127_s29 }
 0x1c4   : > { %v857_v23 = vshrl.u32 %v856_v21, 5  ;;  %v858_v24 = vand.u32 31, %v856_v21  ;;  %v959_v26 = vsel %vm958_vm1, %v957_v19, 0 }
 0x1c5   : > { %v6895_v27 = vshrl.u32 %v959_v26, 5  ;;  %v961_v28 = vand.u32 31, %v959_v26 }
 0x1c6   : > { %v859_v31 = vsub.s32 32, %v858_v24  ;;  %v861_v33 = vshll.u32 %v6285_v32, %v858_v24  ;;  %v864_v35 = vshll.u32 %v6286_v34, %v858_v24  ;;  %v867_v37 = vshll.u32 %v6287_v36, %v858_v24  ;;  %s8189_s28 = smov %s8188_s23  ;;  %s7993_s22 = scalar_lea.hbm %s8188_s23, %s8131_s19 }
 0x1c7   : > { %v870_v39 = vshll.u32 %v6288_v38, %v858_v24  ;;  %v873_v41 = vshll.u32 %v6289_v40, %v858_v24  ;;  %vm876_vm2 = vcmp.lt.s32.totalorder %v857_v23, 1  ;;  %vm877_vm3 = vcmp.lt.s32.totalorder %v857_v23, 2 }
 0x1c8   : > { %v860_v42 = vshrl.u32 %v6285_v32, %v859_v31  ;;  %v862_v43 = vshrl.u32 %v6286_v34, %v859_v31  ;;  %v865_v44 = vshrl.u32 %v6287_v36, %v859_v31  ;;  %v868_v45 = vshrl.u32 %v6288_v38, %v859_v31 }
 0x1c9   : > { %v871_v46 = vshrl.u32 %v6289_v40, %v859_v31  ;;  %v874_v48 = vshrl.u32 %v6290_v47, %v859_v31  ;;  %vm878_vm4 = vcmp.lt.s32.totalorder %v857_v23, 3  ;;  %vm879_vm5 = vcmp.lt.s32.totalorder %v857_v23, 4 }
 0x1ca   : > { %v863_v49 = vor.u32 %v862_v43, %v861_v33  ;;  %v866_v50 = vor.u32 %v865_v44, %v864_v35  ;;  %v869_v51 = vor.u32 %v868_v45, %v867_v37  ;;  %v962_v52 = vsub.s32 32, %v961_v28 }
 0x1cb   : > { %v872_v53 = vor.u32 %v871_v46, %v870_v39  ;;  %v875_v54 = vor.u32 %v874_v48, %v873_v41  ;;  %v964_v55 = vshll.u32 %v6285_v32, %v961_v28  ;;  %v967_v63 = vshll.u32 %v6286_v34, %v961_v28 }
 0x1cc   : > { %v880_v56 = vsel %vm876_vm2, %v860_v42, %v863_v49  ;;  %v881_v57 = vsel %vm879_vm5, %v869_v51, 2102212464  ;;  %v884_v58 = vsel %vm876_vm2, %v863_v49, %v866_v50  ;;  %v888_v59 = vsel %vm876_vm2, %v866_v50, %v869_v51 }
 0x1cd   : > { %v882_v60 = vsel %vm878_vm4, %v866_v50, %v881_v57  ;;  %v885_v61 = vsel %vm879_vm5, %v872_v53, 920167782  ;;  %v889_v62 = vsel %vm879_vm5, %v875_v54, 1326507024  ;;  %v963_v7 = vshrl.u32 %v6285_v32, %v962_v52 }
 0x1ce   : > { %v886_v0 = vsel %vm878_vm4, %v869_v51, %v885_v61  ;;  %v890_v4 = vsel %vm878_vm4, %v872_v53, %v889_v62  ;;  %v965_v8 = vshrl.u32 %v6286_v34, %v962_v52  ;;  %v883_v9 = vsel %vm877_vm3, %v880_v56, %v882_v60  ;;  %v6970_v62 = vld [vmem:[%s6840_s17 + $0x28] sm:$0xff] }
 0x1cf   : > { %v887_v10 = vsel %vm877_vm3, %v884_v58, %v886_v0  ;;  %v891_v11 = vsel %vm877_vm3, %v888_v59, %v890_v4  ;;  %v968_v12 = vshrl.u32 %v6287_v36, %v962_v52  ;;  %v970_v19 = vshll.u32 %v6287_v36, %v961_v28 }
 0x1d0   : > { %v6928_v13 = vmul.u32.u64.low %v6893_v25, %v891_v11  ;;  %v6929_v14 = vmul.u32.u64.high %v6893_v25, %v891_v11, %v6928_v13  ;;  %v6932_v15 = vmul.u32.u64.low %v6893_v25, %v887_v10  ;;  %v6933_v16 = vmul.u32.u64.high %v6893_v25, %v887_v10, %v6932_v15 }
 0x1d1   : > { %v966_v17 = vor.u32 %v965_v8, %v964_v55  ;;  %v969_v18 = vor.u32 %v968_v12, %v967_v63  ;;  %v971_v20 = vshrl.u32 %v6288_v38, %v962_v52  ;;  %v973_v21 = vshll.u32 %v6288_v38, %v961_v28 }
 0x1d2   : > { %v974_v23 = vshrl.u32 %v6289_v40, %v962_v52  ;;  %v976_v24 = vshll.u32 %v6289_v40, %v961_v28  ;;  %v977_v26 = vshrl.u32 %v6290_v47, %v962_v52  ;;  %v899_v31 = vmul.u32 %v6893_v25, %v883_v9 }
 0x1d3   : > { %v972_v33 = vor.u32 %v971_v20, %v970_v19  ;;  %vm979_vm7 = vcmp.lt.s32.totalorder %v6895_v27, 1  ;;  %vm980_vm8 = vcmp.lt.s32.totalorder %v6895_v27, 2  ;;  %vm901_vm9 = vc.u32 %v6929_v14, %v6932_v15 }
 0x1d4   : > { %v902_v35 = vadd.s32 1, %v6933_v16  ;;  %v975_v37 = vor.u32 %v974_v23, %v973_v21  ;;  %vm981_vm10 = vcmp.lt.s32.totalorder %v6895_v27, 3  ;;  %v978_v39 = vor.u32 %v977_v26, %v976_v24 }
 0x1d5   : > { %vm982_vm11 = vcmp.lt.s32.totalorder %v6895_v27, 4  ;;  %v983_v28 = vsel %vm979_vm7, %v963_v7, %v966_v17  ;;  %v987_v41 = vsel %vm979_vm7, %v966_v17, %v969_v18  ;;  %v991_v44 = vsel %vm979_vm7, %v969_v18, %v972_v33 }
 0x1d6   : > { %v903_v42 = vsel %vm901_vm9, %v902_v35, %v6933_v16  ;;  %v984_v25 = vsel %vm982_vm11, %v972_v33, 2102212464  ;;  %v988_v43 = vsel %vm982_vm11, %v975_v37, 920167782  ;;  %v992_v49 = vsel %vm982_vm11, %v978_v39, 1326507024 }
 0x1d7   : > { %v904_v45 = vadd.s32 %v903_v42, %v899_v31  ;;  %v985_v46 = vsel %vm981_vm10, %v969_v18, %v984_v25  ;;  %v989_v48 = vsel %vm981_vm10, %v972_v33, %v988_v43  ;;  %v993_v52 = vsel %vm981_vm10, %v975_v37, %v992_v49 }
 0x1d8   : > { %v986_v50 = vsel %vm980_vm8, %v983_v28, %v985_v46  ;;  %v990_v51 = vsel %vm980_vm8, %v987_v41, %v989_v48  ;;  %v1268_v53 = vsel %vm1267_vm6, %v6899_v30, 0  ;;  %v994_v55 = vsel %vm980_vm8, %v991_v44, %v993_v52 }
 0x1d9   : > { %v905_v54 = vadd.s32 536870912, %v904_v45  ;;  %v6959_v56 = vmul.u32.u64.low %v6897_v29, %v990_v51  ;;  %v6960_v57 = vmul.u32.u64.high %v6897_v29, %v990_v51, %v6959_v56  ;;  %v1263_v60 = vand.u32 8388607, %v1256_v22 }
 0x1da   : > { %v6964_v58 = vmul.u32.u64.low %v6897_v29, %v994_v55  ;;  %v6965_v59 = vmul.u32.u64.high %v6897_v29, %v994_v55, %v6964_v58  ;;  %v1270_v30 = vand.u32 31, %v1268_v53  ;;  %v1002_v63 = vmul.u32 %v6897_v29, %v986_v50 }
 0x1db   : > { %v906_v61 = vshrl.u32 %v905_v54, 30  ;;  %v1005_v0 = vadd.s32 1, %v6960_v57  ;;  %v1359_v4 = vand.u32 2147483647, %v6970_v62  ;;  %v1264_v7 = vor.u32 8388608, %v1263_v60 }
 0x1dc   : > { %vm1004_vm12 = vc.u32 %v6965_v59, %v6959_v56  ;;  %v1362_v8 = vand.u32 2139095040, %v6970_v62  ;;  %v1271_v11 = vsub.s32 32, %v1270_v30  ;;  %v900_v16 = vadd.s32 %v6932_v15, %v6929_v14 }
 0x1dd   : > { %v907_v27 = vshll.u32 %v906_v61, 30  ;;  %v1006_v10 = vsel %vm1004_vm12, %v1005_v0, %v6960_v57  ;;  %v6981_v29 = vand.u32 8388607, %v1359_v4  ;;  %v6984_v18 = vshll.u32 %v1264_v7, 8 }
 0x1de   : > { %v1007_v12 = vadd.s32 %v1006_v10, %v1002_v63  ;;  %v1363_v19 = vshrl.u32 %v1362_v8, 23  ;;  %v6987_v21 = vshrl.u32 %v1268_v53, 5  ;;  %v1279_v23 = vshll.u32 %v6287_v36, %v1270_v30 }
 0x1df   : > { %v908_v9 = vsub.s32 %v904_v45, %v907_v27  ;;  %v1280_v24 = vshrl.u32 %v6288_v38, %v1271_v11  ;;  %v1273_v31 = vshll.u32 %v6285_v32, %v1270_v30  ;;  %v1274_v33 = vshrl.u32 %v6286_v34, %v1271_v11 }
 0x1e0   : > { %v1008_v17 = vadd.s32 536870912, %v1007_v12  ;;  %v1276_v14 = vshll.u32 %v6286_v34, %v1270_v30  ;;  %v1277_v35 = vshrl.u32 %v6287_v36, %v1271_v11  ;;  %v1282_v37 = vshll.u32 %v6288_v38, %v1270_v30 }
 0x1e1   : > { %v910_v13 = vsub.s32 0, %v908_v9  ;;  %v1283_v39 = vshrl.u32 %v6289_v40, %v1271_v11  ;;  %v1285_v42 = vshll.u32 %v6289_v40, %v1270_v30  ;;  %v1286_v25 = vshrl.u32 %v6290_v47, %v1271_v11 }
 0x1e2   : > { %v6991_v26 = vshrl.u32 %v1008_v17, 30  ;;  %v4902_v43 = vadd.s32 4294967169, %v1363_v19  ;;  %v1281_v45 = vor.u32 %v1280_v24, %v1279_v23  ;;  %vm1288_vm15 = vcmp.lt.s32.totalorder %v6987_v21, 1 }
 0x1e3   : > { %v4883_v20 = vmin.u32 %v910_v13, %v908_v9  ;;  %vm1291_vm0 = vcmp.lt.s32.totalorder %v6987_v21, 4  ;;  %v930_v46 = vsub.s32 4, %v906_v61  ;;  %v1272_v3 = vshrl.u32 %v6285_v32, %v1271_v11 }
 0x1e4   : > { %v1010_v41 = vshll.u32 %v6991_v26, 30  ;;  %v1275_v49 = vor.u32 %v1274_v33, %v1273_v31  ;;  %v1278_v50 = vor.u32 %v1277_v35, %v1276_v14  ;;  %v1284_v51 = vor.u32 %v1283_v39, %v1282_v37 }
 0x1e5   : > { %v912_v15 = vclz %v4883_v20  ;;  %v1293_v52 = vsel %vm1291_vm0, %v1281_v45, 2102212464  ;;  %v1287_v55 = vor.u32 %v1286_v25, %v1285_v42  ;;  %vm1289_vm2 = vcmp.lt.s32.totalorder %v6987_v21, 2 }
 0x1e6   : > { %v7010_v48 = vsub.s32 %v1007_v12, %v1010_v41  ;;  %vm1290_vm3 = vcmp.lt.s32.totalorder %v6987_v21, 3  ;;  %v931_v30 = vsel %vm846_vm13, %v930_v46, %v906_v61  ;;  %vm949_vm4 = vcmp.lt.s32.totalorder %v6878_v2, 0 }
 0x1e7   : > { %v4884_v44 = vadd.s32 4294967294, %v912_v15  ;;  %v1292_v27 = vsel %vm1288_vm15, %v1272_v3, %v1275_v49  ;;  %v1294_v0 = vsel %vm1290_vm3, %v1278_v50, %v1293_v52  ;;  %v1297_v10 = vsel %vm1291_vm0, %v1284_v51, 920167782 }
 0x1e8   : > { %v1013_v54 = vsub.s32 0, %v7010_v48  ;;  %v1298_v61 = vsel %vm1290_vm3, %v1281_v45, %v1297_v10  ;;  %v1300_v12 = vsel %vm1288_vm15, %v1278_v50, %v1281_v45  ;;  %v1301_v13 = vsel %vm1291_vm0, %v1287_v55, 1326507024 }
 0x1e9   : > { %vm4885_vm1 = vcmp.lt.s32.totalorder %v4884_v44, 0  ;;  %vm7040_vm5 = vcmp.le.f32.partialorder %v947_v6, 0.7853982  ;;  %v1003_v23 = vadd.s32 %v6959_v56, %v6965_v59  ;;  %v1033_v31 = vsub.s32 4, %v6991_v26 }
 0x1ea   : > { %v915_v53 = vsel %vm4885_vm1, 0, %v4884_v44  ;;  %v4887_v63 = vmin.u32 %v1013_v54, %v7010_v48  ;;  %v1302_v14 = vsel %vm1290_vm3, %v1284_v51, %v1301_v13  ;;  %v1295_v6 = vsel %vm1289_vm2, %v1292_v27, %v1294_v0 }
 0x1eb   : > { %v916_v57 = vsub.s32 32, %v915_v53  ;;  %v917_v58 = vshll.u32 %v908_v9, %v915_v53  ;;  %v920_v60 = vsub.s32 4294967266, %v915_v53  ;;  %v1296_v9 = vsel %vm1288_vm15, %v1275_v49, %v1278_v50 }
 0x1ec   : > { %v1015_v11 = vclz %v4887_v63  ;;  %v1299_v33 = vsel %vm1289_vm2, %v1296_v9, %v1298_v61  ;;  %v1303_v37 = vsel %vm1289_vm2, %v1300_v12, %v1302_v14  ;;  %v1369_v39 = vadd.s32 1, %v4902_v43 }
 0x1ed   : > { %v918_v7 = vshrl.u32 %v900_v16, %v916_v57  ;;  %v921_v8 = vadd.s32 127, %v920_v60  ;;  %v933_v16 = vsel %vm7001_vm14, 0, %v931_v30  ;;  %v1034_v49 = vsel %vm949_vm4, %v1033_v31, %v6991_v26 }
 0x1ee   : > { %v4888_v24 = vadd.s32 4294967294, %v1015_v11  ;;  %v7056_v56 = vmul.u32.u64.low %v6984_v18, %v1303_v37  ;;  %v7057_v59 = vmul.u32.u64.high %v6984_v18, %v1303_v37, %v7056_v56  ;;  %vm1370_vm7 = vcmp.gt.s32.totalorder %v1369_v39, 0 }
 0x1ef   : > { %v919_v17 = vor.u32 %v918_v7, %v917_v58  ;;  %v922_v19 = vshll.u32 %v921_v8, 23  ;;  %v7060_v25 = vmul.u32.u64.low %v6984_v18, %v1299_v33  ;;  %v7061_v44 = vmul.u32.u64.high %v6984_v18, %v1299_v33, %v7060_v25 }
 0x1f0   : > { %vm4889_vm6 = vcmp.lt.s32.totalorder %v4888_v24, 0  ;;  %v1770_v50 = vadd.s32 3, %v933_v16  ;;  %v1371_v51 = vsel %vm1370_vm7, %v1369_v39, 0  ;;  %v1311_v53 = vmul.u32 %v6984_v18, %v1295_v6 }
 0x1f1   : > { %v923_v15 = vor.u32 4788187, %v922_v19  ;;  %v926_v35 = vcvt.s32.f32 %v919_v17  ;;  %v1018_v42 = vsel %vm4889_vm6, 0, %v4888_v24  ;;  %vm1313_vm8 = vc.u32 %v7057_v59, %v7060_v25 }
 0x1f2   : > { %v1019_v45 = vsub.s32 32, %v1018_v42  ;;  %v1020_v46 = vshll.u32 %v7010_v48, %v1018_v42  ;;  %v1023_v3 = vsub.s32 4294967266, %v1018_v42  ;;  %v1314_v55 = vadd.s32 1, %v7061_v44 }
 0x1f3   : > { %v924_v41 = vand.u32 2147483647, %v923_v15  ;;  %v1367_v48 = vor.u32 8388608, %v6981_v29  ;;  %v1373_v57 = vand.u32 31, %v1371_v51  ;;  %v7073_v58 = vand.u32 3, %v933_v16 }
 0x1f4   : > { %v1021_v43 = vshrl.u32 %v1003_v23, %v1019_v45  ;;  %v1024_v52 = vadd.s32 127, %v1023_v3  ;;  %v1036_v26 = vsel %vm7040_vm5, 0, %v1034_v49  ;;  %v7079_v18 = vand.u32 3, %v1770_v50 }
 0x1f5   : > { %v927_v21 = vmul.f32 %v926_v35, %v924_v41  ;;  %v1315_v27 = vsel %vm1313_vm8, %v1314_v55, %v7061_v44  ;;  %v1374_v0 = vsub.s32 32, %v1373_v57  ;;  %v1874_v10 = vadd.s32 3, %v1036_v26 }
 0x1f6   : > { %v1022_v60 = vor.u32 %v1021_v43, %v1020_v46  ;;  %v1025_v30 = vshll.u32 %v1024_v52, 23  ;;  %v1316_v9 = vadd.s32 %v1315_v27, %v1311_v53  ;;  %v7085_v11 = vshrl.u32 %v1371_v51, 5 }
 0x1f7   : > { %v928_v54 = vxor.u32 2147483648, %v927_v21  ;;  %v1376_v61 = vshll.u32 %v6285_v32, %v1373_v57  ;;  %v1377_v17 = vshrl.u32 %v6286_v34, %v1374_v0  ;;  %v1379_v19 = vshll.u32 %v6286_v34, %v1373_v57 }
 0x1f8   : > { %v1026_v7 = vor.u32 4788187, %v1025_v30  ;;  %v1029_v8 = vcvt.s32.f32 %v1022_v60  ;;  %v1317_v13 = vadd.s32 536870912, %v1316_v9  ;;  %v1382_v16 = vshll.u32 %v6287_v36, %v1373_v57 }
 0x1f9   : > { %v929_v63 = vsel %vm846_vm13, %v928_v54, %v927_v21  ;;  %v1383_v28 = vshrl.u32 %v6288_v38, %v1374_v0  ;;  %v1385_v23 = vshll.u32 %v6288_v38, %v1373_v57  ;;  %v1380_v33 = vshrl.u32 %v6287_v36, %v1374_v0 }
 0x1fa   : > { %v932_v29 = vsel %vm7001_vm14, %v6875_v1, %v929_v63  ;;  %v1027_v12 = vand.u32 2147483647, %v1026_v7  ;;  %v7093_v31 = vshrl.u32 %v1317_v13, 30  ;;  %v1386_v14 = vshrl.u32 %v6289_v40, %v1374_v0 }
 0x1fb   : > { %5666 = vcosq.f32 %v932_v29  ;;  %vm939_vm9 = vcmp.eq.s32.totalorder %v7073_v58, 0  ;;  %vm942_vm10 = vcmp.eq.s32.totalorder %v7073_v58, 2  ;;  %v1388_v15 = vshll.u32 %v6289_v40, %v1373_v57 }
 0x1fc   : > { %5668 = vsinq.f32 %v932_v29  ;;  %v1030_v24 = vmul.f32 %v1029_v8, %v1027_v12  ;;  %v1389_v35 = vshrl.u32 %v6290_v47, %v1374_v0  ;;  %v7101_v37 = vand.u32 3, %v1036_v26 }
 0x1fd   : > { %vm1773_vm11 = vcmp.eq.s32.totalorder %v7079_v18, 0  ;;  %vm1776_vm12 = vcmp.eq.s32.totalorder %v7079_v18, 2  ;;  %v7105_v56 = vand.u32 3, %v1874_v10  ;;  %v1319_v39 = vshll.u32 %v7093_v31, 30 }
 0x1fe   : > { %v1031_v6 = vxor.u32 2147483648, %v1030_v24  ;;  %vm938_vm13 = vcmp.lt.s32.totalorder %v7073_v58, 2  ;;  %v1375_v41 = vshrl.u32 %v6285_v32, %v1374_v0  ;;  %v1378_v42 = vor.u32 %v1377_v17, %v1376_v61 }
 0x1ff   : > { %v1384_v44 = vor.u32 %v1383_v28, %v1382_v16  ;;  %v1387_v45 = vor.u32 %v1386_v14, %v1385_v23  ;;  %v7112_v3 = vsub.s32 %v1316_v9, %v1319_v39  ;;  %v1381_v21 = vor.u32 %v1380_v33, %v1379_v19  ;;  %v7165_v19 = vld [vmem:[%s6840_s17 + $0x10] sm:$0xff] }
 0x200   : > { %v1032_v46 = vsel %vm949_vm4, %v1031_v6, %v1030_v24  ;;  %vm1394_vm14 = vcmp.lt.s32.totalorder %v7085_v11, 4  ;;  %vm1772_vm15 = vcmp.lt.s32.totalorder %v7079_v18, 2  ;;  %v1390_v50 = vor.u32 %v1389_v35, %v1388_v15 }
 0x201   : > { %v1035_v49 = vsel %vm7040_vm5, %v6878_v2, %v1032_v46  ;;  %vm1391_vm0 = vcmp.lt.s32.totalorder %v7085_v11, 1  ;;  %v1396_v51 = vsel %vm1394_vm14, %v1384_v44, 2102212464  ;;  %vm936_vm1 = vweird.f32 %v6875_v1 }
 0x202   : > { %5670 = vcosq.f32 %v1035_v49  ;;  %v1322_v43 = vsub.s32 0, %v7112_v3  ;;  %vm1393_vm2 = vcmp.lt.s32.totalorder %v7085_v11, 3  ;;  %v7125_v52 = vshll.u32 %v1367_v48, 8 }
 0x203   : > { %5672 = vsinq.f32 %v1035_v49  ;;  %vm1392_vm3 = vcmp.lt.s32.totalorder %v7085_v11, 2  ;;  %v1395_v20 = vsel %vm1391_vm0, %v1375_v41, %v1378_v42  ;;  %v1400_v54 = vsel %vm1394_vm14, %v1387_v45, 920167782 }
 0x204   : > { %v4899_v60 = vmin.u32 %v1322_v43, %v7112_v3  ;;  %v1397_v30 = vsel %vm1393_vm2, %v1381_v21, %v1396_v51  ;;  %v1399_v48 = vsel %vm1391_vm0, %v1378_v42, %v1381_v21  ;;  %vm1042_vm4 = vcmp.eq.s32.totalorder %v7101_v37, 0 }
 0x205   : > { %v5667_v53 = vpop.eup %5666  ;;  %v1401_v63 = vsel %vm1393_vm2, %v1384_v44, %v1400_v54  ;;  %v1403_v27 = vsel %vm1391_vm0, %v1381_v21, %v1384_v44  ;;  %v1404_v0 = vsel %vm1394_vm14, %v1390_v50, 1326507024  ;;  %vm1041_vm5 = vcmp.lt.s32.totalorder %v7101_v37, 2 }
 0x206   : > { %v5669_v55 = vpop.eup %5668  ;;  %v943_v57 = vxor.u32 2147483648, %v5667_v53  ;;  %vm1045_vm6 = vcmp.eq.s32.totalorder %v7101_v37, 2  ;;  %vm1876_vm7 = vcmp.lt.s32.totalorder %v7105_v56, 2  ;;  %vm1877_vm8 = vcmp.eq.s32.totalorder %v7105_v56, 0 }
 0x207   : > { %v940_v26 = vxor.u32 2147483648, %v5669_v55  ;;  %v1324_v29 = vclz %v4899_v60  ;;  %vm1039_vm0 = vweird.f32 %v6878_v2  ;;  %v1402_v9 = vsel %vm1392_vm3, %v1399_v48, %v1401_v63 }
 0x208   : > { %v944_v8 = vsel %vm942_vm10, %v943_v57, %v5669_v55  ;;  %v1405_v10 = vsel %vm1393_vm2, %v1387_v45, %v1404_v0  ;;  %vm1258_vm14 = vcmp.lt.s32.totalorder %v6883_v5, 0  ;;  %v1312_v61 = vadd.s32 %v7060_v25, %v7057_v59 }
 0x209   : > { %v941_v7 = vsel %vm939_vm9, %v5667_v53, %v940_v26  ;;  %v4900_v12 = vadd.s32 4294967294, %v1324_v29  ;;  %v1398_v13 = vsel %vm1392_vm3, %v1395_v20, %v1397_v30  ;;  %v1406_v17 = vsel %vm1392_vm3, %v1403_v27, %v1405_v10 }
 0x20a   : > { %v1775_v16 = vsel %vm1773_vm11, %v5667_v53, %v940_v26  ;;  %v1778_v28 = vsel %vm1776_vm12, %v943_v57, %v5669_v55  ;;  %v7172_v23 = vmul.u32.u64.low %v7125_v52, %v1406_v17  ;;  %v7173_v24 = vmul.u32.u64.high %v7125_v52, %v1406_v17, %v7172_v23 }
 0x20b   : > { %v945_v59 = vsel %vm938_vm13, %v941_v7, %v944_v8  ;;  %vm1672_vm9 = vcmask 130048   ;;  %vm4901_vm10 = vcmp.lt.s32.totalorder %v4900_v12, 0  ;;  %vm1880_vm2 = vcmp.eq.s32.totalorder %v7105_v56, 2 }
 0x20c   : > { %v7178_v25 = vmul.u32.u64.low %v7125_v52, %v1402_v9  ;;  %v7179_v11 = vmul.u32.u64.high %v7125_v52, %v1402_v9, %v7178_v25  ;;  %v1327_v33 = vsel %vm4901_vm10, 0, %v4900_v12  ;;  %v1342_v14 = vsub.s32 4, %v7093_v31  ;;  %v5671_v35 = vpop.eup %5670 }
 0x20d   : > { %v1053_v15 = vand.u32 2139095040, %v7165_v19  ;;  %v1779_v6 = vsel %vm1772_vm15, %v1775_v16, %v1778_v28  ;;  %v1328_v58 = vsub.s32 32, %v1327_v33  ;;  %v1329_v39 = vshll.u32 %v7112_v3, %v1327_v33  ;;  %v5673_v42 = vpop.eup %5672 }
 0x20e   : > { %v1332_v41 = vsub.s32 4294967266, %v1327_v33  ;;  %v946_v44 = vsel %vm936_vm1, nan, %v945_v59  ;;  %v1046_v45 = vxor.u32 2147483648, %v5671_v35  ;;  %v1414_v46 = vmul.u32 %v7125_v52, %v1398_v13  ;;  %v7239_v33 = vld [vmem:[%s6840_s17 + $0x18] sm:$0xff] }
 0x20f   : > { %vm1416_vm11 = vc.u32 %v7173_v24, %v7178_v25  ;;  %v1043_v21 = vxor.u32 2147483648, %v5673_v42  ;;  %v1330_v49 = vshrl.u32 %v1312_v61, %v1328_v58  ;;  %v1417_v18 = vadd.s32 1, %v7179_v11 }
 0x210   : > { %v1333_v50 = vadd.s32 127, %v1332_v41  ;;  %v1047_v51 = vsel %vm1045_vm6, %v1046_v45, %v5673_v42  ;;  %v1780_v3 = vsel %vm936_vm1, nan, %v1779_v6  ;;  %v1882_v43 = vsel %vm1880_vm2, %v1046_v45, %v5673_v42 }
 0x211   : > { %v1054_v53 = vshrl.u32 %v1053_v15, 23  ;;  %v1044_v52 = vsel %vm1042_vm4, %v5671_v35, %v1043_v21  ;;  %v1879_v20 = vsel %vm1877_vm8, %v5671_v35, %v1043_v21  ;;  %v1331_v54 = vor.u32 %v1330_v49, %v1329_v39 }
 0x212   : > { %v1334_v55 = vshll.u32 %v1333_v50, 23  ;;  %v1048_v57 = vsel %vm1041_vm5, %v1044_v52, %v1047_v51  ;;  %v1883_v60 = vsel %vm1876_vm7, %v1879_v20, %v1882_v43  ;;  %v1343_v1 = vsel %vm1258_vm14, %v1342_v14, %v7093_v31 }
 0x213   : > { %v1418_v30 = vsel %vm1416_vm11, %v1417_v18, %v7179_v11  ;;  %v1049_v48 = vsel %vm1039_vm0, nan, %v1048_v57  ;;  %v1884_v26 = vsel %vm1039_vm0, nan, %v1883_v60  ;;  %v1338_v63 = vcvt.s32.f32 %v1331_v54 }
 0x214   : > { %v1335_v37 = vor.u32 4788187, %v1334_v55  ;;  %v1668_v27 = vpack.c.bf16 %v1049_v48, %v946_v44  ;;  %v2509_v56 = vpack.c.bf16 %v1884_v26, %v1780_v3  ;;  %v1419_v0 = vadd.s32 %v1418_v30, %v1414_v46 }
 0x215   : > { %v4890_v29 = vadd.s32 4294967169, %v1054_v53  ;;  %vm7223_vm12 = vcmp.le.f32.partialorder %v1256_v22, 0.7853982  ;;  %v1050_v61 = vand.u32 2147483647, %v7165_v19  ;;  %vm1361_vm15 = vcmp.lt.s32.totalorder %v6970_v62, 0 }
 0x216   : > { %v1336_v7 = vand.u32 2147483647, %v1335_v37  ;;  %1673 = vst.msk [vmem:[#allocation2] sm:$0xff] %vm1672_vm9, %v1668_v27  ;;  %2513 = vst.msk [vmem:[#allocation3] sm:$0xff] %vm1672_vm9, %v2509_v56  ;;  %v1420_v2 = vadd.s32 536870912, %v1419_v0  ;;  %v1345_v10 = vsel %vm7223_vm12, 0, %v1343_v1  ;;  %v1415_v41 = vadd.s32 %v7178_v25, %v7173_v24 }
 0x217   : > { %v1060_v8 = vadd.s32 1, %v4890_v29  ;;  %v2186_v28 = vadd.s32 3, %v1345_v10  ;;  %v7234_v59 = vand.u32 8388607, %v1050_v61  ;;  %v7246_v6 = vand.u32 3, %v1345_v10 }
 0x218   : > { %v1339_v9 = vmul.f32 %v1338_v63, %v1336_v7  ;;  %v1421_v12 = vshrl.u32 %v1420_v2, 30  ;;  %v1153_v21 = vand.u32 2147483647, %v7239_v33  ;;  %vm7261_vm1 = vcmp.le.f32.partialorder %v1359_v4, 0.7853982 }
 0x219   : > { %vm1061_vm13 = vcmp.gt.s32.totalorder %v1060_v8, 0  ;;  %v7253_v44 = vand.u32 3, %v2186_v28  ;;  %v1058_v46 = vor.u32 8388608, %v7234_v59  ;;  %vm1354_vm7 = vcmp.eq.s32.totalorder %v7246_v6, 2 }
 0x21a   : > { %v1340_v13 = vxor.u32 2147483648, %v1339_v9  ;;  %v1062_v17 = vsel %vm1061_vm13, %v1060_v8, 0  ;;  %v1422_v16 = vshll.u32 %v1421_v12, 30  ;;  %v1445_v45 = vsub.s32 4, %v1421_v12 }
 0x21b   : > { %v1064_v23 = vand.u32 31, %v1062_v17  ;;  %v1063_v25 = vshrl.u32 %v1062_v17, 5  ;;  %v1160_v60 = vand.u32 8388607, %v1153_v21  ;;  %vm2192_vm0 = vcmp.eq.s32.totalorder %v7253_v44, 2 }
 0x21c   : > { %v1341_v22 = vsel %vm1258_vm14, %v1340_v13, %v1339_v9  ;;  %v7236_v11 = vsub.s32 %v1419_v0, %v1422_v16  ;;  %v1446_v54 = vsel %vm1361_vm15, %v1445_v45, %v1421_v12  ;;  %vm1351_vm10 = vcmp.eq.s32.totalorder %v7246_v6, 0 }
 0x21d   : > { %v7241_v14 = vld [vmem:[#allocation2] sm:$0xff]  ;;  %v1344_v35 = vsel %vm7223_vm12, %v6883_v5, %v1341_v22  ;;  %v1065_v58 = vsub.s32 32, %v1064_v23  ;;  %v1156_v5 = vand.u32 2139095040, %v7239_v33  ;;  %v1067_v50 = vshll.u32 %v6285_v32, %v1064_v23 }
 0x21e   : > { %v2521_v15 = vld [vmem:[#allocation3] sm:$0xff]  ;;  %v1425_v42 = vsub.s32 0, %v7236_v11  ;;  %5674 = vcosq.f32 %v1344_v35  ;;  %v1070_v51 = vshll.u32 %v6286_v34, %v1064_v23  ;;  %v1073_v43 = vshll.u32 %v6287_v36, %v1064_v23 }
 0x21f   : > { %v2531_v39 = vadd.bf16 %v2521_v15, %v7241_v14  ;;  %v1068_v18 = vshrl.u32 %v6286_v34, %v1065_v58  ;;  %v1071_v3 = vshrl.u32 %v6287_v36, %v1065_v58  ;;  %v1074_v52 = vshrl.u32 %v6288_v38, %v1065_v58 }
 0x220   : > { %v4903_v24 = vmin.u32 %v1425_v42, %v7236_v11  ;;  %v1076_v4 = vshll.u32 %v6288_v38, %v1064_v23  ;;  %v1077_v20 = vshrl.u32 %v6289_v40, %v1065_v58  ;;  %v1079_v55 = vshll.u32 %v6289_v40, %v1064_v23 }
 0x221   : > { %5160 = vmatprep.mubr.msk.bf16.mxu0 %vm1672_vm9, %v2531_v39  ;;  %v1157_v57 = vshrl.u32 %v1156_v5, 23  ;;  %5676 = vsinq.f32 %v1344_v35  ;;  %v1080_v48 = vshrl.u32 %v6290_v47, %v1065_v58  ;;  %v1069_v26 = vor.u32 %v1068_v18, %v1067_v50 }
 0x222   : > { %v1427_v53 = vclz %v4903_v24  ;;  %v1078_v30 = vor.u32 %v1077_v20, %v1076_v4  ;;  %v1072_v37 = vor.u32 %v1071_v3, %v1070_v51  ;;  %v1075_v63 = vor.u32 %v1074_v52, %v1073_v43  ;;  %v7311_v20 = vld [vmem:[%s6840_s17 + $0x30] sm:$0xff] }
 0x223   : > { %vm1085_vm3 = vcmp.lt.s32.totalorder %v1063_v25, 4  ;;  %v1066_v27 = vshrl.u32 %v6285_v32, %v1065_v58  ;;  %vm1082_vm5 = vcmp.lt.s32.totalorder %v1063_v25, 1  ;;  %vm1084_vm6 = vcmp.lt.s32.totalorder %v1063_v25, 3 }
 0x224   : > { %v4904_v1 = vadd.s32 4294967294, %v1427_v53  ;;  %v1081_v0 = vor.u32 %v1080_v48, %v1079_v55  ;;  %v1087_v29 = vsel %vm1085_vm3, %v1075_v63, 2102212464  ;;  %v1091_v7 = vsel %vm1085_vm3, %v1078_v30, 920167782 }
 0x225   : > { %v4894_v9 = vadd.s32 4294967169, %v1157_v57  ;;  %v1448_v10 = vsel %vm7261_vm1, 0, %v1446_v54  ;;  %vm1083_vm8 = vcmp.lt.s32.totalorder %v1063_v25, 2  ;;  %v1090_v12 = vsel %vm1082_vm5, %v1069_v26, %v1072_v37 }
 0x226   : > { %vm4905_vm4 = vcmp.lt.s32.totalorder %v4904_v1, 0  ;;  %v1092_v13 = vsel %vm1084_vm6, %v1075_v63, %v1091_v7  ;;  %v1086_v23 = vsel %vm1082_vm5, %v1066_v27, %v1069_v26  ;;  %v1088_v22 = vsel %vm1084_vm6, %v1072_v37, %v1087_v29 }
 0x227   : > { %v1430_v56 = vsel %vm4905_vm4, 0, %v4904_v1  ;;  %v1094_v59 = vsel %vm1082_vm5, %v1072_v37, %v1075_v63  ;;  %v1098_v15 = vshll.u32 %v1058_v46, 8  ;;  %v1093_v39 = vsel %vm1083_vm8, %v1090_v12, %v1092_v13 }
 0x228   : > { %v1431_v31 = vsub.s32 32, %v1430_v56  ;;  %v1432_v2 = vshll.u32 %v7236_v11, %v1430_v56  ;;  %v1435_v8 = vsub.s32 4294967266, %v1430_v56  ;;  %v7289_v17 = vpop.eup %5674  ;;  %v1095_v11 = vsel %vm1085_vm3, %v1081_v0, 1326507024 }
 0x229   : > { %v1161_v42 = vor.u32 8388608, %v1160_v60  ;;  %v2290_v45 = vadd.s32 3, %v1448_v10  ;;  %v1089_v5 = vsel %vm1083_vm8, %v1086_v23, %v1088_v22  ;;  %v1096_v24 = vsel %vm1084_vm6, %v1078_v30, %v1095_v11 }
 0x22a   : > { %v1433_v16 = vshrl.u32 %v1415_v41, %v1431_v31  ;;  %v1436_v28 = vadd.s32 127, %v1435_v8  ;;  %v1355_v41 = vxor.u32 2147483648, %v7289_v17  ;;  %v1097_v3 = vsel %vm1083_vm8, %v1094_v59, %v1096_v24 }
 0x22b   : > { %v7300_v50 = vpop.eup %5676  ;;  %v1163_v46 = vadd.s32 1, %v4894_v9  ;;  %v7303_v43 = vmul.u32.u64.low %v1098_v15, %v1097_v3  ;;  %v7304_v53 = vmul.u32.u64.high %v1098_v15, %v1097_v3, %v7303_v43  ;;  %v7313_v55 = vshll.u32 %v1161_v42, 8  ;;  %v5698_v42 = vld [vmem:[%s6840_s17 + $0x20] sm:$0xff] }
 0x22c   : > { %v1434_v35 = vor.u32 %v1433_v16, %v1432_v2  ;;  %v1437_v58 = vshll.u32 %v1436_v28, 23  ;;  %v7306_v52 = vmul.u32.u64.low %v1098_v15, %v1093_v39  ;;  %v7307_v4 = vmul.u32.u64.high %v1098_v15, %v1093_v39, %v7306_v52 }
 0x22d   : > { %vm1164_vm14 = vcmp.gt.s32.totalorder %v1163_v46, 0  ;;  %v1462_v57 = vand.u32 2147483647, %v7311_v20  ;;  %v1352_v60 = vxor.u32 2147483648, %v7300_v50  ;;  %v7317_v25 = vand.u32 3, %v1448_v10 }
 0x22e   : > { %v1438_v18 = vor.u32 4788187, %v1437_v58  ;;  %v1441_v51 = vcvt.s32.f32 %v1434_v35  ;;  %v7319_v1 = vand.u32 3, %v2290_v45  ;;  %v1165_v30 = vsel %vm1164_vm14, %v1163_v46, 0 }
 0x22f   : > { %v7324_v48 = vsel %vm1354_vm7, %v1355_v41, %v7300_v50  ;;  %v1105_v37 = vmul.u32 %v1098_v15, %v1089_v5  ;;  %v1167_v63 = vand.u32 31, %v1165_v30  ;;  %vm2189_vm2 = vcmp.eq.s32.totalorder %v7253_v44, 0 }
 0x230   : > { %v1439_v54 = vand.u32 2147483647, %v1438_v18  ;;  %v7331_v27 = vsel %vm2192_vm0, %v1355_v41, %v7300_v50  ;;  %vm1107_vm11 = vc.u32 %v7304_v53, %v7306_v52  ;;  %v1108_v56 = vadd.s32 1, %v7307_v4 }
 0x231   : > { %v1166_v0 = vshrl.u32 %v1165_v30, 5  ;;  %v1168_v7 = vsub.s32 32, %v1167_v63  ;;  %v1170_v31 = vshll.u32 %v6285_v32, %v1167_v63  ;;  %v1173_v2 = vshll.u32 %v6286_v34, %v1167_v63 }
 0x232   : > { %v1442_v26 = vmul.f32 %v1441_v51, %v1439_v54  ;;  %v1109_v8 = vsel %vm1107_vm11, %v1108_v56, %v7307_v4  ;;  %v1176_v9 = vshll.u32 %v6287_v36, %v1167_v63  ;;  %v1179_v10 = vshll.u32 %v6288_v38, %v1167_v63 }
 0x233   : > { %v1182_v12 = vshll.u32 %v6289_v40, %v1167_v63  ;;  %vm1350_vm12 = vcmp.lt.s32.totalorder %v7246_v6, 2  ;;  %vm2188_vm13 = vcmp.lt.s32.totalorder %v7253_v44, 2  ;;  %v1110_v16 = vadd.s32 %v1109_v8, %v1105_v37 }
 0x234   : > { %v1443_v29 = vxor.u32 2147483648, %v1442_v26  ;;  %v1169_v28 = vshrl.u32 %v6285_v32, %v1168_v7  ;;  %v1171_v23 = vshrl.u32 %v6286_v34, %v1168_v7  ;;  %v1174_v59 = vshrl.u32 %v6287_v36, %v1168_v7 }
 0x235   : > { %v1177_v11 = vshrl.u32 %v6288_v38, %v1168_v7  ;;  %v1180_v15 = vshrl.u32 %v6289_v40, %v1168_v7  ;;  %v1111_v35 = vadd.s32 536870912, %v1110_v16  ;;  %v1183_v39 = vshrl.u32 %v6290_v47, %v1168_v7 }
 0x236   : > { %v1444_v13 = vsel %vm1361_vm15, %v1443_v29, %v1442_v26  ;;  %v1172_v58 = vor.u32 %v1171_v23, %v1170_v31  ;;  %vm1348_vm15 = vweird.f32 %v5698_v42  ;;  %v1175_v41 = vor.u32 %v1174_v59, %v1173_v2  ;;  %v7400_v23 = vld [vmem:[#allocation15] sm:$0xff]  }
 0x237   : > { %v1447_v22 = vsel %vm7261_vm1, %v6970_v62, %v1444_v13  ;;  %v1178_v45 = vor.u32 %v1177_v11, %v1176_v9  ;;  %v1181_v5 = vor.u32 %v1180_v15, %v1179_v10  ;;  %v7356_v24 = vshrl.u32 %v1111_v35, 30  ;;  %5178 = vmatprep.subr.bf16.mxu0 %v7400_v23 }
 0x238   : > { %5678 = vcosq.f32 %v1447_v22  ;;  %v1184_v49 = vor.u32 %v1183_v39, %v1182_v12  ;;  %vm1185_vm1 = vcmp.lt.s32.totalorder %v1166_v0, 1  ;;  %v1465_v18 = vand.u32 2139095040, %v7311_v20 }
 0x239   : > { %5680 = vsinq.f32 %v1447_v22  ;;  %vm1454_vm3 = vcmp.eq.s32.totalorder %v7317_v25, 0  ;;  %vm1186_vm4 = vcmp.lt.s32.totalorder %v1166_v0, 2  ;;  %vm1187_vm5 = vcmp.lt.s32.totalorder %v1166_v0, 3 }
 0x23a   : > { %vm1188_vm6 = vcmp.lt.s32.totalorder %v1166_v0, 4  ;;  %v1193_v51 = vsel %vm1185_vm1, %v1172_v58, %v1175_v41  ;;  %vm1453_vm7 = vcmp.lt.s32.totalorder %v7317_v25, 2  ;;  %v1113_v3 = vshll.u32 %v7356_v24, 30 }
 0x23b   : > { %v1189_v46 = vsel %vm1185_vm1, %v1169_v28, %v1172_v58  ;;  %v1190_v43 = vsel %vm1188_vm6, %v1178_v45, 2102212464  ;;  %v1194_v4 = vsel %vm1188_vm6, %v1181_v5, 920167782  ;;  %vm1451_vm8 = vweird.f32 %v6970_v62  ;;  %v7398_v28 = vld [vmem:[#allocation13] sm:$0xff]  }
 0x23c   : > { %v1191_v54 = vsel %vm1187_vm5, %v1175_v41, %v1190_v43  ;;  %v1195_v30 = vsel %vm1187_vm5, %v1178_v45, %v1194_v4  ;;  %v1197_v26 = vsel %vm1185_vm1, %v1175_v41, %v1178_v45  ;;  %v1198_v37 = vsel %vm1188_vm6, %v1184_v49, 1326507024  ;;  %5168 = vmatprep.subr.bf16.mxu1 %v7398_v28 }
 0x23d   : > { %v1353_v63 = vsel %vm1351_vm10, %v7289_v17, %v1352_v60  ;;  %v2191_v56 = vsel %vm2189_vm2, %v7289_v17, %v1352_v60  ;;  %v7375_v29 = vsub.s32 %v1110_v16, %v1113_v3  ;;  %v1196_v7 = vsel %vm1186_vm4, %v1193_v51, %v1195_v30 }
 0x23e   : > { %v1199_v31 = vsel %vm1187_vm5, %v1181_v5, %v1198_v37  ;;  %v7380_v2 = vmul.u32.u64.low %v7313_v55, %v1196_v7  ;;  %v7381_v8 = vmul.u32.u64.high %v7313_v55, %v1196_v7, %v7380_v2  ;;  %v1466_v9 = vshrl.u32 %v1465_v18, 23 }
 0x23f   : > { %vm1457_vm0 = vcmp.eq.s32.totalorder %v7317_v25, 2  ;;  %v1116_v50 = vsub.s32 0, %v7375_v29  ;;  %v1192_v10 = vsel %vm1186_vm4, %v1189_v46, %v1191_v54  ;;  %v1200_v17 = vsel %vm1186_vm4, %v1197_v26, %v1199_v31 }
 0x240   : > { %v1357_v60 = vsel %vm1350_vm12, %v1353_v63, %v7324_v48  ;;  %v2195_v12 = vsel %vm2188_vm13, %v2191_v56, %v7331_v27  ;;  %v7395_v13 = vmul.u32.u64.low %v7313_v55, %v1200_v17  ;;  %v7396_v16 = vmul.u32.u64.high %v7313_v55, %v1200_v17, %v7395_v13 }
 0x241   : > { %vm2292_vm14 = vcmp.lt.s32.totalorder %v7319_v1, 2  ;;  %vm2293_vm10 = vcmp.eq.s32.totalorder %v7319_v1, 0  ;;  %vm2296_vm2 = vcmp.eq.s32.totalorder %v7319_v1, 2  ;;  %v4891_v6 = vmin.u32 %v1116_v50, %v7375_v29 }
 0x242   : > { %v5679_v22 = vpop.eup %5678  ;;  %v1208_v27 = vmul.u32 %v7313_v55, %v1192_v10  ;;  %v1211_v0 = vadd.s32 1, %v7381_v8  ;;  %v4906_v59 = vadd.s32 4294967169, %v1466_v9  ;;  %v1358_v11 = vsel %vm1348_vm15, nan, %v1357_v60  ;;  %v7453_v60 = vld [vmem:[%s6840_s17 + $0x38] sm:$0xff]  ;;  %s6122_s17 = scalar_lea.vmem %s7995_s18, 1024 }
 0x243   : > { %v5681_v48 = vpop.eup %5680  ;;  %v1458_v44 = vxor.u32 2147483648, %v5679_v22  ;;  %v2196_v35 = vsel %vm1348_vm15, nan, %v2195_v12  ;;  %v1118_v58 = vclz %v4891_v6  ;;  %v1136_v45 = vsub.s32 4, %v7356_v24  ;;  %p6123_p2 = scmp.ne.s32.totalorder %s7995_s18, %s6122_s17  ;;  %p6130_p7 = scmp.lt.s32.totalorder %s6128_s30, %s6122_s17 }
 0x244   : > { %v1455_v15 = vxor.u32 2147483648, %v5681_v48  ;;  %vm1210_vm11 = vc.u32 %v7396_v16, %v7380_v2  ;;  %v1472_v46 = vadd.s32 1, %v4906_v59  ;;  %v1106_v54 = vadd.s32 %v7306_v52, %v7304_v53 }
 0x245   : > { %v1459_v39 = vsel %vm1457_vm0, %v1458_v44, %v5681_v48  ;;  %v2298_v41 = vsel %vm2296_vm2, %v1458_v44, %v5681_v48  ;;  %v4892_v49 = vadd.s32 4294967294, %v1118_v58  ;;  %v1212_v42 = vsel %vm1210_vm11, %v1211_v0, %v7381_v8  ;;  %p6124_p10 = pnand %p6123_p2, %p8190_p9  ;;  %p6131_p5 = por %p6130_p7, %p6129_p0 }
 0x246   : > { %v1456_v55 = vsel %vm1454_vm3, %v5679_v22, %v1455_v15  ;;  %v2295_v5 = vsel %vm2293_vm10, %v5679_v22, %v1455_v15  ;;  %v1213_v3 = vadd.s32 %v1212_v42, %v1208_v27  ;;  %vm1052_vm13 = vcmp.lt.s32.totalorder %v7165_v19, 0 }
 0x247   : > { %v1460_v18 = vsel %vm1453_vm7, %v1456_v55, %v1459_v39  ;;  %v2299_v51 = vsel %vm2292_vm14, %v2295_v5, %v2298_v41  ;;  %vm4893_vm12 = vcmp.lt.s32.totalorder %v4892_v49, 0  ;;  %v1137_v62 = vsel %vm1052_vm13, %v1136_v45, %v7356_v24  ;;  %p6125_p12 = pneg %p6124_p10 }
 0x248   : > { %v1461_v43 = vsel %vm1451_vm8, nan, %v1460_v18  ;;  %v2300_v4 = vsel %vm1451_vm8, nan, %v2299_v51  ;;  %v1121_v37 = vsel %vm4893_vm12, 0, %v4892_v49  ;;  %v1214_v25 = vadd.s32 536870912, %v1213_v3 }
 0x249   : > { %v1670_v30 = vpack.c.bf16 %v1461_v43, %v1358_v11  ;;  %v2511_v26 = vpack.c.bf16 %v2300_v4, %v2196_v35  ;;  %v1122_v1 = vsub.s32 32, %v1121_v37  ;;  %v1123_v63 = vshll.u32 %v7375_v29, %v1121_v37  ;;  %p6132_p8 = pnand %p6131_p5, %p6125_p12 }
 0x24a   : > { %v1126_v56 = vsub.s32 4294967266, %v1121_v37  ;;  %v7439_v53 = vshrl.u32 %v1214_v25, 30  ;;  %v1469_v52 = vand.u32 8388607, %v1462_v57  ;;  %vm1473_vm15 = vcmp.gt.s32.totalorder %v1472_v46, 0 }
 0x24b   : > { %1675 = vst.msk [vmem:[#allocation2 + $0x10] sm:$0xff] %vm1672_vm9, %v1670_v30  ;;  %2515 = vst.msk [vmem:[#allocation3 + $0x10] sm:$0xff] %vm1672_vm9, %v2511_v26  ;;  %v1124_v7 = vshrl.u32 %v1106_v54, %v1122_v1  ;;  %v1474_v8 = vsel %vm1473_vm15, %v1472_v46, 0  ;;  %vm7445_vm1 = vcmp.le.f32.partialorder %v1050_v61, 0.7853982  ;;  %v1568_v11 = vand.u32 2139095040, %v7453_v60 }
 0x24c   : > { %v1127_v31 = vadd.s32 127, %v1126_v56  ;;  %v1216_v9 = vshll.u32 %v7439_v53, 30  ;;  %v1476_v50 = vand.u32 31, %v1474_v8  ;;  %v1139_v17 = vsel %vm7445_vm1, 0, %v1137_v62 }
 0x24d   : > { %v1125_v10 = vor.u32 %v1124_v7, %v1123_v63  ;;  %v1470_v13 = vor.u32 8388608, %v1469_v52  ;;  %v7457_v61 = vand.u32 3, %v1139_v17  ;;  %v1565_v44 = vand.u32 2147483647, %v7453_v60 }
 0x24e   : > { %v1128_v24 = vshll.u32 %v1127_v31, 23  ;;  %v7455_v12 = vsub.s32 %v1213_v3, %v1216_v9  ;;  %v1477_v22 = vsub.s32 32, %v1476_v50  ;;  %v7461_v0 = vadd.s32 3, %v1139_v17 }
 0x24f   : > { %v1132_v48 = vcvt.s32.f32 %v1125_v10  ;;  %v1479_v59 = vshll.u32 %v6285_v32, %v1476_v50  ;;  %v1482_v41 = vshll.u32 %v6286_v34, %v1476_v50  ;;  %v1485_v49 = vshll.u32 %v6287_v36, %v1476_v50 }
 0x250   : > { %v1129_v6 = vor.u32 4788187, %v1128_v24  ;;  %v1219_v27 = vsub.s32 0, %v7455_v12  ;;  %v1480_v39 = vshrl.u32 %v6286_v34, %v1477_v22  ;;  %v1483_v45 = vshrl.u32 %v6287_v36, %v1477_v22 }
 0x251   : > { %v7476_v42 = vshll.u32 %v1470_v13, 8  ;;  %v1209_v51 = vadd.s32 %v7380_v2, %v7396_v16  ;;  %v1239_v3 = vsub.s32 4, %v7439_v53  ;;  %v1475_v46 = vshrl.u32 %v1474_v8, 5 }
 0x252   : > { %v7465_v15 = vld [vmem:[#allocation2 + $0x10] sm:$0xff]  ;;  %v1130_v58 = vand.u32 2147483647, %v1129_v6  ;;  %v4895_v5 = vmin.u32 %v1219_v27, %v7455_v12  ;;  %vm1155_vm3 = vcmp.lt.s32.totalorder %v7239_v33, 0  ;;  %v1486_v4 = vshrl.u32 %v6288_v38, %v1477_v22 }
 0x253   : > { %v7467_v35 = vld [vmem:[#allocation3 + $0x10] sm:$0xff]  ;;  %v1488_v54 = vshll.u32 %v6288_v38, %v1476_v50  ;;  %v1569_v30 = vshrl.u32 %v1568_v11, 23  ;;  %v1478_v37 = vshrl.u32 %v6285_v32, %v1477_v22  ;;  %v1481_v25 = vor.u32 %v1480_v39, %v1479_v59 }
 0x254   : > { %v2533_v55 = vadd.bf16 %v7467_v35, %v7465_v15  ;;  %v1133_v18 = vmul.f32 %v1132_v48, %v1130_v58  ;;  %v1221_v43 = vclz %v4895_v5  ;;  %v1484_v1 = vor.u32 %v1483_v45, %v1482_v41 }
 0x255   : > { %v1487_v2 = vor.u32 %v1486_v4, %v1485_v49  ;;  %v1489_v16 = vshrl.u32 %v6289_v40, %v1477_v22  ;;  %v1491_v56 = vshll.u32 %v6289_v40, %v1476_v50  ;;  %v1492_v52 = vshrl.u32 %v6290_v47, %v1477_v22 }
 0x256   : > { %5164 = vmatprep.mubr.msk.bf16.mxu1 %vm1672_vm9, %v2533_v55  ;;  %v1134_v26 = vxor.u32 2147483648, %v1133_v18  ;;  %v4896_v63 = vadd.s32 4294967294, %v1221_v43  ;;  %vm1494_vm4 = vcmp.lt.s32.totalorder %v1475_v46, 1  ;;  %vm1495_vm5 = vcmp.lt.s32.totalorder %v1475_v46, 2 }
 0x257   : > { %vm7496_vm6 = vcmp.le.f32.partialorder %v1153_v21, 0.7853982  ;;  %v1490_v8 = vor.u32 %v1489_v16, %v1488_v54  ;;  %vm1496_vm8 = vcmp.lt.s32.totalorder %v1475_v46, 3  ;;  %v1493_v50 = vor.u32 %v1492_v52, %v1491_v56 }
 0x258   : > { %v1135_v62 = vsel %vm1052_vm13, %v1134_v26, %v1133_v18  ;;  %vm4897_vm7 = vcmp.lt.s32.totalorder %v4896_v63, 0  ;;  %vm1497_vm0 = vcmp.lt.s32.totalorder %v1475_v46, 4  ;;  %v1498_v29 = vsel %vm1494_vm4, %v1478_v37, %v1481_v25 }
 0x259   : > { %v1138_v7 = vsel %vm7445_vm1, %v7165_v19, %v1135_v62  ;;  %v1224_v9 = vsel %vm4897_vm7, 0, %v4896_v63  ;;  %v1499_v13 = vsel %vm1497_vm0, %v1487_v2, 2102212464  ;;  %v1502_v21 = vsel %vm1494_vm4, %v1481_v25, %v1484_v1 }
 0x25a   : > { %5682 = vcosq.f32 %v1138_v7  ;;  %v1225_v10 = vsub.s32 32, %v1224_v9  ;;  %v1226_v24 = vshll.u32 %v7455_v12, %v1224_v9  ;;  %v1229_v17 = vsub.s32 4294967266, %v1224_v9 }
 0x25b   : > { %5684 = vsinq.f32 %v1138_v7  ;;  %v1503_v22 = vsel %vm1497_vm0, %v1490_v8, 920167782  ;;  %v1500_v27 = vsel %vm1496_vm8, %v1484_v1, %v1499_v13  ;;  %v1240_v11 = vsel %vm1155_vm3, %v1239_v3, %v7439_v53 }
 0x25c   : > { %v1227_v6 = vshrl.u32 %v1209_v51, %v1225_v10  ;;  %v1230_v48 = vadd.s32 127, %v1229_v17  ;;  %v1504_v59 = vsel %vm1496_vm8, %v1487_v2, %v1503_v22  ;;  %v1506_v58 = vsel %vm1494_vm4, %v1484_v1, %v1487_v2 }
 0x25d   : > { %v1505_v12 = vsel %vm1495_vm5, %v1502_v21, %v1504_v59  ;;  %v1507_v39 = vsel %vm1497_vm0, %v1493_v50, 1326507024  ;;  %v1501_v55 = vsel %vm1495_vm5, %v1498_v29, %v1500_v27  ;;  %v4910_v53 = vadd.s32 4294967169, %v1569_v30 }
 0x25e   : > { %v1228_v41 = vor.u32 %v1227_v6, %v1226_v24  ;;  %v1231_v45 = vshll.u32 %v1230_v48, 23  ;;  %v1508_v5 = vsel %vm1496_vm8, %v1490_v8, %v1507_v39  ;;  %v1242_v26 = vsel %vm7496_vm6, 0, %v1240_v11 }
 0x25f   : > { %v1509_v49 = vsel %vm1495_vm5, %v1506_v58, %v1508_v5  ;;  %v7517_v18 = vmul.u32.u64.low %v7476_v42, %v1505_v12  ;;  %v7518_v51 = vmul.u32.u64.high %v7476_v42, %v1505_v12, %v7517_v18  ;;  %v1575_v37 = vadd.s32 1, %v4910_v53 }
 0x260   : > { %v1232_v3 = vor.u32 4788187, %v1231_v45  ;;  %v1235_v43 = vcvt.s32.f32 %v1228_v41  ;;  %v7522_v4 = vmul.u32.u64.low %v7476_v42, %v1509_v49  ;;  %v7523_v54 = vmul.u32.u64.high %v7476_v42, %v1509_v49, %v7522_v4 }
 0x261   : > { %vm1144_vm14 = vcmp.lt.s32.totalorder %v7457_v61, 2  ;;  %v7529_v25 = vand.u32 3, %v7461_v0  ;;  %v1517_v1 = vmul.u32 %v7476_v42, %v1501_v55  ;;  %vm1145_vm10 = vcmp.eq.s32.totalorder %v7457_v61, 0 }
 0x262   : > { %v1233_v46 = vand.u32 2147483647, %v1232_v3  ;;  %v1520_v30 = vadd.s32 1, %v7518_v51  ;;  %v1572_v2 = vand.u32 8388607, %v1565_v44  ;;  %vm1576_vm2 = vcmp.gt.s32.totalorder %v1575_v37, 0 }
 0x263   : > { %v2082_v52 = vadd.s32 3, %v1242_v26  ;;  %vm1519_vm11 = vc.u32 %v7523_v54, %v7517_v18  ;;  %vm1148_vm12 = vcmp.eq.s32.totalorder %v7457_v61, 2  ;;  %v1577_v7 = vsel %vm1576_vm2, %v1575_v37, 0 }
 0x264   : > { %v5683_v63 = vpop.eup %5682  ;;  %v1236_v62 = vmul.f32 %v1235_v43, %v1233_v46  ;;  %v1521_v42 = vsel %vm1519_vm11, %v1520_v30, %v7518_v51  ;;  %vm1142_vm13 = vweird.f32 %v7165_v19  ;;  %vm1980_vm15 = vcmp.lt.s32.totalorder %v7529_v25, 2 }
 0x265   : > { %v5685_v16 = vpop.eup %5684  ;;  %v1149_v56 = vxor.u32 2147483648, %v5683_v63  ;;  %vm1984_vm1 = vcmp.eq.s32.totalorder %v7529_v25, 2  ;;  %v1522_v9 = vadd.s32 %v1521_v42, %v1517_v1  ;;  %v7543_v50 = vand.u32 3, %v1242_v26 }
 0x266   : > { %v1146_v0 = vxor.u32 2147483648, %v5685_v16  ;;  %v1237_v8 = vxor.u32 2147483648, %v1236_v62  ;;  %vm1981_vm4 = vcmp.eq.s32.totalorder %v7529_v25, 0  ;;  %v1573_v10 = vor.u32 8388608, %v1572_v2 }
 0x267   : > { %v1579_v24 = vand.u32 31, %v1577_v7  ;;  %v1150_v17 = vsel %vm1148_vm12, %v1149_v56, %v5685_v16  ;;  %v7548_v13 = vand.u32 3, %v2082_v52  ;;  %v1523_v21 = vadd.s32 536870912, %v1522_v9 }
 0x268   : > { %v1238_v29 = vsel %vm1155_vm3, %v1237_v8, %v1236_v62  ;;  %v1147_v22 = vsel %vm1145_vm10, %v5683_v63, %v1146_v0  ;;  %v1986_v48 = vsel %vm1984_vm1, %v1149_v56, %v5685_v16  ;;  %v1578_v58 = vshrl.u32 %v1577_v7, 5 }
 0x269   : > { %v1241_v6 = vsel %vm7496_vm6, %v7239_v33, %v1238_v29  ;;  %v1580_v27 = vsub.s32 32, %v1579_v24  ;;  %v7555_v59 = vshrl.u32 %v1523_v21, 30  ;;  %v1582_v11 = vshll.u32 %v6285_v32, %v1579_v24 }
 0x26a   : > { %5686 = vcosq.f32 %v1241_v6  ;;  %v1585_v12 = vshll.u32 %v6286_v34, %v1579_v24  ;;  %vm1251_vm3 = vcmp.eq.s32.totalorder %v7543_v50, 2  ;;  %v1983_v31 = vsel %vm1981_vm4, %v5683_v63, %v1146_v0 }
 0x26b   : > { %5688 = vsinq.f32 %v1241_v6  ;;  %v1583_v39 = vshrl.u32 %v6286_v34, %v1580_v27  ;;  %v1586_v41 = vshrl.u32 %v6287_v36, %v1580_v27  ;;  %v1525_v45 = vshll.u32 %v7555_v59, 30 }
 0x26c   : > { %v1588_v55 = vshll.u32 %v6287_v36, %v1579_v24  ;;  %v1589_v5 = vshrl.u32 %v6288_v38, %v1580_v27  ;;  %v1151_v49 = vsel %vm1144_vm14, %v1147_v22, %v1150_v17  ;;  %vm1248_vm5 = vcmp.eq.s32.totalorder %v7543_v50, 0 }
 0x26d   : > { %vm2085_vm6 = vcmp.eq.s32.totalorder %v7548_v13, 0  ;;  %v1581_v34 = vshrl.u32 %v6285_v32, %v1580_v27  ;;  %v1591_v51 = vshll.u32 %v6288_v38, %v1579_v24  ;;  %v1592_v53 = vshrl.u32 %v6289_v40, %v1580_v27 }
 0x26e   : > { %vm1247_vm7 = vcmp.lt.s32.totalorder %v7543_v50, 2  ;;  %vm2084_vm8 = vcmp.lt.s32.totalorder %v7548_v13, 2  ;;  %v7576_v36 = vsub.s32 %v1522_v9, %v1525_v45  ;;  %v1584_v3 = vor.u32 %v1583_v39, %v1582_v11 }
 0x26f   : > { %v1587_v43 = vor.u32 %v1586_v41, %v1585_v12  ;;  %v1594_v61 = vshll.u32 %v6289_v40, %v1579_v24  ;;  %vm1245_vm0 = vweird.f32 %v7239_v33  ;;  %v1590_v4 = vor.u32 %v1589_v5, %v1588_v55 }
 0x270   : > { %v1593_v26 = vor.u32 %v1592_v53, %v1591_v51  ;;  %v1595_v32 = vshrl.u32 %v6290_v47, %v1580_v27  ;;  %vm1597_vm14 = vcmp.lt.s32.totalorder %v1578_v58, 1  ;;  %v1987_v38 = vsel %vm1980_vm15, %v1983_v31, %v1986_v48 }
 0x271   : > { %vm2088_vm10 = vcmp.eq.s32.totalorder %v7548_v13, 2  ;;  %v1528_v37 = vsub.s32 0, %v7576_v36  ;;  %v1613_v46 = vshll.u32 %v1573_v10, 8  ;;  %v1152_v1 = vsel %vm1142_vm13, nan, %v1151_v49 }
 0x272   : > { %v1596_v63 = vor.u32 %v1595_v32, %v1594_v61  ;;  %vm1599_vm2 = vcmp.lt.s32.totalorder %v1578_v58, 3  ;;  %vm1600_vm11 = vcmp.lt.s32.totalorder %v1578_v58, 4  ;;  %vm1598_vm12 = vcmp.lt.s32.totalorder %v1578_v58, 2 }
 0x273   : > { %v4907_v40 = vmin.u32 %v1528_v37, %v7576_v36  ;;  %v1601_v30 = vsel %vm1597_vm14, %v1581_v34, %v1584_v3  ;;  %v1605_v47 = vsel %vm1597_vm14, %v1584_v3, %v1587_v43  ;;  %v1602_v2 = vsel %vm1600_vm11, %v1590_v4, 2102212464 }
 0x274   : > { %v1606_v16 = vsel %vm1600_vm11, %v1593_v26, 920167782  ;;  %v1609_v25 = vsel %vm1597_vm14, %v1587_v43, %v1590_v4  ;;  %v1610_v56 = vsel %vm1600_vm11, %v1596_v63, 1326507024  ;;  %v5687_v62 = vpop.eup %5686  ;;  %v1603_v0 = vsel %vm1599_vm2, %v1587_v43, %v1602_v2 }
 0x275   : > { %v1530_v52 = vclz %v4907_v40  ;;  %v1607_v42 = vsel %vm1599_vm2, %v1590_v4, %v1606_v16  ;;  %v1611_v7 = vsel %vm1599_vm2, %v1593_v26, %v1610_v56  ;;  %v5689_v8 = vpop.eup %5688  ;;  %v1252_v9 = vxor.u32 2147483648, %v5687_v62 }
 0x276   : > { %v1604_v10 = vsel %vm1598_vm12, %v1601_v30, %v1603_v0  ;;  %v1608_v24 = vsel %vm1598_vm12, %v1605_v47, %v1607_v42  ;;  %v1612_v17 = vsel %vm1598_vm12, %v1609_v25, %v1611_v7  ;;  %v1249_v29 = vxor.u32 2147483648, %v5689_v8 }
 0x277   : > { %v4908_v21 = vadd.s32 4294967294, %v1530_v52  ;;  %v7591_v22 = vmul.u32.u64.low %v1613_v46, %v1612_v17  ;;  %v7592_v6 = vmul.u32.u64.high %v1613_v46, %v1612_v17, %v7591_v22  ;;  %v1253_v48 = vsel %vm1251_vm3, %v1252_v9, %v5689_v8 }
 0x278   : > { %v2090_v27 = vsel %vm2088_vm10, %v1252_v9, %v5689_v8  ;;  %v7598_v11 = vmul.u32.u64.low %v1613_v46, %v1608_v24  ;;  %v7599_v12 = vmul.u32.u64.high %v1613_v46, %v1608_v24, %v7598_v11  ;;  %v1250_v39 = vsel %vm1248_vm5, %v5687_v62, %v1249_v29 }
 0x279   : > { %v1988_v58 = vsel %vm1142_vm13, nan, %v1987_v38  ;;  %v2087_v41 = vsel %vm2085_vm6, %v5687_v62, %v1249_v29  ;;  %vm4909_vm15 = vcmp.lt.s32.totalorder %v4908_v21, 0  ;;  %v1254_v31 = vsel %vm1247_vm7, %v1250_v39, %v1253_v48 }
 0x27a   : > { %v2091_v45 = vsel %vm2084_vm8, %v2087_v41, %v2090_v27  ;;  %v1533_v55 = vsel %vm4909_vm15, 0, %v4908_v21  ;;  %v1255_v5 = vsel %vm1245_vm0, nan, %v1254_v31  ;;  %v1518_v19 = vadd.s32 %v7517_v18, %v7523_v54 }
 0x27b   : > { %v2092_v49 = vsel %vm1245_vm0, nan, %v2091_v45  ;;  %v1620_v34 = vmul.u32 %v1613_v46, %v1604_v10  ;;  %v1669_v51 = vpack.c.bf16 %v1255_v5, %v1152_v1  ;;  %v1534_v3 = vsub.s32 32, %v1533_v55 }
 0x27c   : > { %v2510_v53 = vpack.c.bf16 %v2092_v49, %v1988_v58  ;;  %v1538_v43 = vsub.s32 4294967266, %v1533_v55  ;;  %vm1622_vm13 = vc.u32 %v7592_v6, %v7598_v11  ;;  %v1623_v50 = vadd.s32 1, %v7599_v12 }
 0x27d   : > { %1674 = vst.msk [vmem:[#allocation2 + $0x8] sm:$0xff] %vm1672_vm9, %v1669_v51  ;;  %v1535_v61 = vshll.u32 %v7576_v36, %v1533_v55  ;;  %v1536_v4 = vshrl.u32 %v1518_v19, %v1534_v3  ;;  %vm1464_vm1 = vcmp.lt.s32.totalorder %v7311_v20, 0  ;;  %v1621_v0 = vadd.s32 %v7598_v11, %v7592_v6 }
 0x27e   : > { %2514 = vst.msk [vmem:[#allocation3 + $0x8] sm:$0xff] %vm1672_vm9, %v2510_v53  ;;  %v1539_v13 = vadd.s32 127, %v1538_v43  ;;  %v1624_v33 = vsel %vm1622_vm13, %v1623_v50, %v7599_v12  ;;  %vm7637_vm3 = vcmp.le.f32.partialorder %v1462_v57, 0.7853982  ;;  %vm1567_vm5 = vcmp.lt.s32.totalorder %v7453_v60, 0 }
 0x27f   : > { %v1625_v54 = vadd.s32 %v1624_v33, %v1620_v34  ;;  %v1537_v32 = vor.u32 %v1536_v4, %v1535_v61  ;;  %vm1566_vm6 = vcmp.le.f32.partialorder %v1565_v44, 0.7853982  ;;  %vm1554_vm11 = vweird.f32 %v7311_v20 }
 0x280   : > { %v1540_v18 = vshll.u32 %v1539_v13, 23 }
 0x281   : > { %v1626_v26 = vadd.s32 536870912, %v1625_v54  ;;  %v1544_v47 = vcvt.s32.f32 %v1537_v32 }
 0x282   : > { %v1541_v38 = vor.u32 4788187, %v1540_v18 }
 0x283   : > { %v1627_v37 = vshrl.u32 %v1626_v26, 30 }
 0x284   : > { %v2518_v46 = vld [vmem:[#allocation2 + $0x8] sm:$0xff]  ;;  %v1542_v30 = vand.u32 2147483647, %v1541_v38 }
 0x285   : > { %v7623_v1 = vld [vmem:[#allocation3 + $0x8] sm:$0xff]  ;;  %v1628_v40 = vshll.u32 %v1627_v37, 30  ;;  %v1651_v27 = vsub.s32 4, %v1627_v37 }
 0x286   : > { %v2532_v63 = vadd.bf16 %v7623_v1, %v2518_v46  ;;  %v1545_v16 = vmul.f32 %v1544_v47, %v1542_v30 }
 0x287   : > { %v1629_v2 = vsub.s32 %v1625_v54, %v1628_v40  ;;  %v1652_v58 = vsel %vm1567_vm5, %v1651_v27, %v1627_v37 }
 0x288   : > { %5161 = vmatmul.mubr.msk.bf16.vlgmr.msra.gmra.mrb[0].mxu0 %vm1672_vm9, %v2532_v63  ;;  %v1546_v62 = vxor.u32 2147483648, %v1545_v16  ;;  %v1654_v55 = vsel %vm1566_vm6, 0, %v1652_v58 }
 0x289   : > { %5179 = vmatpush3.bf16.msra.mxu0 %v7400_v23  ;;  %5180 = vmatprep.mubr.msk.bf16.mxu0 %vm1672_vm9, %v7241_v14  ;;  %v1631_v36 = vsub.s32 0, %v1629_v2  ;;  %v2498_v34 = vadd.s32 3, %v1654_v55  ;;  %v1658_v44 = vand.u32 3, %v1654_v55  ;;  %v7675_v14 = vld [vmem:[#allocation10] sm:$0xff]  }
 0x28a   : > { %v1547_v42 = vsel %vm1464_vm1, %v1546_v62, %v1545_v16 }
 0x28b   : > { %v4911_v25 = vmin.u32 %v1631_v36, %v1629_v2  ;;  %v1550_v17 = vsel %vm7637_vm3, %v7311_v20, %v1547_v42  ;;  %v2499_v3 = vand.u32 3, %v2498_v34  ;;  %vm1660_vm12 = vcmp.eq.s32.totalorder %v1658_v44, 0  ;;  %v5699_v20 = vld [vmem:[#allocation3] sm:$0xff] }
 0x28c   : > { %5690 = vcosq.f32 %v1550_v17  ;;  %vm1663_vm15 = vcmp.eq.s32.totalorder %v1658_v44, 2 }
 0x28d   : > { %v1633_v56 = vclz %v4911_v25  ;;  %5692 = vsinq.f32 %v1550_v17  ;;  %vm2504_vm13 = vcmp.eq.s32.totalorder %v2499_v3, 2 }
 0x28f   : > { %v4912_v52 = vadd.s32 4294967294, %v1633_v56 }
 0x290   : > { %5181 = vmatmul.mubr.msk.bf16.vlgmr.msra.gmra.mrb[4].mxu0 %vm1672_vm9, %v2518_v46 }
 0x291   : > { %5184 = vmatprep.mubr.msk.bf16.mxu0 %vm1672_vm9, %v7465_v15  ;;  %vm4913_vm4 = vcmp.lt.s32.totalorder %v4912_v52, 0  ;;  %v1548_v15 = vsub.s32 4, %v7555_v59 }
 0x292   : > { %v1636_v23 = vsel %vm4913_vm4, 0, %v4912_v52  ;;  %vm1659_vm4 = vcmp.lt.s32.totalorder %v1658_v44, 2 }
 0x293   : > { %v1637_v7 = vsub.s32 32, %v1636_v23  ;;  %v1638_v8 = vshll.u32 %v1629_v2, %v1636_v23  ;;  %v1641_v9 = vsub.s32 4294967266, %v1636_v23  ;;  %v1549_v6 = vsel %vm1464_vm1, %v1548_v15, %v7555_v59 }
 0x294   : > { %v1551_v11 = vsel %vm7637_vm3, 0, %v1549_v6  ;;  %vm2501_vm1 = vcmp.eq.s32.totalorder %v2499_v3, 0  ;;  %vm2500_vm3 = vcmp.lt.s32.totalorder %v2499_v3, 2 }
 0x295   : > { %v1639_v10 = vshrl.u32 %v1621_v0, %v1637_v7  ;;  %v1642_v24 = vadd.s32 127, %v1641_v9  ;;  %v2394_v41 = vadd.s32 3, %v1551_v11  ;;  %v1555_v49 = vand.u32 3, %v1551_v11  ;;  %v7673_v0 = vld [vmem:[#allocation7] sm:$0xff]  }
 0x296   : > { %v5691_v59 = vpop.eup %5690 }
 0x297   : > { %v1640_v29 = vor.u32 %v1639_v10, %v1638_v8  ;;  %v1643_v57 = vshll.u32 %v1642_v24, 23  ;;  %v5693_v5 = vpop.eup %5692  ;;  %v2395_v19 = vand.u32 3, %v2394_v41  ;;  %v1561_v53 = vxor.u32 2147483648, %v5691_v59 }
 0x298   : > { %v1558_v51 = vxor.u32 2147483648, %v5693_v5  ;;  %vm1557_vm7 = vcmp.eq.s32.totalorder %v1555_v49, 0  ;;  %vm1560_vm8 = vcmp.eq.s32.totalorder %v1555_v49, 2  ;;  %vm1556_vm10 = vcmp.lt.s32.totalorder %v1555_v49, 2 }
 0x299   : > { %v1644_v21 = vor.u32 4788187, %v1643_v57  ;;  %v1647_v22 = vcvt.s32.f32 %v1640_v29  ;;  %vm2397_vm0 = vcmp.eq.s32.totalorder %v2395_v19, 0  ;;  %vm2400_vm14 = vcmp.eq.s32.totalorder %v2395_v19, 2 }
 0x29a   : > { %vm2396_vm2 = vcmp.lt.s32.totalorder %v2395_v19, 2  ;;  %v1559_v43 = vsel %vm1557_vm7, %v5691_v59, %v1558_v51  ;;  %v1562_v50 = vsel %vm1560_vm8, %v1561_v53, %v5693_v5  ;;  %v2399_v13 = vsel %vm2397_vm0, %v5691_v59, %v1558_v51 }
 0x29b   : > { %v1645_v48 = vand.u32 2147483647, %v1644_v21  ;;  %v2402_v33 = vsel %vm2400_vm14, %v1561_v53, %v5693_v5  ;;  %v1563_v18 = vsel %vm1556_vm10, %v1559_v43, %v1562_v50  ;;  %vm3082_vm7 = vcmask 261120  }
 0x29c   : > { %v2403_v26 = vsel %vm2396_vm2, %v2399_v13, %v2402_v33  ;;  %v1564_v46 = vsel %vm1554_vm11, nan, %v1563_v18 }
 0x29d   : > { %v1648_v12 = vmul.f32 %v1647_v22, %v1645_v48  ;;  %v2404_v40 = vsel %vm1554_vm11, nan, %v2403_v26 }
 0x29f   : > { %v1649_v39 = vxor.u32 2147483648, %v1648_v12 }
 0x2a1   : > { %v1650_v31 = vsel %vm1567_vm5, %v1649_v39, %v1648_v12  ;;  %vm1657_vm5 = vweird.f32 %v7453_v60 }
 0x2a2   : > { %v1653_v45 = vsel %vm1566_vm6, %v7453_v60, %v1650_v31  ;;  %vm6292_vm6 = vmmov 0  }
 0x2a3   : > { %5694 = vcosq.f32 %v1653_v45 }
 0x2a4   : > { %5696 = vsinq.f32 %v1653_v45 }
 0x2ad   : > { %v5695_v61 = vpop.eup %5694 }
 0x2ae   : > { %v5697_v4 = vpop.eup %5696  ;;  %v1664_v54 = vxor.u32 2147483648, %v5695_v61 }
 0x2af   : > { %v1661_v32 = vxor.u32 2147483648, %v5697_v4 }
 0x2b0   : > { %v1665_v38 = vsel %vm1663_vm15, %v1664_v54, %v5697_v4  ;;  %v2506_v37 = vsel %vm2504_vm13, %v1664_v54, %v5697_v4  ;;  %v7693_v4 = vld [vmem:[#allocation10 + $0x8] sm:$0xff]  }
 0x2b1   : > { %v1662_v63 = vsel %vm1660_vm12, %v5695_v61, %v1661_v32  ;;  %v2503_v30 = vsel %vm2501_vm1, %v5695_v61, %v1661_v32 }
 0x2b2   : > { %v1666_v47 = vsel %vm1659_vm4, %v1662_v63, %v1665_v38  ;;  %v2507_v2 = vsel %vm2500_vm3, %v2503_v30, %v2506_v37  ;;  %v7695_v38 = vld [vmem:[#allocation7 + $0x8] sm:$0xff]   ;;  %v7697_v63 = vld [vmem:[#allocation9] sm:$0xff]  }
 0x2b3   : > { %v1667_v36 = vsel %vm1657_vm5, nan, %v1666_v47  ;;  %v2508_v16 = vsel %vm1657_vm5, nan, %v2507_v2 }
 0x2b4   : > { %v1671_v25 = vpack.c.bf16 %v1667_v36, %v1564_v46  ;;  %v2512_v56 = vpack.c.bf16 %v2508_v16, %v2404_v40  ;;  %v7717_v16 = vld [vmem:[#allocation9 + $0x8] sm:$0xff]  }
 0x2b6   : > { %1676 = vst.msk [vmem:[#allocation2 + $0x18] sm:$0xff] %vm1672_vm9, %v1671_v25  ;;  %2516 = vst.msk [vmem:[#allocation3 + $0x18] sm:$0xff] %vm1672_vm9, %v2512_v56  ;;  %v6291_v25 = vmov 0.0  }
 0x2bd   : > { %v2520_v60 = vld [vmem:[#allocation2 + $0x18] sm:$0xff] }
 0x2be   : > { %v2524_v62 = vld [vmem:[#allocation3 + $0x18] sm:$0xff]  ;;  %5185 = vmatmul.mubr.msk.bf16.gmra.mrb[8].mxu0 %vm1672_vm9, %v2520_v60 }
 0x2bf   : > { %v2534_v52 = vadd.bf16 %v2524_v62, %v2520_v60  ;;  %5202 = vmatprep.mubr.msk.bf16.mxu0 %vm1672_vm9, %v7675_v14 }
 0x2c1   : > { %5165 = vmatmul.mubr.msk.bf16.vlgmr.msra.gmra.mrb[0].mxu1 %vm1672_vm9, %v2534_v52 }
 0x2c2   : > { %5169 = vmatpush3.bf16.msra.mxu1 %v7398_v28  ;;  %5170 = vmatprep.mubr.msk.bf16.mxu1 %vm1672_vm9, %v5699_v20 }
 0x2c9   : > { %5171 = vmatmul.mubr.msk.bf16.vlgmr.msra.gmra.mrb[4].mxu1 %vm1672_vm9, %v7623_v1 }
 0x2ca   : > { %5174 = vmatprep.mubr.msk.bf16.mxu1 %vm1672_vm9, %v7467_v35 }
 0x2d1   : > { %5175 = vmatmul.mubr.msk.bf16.gmra.mrb[8].mxu1 %vm1672_vm9, %v2524_v62 }
 0x2d2   : > { %5190 = vmatprep.mubr.msk.bf16.mxu1 %vm1672_vm9, %v7673_v0 }
 0x35b   : > { %v5162_v28 = vpop.f32.mrb[0].mxu0 }
 0x35c   : > { %v2588_v23 = vpop.f32.mrb[1].mxu0 }
 0x35d   : > { %v5163_v42 = vpop.f32.mrb[2].mxu0 }
 0x35e   : > { %v2591_v7 = vpop.f32.mrb[3].mxu0 }
 0x363   : > { %v5182_v1 = vpop.f32.mrb[4].mxu0 }
 0x364   : > { %v2795_v8 = vadd.f32 %v5182_v1, %v5162_v28  ;;  %v2754_v9 = vpop.f32.mrb[5].mxu0  ;;  %v5052_v1 = vld [vmem:[#allocation18 + $0x8] sm:$0xff]  }
 0x365   : > { %v2793_v35 = vadd.f32 %v2754_v9, %v2588_v23  ;;  %v5183_v10 = vpop.f32.mrb[6].mxu0 }
 0x366   : > { %v2796_v24 = vadd.f32 %v5183_v10, %v5163_v42  ;;  %v2757_v15 = vpop.f32.mrb[7].mxu0  ;;  %v5036_v10 = vld [vmem:[#allocation16] sm:$0xff]  }
 0x367   : > { %v2794_v17 = vadd.f32 %v2757_v15, %v2591_v7 }
 0x368   : > { %v7681_v29 = vpack.c.bf16 %v2796_v24, %v2795_v8  ;;  %v5044_v8 = vld [vmem:[#allocation18] sm:$0xff]  }
 0x369   : > { %v2805_v57 = vpack.c.bf16 %v2794_v17, %v2793_v35 }
 0x391   : > { %v5186_v21 = vpop.f32.mrb[8].mxu0 }
 0x392   : > { %v2770_v22 = vpop.f32.mrb[9].mxu0 }
 0x393   : > { %v5187_v48 = vpop.f32.mrb[10].mxu0 }
 0x394   : > { %v5166_v6 = vpop.f32.mrb[0].mxu1  ;;  %v2773_v12 = vpop.f32.mrb[11].mxu0 }
 0x395   : > { %v2604_v27 = vpop.f32.mrb[1].mxu1  ;;  %v2799_v11 = vadd.f32 %v5186_v21, %v5166_v6  ;;  %v7731_v21 = vunpack.c.l.bf16 %v5044_v8 }
 0x396   : > { %v5167_v39 = vpop.f32.mrb[2].mxu1  ;;  %v2797_v58 = vadd.f32 %v2770_v22, %v2604_v27  ;;  %v7733_v22 = vunpack.c.l.bf16 %v5036_v10 }
 0x397   : > { %v2607_v41 = vpop.f32.mrb[3].mxu1  ;;  %v2800_v31 = vadd.f32 %v5187_v48, %v5167_v39  ;;  %v7737_v48 = vunpack.c.h.bf16 %v5052_v1 }
 0x398   : > { %v2798_v45 = vadd.f32 %v2773_v12, %v2607_v41  ;;  %v7741_v12 = vunpack.c.h.bf16 %v5036_v10 }
 0x399   : > { %v7683_v55 = vpack.c.bf16 %v2800_v31, %v2799_v11 }
 0x39a   : > { %v7685_v59 = vpack.c.bf16 %v2798_v45, %v2797_v58 }
 0x39c   : > { %v5172_v5 = vpop.f32.mrb[4].mxu1 }
 0x39d   : > { %v2787_v49 = vsub.f32 %v5162_v28, %v5172_v5  ;;  %v2671_v19 = vpop.f32.mrb[5].mxu1 }
 0x39e   : > { %v2785_v34 = vsub.f32 %v2588_v23, %v2671_v19  ;;  %v5173_v51 = vpop.f32.mrb[6].mxu1 }
 0x39f   : > { %v2788_v53 = vsub.f32 %v5163_v42, %v5173_v51  ;;  %v2674_v44 = vpop.f32.mrb[7].mxu1 }
 0x3a0   : > { %v2786_v3 = vsub.f32 %v2591_v7, %v2674_v44  ;;  %v5051_v7 = vld [vmem:[#allocation16 + $0x8] sm:$0xff]  }
 0x3a1   : > { %v7687_v43 = vpack.c.bf16 %v2788_v53, %v2787_v49  ;;  %v7727_v17 = vunpack.c.l.bf16 %v5051_v7 }
 0x3a2   : > { %v2801_v50 = vpack.c.bf16 %v2786_v3, %v2785_v34 }
 0x3a3   : > { %v7691_v13 = vadd.bf16 %v7681_v29, %v7687_v43 }
 0x3a4   : > { %v5176_v33 = vpop.f32.mrb[8].mxu1  ;;  %5200 = vmatprep.subr.bf16.mxu0 %v2801_v50  ;;  %v2835_v61 = vadd.bf16 %v2805_v57, %v2801_v50 }
 0x3a5   : > { %v2791_v18 = vsub.f32 %v5166_v6, %v5176_v33  ;;  %v2687_v54 = vpop.f32.mrb[9].mxu1  ;;  %5201 = vmatpush3.bf16.msra.mxu0 %v2801_v50  ;;  %v7735_v6 = vunpack.c.h.bf16 %v5051_v7 }
 0x3a6   : > { %v2789_v26 = vsub.f32 %v2604_v27, %v2687_v54  ;;  %v5177_v32 = vpop.f32.mrb[10].mxu1  ;;  %5188 = vmatprep.subr.bf16.mxu1 %v2835_v61  ;;  %5214 = vmatprep.subr.bf16.mxu0 %v6291_v25  ;;  %v7739_v27 = vunpack.c.h.bf16 %v5044_v8 }
 0x3a7   : > { %v2792_v37 = vsub.f32 %v5167_v39, %v5177_v32  ;;  %v2690_v46 = vpop.f32.mrb[11].mxu1  ;;  %5189 = vmatpush3.bf16.msra.mxu1 %v2835_v61 }
 0x3a8   : > { %v2790_v40 = vsub.f32 %v2607_v41, %v2690_v46  ;;  %5194 = vmatprep.subr.bf16.mxu1 %v2805_v57  ;;  %5203 = vmatmul.mubr.msk.bf16.vlgmr.msra.gmra.mrb[12].mxu0 %vm1672_vm9, %v7693_v4 }
 0x3a9   : > { %v7701_v30 = vpack.c.bf16 %v2792_v37, %v2791_v18  ;;  %5218 = vmatprep.mubr.msk.bf16.mxu0 %vm6292_vm6, %v6291_v25 }
 0x3aa   : > { %v7703_v47 = vpack.c.bf16 %v2790_v40, %v2789_v26  ;;  %5191 = vmatmul.mubr.msk.bf16.vlgmr.msra.gmra.mrb[12].mxu1 %vm1672_vm9, %v7695_v38 }
 0x3ab   : > { %5195 = vmatpush3.bf16.msra.mxu1 %v2805_v57  ;;  %5196 = vmatprep.mubr.msk.bf16.mxu1 %vm1672_vm9, %v7697_v63  ;;  %v7711_v2 = vadd.bf16 %v7683_v55, %v7701_v30  ;;  %v7729_v57 = vunpack.c.l.bf16 %v5052_v1 }
 0x3ac   : > { %v7715_v36 = vadd.bf16 %v7685_v59, %v7703_v47  ;;  %5206 = vmatprep.subr.bf16.mxu1 %v6291_v25 }
 0x3b2   : > { %5197 = vmatmul.mubr.msk.bf16.vlgmr.msra.gmra.mrb[16].mxu1 %vm1672_vm9, %v7717_v16 }
 0x3b3   : > { %5210 = vmatprep.mubr.msk.bf16.mxu1 %vm6292_vm6, %v6291_v25 }
 0x47b   : > { %v5204_v56 = vpop.f32.mrb[12].mxu0 }
 0x47c   : > { %v3016_v60 = vpop.f32.mrb[13].mxu0 }
 0x47d   : > { %v5192_v62 = vpop.f32.mrb[12].mxu1  ;;  %v5205_v52 = vpop.f32.mrb[14].mxu0 }
 0x47e   : > { %v2886_v20 = vpop.f32.mrb[13].mxu1  ;;  %v3037_v28 = vadd.f32 %v5204_v56, %v5192_v62  ;;  %v3019_v23 = vpop.f32.mrb[15].mxu0 }
 0x47f   : > { %v5193_v42 = vpop.f32.mrb[14].mxu1  ;;  %v3035_v9 = vadd.f32 %v3016_v60, %v2886_v20 }
 0x480   : > { %v2889_v35 = vpop.f32.mrb[15].mxu1  ;;  %v3038_v24 = vadd.f32 %v5205_v52, %v5193_v42  ;;  %v3053_v58 = vmul.f32 %v7729_v57, %v3037_v28  ;;  %v3067_v41 = vmul.f32 %v7727_v17, %v3037_v28 }
 0x481   : > { %v3036_v15 = vadd.f32 %v3019_v23, %v2889_v35  ;;  %v3051_v45 = vmul.f32 %v7731_v21, %v3035_v9  ;;  %v3065_v49 = vmul.f32 %v7733_v22, %v3035_v9 }
 0x482   : > { %v3054_v34 = vmul.f32 %v7737_v48, %v3038_v24  ;;  %v3068_v51 = vmul.f32 %v7735_v6, %v3038_v24  ;;  %v7761_v24 = vld [vmem:[#allocation21] sm:$0xff]  }
 0x483   : > { %v3052_v33 = vmul.f32 %v7739_v27, %v3036_v15  ;;  %v3066_v26 = vmul.f32 %v7741_v12, %v3036_v15  ;;  %v7764_v15 = vld [vmem:[#allocation19] sm:$0xff]  }
 0x485   : > { %v5198_v11 = vpop.f32.mrb[16].mxu1 }
 0x486   : > { %v3033_v39 = vsub.f32 %v5192_v62, %v5198_v11  ;;  %v2951_v31 = vpop.f32.mrb[17].mxu1  ;;  %v7778_v11 = vld [vmem:[#allocation22] sm:$0xff]  }
 0x487   : > { %v3031_v5 = vsub.f32 %v2886_v20, %v2951_v31  ;;  %v5199_v19 = vpop.f32.mrb[18].mxu1 }
 0x488   : > { %v3045_v53 = vmul.f32 %v7727_v17, %v3033_v39  ;;  %v3063_v44 = vmul.f32 %v7729_v57, %v3033_v39  ;;  %v3034_v3 = vsub.f32 %v5193_v42, %v5199_v19  ;;  %v2954_v50 = vpop.f32.mrb[19].mxu1 }
 0x489   : > { %v3043_v61 = vmul.f32 %v7733_v22, %v3031_v5  ;;  %v3061_v18 = vmul.f32 %v7731_v21, %v3031_v5  ;;  %v3032_v54 = vsub.f32 %v2889_v35, %v2954_v50 }
 0x48a   : > { %v3057_v32 = vsub.f32 %v3045_v53, %v3053_v58  ;;  %v3071_v37 = vadd.f32 %v3067_v41, %v3063_v44  ;;  %v3046_v46 = vmul.f32 %v7735_v6, %v3034_v3  ;;  %v3064_v40 = vmul.f32 %v7737_v48, %v3034_v3 }
 0x48b   : > { %v3055_v56 = vsub.f32 %v3043_v61, %v3051_v45  ;;  %v3069_v60 = vadd.f32 %v3065_v49, %v3061_v18  ;;  %v3044_v62 = vmul.f32 %v7741_v12, %v3032_v54  ;;  %v3062_v52 = vmul.f32 %v7739_v27, %v3032_v54 }
 0x48c   : > { %v3058_v20 = vsub.f32 %v3046_v46, %v3054_v34  ;;  %v3072_v28 = vadd.f32 %v3068_v51, %v3064_v40 }
 0x48d   : > { %v3056_v23 = vsub.f32 %v3044_v62, %v3052_v33  ;;  %v3070_v42 = vadd.f32 %v3066_v26, %v3062_v52 }
 0x48e   : > { %v3060_v7 = vpack.c.bf16 %v3058_v20, %v3057_v32  ;;  %v3074_v1 = vpack.c.bf16 %v3072_v28, %v3071_v37 }
 0x48f   : > { %v3059_v8 = vpack.c.bf16 %v3056_v23, %v3055_v56  ;;  %v3073_v9 = vpack.c.bf16 %v3070_v42, %v3069_v60 }
 0x490   : > { %v3076_v35 = vadd.bf16 %v3074_v1, %v3060_v7 }
 0x491   : > { %5215 = vmatpush3.bf16.msra.mxu0 %v3073_v9  ;;  %v3075_v10 = vadd.bf16 %v3073_v9, %v3059_v8 }
 0x492   : > { %5216 = vmatprep.subr.bf16.mxu0 %v6291_v25 }
 0x493   : > { %5207 = vmatpush3.bf16.msra.mxu1 %v3075_v10 }
 0x494   : > { %5208 = vmatprep.subr.bf16.mxu1 %v6291_v25 }
 0x495   : > { %5217 = vmatpush3.bf16.msra.mxu0 %v3074_v1 }
 0x496   : > { %5230 = vmatprep.subr.bf16.mxu0 %v7691_v13 }
 0x497   : > { %5209 = vmatpush3.bf16.msra.mxu1 %v3076_v35 }
 0x498   : > { %5219 = vmatmul.mubr.msk.bf16.vlgmr.msra.gmra.mrb[16].mxu0 %vm3082_vm7, %v7761_v24  ;;  %5222 = vmatprep.subr.bf16.mxu1 %v6291_v25 }
 0x499   : > { %5231 = vmatpush3.bf16.msra.mxu0 %v7691_v13  ;;  %5232 = vmatprep.mubr.msk.bf16.mxu0 %vm1672_vm9, %v7673_v0 }
 0x49a   : > { %5211 = vmatmul.mubr.msk.bf16.vlgmr.msra.gmra.mrb[20].mxu1 %vm3082_vm7, %v7764_v15  ;;  %5242 = vmatprep.subr.bf16.mxu0 %v7687_v43 }
 0x49b   : > { %5223 = vmatpush3.bf16.msra.mxu1 %v3059_v8  ;;  %5226 = vmatprep.mubr.msk.bf16.mxu1 %vm6292_vm6, %v6291_v25 }
 0x49c   : > { %5224 = vmatprep.subr.bf16.mxu1 %v6291_v25 }
 0x49f   : > { %5225 = vmatpush3.bf16.msra.mxu1 %v3060_v7 }
 0x4a0   : > { %5233 = vmatmul.mubr.msk.bf16.vlgmr.msra.gmra.mrb[20].mxu0 %vm1672_vm9, %v7695_v38  ;;  %5236 = vmatprep.subr.bf16.mxu1 %v7681_v29 }
 0x4a1   : > { %5243 = vmatpush3.bf16.msra.mxu0 %v7687_v43  ;;  %5244 = vmatprep.mubr.msk.bf16.mxu0 %vm1672_vm9, %v7675_v14 }
 0x4a2   : > { %5227 = vmatmul.mubr.msk.bf16.vlgmr.msra.gmra.mrb[24].mxu1 %vm3082_vm7, %v7778_v11  ;;  %5256 = vmatprep.subr.bf16.mxu0 %v6291_v25 }
 0x4a3   : > { %5237 = vmatpush3.bf16.msra.mxu1 %v7681_v29  ;;  %5238 = vmatprep.mubr.msk.bf16.mxu1 %vm1672_vm9, %v7697_v63 }
 0x4a4   : > { %5248 = vmatprep.subr.bf16.mxu1 %v6291_v25 }
 0x4a8   : > { %5245 = vmatmul.mubr.msk.bf16.vlgmr.msra.gmra.mrb[24].mxu0 %vm1672_vm9, %v7693_v4 }
 0x4a9   : > { %5260 = vmatprep.mubr.msk.bf16.mxu0 %vm6292_vm6, %v6291_v25 }
 0x4aa   : > { %5239 = vmatmul.mubr.msk.bf16.vlgmr.msra.gmra.mrb[28].mxu1 %vm1672_vm9, %v7717_v16 }
 0x4ab   : > { %5252 = vmatprep.mubr.msk.bf16.mxu1 %vm6292_vm6, %v6291_v25 }
 0x56b   : > { %v3169_v43 = vpop.f32.mrb[16].mxu0 }
 0x56c   : > { %v5220_v13 = vpop.f32.mrb[17].mxu0 }
 0x56d   : > { %v3120_v29 = vpop.f32.mrb[20].mxu1  ;;  %v3172_v39 = vpop.f32.mrb[18].mxu0 }
 0x56e   : > { %v5212_v58 = vpop.f32.mrb[21].mxu1  ;;  %v3225_v41 = vsub.f32 %v3120_v29, %v3169_v43  ;;  %v5221_v31 = vpop.f32.mrb[19].mxu0 }
 0x56f   : > { %v3123_v45 = vpop.f32.mrb[22].mxu1 }
 0x570   : > { %v5213_v5 = vpop.f32.mrb[23].mxu1  ;;  %v3226_v49 = vsub.f32 %v3123_v45, %v3172_v39 }
 0x572   : > { %v7801_v19 = vpack.c.bf16 %v3226_v49, %v3225_v41 }
 0x573   : > { %v5234_v34 = vpop.f32.mrb[20].mxu0 }
 0x574   : > { %v3266_v51 = vpop.f32.mrb[21].mxu0 }
 0x575   : > { %v3218_v53 = vpop.f32.mrb[24].mxu1  ;;  %v5235_v44 = vpop.f32.mrb[22].mxu0 }
 0x576   : > { %v3227_v3 = vadd.f32 %v3218_v53, %v3120_v29  ;;  %v5228_v50 = vpop.f32.mrb[25].mxu1  ;;  %v3269_v33 = vpop.f32.mrb[23].mxu0 }
 0x577   : > { %v3221_v61 = vpop.f32.mrb[26].mxu1 }
 0x578   : > { %v3228_v18 = vadd.f32 %v3221_v61, %v3123_v45  ;;  %v5229_v54 = vpop.f32.mrb[27].mxu1 }
 0x57a   : > { %v7803_v26 = vpack.c.bf16 %v3228_v18, %v3227_v3 }
 0x57b   : > { %v5246_v32 = vpop.f32.mrb[24].mxu0 }
 0x57c   : > { %v3385_v37 = vadd.f32 %v5246_v32, %v5234_v34  ;;  %v3364_v46 = vpop.f32.mrb[25].mxu0 }
 0x57d   : > { %v5240_v40 = vpop.f32.mrb[28].mxu1  ;;  %v3383_v56 = vadd.f32 %v3364_v46, %v3266_v51  ;;  %v5247_v60 = vpop.f32.mrb[26].mxu0 }
 0x57e   : > { %v3381_v62 = vsub.f32 %v5234_v34, %v5240_v40  ;;  %v3393_v52 = vmul.f32 %v7729_v57, %v3385_v37  ;;  %v3407_v20 = vmul.f32 %v7727_v17, %v3385_v37  ;;  %v3315_v28 = vpop.f32.mrb[29].mxu1  ;;  %v3386_v23 = vadd.f32 %v5247_v60, %v5235_v44  ;;  %v3367_v42 = vpop.f32.mrb[27].mxu0 }
 0x57f   : > { %v3379_v7 = vsub.f32 %v3266_v51, %v3315_v28  ;;  %v3391_v1 = vmul.f32 %v7731_v21, %v3383_v56  ;;  %v3405_v8 = vmul.f32 %v7733_v22, %v3383_v56  ;;  %v5241_v9 = vpop.f32.mrb[30].mxu1  ;;  %v3384_v35 = vadd.f32 %v3367_v42, %v3269_v33 }
 0x580   : > { %v3389_v10 = vmul.f32 %v7727_v17, %v3381_v62  ;;  %v3403_v43 = vmul.f32 %v7729_v57, %v3381_v62  ;;  %v3382_v13 = vsub.f32 %v5235_v44, %v5241_v9  ;;  %v3394_v29 = vmul.f32 %v7737_v48, %v3386_v23  ;;  %v3318_v39 = vpop.f32.mrb[31].mxu1 }
 0x581   : > { %v3387_v58 = vmul.f32 %v7733_v22, %v3379_v7  ;;  %v3401_v41 = vmul.f32 %v7731_v21, %v3379_v7  ;;  %v3408_v31 = vmul.f32 %v7735_v6, %v3386_v23  ;;  %v3380_v45 = vsub.f32 %v3269_v33, %v3318_v39 }
 0x582   : > { %v3397_v5 = vsub.f32 %v3389_v10, %v3393_v52  ;;  %v3411_v49 = vadd.f32 %v3407_v20, %v3403_v43  ;;  %v3390_v34 = vmul.f32 %v7735_v6, %v3382_v13  ;;  %v3404_v51 = vmul.f32 %v7737_v48, %v3382_v13 }
 0x583   : > { %v3395_v53 = vsub.f32 %v3387_v58, %v3391_v1  ;;  %v3409_v3 = vadd.f32 %v3405_v8, %v3401_v41  ;;  %v3388_v44 = vmul.f32 %v7741_v12, %v3380_v45  ;;  %v3402_v50 = vmul.f32 %v7739_v27, %v3380_v45 }
 0x584   : > { %v3398_v61 = vsub.f32 %v3390_v34, %v3394_v29  ;;  %v3412_v18 = vadd.f32 %v3408_v31, %v3404_v51  ;;  %v3392_v54 = vmul.f32 %v7739_v27, %v3384_v35  ;;  %v3406_v32 = vmul.f32 %v7741_v12, %v3384_v35 }
 0x586   : > { %v3400_v37 = vpack.c.bf16 %v3398_v61, %v3397_v5  ;;  %v3414_v33 = vpack.c.bf16 %v3412_v18, %v3411_v49  ;;  %v3396_v46 = vsub.f32 %v3388_v44, %v3392_v54  ;;  %v3410_v40 = vadd.f32 %v3406_v32, %v3402_v50 }
 0x588   : > { %v3399_v56 = vpack.c.bf16 %v3396_v46, %v3395_v53  ;;  %v3413_v60 = vpack.c.bf16 %v3410_v40, %v3409_v3  ;;  %v3416_v62 = vadd.bf16 %v3414_v33, %v3400_v37 }
 0x58a   : > { %5257 = vmatpush3.bf16.msra.mxu0 %v3413_v60  ;;  %v3415_v52 = vadd.bf16 %v3413_v60, %v3399_v56 }
 0x58b   : > { %5258 = vmatprep.subr.bf16.mxu0 %v6291_v25 }
 0x58c   : > { %5249 = vmatpush3.bf16.msra.mxu1 %v3415_v52 }
 0x58d   : > { %5250 = vmatprep.subr.bf16.mxu1 %v6291_v25 }
 0x58e   : > { %5259 = vmatpush3.bf16.msra.mxu0 %v3414_v33 }
 0x58f   : > { %5272 = vmatprep.subr.bf16.mxu0 %v7715_v36 }
 0x590   : > { %5251 = vmatpush3.bf16.msra.mxu1 %v3416_v62 }
 0x591   : > { %5261 = vmatmul.mubr.msk.bf16.vlgmr.msra.gmra.mrb[28].mxu0 %vm3082_vm7, %v7761_v24  ;;  %5264 = vmatprep.subr.bf16.mxu1 %v6291_v25 }
 0x592   : > { %5273 = vmatpush3.bf16.msra.mxu0 %v7715_v36  ;;  %5274 = vmatprep.mubr.msk.bf16.mxu0 %vm1672_vm9, %v7673_v0 }
 0x593   : > { %5253 = vmatmul.mubr.msk.bf16.vlgmr.msra.gmra.mrb[32].mxu1 %vm3082_vm7, %v7764_v15  ;;  %5284 = vmatprep.subr.bf16.mxu0 %v7703_v47 }
 0x594   : > { %5265 = vmatpush3.bf16.msra.mxu1 %v3399_v56  ;;  %5268 = vmatprep.mubr.msk.bf16.mxu1 %vm6292_vm6, %v6291_v25 }
 0x595   : > { %5266 = vmatprep.subr.bf16.mxu1 %v6291_v25 }
 0x598   : > { %5267 = vmatpush3.bf16.msra.mxu1 %v3400_v37 }
 0x599   : > { %5275 = vmatmul.mubr.msk.bf16.vlgmr.msra.gmra.mrb[32].mxu0 %vm1672_vm9, %v7695_v38  ;;  %5278 = vmatprep.subr.bf16.mxu1 %v7685_v59 }
 0x59a   : > { %5285 = vmatpush3.bf16.msra.mxu0 %v7703_v47  ;;  %5286 = vmatprep.mubr.msk.bf16.mxu0 %vm1672_vm9, %v7675_v14 }
 0x59b   : > { %5269 = vmatmul.mubr.msk.bf16.vlgmr.msra.gmra.mrb[36].mxu1 %vm3082_vm7, %v7778_v11  ;;  %5298 = vmatprep.subr.bf16.mxu0 %v6291_v25 }
 0x59c   : > { %5279 = vmatpush3.bf16.msra.mxu1 %v7685_v59  ;;  %5280 = vmatprep.mubr.msk.bf16.mxu1 %vm1672_vm9, %v7697_v63 }
 0x59d   : > { %5290 = vmatprep.subr.bf16.mxu1 %v6291_v25 }
 0x5a1   : > { %5287 = vmatmul.mubr.msk.bf16.vlgmr.msra.gmra.mrb[36].mxu0 %vm1672_vm9, %v7693_v4 }
 0x5a2   : > { %5302 = vmatprep.mubr.msk.bf16.mxu0 %vm6292_vm6, %v6291_v25 }
 0x5a3   : > { %5281 = vmatmul.mubr.msk.bf16.vlgmr.msra.gmra.mrb[40].mxu1 %vm1672_vm9, %v7717_v16 }
 0x5a4   : > { %5294 = vmatprep.mubr.msk.bf16.mxu1 %vm6292_vm6, %v6291_v25 }
 0x664   : > { %v3492_v47 = vpop.f32.mrb[28].mxu0 }
 0x665   : > { %v5262_v36 = vpop.f32.mrb[29].mxu0 }
 0x666   : > { %v3451_v59 = vpop.f32.mrb[32].mxu1  ;;  %v3495_v20 = vpop.f32.mrb[30].mxu0 }
 0x667   : > { %v5254_v28 = vpop.f32.mrb[33].mxu1  ;;  %v3540_v23 = vsub.f32 %v3451_v59, %v3492_v47  ;;  %v5263_v42 = vpop.f32.mrb[31].mxu0 }
 0x668   : > { %v3454_v7 = vpop.f32.mrb[34].mxu1 }
 0x669   : > { %v5255_v1 = vpop.f32.mrb[35].mxu1  ;;  %v3541_v8 = vsub.f32 %v3454_v7, %v3495_v20 }
 0x66b   : > { %v7857_v9 = vpack.c.bf16 %v3541_v8, %v3540_v23 }
 0x66c   : > { %v5276_v35 = vpop.f32.mrb[32].mxu0 }
 0x66d   : > { %v3581_v10 = vpop.f32.mrb[33].mxu0 }
 0x66e   : > { %v3533_v43 = vpop.f32.mrb[36].mxu1  ;;  %v5277_v13 = vpop.f32.mrb[34].mxu0 }
 0x66f   : > { %v3542_v29 = vadd.f32 %v3533_v43, %v3451_v59  ;;  %v5270_v39 = vpop.f32.mrb[37].mxu1  ;;  %v3584_v58 = vpop.f32.mrb[35].mxu0 }
 0x670   : > { %v3536_v41 = vpop.f32.mrb[38].mxu1 }
 0x671   : > { %v3543_v31 = vadd.f32 %v3536_v41, %v3454_v7  ;;  %v5271_v45 = vpop.f32.mrb[39].mxu1 }
 0x673   : > { %v7859_v5 = vpack.c.bf16 %v3543_v31, %v3542_v29 }
 0x674   : > { %v5288_v49 = vpop.f32.mrb[36].mxu0 }
 0x675   : > { %v3700_v34 = vadd.f32 %v5288_v49, %v5276_v35  ;;  %v3679_v51 = vpop.f32.mrb[37].mxu0 }
 0x676   : > { %v5282_v53 = vpop.f32.mrb[40].mxu1  ;;  %v3698_v3 = vadd.f32 %v3679_v51, %v3581_v10  ;;  %v5289_v44 = vpop.f32.mrb[38].mxu0 }
 0x677   : > { %v3696_v50 = vsub.f32 %v5276_v35, %v5282_v53  ;;  %v3708_v61 = vmul.f32 %v7729_v57, %v3700_v34  ;;  %v3722_v18 = vmul.f32 %v7727_v17, %v3700_v34  ;;  %v3630_v54 = vpop.f32.mrb[41].mxu1  ;;  %v3701_v32 = vadd.f32 %v5289_v44, %v5277_v13  ;;  %v3682_v37 = vpop.f32.mrb[39].mxu0 }
 0x678   : > { %v3694_v33 = vsub.f32 %v3581_v10, %v3630_v54  ;;  %v3706_v46 = vmul.f32 %v7731_v21, %v3698_v3  ;;  %v3720_v40 = vmul.f32 %v7733_v22, %v3698_v3  ;;  %v5283_v56 = vpop.f32.mrb[42].mxu1  ;;  %v3699_v60 = vadd.f32 %v3682_v37, %v3584_v58 }
 0x679   : > { %v3704_v62 = vmul.f32 %v7727_v17, %v3696_v50  ;;  %v3718_v52 = vmul.f32 %v7729_v57, %v3696_v50  ;;  %v3697_v47 = vsub.f32 %v5277_v13, %v5283_v56  ;;  %v3709_v36 = vmul.f32 %v7737_v48, %v3701_v32  ;;  %v3633_v59 = vpop.f32.mrb[43].mxu1 }
 0x67a   : > { %v3702_v20 = vmul.f32 %v7733_v22, %v3694_v33  ;;  %v3716_v28 = vmul.f32 %v7731_v21, %v3694_v33  ;;  %v3723_v23 = vmul.f32 %v7735_v6, %v3701_v32  ;;  %v3695_v42 = vsub.f32 %v3584_v58, %v3633_v59 }
 0x67b   : > { %v3712_v7 = vsub.f32 %v3704_v62, %v3708_v61  ;;  %v3726_v1 = vadd.f32 %v3722_v18, %v3718_v52  ;;  %v3705_v8 = vmul.f32 %v7735_v6, %v3697_v47  ;;  %v3719_v35 = vmul.f32 %v7737_v48, %v3697_v47 }
 0x67c   : > { %v3710_v10 = vsub.f32 %v3702_v20, %v3706_v46  ;;  %v3724_v43 = vadd.f32 %v3720_v40, %v3716_v28  ;;  %v3703_v13 = vmul.f32 %v7741_v12, %v3695_v42  ;;  %v3717_v29 = vmul.f32 %v7739_v27, %v3695_v42 }
 0x67d   : > { %v3713_v39 = vsub.f32 %v3705_v8, %v3709_v36  ;;  %v3727_v41 = vadd.f32 %v3723_v23, %v3719_v35  ;;  %v3707_v31 = vmul.f32 %v7739_v27, %v3699_v60  ;;  %v3721_v45 = vmul.f32 %v7741_v12, %v3699_v60 }
 0x67f   : > { %v3715_v49 = vpack.c.bf16 %v3713_v39, %v3712_v7  ;;  %v3729_v58 = vpack.c.bf16 %v3727_v41, %v3726_v1  ;;  %v3711_v34 = vsub.f32 %v3703_v13, %v3707_v31  ;;  %v3725_v51 = vadd.f32 %v3721_v45, %v3717_v29 }
 0x681   : > { %v3714_v53 = vpack.c.bf16 %v3711_v34, %v3710_v10  ;;  %v3728_v3 = vpack.c.bf16 %v3725_v51, %v3724_v43  ;;  %v3731_v44 = vadd.bf16 %v3729_v58, %v3715_v49 }
 0x683   : > { %5299 = vmatpush3.bf16.msra.mxu0 %v3728_v3  ;;  %v3730_v50 = vadd.bf16 %v3728_v3, %v3714_v53 }
 0x684   : > { %5300 = vmatprep.subr.bf16.mxu0 %v6291_v25 }
 0x685   : > { %5291 = vmatpush3.bf16.msra.mxu1 %v3730_v50 }
 0x686   : > { %5292 = vmatprep.subr.bf16.mxu1 %v6291_v25 }
 0x687   : > { %5301 = vmatpush3.bf16.msra.mxu0 %v3729_v58 }
 0x688   : > { %5314 = vmatprep.subr.bf16.mxu0 %v7711_v2 }
 0x689   : > { %5293 = vmatpush3.bf16.msra.mxu1 %v3731_v44 }
 0x68a   : > { %5303 = vmatmul.mubr.msk.bf16.vlgmr.msra.gmra.mrb[40].mxu0 %vm3082_vm7, %v7761_v24  ;;  %5306 = vmatprep.subr.bf16.mxu1 %v6291_v25 }
 0x68b   : > { %5315 = vmatpush3.bf16.msra.mxu0 %v7711_v2  ;;  %5316 = vmatprep.mubr.msk.bf16.mxu0 %vm1672_vm9, %v7673_v0 }
 0x68c   : > { %5295 = vmatmul.mubr.msk.bf16.vlgmr.msra.gmra.mrb[44].mxu1 %vm3082_vm7, %v7764_v15  ;;  %5326 = vmatprep.subr.bf16.mxu0 %v7701_v30 }
 0x68d   : > { %5307 = vmatpush3.bf16.msra.mxu1 %v3714_v53  ;;  %5310 = vmatprep.mubr.msk.bf16.mxu1 %vm6292_vm6, %v6291_v25 }
 0x68e   : > { %5308 = vmatprep.subr.bf16.mxu1 %v6291_v25 }
 0x691   : > { %5309 = vmatpush3.bf16.msra.mxu1 %v3715_v49 }
 0x692   : > { %5317 = vmatmul.mubr.msk.bf16.vlgmr.msra.gmra.mrb[44].mxu0 %vm1672_vm9, %v7695_v38  ;;  %5320 = vmatprep.subr.bf16.mxu1 %v7683_v55 }
 0x693   : > { %5327 = vmatpush3.bf16.msra.mxu0 %v7701_v30  ;;  %5328 = vmatprep.mubr.msk.bf16.mxu0 %vm1672_vm9, %v7675_v14 }
 0x694   : > { %5311 = vmatmul.mubr.msk.bf16.vlgmr.msra.gmra.mrb[48].mxu1 %vm3082_vm7, %v7778_v11  ;;  %5340 = vmatprep.subr.bf16.mxu0 %v6291_v25 }
 0x695   : > { %5321 = vmatpush3.bf16.msra.mxu1 %v7683_v55  ;;  %5322 = vmatprep.mubr.msk.bf16.mxu1 %vm1672_vm9, %v7697_v63 }
 0x696   : > { %5332 = vmatprep.subr.bf16.mxu1 %v6291_v25 }
 0x69a   : > { %5329 = vmatmul.mubr.msk.bf16.vlgmr.msra.gmra.mrb[48].mxu0 %vm1672_vm9, %v7693_v4 }
 0x69b   : > { %5344 = vmatprep.mubr.msk.bf16.mxu0 %vm6292_vm6, %v6291_v25 }
 0x69c   : > { %5323 = vmatmul.mubr.msk.bf16.vlgmr.msra.gmra.mrb[52].mxu1 %vm1672_vm9, %v7717_v16 }
 0x69d   : > { %5336 = vmatprep.mubr.msk.bf16.mxu1 %vm6292_vm6, %v6291_v25 }
 0x75d   : > { %v3807_v0 = vpop.f32.mrb[40].mxu0 }
 0x75e   : > { %v5304_v14 = vpop.f32.mrb[41].mxu0 }
 0x75f   : > { %v3766_v55 = vpop.f32.mrb[44].mxu1  ;;  %v3810_v38 = vpop.f32.mrb[42].mxu0 }
 0x760   : > { %v5296_v30 = vpop.f32.mrb[45].mxu1  ;;  %v3855_v63 = vsub.f32 %v3766_v55, %v3807_v0  ;;  %v5305_v2 = vpop.f32.mrb[43].mxu0 }
 0x761   : > { %v3769_v61 = vpop.f32.mrb[46].mxu1 }
 0x762   : > { %v5297_v18 = vpop.f32.mrb[47].mxu1  ;;  %v3856_v54 = vsub.f32 %v3769_v61, %v3810_v38 }
 0x764   : > { %v7913_v4 = vpack.c.bf16 %v3856_v54, %v3855_v63 }
 0x765   : > { %v5318_v32 = vpop.f32.mrb[44].mxu0 }
 0x766   : > { %v3896_v37 = vpop.f32.mrb[45].mxu0 }
 0x767   : > { %v3848_v33 = vpop.f32.mrb[48].mxu1  ;;  %v5319_v46 = vpop.f32.mrb[46].mxu0 }
 0x768   : > { %v3857_v16 = vadd.f32 %v3848_v33, %v3766_v55  ;;  %v5312_v40 = vpop.f32.mrb[49].mxu1  ;;  %v3899_v56 = vpop.f32.mrb[47].mxu0 }
 0x769   : > { %v3851_v60 = vpop.f32.mrb[50].mxu1  ;;  %v5662_v40 = vld [vmem:[#allocation25] sm:$0xff]  }
 0x76a   : > { %v3858_v62 = vadd.f32 %v3851_v60, %v3769_v61  ;;  %v5313_v52 = vpop.f32.mrb[51].mxu1  ;;  %v5665_v60 = vld [vmem:[#allocation27 + $0x8] sm:$0xff]  }
 0x76c   : > { %v7915_v47 = vpack.c.bf16 %v3858_v62, %v3857_v16  ;;  %v5660_v16 = vld [vmem:[#allocation24] sm:$0xff]  }
 0x76d   : > { %v5330_v36 = vpop.f32.mrb[48].mxu0 }
 0x76e   : > { %v4015_v59 = vadd.f32 %v5330_v36, %v5318_v32  ;;  %v3994_v20 = vpop.f32.mrb[49].mxu0 }
 0x76f   : > { %v5324_v28 = vpop.f32.mrb[52].mxu1  ;;  %v4013_v23 = vadd.f32 %v3994_v20, %v3896_v37  ;;  %v5331_v42 = vpop.f32.mrb[50].mxu0 }
 0x770   : > { %v4011_v7 = vsub.f32 %v5318_v32, %v5324_v28  ;;  %v4023_v1 = vmul.f32 %v7729_v57, %v4015_v59  ;;  %v4037_v8 = vmul.f32 %v7727_v17, %v4015_v59  ;;  %v3945_v35 = vpop.f32.mrb[53].mxu1  ;;  %v4016_v10 = vadd.f32 %v5331_v42, %v5319_v46  ;;  %v3997_v43 = vpop.f32.mrb[51].mxu0 }
 0x771   : > { %v4009_v13 = vsub.f32 %v3896_v37, %v3945_v35  ;;  %v4021_v29 = vmul.f32 %v7731_v21, %v4013_v23  ;;  %v4035_v39 = vmul.f32 %v7733_v22, %v4013_v23  ;;  %v5325_v41 = vpop.f32.mrb[54].mxu1  ;;  %v4014_v31 = vadd.f32 %v3997_v43, %v3899_v56 }
 0x772   : > { %v4019_v45 = vmul.f32 %v7727_v17, %v4011_v7  ;;  %v4033_v49 = vmul.f32 %v7729_v57, %v4011_v7  ;;  %v4012_v58 = vsub.f32 %v5319_v46, %v5325_v41  ;;  %v4024_v34 = vmul.f32 %v7737_v48, %v4016_v10  ;;  %v3948_v51 = vpop.f32.mrb[55].mxu1 }
 0x773   : > { %v4017_v53 = vmul.f32 %v7733_v22, %v4009_v13  ;;  %v4031_v3 = vmul.f32 %v7731_v21, %v4009_v13  ;;  %v4038_v44 = vmul.f32 %v7735_v6, %v4016_v10  ;;  %v4010_v50 = vsub.f32 %v3899_v56, %v3948_v51 }
 0x774   : > { %v4027_v0 = vsub.f32 %v4019_v45, %v4023_v1  ;;  %v4041_v14 = vadd.f32 %v4037_v8, %v4033_v49  ;;  %v4020_v55 = vmul.f32 %v7735_v6, %v4012_v58  ;;  %v4034_v38 = vmul.f32 %v7737_v48, %v4012_v58 }
 0x775   : > { %v4025_v17 = vsub.f32 %v4017_v53, %v4021_v29  ;;  %v4039_v30 = vadd.f32 %v4035_v39, %v4031_v3  ;;  %v4018_v57 = vmul.f32 %v7741_v12, %v4010_v50  ;;  %v4032_v63 = vmul.f32 %v7739_v27, %v4010_v50 }
 0x776   : > { %v4028_v2 = vsub.f32 %v4020_v55, %v4024_v34  ;;  %v4042_v61 = vadd.f32 %v4038_v44, %v4034_v38  ;;  %v4022_v22 = vmul.f32 %v7739_v27, %v4014_v31  ;;  %v4036_v21 = vmul.f32 %v7741_v12, %v4014_v31  ;;  %v5661_v27 = vld [vmem:[#allocation24 + $0x8] sm:$0xff]  }
 0x777   : > { %v4188_v12 = vadd.bf16 %v7803_v26, %v7801_v19  ;;  %v4190_v56 = vadd.bf16 %v7915_v47, %v7913_v4 }
 0x778   : > { %v4030_v18 = vpack.c.bf16 %v4028_v2, %v4027_v0  ;;  %v4044_v54 = vpack.c.bf16 %v4042_v61, %v4041_v14  ;;  %v4026_v32 = vsub.f32 %v4018_v57, %v4022_v22  ;;  %v4040_v37 = vadd.f32 %v4036_v21, %v4032_v63 }
 0x77a   : > { %v4029_v33 = vpack.c.bf16 %v4026_v32, %v4025_v17  ;;  %v4043_v6 = vpack.c.bf16 %v4040_v37, %v4039_v30  ;;  %v4046_v46 = vadd.bf16 %v4044_v54, %v4030_v18 }
 0x77c   : > { %5341 = vmatpush3.bf16.msra.mxu0 %v4043_v6  ;;  %v4045_v48 = vadd.bf16 %v4043_v6, %v4029_v33 }
 0x77d   : > { %5342 = vmatprep.subr.bf16.mxu0 %v6291_v25 }
 0x77e   : > { %5333 = vmatpush3.bf16.msra.mxu1 %v4045_v48 }
 0x77f   : > { %5334 = vmatprep.subr.bf16.mxu1 %v6291_v25 }
 0x780   : > { %5343 = vmatpush3.bf16.msra.mxu0 %v4044_v54 }
 0x781   : > { %5356 = vmatprep.subr.bf16.mxu0 %v5660_v16 }
 0x782   : > { %5335 = vmatpush3.bf16.msra.mxu1 %v4046_v46 }
 0x783   : > { %5345 = vmatmul.mubr.msk.bf16.vlgmr.msra.gmra.mrb[52].mxu0 %vm3082_vm7, %v7761_v24  ;;  %5348 = vmatprep.subr.bf16.mxu1 %v6291_v25  ;;  %v4189_v24 = vadd.bf16 %v7859_v5, %v7857_v9 }
 0x784   : > { %5357 = vmatpush3.bf16.msra.mxu0 %v5660_v16  ;;  %5360 = vmatprep.mubr.msk.bf16.mxu0 %vm3082_vm7, %v4188_v12 }
 0x785   : > { %5337 = vmatmul.mubr.msk.bf16.vlgmr.msra.gmra.mrb[56].mxu1 %vm3082_vm7, %v7764_v15  ;;  %5358 = vmatprep.subr.bf16.mxu0 %v5661_v27  ;;  %v5663_v15 = vld [vmem:[#allocation25 + $0x8] sm:$0xff]  }
 0x786   : > { %5349 = vmatpush3.bf16.msra.mxu1 %v4029_v33  ;;  %5352 = vmatprep.mubr.msk.bf16.mxu1 %vm6292_vm6, %v6291_v25 }
 0x787   : > { %5350 = vmatprep.subr.bf16.mxu1 %v6291_v25  ;;  %v5664_v25 = vld [vmem:[#allocation27] sm:$0xff]  }
 0x788   : > { %5359 = vmatpush3.bf16.msra.mxu0 %v5661_v27 }
 0x789   : > { %5380 = vmatprep.subr.bf16.mxu0 %v5664_v25 }
 0x78a   : > { %5351 = vmatpush3.bf16.msra.mxu1 %v4030_v18 }
 0x78b   : > { %5361 = vmatmul.mubr.msk.bf16.vlgmr.msra.gmra.mrb[56].mxu0 %vm3082_vm7, %v4189_v24  ;;  %5368 = vmatprep.subr.bf16.mxu1 %v5662_v40 }
 0x78c   : > { %5364 = vmatprep.mubr.msk.bf16.mxu0 %vm3082_vm7, %v4190_v56  ;;  %5381 = vmatpush3.bf16.msra.mxu0 %v5664_v25 }
 0x78d   : > { %5353 = vmatmul.mubr.msk.bf16.vlgmr.msra.gmra.mrb[60].mxu1 %vm3082_vm7, %v7778_v11  ;;  %5382 = vmatprep.subr.bf16.mxu0 %v5665_v60 }
 0x78e   : > { %5369 = vmatpush3.bf16.msra.mxu1 %v5662_v40  ;;  %5372 = vmatprep.mubr.msk.bf16.mxu1 %vm3082_vm7, %v7803_v26 }
 0x78f   : > { %5370 = vmatprep.subr.bf16.mxu1 %v5663_v15 }
 0x790   : > { %5383 = vmatpush3.bf16.msra.mxu0 %v5665_v60 }
 0x792   : > { %5371 = vmatpush3.bf16.msra.mxu1 %v5663_v15 }
 0x795   : > { %5373 = vmatmul.mubr.msk.bf16.vlgmr.msra.gmra.mrb[64].mxu1 %vm3082_vm7, %v7859_v5 }
 0x796   : > { %5376 = vmatprep.mubr.msk.bf16.mxu1 %vm3082_vm7, %v7915_v47 }
 0x856   : > { %v4122_v62 = vpop.f32.mrb[52].mxu0 }
 0x857   : > { %v5346_v11 = vpop.f32.mrb[53].mxu0 }
 0x858   : > { %v4081_v52 = vpop.f32.mrb[56].mxu1  ;;  %v4125_v36 = vpop.f32.mrb[54].mxu0 }
 0x859   : > { %v4170_v59 = vsub.f32 %v4081_v52, %v4122_v62  ;;  %v5338_v26 = vpop.f32.mrb[57].mxu1  ;;  %v5347_v20 = vpop.f32.mrb[55].mxu0 }
 0x85a   : > { %v4084_v28 = vpop.f32.mrb[58].mxu1 }
 0x85b   : > { %v4171_v23 = vsub.f32 %v4084_v28, %v4125_v36  ;;  %v5339_v42 = vpop.f32.mrb[59].mxu1 }
 0x85d   : > { %v4174_v5 = vpack.c.bf16 %v4171_v23, %v4170_v59 }
 0x85e   : > { %v7960_v7 = vpop.f32.mrb[56].mxu0 }
 0x85f   : > { %v7962_v47 = vpop.f32.mrb[57].mxu0 }
 0x860   : > { %v4163_v1 = vpop.f32.mrb[60].mxu1  ;;  %v7964_v8 = vpop.f32.mrb[58].mxu0 }
 0x861   : > { %v4172_v35 = vadd.f32 %v4163_v1, %v4081_v52  ;;  %v5354_v10 = vpop.f32.mrb[61].mxu1  ;;  %v7966_v43 = vpop.f32.mrb[59].mxu0 }
 0x862   : > { %v4166_v13 = vpop.f32.mrb[62].mxu1 }
 0x863   : > { %v4173_v29 = vadd.f32 %v4166_v13, %v4084_v28  ;;  %v5355_v39 = vpop.f32.mrb[63].mxu1 }
 0x865   : > { %v4175_v41 = vpack.c.bf16 %v4173_v29, %v4172_v35 }
 0x867   : > { %v4191_v31 = vadd.bf16 %v4175_v41, %v4174_v5  ;;  %5377 = vmatmul.mubr.msk.bf16.gmra.mrb[68].mxu1 %vm3082_vm7, %v4175_v41 }
 0x868   : > { %v5374_v45 = vpop.f32.mrb[64].mxu1 }
 0x869   : > { %v4461_v49 = vsub.f32 %v7960_v7, %v5374_v45  ;;  %5365 = vmatmul.mubr.msk.bf16.gmra.mrb[60].mxu0 %vm3082_vm7, %v4191_v31  ;;  %v4339_v58 = vpop.f32.mrb[65].mxu1 }
 0x86a   : > { %v4459_v34 = vsub.f32 %v7962_v47, %v4339_v58  ;;  %v5375_v51 = vpop.f32.mrb[66].mxu1  ;;  %5384 = vmatprep.mubr.msk.bf16.mxu0 %vm3082_vm7, %v7801_v19 }
 0x86b   : > { %4480 = vst.msk [vmem:[%s817_s25 + $0x10] sm:$0xff] %vm1672_vm9, %v4461_v49  ;;  %v4462_v53 = vsub.f32 %v7964_v8, %v5375_v51  ;;  %v4342_v3 = vpop.f32.mrb[67].mxu1 }
 0x86c   : > { %4478 = vst.msk [vmem:[%s817_s25] sm:$0xff] %vm1672_vm9, %v4459_v34  ;;  %v4460_v44 = vsub.f32 %v7966_v43, %v4342_v3 }
 0x86d   : > { %4481 = vst.msk [vmem:[%s817_s25 + $0x18] sm:$0xff] %vm1672_vm9, %v4462_v53 }
 0x86e   : > { %4479 = vst.msk [vmem:[%s817_s25 + $0x8] sm:$0xff] %vm1672_vm9, %v4460_v44 }
 0x871   : > { %5385 = vmatmul.mubr.msk.bf16.vlgmr.msra.gmra.mrb[64].mxu0 %vm3082_vm7, %v7857_v9 }
 0x872   : > { %5388 = vmatprep.mubr.msk.bf16.mxu0 %vm3082_vm7, %v7913_v4 }
 0x879   : > { %5389 = vmatmul.mubr.msk.bf16.gmra.mrb[68].mxu0 %vm3082_vm7, %v4174_v5 }
 0x93a   : > { %v5378_v19 = vpop.f32.mrb[68].mxu1 }
 0x93b   : > { %v4355_v50 = vpop.f32.mrb[69].mxu1 }
 0x93c   : > { %v5366_v0 = vpop.f32.mrb[60].mxu0  ;;  %v5379_v14 = vpop.f32.mrb[70].mxu1 }
 0x93d   : > { %v4465_v55 = vsub.f32 %v5366_v0, %v5378_v19  ;;  %v4266_v38 = vpop.f32.mrb[61].mxu0  ;;  %v4358_v17 = vpop.f32.mrb[71].mxu1 }
 0x93e   : > { %v4463_v30 = vsub.f32 %v4266_v38, %v4355_v50  ;;  %v5367_v57 = vpop.f32.mrb[62].mxu0 }
 0x93f   : > { %4484 = vst.msk [vmem:[%s817_s25 + $0x30] sm:$0xff] %vm1672_vm9, %v4465_v55  ;;  %v4466_v9 = vsub.f32 %v5367_v57, %v5379_v14  ;;  %v4269_v4 = vpop.f32.mrb[63].mxu0 }
 0x940   : > { %4482 = vst.msk [vmem:[%s817_s25 + $0x20] sm:$0xff] %vm1672_vm9, %v4463_v30  ;;  %v4464_v63 = vsub.f32 %v4269_v4, %v4358_v17 }
 0x941   : > { %4485 = vst.msk [vmem:[%s817_s25 + $0x38] sm:$0xff] %vm1672_vm9, %v4466_v9 }
 0x942   : > { %4483 = vst.msk [vmem:[%s817_s25 + $0x28] sm:$0xff] %vm1672_vm9, %v4464_v63 }
 0x943   : > { %6135 = shalt.err (!%p6132_p8)
}
 0x944   : > { %s6136_s25 = scalar_lea.hbm %s7993_s22, 1024  ;;  %s6140_s2 = scalar_lea.hbm %s8189_s28, 2048 }
 0x945   : > { %p6137_p3 = scmp.ne.s32.totalorder %s7993_s22, %s6136_s25  ;;  %p6141_p13 = scmp.lt.u32.totalorder %s7993_s22, %s8189_s28 }
 0x946   : > { %p6142_p1 = scmp.lt.u32.totalorder %s6140_s2, %s6136_s25  ;;  %p6144_p2 = scmp.lt.u32.totalorder %s6136_s25, %s7993_s22 }
 0x947   : > { %p6138_p11 = pnand %p6137_p3, %p8190_p9 }
 0x948   : > { %p6143_p4 = por %p6142_p1, %p6141_p13 }
 0x949   : > { %p6139_p6 = pneg %p6138_p11 }
 0x94a   : > { %p6145_p10 = por %p6144_p2, %p6143_p4 }
 0x94c   : > { %p6146_p12 = pnand %p6145_p10, %p6139_p6 }
 0x94e   : > { %6149 = shalt.err (!%p6146_p12)
}
 0x94f   : > { %s8132_s17 = smov 128   ;;  %s8133_s30 = smov 8   ;;  %v5386_v2 = vpop.f32.mrb[64].mxu0 }
 0x950   : > { %s8191_s19 = scalar_lea.sflag [#allocation6], %s6833_s16  ;;  %v4469_v61 = vadd.f32 %v5386_v2, %v7960_v7  ;;  %v4428_v22 = vpop.f32.mrb[65].mxu0  ;;  %s824_s24 = scalar_lea.vmem [#allocation29], %s6836_s27 }
 0x951   : > { %5484 = dma.vmem_to_hbm [thread:$0]  (%p8190_p9), %s7995_s18, 1024, %s7993_s22, %s8191_s19, %s8132_s17, %s8132_s17, %s8133_s30   ;;  %v4467_v21 = vadd.f32 %v4428_v22, %v7962_v47  ;;  %v5387_v18 = vpop.f32.mrb[66].mxu0 }
 0x952   : > { %4488 = vst.msk [vmem:[%s824_s24 + $0x10] sm:$0xff] %vm1672_vm9, %v4469_v61  ;;  %v4470_v54 = vadd.f32 %v5387_v18, %v7964_v8  ;;  %v4431_v32 = vpop.f32.mrb[67].mxu0  ;;  %s4581_s27 = sshll.u32 %s824_s24, 4  ;;  %s8192_s18 = sshll.u32 %s8187_s3, 10  ;;  %s8045_s27 = int_to_ptr.vmem [resolvable:$true] %s4581_s27 }
 0x953   : > { %4486 = vst.msk [vmem:[%s824_s24] sm:$0xff] %vm1672_vm9, %v4467_v21  ;;  %v4468_v37 = vadd.f32 %v4431_v32, %v7966_v43  ;;  %v5390_v33 = vpop.f32.mrb[68].mxu0  ;;  %s8193_s23 = sld [smem:[#allocation53_spill]]  ;;  %s4552_s19 = scalar_lea.sflag [#allocation30], %s6833_s16 }
 0x954   : > { %4489 = vst.msk [vmem:[%s824_s24 + $0x18] sm:$0xff] %vm1672_vm9, %v4470_v54  ;;  %v4473_v6 = vadd.f32 %v5390_v33, %v5366_v0  ;;  %v4444_v46 = vpop.f32.mrb[69].mxu0  ;;  %s6150_s17 = scalar_lea.vmem %s8045_s27, 1024  ;;  %s6296_s3 = smov [#allocation29]  }
 0x955   : > { %4487 = vst.msk [vmem:[%s824_s24 + $0x8] sm:$0xff] %vm1672_vm9, %v4468_v37  ;;  %v4471_v48 = vadd.f32 %v4444_v46, %v4266_v38  ;;  %v5391_v16 = vpop.f32.mrb[70].mxu0  ;;  %p6151_p0 = scmp.ne.s32.totalorder %s8045_s27, %s6150_s17  ;;  %s6154_s30 = sshll.u32 %s6296_s3, 4  ;;  %s6155_s30 = int_to_ptr.vmem [resolvable:$false] %s6154_s30 }
 0x956   : > { %4492 = vst.msk [vmem:[%s824_s24 + $0x30] sm:$0xff] %vm1672_vm9, %v4473_v6  ;;  %v4474_v27 = vadd.f32 %v5391_v16, %v5367_v57  ;;  %v4447_v12 = vpop.f32.mrb[71].mxu0  ;;  %p6157_p8 = scmp.lt.s32.totalorder %s8045_s27, %s6155_s30 }
 0x957   : > { %4490 = vst.msk [vmem:[%s824_s24 + $0x20] sm:$0xff] %vm1672_vm9, %v4471_v48  ;;  %v4472_v40 = vadd.f32 %v4447_v12, %v4269_v4  ;;  %p6152_p7 = pnand %p6151_p0, %p8190_p9 }
 0x958   : > { %4493 = vst.msk [vmem:[%s824_s24 + $0x38] sm:$0xff] %vm1672_vm9, %v4474_v27 }
 0x959   : > { %s8194_s2 = smov %s8193_s23  ;;  %s8043_s29 = scalar_lea.hbm %s8193_s23, %s8192_s18  ;;  %4491 = vst.msk [vmem:[%s824_s24 + $0x28] sm:$0xff] %vm1672_vm9, %v4472_v40 }
 0x95a   : > { %p6153_p5 = pneg %p6152_p7  ;;  %s6156_s18 = scalar_lea.vmem %s6155_s30, 2048 }
 0x95b   : > { %p6158_p3 = scmp.lt.s32.totalorder %s6156_s18, %s6150_s17 }
 0x95d   : > { %p6159_p11 = por %p6158_p3, %p6157_p8 }
 0x95f   : > { %p6160_p6 = pnand %p6159_p11, %p6153_p5 }
 0x961   : > { %6163 = shalt.err (!%p6160_p6)
}
 0x962   : > { %s6164_s24 = scalar_lea.hbm %s8043_s29, 1024  ;;  %s6168_s23 = scalar_lea.hbm %s8194_s2, 2048 }
 0x963   : > { %p6165_p13 = scmp.ne.s32.totalorder %s8043_s29, %s6164_s24  ;;  %p6169_p2 = scmp.lt.u32.totalorder %s8043_s29, %s8194_s2 }
 0x964   : > { %p6170_p10 = scmp.lt.u32.totalorder %s6168_s23, %s6164_s24  ;;  %p6172_p0 = scmp.lt.u32.totalorder %s6164_s24, %s8043_s29 }
 0x965   : > { %p6166_p1 = pnand %p6165_p13, %p8190_p9 }
 0x966   : > { %p6171_p12 = por %p6170_p10, %p6169_p2 }
 0x967   : > { %p6167_p4 = pneg %p6166_p1 }
 0x968   : > { %p6173_p7 = por %p6172_p0, %p6171_p12 }
 0x96a   : > { %p6174_p5 = pnand %p6173_p7, %p6167_p4 }
 0x96c   : > { %6177 = shalt.err (!%p6174_p5)
}
 0x96d   : > { %s8195_s17 = smov 8   ;;  %s8196_s18 = smov 128  }
 0x96e   : > { %5485 = dma.vmem_to_hbm [thread:$0]  (%p8190_p9), %s8045_s27, 1024, %s8043_s29, %s4552_s19, %s8196_s18, %s8196_s18, %s8195_s17  }
 0x96f PF: > { %s8197_s22 = sld [smem:[#allocation41_spill]]  ;;  %p8198_p8 = scmp.ne.s32.totalorder %s8164_s20, 0 }
 0x970   : > { %p8199_p3 = scmp.ge.s32.totalorder %s6264_s26, 2 }
 0x972   : > { %p5536_p11 = pnand %p8199_p3, %p8198_p8 }
 0x975   : > { %s4596_s25 = sand.u32 1, %s8197_s22  }
 0x976   : > { %s4597_s24 = scalar_lea.sflag [#allocation6], %s4596_s25 }
 0x977   : > { %6235 = dma.done.wait (!%p5536_p11), %s4597_s24, 1024  }
 0x978   : > { %6237 = vsyncadd (!%p5536_p11), %s4597_s24, 4294966272  ;;  %s4606_s21 = scalar_lea.sflag [#allocation30], %s4596_s25 }
 0x979   : > { %6239 = dma.done.wait (!%p5536_p11), %s4606_s21, 1024  }
 0x97a   : > { %6241 = vsyncadd (!%p5536_p11), %s4606_s21, 4294966272  ;;  %s43_s26 = sadd.s32 1, %s6264_s26   ;;  %s8200_s21 = sld [smem:[#allocation42_spill]] }
 0x97b   : > { %p40_p6 = scmp.ge.s32.totalorder %s43_s26, 4   ;;  %s8201_s22 = sld [smem:[#allocation43_spill]] }
 0x97c   : > { %s8202_s24 = sld [smem:[#allocation45_spill]]  ;;  %s8203_s23 = smov %s6780_s1 }
 0x97d   : > { %s8204_s25 = smov %s8206_s0  ;;  %42 = sbr.rel (!%p40_p6) target bundleno = 22 (0x16), region = 218 }
 0x984   :  { %4611 = vsyncpa [#allocation5], 1 }
 0x985   :  { %4613 = vsyncpa [#allocation5 + $0x1], 1 }
 0x986   :  { %4614 = vsyncpa [#allocation8], 1 }
 0x987   :  { %4615 = vsyncpa [#allocation11], 1 }
 0x988   :  { %4616 = vsyncpa [#allocation14], 1 }
 0x989   :  { %4617 = vsyncpa [#allocation17], 1 }
 0x98a   :  { %4618 = vsyncpa [#allocation20], 1 }
 0x98b   :  { %4619 = vsyncpa [#allocation23], 1 }
 0x98c   :  { %4620 = vsyncpa [#allocation26], 1 }
 0x98d   :  { %4621 = vsyncpa [#allocation6], 1 }
 0x98e   :  { %4623 = vsyncpa [#allocation6 + $0x1], 1 }
 0x98f   :  { %4624 = vsyncpa [#allocation30], 1 }
 0x990   :  { %4626 = vsyncpa [#allocation30 + $0x1], 1 }

</bundles_post_ra>
